<compile_context>
chip_gen: v7x
topology: tpu7x:2x2x1
jax: 0.10.0
libtpu: 0.0.40
codegen_flags: <defaults>
</compile_context>

<pallas_src>
import jax
import jax.numpy as jnp
from jax import lax
from jax.experimental import pallas as pl
from jax.experimental.pallas import tpu as pltpu


# ----------------------------------------------------------------------------
# Static geometry (default SWD_CNN config, 3x32x32 input)
# ----------------------------------------------------------------------------
IN_C, IMG, KSZ = 3, 32, 5
C1, C2, NCLS = 6, 16, 10
POOL_OUT = 5                      # final 5x5 spatial map feeding the linear layer

# Column shifts on the 32-wide flattened grid (col = row*32 + w):
SHIFT1 = [IMG * ki + kj for ki in range(KSZ) for kj in range(KSZ)]           # conv1 taps (stride-1 grid)
POOL1 = [IMG * di + dj for di in range(2) for dj in range(2)]                # pool1: {0,1,32,33}
SHIFT2 = [2 * IMG * ki + 2 * kj for ki in range(KSZ) for kj in range(KSZ)]   # conv2 taps (stride-2 grid)
POOL2 = [2 * IMG * di + 2 * dj for di in range(2) for dj in range(2)]        # pool2: {0,2,64,66}
LIN_COLS = [4 * IMG * i + 4 * j for i in range(POOL_OUT) for j in range(POOL_OUT)]  # 128*i + 4*j

# Stage widths, derived backwards so every static slice is exactly in bounds.
L_FIN = max(LIN_COLS) + 1          # 529  pooled conv2 map
L_C2 = L_FIN + max(POOL2)          # 595  conv2 output
L_P1 = L_C2 + max(SHIFT2)          # 859  pooled conv1 map
L_C1 = L_P1 + max(POOL1)           # 892  conv1 output
assert L_C1 + max(SHIFT1) <= IMG * IMG   # 892 + 132 == 1024 -> no input padding needed

K1P = ((IN_C * KSZ * KSZ + 7) // 8) * 8   # 75 -> 80   (K padded to multiple of 8)
K2P = ((C1 * KSZ * KSZ + 7) // 8) * 8     # 150 -> 152


# ----------------------------------------------------------------------------
# Fused Pallas kernel: one batch element per grid step, everything in VMEM
# ----------------------------------------------------------------------------
def _swd_cnn_kernel(x_ref, w1_ref, b1_ref, w2_ref, b2_ref, wl_ref, bl_ref, o_ref):
    f32 = jnp.float32
    x = x_ref[0]                                            # (3, 1024) flattened image

    # ---- conv1: in-VMEM im2col (25 shifted views, K 75->80) + one MXU matmul
    p1 = jnp.concatenate(
        [x[:, s:s + L_C1] for s in SHIFT1]
        + [jnp.zeros((K1P - IN_C * KSZ * KSZ, L_C1), f32)], axis=0)      # (80, 892)
    y1 = jnp.dot(w1_ref[...], p1, preferred_element_type=f32) + b1_ref[...]
    y1 = jnp.maximum(y1, 0.0)                               # (6, 892), lane-dense

    # ---- 2x2/stride-2 max pool as max over 4 shifted views (stays on wide grid;
    #      valid pooled entries sit at columns 64*i + 2*j)
    m1 = y1[:, :L_P1]
    for d in POOL1[1:]:
        m1 = jnp.maximum(m1, y1[:, d:d + L_P1])             # (6, 859)

    # ---- conv2 on the subsampled grid (taps shift by 64*ki + 2*kj)
    p2 = jnp.concatenate(
        [m1[:, s:s + L_C2] for s in SHIFT2]
        + [jnp.zeros((K2P - C1 * KSZ * KSZ, L_C2), f32)], axis=0)        # (152, 595)
    y2 = jnp.dot(w2_ref[...], p2, preferred_element_type=f32) + b2_ref[...]
    y2 = jnp.maximum(y2, 0.0)                               # (16, 595)

    # ---- second 2x2 max pool (valid entries at columns 128*i + 4*j)
    m2 = y2[:, :L_FIN]
    for d in POOL2[1:]:
        m2 = jnp.maximum(m2, y2[:, d:d + L_FIN])            # (16, 529)

    # ---- linear: weights were pre-scattered onto the wide grid, so flatten +
    #      column-select happen inside 16 small matmuls (garbage cols hit zeros).
    out = bl_ref[...]                                       # (1, 10)
    for c in range(C2):
        out = out + jnp.dot(m2[c:c + 1, :], wl_ref[c], preferred_element_type=f32)
    o_ref[0] = out


# ----------------------------------------------------------------------------
# One-time weight repacking for the fused kernel (plain JAX, outside hot path)
# ----------------------------------------------------------------------------
def pack_params(p):
    w1 = p["conv1_w"]          # (6, 3, 5, 5)  OIHW
    w2 = p["conv_last_w"]      # (16, 6, 5, 5)
    lw = p["linear_w"]         # (10, 400), input index = c*25 + i*5 + j

    # conv weights -> (OC, K) with K ordered [(ki,kj) outer, c inner], K padded.
    w1p = w1.transpose(0, 2, 3, 1).reshape(C1, KSZ * KSZ * IN_C)
    w1p = jnp.pad(w1p, ((0, 0), (0, K1P - KSZ * KSZ * IN_C)))
    w2p = w2.transpose(0, 2, 3, 1).reshape(C2, KSZ * KSZ * C1)
    w2p = jnp.pad(w2p, ((0, 0), (0, K2P - KSZ * KSZ * C1)))

    # linear weight scattered onto the wide grid: wlw[c, 128*i+4*j, o] = lw[o, c*25+i*5+j]
    lw3 = lw.reshape(NCLS, C2, POOL_OUT, POOL_OUT).transpose(1, 2, 3, 0)
    lw3 = lw3.reshape(C2, POOL_OUT * POOL_OUT, NCLS)
    cols = jnp.asarray(LIN_COLS, jnp.int32)
    wlw = jnp.zeros((C2, L_FIN, NCLS), jnp.float32).at[:, cols, :].set(lw3)

    return dict(
        w1=w1p, b1=p["conv1_b"].reshape(C1, 1),
        w2=w2p, b2=p["conv_last_b"].reshape(C2, 1),
        wl=wlw, bl=p["linear_b"].reshape(1, NCLS),
    )


@jax.jit
def swd_cnn_forward(x, packed):
    B = x.shape[0]
    x_flat = x.reshape(B, IN_C, IMG * IMG)       # metadata-only reshape
    out = pl.pallas_call(
        _swd_cnn_kernel,
        out_shape=jax.ShapeDtypeStruct((B, 1, NCLS), jnp.float32),
        grid=(B,),
        in_specs=[
            pl.BlockSpec((1, IN_C, IMG * IMG), lambda b: (b, 0, 0)),
            pl.BlockSpec((C1, K1P), lambda b: (0, 0)),
            pl.BlockSpec((C1, 1), lambda b: (0, 0)),
            pl.BlockSpec((C2, K2P), lambda b: (0, 0)),
            pl.BlockSpec((C2, 1), lambda b: (0, 0)),
            pl.BlockSpec((C2, L_FIN, NCLS), lambda b: (0, 0, 0)),
            pl.BlockSpec((1, NCLS), lambda b: (0, 0)),
        ],
        out_specs=pl.BlockSpec((1, 1, NCLS), lambda b: (b, 0, 0)),
        compiler_params=pltpu.CompilerParams(
            dimension_semantics=("parallel",)),   # both samples -> both TCs on v7x
    )(x_flat, packed["w1"], packed["b1"], packed["w2"], packed["b2"],
      packed["wl"], packed["bl"])
    return out[:, 0, :]


# ----------------------------------------------------------------------------
# Deterministic parameter init (PyTorch-default-like uniform(-1/sqrt(fan_in), ..))
# ----------------------------------------------------------------------------
def init_params(key):
    def u(key, shape, fan_in):
        bound = 1.0 / jnp.sqrt(fan_in)
        return jax.random.uniform(key, shape, jnp.float32, -bound, bound)

    ks = jax.random.split(key, 6)
    return {
        "conv1_w": u(ks[0], (C1, IN_C, KSZ, KSZ), IN_C * KSZ * KSZ),
        "conv1_b": u(ks[1], (C1,), IN_C * KSZ * KSZ),
        "conv_last_w": u(ks[2], (C2, C1, KSZ, KSZ), C1 * KSZ * KSZ),
        "conv_last_b": u(ks[3], (C2,), C1 * KSZ * KSZ),
        "linear_w": u(ks[4], (NCLS, C2 * POOL_OUT * POOL_OUT), C2 * POOL_OUT * POOL_OUT),
        "linear_b": u(ks[5], (NCLS,), C2 * POOL_OUT * POOL_OUT),
    }


# ----------------------------------------------------------------------------
# Pure-JAX reference for verification
# ----------------------------------------------------------------------------
def reference_forward(x, p):
    dn = ("NCHW", "OIHW", "NCHW")

    def conv(x, w, b):
        y = lax.conv_general_dilated(x, w, (1, 1), "VALID", dimension_numbers=dn)
        return y + b[None, :, None, None]

    def pool(x):
        return lax.reduce_window(x, -jnp.inf, lax.max,
                                 (1, 1, 2, 2), (1, 1, 2, 2), "VALID")

    x = pool(jax.nn.relu(conv(x, p["conv1_w"], p["conv1_b"])))
    x = pool(jax.nn.relu(conv(x, p["conv_last_w"], p["conv_last_b"])))
    x = x.reshape(x.shape[0], -1)
    return x @ p["linear_w"].T + p["linear_b"]


if __name__ == "__main__":
    key = jax.random.PRNGKey(0)
    kx, kp = jax.random.split(key)
    # batch=2, CIFAR-like 3x32x32 input (required by linear_input_dim = 16*5*5)
    x = jax.random.normal(kx, (2, IN_C, IMG, IMG), jnp.float32)
    params = init_params(kp)
    packed = pack_params(params)

    out = jax.block_until_ready(swd_cnn_forward(x, packed))
    ref = jax.block_until_ready(reference_forward(x, params))

    assert out.shape == (2, NCLS), out.shape
    assert jnp.allclose(out, ref, rtol=1e-4, atol=1e-4), \
        f"max abs diff {jnp.max(jnp.abs(out - ref))}"
    print("KERNEL_OK")
</pallas_src>

<mosaic_0001>
module attributes {stable_mosaic.version = 11 : i64} {
  func.func @_swd_cnn_kernel(%arg0: i32, %arg1: memref<1x3x1024xf32, #tpu.memory_space<vmem>>, %arg2: memref<6x80xf32, #tpu.memory_space<vmem>>, %arg3: memref<6x1xf32, #tpu.memory_space<vmem>>, %arg4: memref<16x152xf32, #tpu.memory_space<vmem>>, %arg5: memref<16x1xf32, #tpu.memory_space<vmem>>, %arg6: memref<16x529x10xf32, #tpu.memory_space<vmem>>, %arg7: memref<1x10xf32, #tpu.memory_space<vmem>>, %arg8: memref<1x1x10xf32, #tpu.memory_space<vmem>>) attributes {dimension_semantics = [#tpu.dimension_semantics<parallel>], iteration_bounds = array<i64: 2>, scalar_prefetch = 0 : i64, scratch_operands = 0 : i64, tpu.core_type = #tpu.core_type<tc>, window_params = [{transform_indices = @transform_0, window_bounds = array<i64: 1, 3, 1024>}, {pipeline_mode = #tpu.pipeline_mode<synchronous>, transform_indices = @transform_1, window_bounds = array<i64: 6, 80>}, {pipeline_mode = #tpu.pipeline_mode<synchronous>, transform_indices = @transform_2, window_bounds = array<i64: 6, 1>}, {pipeline_mode = #tpu.pipeline_mode<synchronous>, transform_indices = @transform_3, window_bounds = array<i64: 16, 152>}, {pipeline_mode = #tpu.pipeline_mode<synchronous>, transform_indices = @transform_4, window_bounds = array<i64: 16, 1>}, {pipeline_mode = #tpu.pipeline_mode<synchronous>, transform_indices = @transform_5, window_bounds = array<i64: 16, 529, 10>}, {pipeline_mode = #tpu.pipeline_mode<synchronous>, transform_indices = @transform_6, window_bounds = array<i64: 1, 10>}, {transform_indices = @transform_7, window_bounds = array<i64: 1, 1, 10>}]} {
    %c0 = arith.constant 0 : index
    %c0_0 = arith.constant 0 : index
    %c0_1 = arith.constant 0 : index
    %0 = vector.load %arg1[%c0, %c0_0, %c0_1] : memref<1x3x1024xf32, #tpu.memory_space<vmem>>, vector<1x3x1024xf32>
    %1 = vector.shape_cast %0 : vector<1x3x1024xf32> to vector<3x1024xf32>
    %2 = vector.extract_strided_slice %1 {offsets = [0, 0], sizes = [3, 892], strides = [1, 1]} : vector<3x1024xf32> to vector<3x892xf32>
    %3 = vector.extract_strided_slice %1 {offsets = [0, 1], sizes = [3, 892], strides = [1, 1]} : vector<3x1024xf32> to vector<3x892xf32>
    %4 = vector.extract_strided_slice %1 {offsets = [0, 2], sizes = [3, 892], strides = [1, 1]} : vector<3x1024xf32> to vector<3x892xf32>
    %5 = vector.extract_strided_slice %1 {offsets = [0, 3], sizes = [3, 892], strides = [1, 1]} : vector<3x1024xf32> to vector<3x892xf32>
    %6 = vector.extract_strided_slice %1 {offsets = [0, 4], sizes = [3, 892], strides = [1, 1]} : vector<3x1024xf32> to vector<3x892xf32>
    %7 = vector.extract_strided_slice %1 {offsets = [0, 32], sizes = [3, 892], strides = [1, 1]} : vector<3x1024xf32> to vector<3x892xf32>
    %8 = vector.extract_strided_slice %1 {offsets = [0, 33], sizes = [3, 892], strides = [1, 1]} : vector<3x1024xf32> to vector<3x892xf32>
    %9 = vector.extract_strided_slice %1 {offsets = [0, 34], sizes = [3, 892], strides = [1, 1]} : vector<3x1024xf32> to vector<3x892xf32>
    %10 = vector.extract_strided_slice %1 {offsets = [0, 35], sizes = [3, 892], strides = [1, 1]} : vector<3x1024xf32> to vector<3x892xf32>
    %11 = vector.extract_strided_slice %1 {offsets = [0, 36], sizes = [3, 892], strides = [1, 1]} : vector<3x1024xf32> to vector<3x892xf32>
    %12 = vector.extract_strided_slice %1 {offsets = [0, 64], sizes = [3, 892], strides = [1, 1]} : vector<3x1024xf32> to vector<3x892xf32>
    %13 = vector.extract_strided_slice %1 {offsets = [0, 65], sizes = [3, 892], strides = [1, 1]} : vector<3x1024xf32> to vector<3x892xf32>
    %14 = vector.extract_strided_slice %1 {offsets = [0, 66], sizes = [3, 892], strides = [1, 1]} : vector<3x1024xf32> to vector<3x892xf32>
    %15 = vector.extract_strided_slice %1 {offsets = [0, 67], sizes = [3, 892], strides = [1, 1]} : vector<3x1024xf32> to vector<3x892xf32>
    %16 = vector.extract_strided_slice %1 {offsets = [0, 68], sizes = [3, 892], strides = [1, 1]} : vector<3x1024xf32> to vector<3x892xf32>
    %17 = vector.extract_strided_slice %1 {offsets = [0, 96], sizes = [3, 892], strides = [1, 1]} : vector<3x1024xf32> to vector<3x892xf32>
    %18 = vector.extract_strided_slice %1 {offsets = [0, 97], sizes = [3, 892], strides = [1, 1]} : vector<3x1024xf32> to vector<3x892xf32>
    %19 = vector.extract_strided_slice %1 {offsets = [0, 98], sizes = [3, 892], strides = [1, 1]} : vector<3x1024xf32> to vector<3x892xf32>
    %20 = vector.extract_strided_slice %1 {offsets = [0, 99], sizes = [3, 892], strides = [1, 1]} : vector<3x1024xf32> to vector<3x892xf32>
    %21 = vector.extract_strided_slice %1 {offsets = [0, 100], sizes = [3, 892], strides = [1, 1]} : vector<3x1024xf32> to vector<3x892xf32>
    %22 = vector.extract_strided_slice %1 {offsets = [0, 128], sizes = [3, 892], strides = [1, 1]} : vector<3x1024xf32> to vector<3x892xf32>
    %23 = vector.extract_strided_slice %1 {offsets = [0, 129], sizes = [3, 892], strides = [1, 1]} : vector<3x1024xf32> to vector<3x892xf32>
    %24 = vector.extract_strided_slice %1 {offsets = [0, 130], sizes = [3, 892], strides = [1, 1]} : vector<3x1024xf32> to vector<3x892xf32>
    %25 = vector.extract_strided_slice %1 {offsets = [0, 131], sizes = [3, 892], strides = [1, 1]} : vector<3x1024xf32> to vector<3x892xf32>
    %26 = vector.extract_strided_slice %1 {offsets = [0, 132], sizes = [3, 892], strides = [1, 1]} : vector<3x1024xf32> to vector<3x892xf32>
    %cst = arith.constant 0.000000e+00 : f32
    %27 = vector.broadcast %cst : f32 to vector<5x892xf32>
    %28 = tpu.concatenate %2, %3, %4, %5, %6, %7, %8, %9, %10, %11, %12, %13, %14, %15, %16, %17 in 0 : vector<3x892xf32>, vector<3x892xf32>, vector<3x892xf32>, vector<3x892xf32>, vector<3x892xf32>, vector<3x892xf32>, vector<3x892xf32>, vector<3x892xf32>, vector<3x892xf32>, vector<3x892xf32>, vector<3x892xf32>, vector<3x892xf32>, vector<3x892xf32>, vector<3x892xf32>, vector<3x892xf32>, vector<3x892xf32> -> vector<48x892xf32>
    %29 = tpu.concatenate %18, %19, %20, %21, %22, %23, %24, %25, %26, %27 in 0 : vector<3x892xf32>, vector<3x892xf32>, vector<3x892xf32>, vector<3x892xf32>, vector<3x892xf32>, vector<3x892xf32>, vector<3x892xf32>, vector<3x892xf32>, vector<3x892xf32>, vector<5x892xf32> -> vector<32x892xf32>
    %30 = tpu.concatenate %28, %29 in 0 : vector<48x892xf32>, vector<32x892xf32> -> vector<80x892xf32>
    %c0_2 = arith.constant 0 : index
    %c0_3 = arith.constant 0 : index
    %31 = vector.load %arg2[%c0_2, %c0_3] : memref<6x80xf32, #tpu.memory_space<vmem>>, vector<6x80xf32>
    %cst_4 = arith.constant dense<0.000000e+00> : vector<6x892xf32>
    %32 = tpu.matmul %31, %30, %cst_4 {dimension_numbers = #tpu.dot_dimension_numbers<[1], [0], [0], [1], [0, 0, 1, 1], [], []>} : vector<6x80xf32>, vector<80x892xf32>, vector<6x892xf32> -> vector<6x892xf32>
    %c0_5 = arith.constant 0 : index
    %c0_6 = arith.constant 0 : index
    %33 = vector.load %arg3[%c0_5, %c0_6] : memref<6x1xf32, #tpu.memory_space<vmem>>, vector<6x1xf32>
    %34 = vector.broadcast %33 : vector<6x1xf32> to vector<6x892xf32>
    %35 = arith.addf %32, %34 : vector<6x892xf32>
    %cst_7 = arith.constant 0.000000e+00 : f32
    %36 = vector.broadcast %cst_7 : f32 to vector<6x892xf32>
    %37 = arith.maximumf %35, %36 : vector<6x892xf32>
    %38 = vector.extract_strided_slice %37 {offsets = [0, 0], sizes = [6, 859], strides = [1, 1]} : vector<6x892xf32> to vector<6x859xf32>
    %39 = vector.extract_strided_slice %37 {offsets = [0, 1], sizes = [6, 859], strides = [1, 1]} : vector<6x892xf32> to vector<6x859xf32>
    %40 = arith.maximumf %38, %39 : vector<6x859xf32>
    %41 = vector.extract_strided_slice %37 {offsets = [0, 32], sizes = [6, 859], strides = [1, 1]} : vector<6x892xf32> to vector<6x859xf32>
    %42 = arith.maximumf %40, %41 : vector<6x859xf32>
    %43 = vector.extract_strided_slice %37 {offsets = [0, 33], sizes = [6, 859], strides = [1, 1]} : vector<6x892xf32> to vector<6x859xf32>
    %44 = arith.maximumf %42, %43 : vector<6x859xf32>
    %45 = vector.extract_strided_slice %44 {offsets = [0, 0], sizes = [6, 595], strides = [1, 1]} : vector<6x859xf32> to vector<6x595xf32>
    %46 = vector.extract_strided_slice %44 {offsets = [0, 2], sizes = [6, 595], strides = [1, 1]} : vector<6x859xf32> to vector<6x595xf32>
    %47 = vector.extract_strided_slice %44 {offsets = [0, 4], sizes = [6, 595], strides = [1, 1]} : vector<6x859xf32> to vector<6x595xf32>
    %48 = vector.extract_strided_slice %44 {offsets = [0, 6], sizes = [6, 595], strides = [1, 1]} : vector<6x859xf32> to vector<6x595xf32>
    %49 = vector.extract_strided_slice %44 {offsets = [0, 8], sizes = [6, 595], strides = [1, 1]} : vector<6x859xf32> to vector<6x595xf32>
    %50 = vector.extract_strided_slice %44 {offsets = [0, 64], sizes = [6, 595], strides = [1, 1]} : vector<6x859xf32> to vector<6x595xf32>
    %51 = vector.extract_strided_slice %44 {offsets = [0, 66], sizes = [6, 595], strides = [1, 1]} : vector<6x859xf32> to vector<6x595xf32>
    %52 = vector.extract_strided_slice %44 {offsets = [0, 68], sizes = [6, 595], strides = [1, 1]} : vector<6x859xf32> to vector<6x595xf32>
    %53 = vector.extract_strided_slice %44 {offsets = [0, 70], sizes = [6, 595], strides = [1, 1]} : vector<6x859xf32> to vector<6x595xf32>
    %54 = vector.extract_strided_slice %44 {offsets = [0, 72], sizes = [6, 595], strides = [1, 1]} : vector<6x859xf32> to vector<6x595xf32>
    %55 = vector.extract_strided_slice %44 {offsets = [0, 128], sizes = [6, 595], strides = [1, 1]} : vector<6x859xf32> to vector<6x595xf32>
    %56 = vector.extract_strided_slice %44 {offsets = [0, 130], sizes = [6, 595], strides = [1, 1]} : vector<6x859xf32> to vector<6x595xf32>
    %57 = vector.extract_strided_slice %44 {offsets = [0, 132], sizes = [6, 595], strides = [1, 1]} : vector<6x859xf32> to vector<6x595xf32>
    %58 = vector.extract_strided_slice %44 {offsets = [0, 134], sizes = [6, 595], strides = [1, 1]} : vector<6x859xf32> to vector<6x595xf32>
    %59 = vector.extract_strided_slice %44 {offsets = [0, 136], sizes = [6, 595], strides = [1, 1]} : vector<6x859xf32> to vector<6x595xf32>
    %60 = vector.extract_strided_slice %44 {offsets = [0, 192], sizes = [6, 595], strides = [1, 1]} : vector<6x859xf32> to vector<6x595xf32>
    %61 = vector.extract_strided_slice %44 {offsets = [0, 194], sizes = [6, 595], strides = [1, 1]} : vector<6x859xf32> to vector<6x595xf32>
    %62 = vector.extract_strided_slice %44 {offsets = [0, 196], sizes = [6, 595], strides = [1, 1]} : vector<6x859xf32> to vector<6x595xf32>
    %63 = vector.extract_strided_slice %44 {offsets = [0, 198], sizes = [6, 595], strides = [1, 1]} : vector<6x859xf32> to vector<6x595xf32>
    %64 = vector.extract_strided_slice %44 {offsets = [0, 200], sizes = [6, 595], strides = [1, 1]} : vector<6x859xf32> to vector<6x595xf32>
    %65 = vector.extract_strided_slice %44 {offsets = [0, 256], sizes = [6, 595], strides = [1, 1]} : vector<6x859xf32> to vector<6x595xf32>
    %66 = vector.extract_strided_slice %44 {offsets = [0, 258], sizes = [6, 595], strides = [1, 1]} : vector<6x859xf32> to vector<6x595xf32>
    %67 = vector.extract_strided_slice %44 {offsets = [0, 260], sizes = [6, 595], strides = [1, 1]} : vector<6x859xf32> to vector<6x595xf32>
    %68 = vector.extract_strided_slice %44 {offsets = [0, 262], sizes = [6, 595], strides = [1, 1]} : vector<6x859xf32> to vector<6x595xf32>
    %69 = vector.extract_strided_slice %44 {offsets = [0, 264], sizes = [6, 595], strides = [1, 1]} : vector<6x859xf32> to vector<6x595xf32>
    %cst_8 = arith.constant 0.000000e+00 : f32
    %70 = vector.broadcast %cst_8 : f32 to vector<2x595xf32>
    %71 = tpu.concatenate %45, %46, %47, %48, %49, %50, %51, %52, %53, %54, %55, %56, %57, %58, %59, %60 in 0 : vector<6x595xf32>, vector<6x595xf32>, vector<6x595xf32>, vector<6x595xf32>, vector<6x595xf32>, vector<6x595xf32>, vector<6x595xf32>, vector<6x595xf32>, vector<6x595xf32>, vector<6x595xf32>, vector<6x595xf32>, vector<6x595xf32>, vector<6x595xf32>, vector<6x595xf32>, vector<6x595xf32>, vector<6x595xf32> -> vector<96x595xf32>
    %72 = tpu.concatenate %61, %62, %63, %64, %65, %66, %67, %68, %69, %70 in 0 : vector<6x595xf32>, vector<6x595xf32>, vector<6x595xf32>, vector<6x595xf32>, vector<6x595xf32>, vector<6x595xf32>, vector<6x595xf32>, vector<6x595xf32>, vector<6x595xf32>, vector<2x595xf32> -> vector<56x595xf32>
    %73 = tpu.concatenate %71, %72 in 0 : vector<96x595xf32>, vector<56x595xf32> -> vector<152x595xf32>
    %c0_9 = arith.constant 0 : index
    %c0_10 = arith.constant 0 : index
    %74 = vector.load %arg4[%c0_9, %c0_10] : memref<16x152xf32, #tpu.memory_space<vmem>>, vector<16x152xf32>
    %cst_11 = arith.constant dense<0.000000e+00> : vector<16x595xf32>
    %75 = tpu.matmul %74, %73, %cst_11 {dimension_numbers = #tpu.dot_dimension_numbers<[1], [0], [0], [1], [0, 0, 1, 1], [], []>} : vector<16x152xf32>, vector<152x595xf32>, vector<16x595xf32> -> vector<16x595xf32>
    %c0_12 = arith.constant 0 : index
    %c0_13 = arith.constant 0 : index
    %76 = vector.load %arg5[%c0_12, %c0_13] : memref<16x1xf32, #tpu.memory_space<vmem>>, vector<16x1xf32>
    %77 = vector.broadcast %76 : vector<16x1xf32> to vector<16x595xf32>
    %78 = arith.addf %75, %77 : vector<16x595xf32>
    %cst_14 = arith.constant 0.000000e+00 : f32
    %79 = vector.broadcast %cst_14 : f32 to vector<16x595xf32>
    %80 = arith.maximumf %78, %79 : vector<16x595xf32>
    %81 = vector.extract_strided_slice %80 {offsets = [0, 0], sizes = [16, 529], strides = [1, 1]} : vector<16x595xf32> to vector<16x529xf32>
    %82 = vector.extract_strided_slice %80 {offsets = [0, 2], sizes = [16, 529], strides = [1, 1]} : vector<16x595xf32> to vector<16x529xf32>
    %83 = arith.maximumf %81, %82 : vector<16x529xf32>
    %84 = vector.extract_strided_slice %80 {offsets = [0, 64], sizes = [16, 529], strides = [1, 1]} : vector<16x595xf32> to vector<16x529xf32>
    %85 = arith.maximumf %83, %84 : vector<16x529xf32>
    %86 = vector.extract_strided_slice %80 {offsets = [0, 66], sizes = [16, 529], strides = [1, 1]} : vector<16x595xf32> to vector<16x529xf32>
    %87 = arith.maximumf %85, %86 : vector<16x529xf32>
    %c0_15 = arith.constant 0 : index
    %c0_16 = arith.constant 0 : index
    %88 = vector.load %arg7[%c0_15, %c0_16] : memref<1x10xf32, #tpu.memory_space<vmem>>, vector<1x10xf32>
    %89 = vector.extract_strided_slice %87 {offsets = [0, 0], sizes = [1, 529], strides = [1, 1]} : vector<16x529xf32> to vector<1x529xf32>
    %c0_17 = arith.constant 0 : index
    %c0_18 = arith.constant 0 : index
    %c0_19 = arith.constant 0 : index
    %90 = vector.load %arg6[%c0_17, %c0_18, %c0_19] : memref<16x529x10xf32, #tpu.memory_space<vmem>>, vector<1x529x10xf32>
    %91 = vector.shape_cast %90 : vector<1x529x10xf32> to vector<529x10xf32>
    %cst_20 = arith.constant dense<0.000000e+00> : vector<1x10xf32>
    %92 = tpu.matmul %89, %91, %cst_20 {dimension_numbers = #tpu.dot_dimension_numbers<[1], [0], [0], [1], [0, 0, 1, 1], [], []>} : vector<1x529xf32>, vector<529x10xf32>, vector<1x10xf32> -> vector<1x10xf32>
    %93 = arith.addf %88, %92 : vector<1x10xf32>
    %94 = vector.extract_strided_slice %87 {offsets = [1, 0], sizes = [1, 529], strides = [1, 1]} : vector<16x529xf32> to vector<1x529xf32>
    %c1 = arith.constant 1 : index
    %c0_21 = arith.constant 0 : index
    %c0_22 = arith.constant 0 : index
    %95 = vector.load %arg6[%c1, %c0_21, %c0_22] : memref<16x529x10xf32, #tpu.memory_space<vmem>>, vector<1x529x10xf32>
    %96 = vector.shape_cast %95 : vector<1x529x10xf32> to vector<529x10xf32>
    %cst_23 = arith.constant dense<0.000000e+00> : vector<1x10xf32>
    %97 = tpu.matmul %94, %96, %cst_23 {dimension_numbers = #tpu.dot_dimension_numbers<[1], [0], [0], [1], [0, 0, 1, 1], [], []>} : vector<1x529xf32>, vector<529x10xf32>, vector<1x10xf32> -> vector<1x10xf32>
    %98 = arith.addf %93, %97 : vector<1x10xf32>
    %99 = vector.extract_strided_slice %87 {offsets = [2, 0], sizes = [1, 529], strides = [1, 1]} : vector<16x529xf32> to vector<1x529xf32>
    %c2 = arith.constant 2 : index
    %c0_24 = arith.constant 0 : index
    %c0_25 = arith.constant 0 : index
    %100 = vector.load %arg6[%c2, %c0_24, %c0_25] : memref<16x529x10xf32, #tpu.memory_space<vmem>>, vector<1x529x10xf32>
    %101 = vector.shape_cast %100 : vector<1x529x10xf32> to vector<529x10xf32>
    %cst_26 = arith.constant dense<0.000000e+00> : vector<1x10xf32>
    %102 = tpu.matmul %99, %101, %cst_26 {dimension_numbers = #tpu.dot_dimension_numbers<[1], [0], [0], [1], [0, 0, 1, 1], [], []>} : vector<1x529xf32>, vector<529x10xf32>, vector<1x10xf32> -> vector<1x10xf32>
    %103 = arith.addf %98, %102 : vector<1x10xf32>
    %104 = vector.extract_strided_slice %87 {offsets = [3, 0], sizes = [1, 529], strides = [1, 1]} : vector<16x529xf32> to vector<1x529xf32>
    %c3 = arith.constant 3 : index
    %c0_27 = arith.constant 0 : index
    %c0_28 = arith.constant 0 : index
    %105 = vector.load %arg6[%c3, %c0_27, %c0_28] : memref<16x529x10xf32, #tpu.memory_space<vmem>>, vector<1x529x10xf32>
    %106 = vector.shape_cast %105 : vector<1x529x10xf32> to vector<529x10xf32>
    %cst_29 = arith.constant dense<0.000000e+00> : vector<1x10xf32>
    %107 = tpu.matmul %104, %106, %cst_29 {dimension_numbers = #tpu.dot_dimension_numbers<[1], [0], [0], [1], [0, 0, 1, 1], [], []>} : vector<1x529xf32>, vector<529x10xf32>, vector<1x10xf32> -> vector<1x10xf32>
    %108 = arith.addf %103, %107 : vector<1x10xf32>
    %109 = vector.extract_strided_slice %87 {offsets = [4, 0], sizes = [1, 529], strides = [1, 1]} : vector<16x529xf32> to vector<1x529xf32>
    %c4 = arith.constant 4 : index
    %c0_30 = arith.constant 0 : index
    %c0_31 = arith.constant 0 : index
    %110 = vector.load %arg6[%c4, %c0_30, %c0_31] : memref<16x529x10xf32, #tpu.memory_space<vmem>>, vector<1x529x10xf32>
    %111 = vector.shape_cast %110 : vector<1x529x10xf32> to vector<529x10xf32>
    %cst_32 = arith.constant dense<0.000000e+00> : vector<1x10xf32>
    %112 = tpu.matmul %109, %111, %cst_32 {dimension_numbers = #tpu.dot_dimension_numbers<[1], [0], [0], [1], [0, 0, 1, 1], [], []>} : vector<1x529xf32>, vector<529x10xf32>, vector<1x10xf32> -> vector<1x10xf32>
    %113 = arith.addf %108, %112 : vector<1x10xf32>
    %114 = vector.extract_strided_slice %87 {offsets = [5, 0], sizes = [1, 529], strides = [1, 1]} : vector<16x529xf32> to vector<1x529xf32>
    %c5 = arith.constant 5 : index
    %c0_33 = arith.constant 0 : index
    %c0_34 = arith.constant 0 : index
    %115 = vector.load %arg6[%c5, %c0_33, %c0_34] : memref<16x529x10xf32, #tpu.memory_space<vmem>>, vector<1x529x10xf32>
    %116 = vector.shape_cast %115 : vector<1x529x10xf32> to vector<529x10xf32>
    %cst_35 = arith.constant dense<0.000000e+00> : vector<1x10xf32>
    %117 = tpu.matmul %114, %116, %cst_35 {dimension_numbers = #tpu.dot_dimension_numbers<[1], [0], [0], [1], [0, 0, 1, 1], [], []>} : vector<1x529xf32>, vector<529x10xf32>, vector<1x10xf32> -> vector<1x10xf32>
    %118 = arith.addf %113, %117 : vector<1x10xf32>
    %119 = vector.extract_strided_slice %87 {offsets = [6, 0], sizes = [1, 529], strides = [1, 1]} : vector<16x529xf32> to vector<1x529xf32>
    %c6 = arith.constant 6 : index
    %c0_36 = arith.constant 0 : index
    %c0_37 = arith.constant 0 : index
    %120 = vector.load %arg6[%c6, %c0_36, %c0_37] : memref<16x529x10xf32, #tpu.memory_space<vmem>>, vector<1x529x10xf32>
    %121 = vector.shape_cast %120 : vector<1x529x10xf32> to vector<529x10xf32>
    %cst_38 = arith.constant dense<0.000000e+00> : vector<1x10xf32>
    %122 = tpu.matmul %119, %121, %cst_38 {dimension_numbers = #tpu.dot_dimension_numbers<[1], [0], [0], [1], [0, 0, 1, 1], [], []>} : vector<1x529xf32>, vector<529x10xf32>, vector<1x10xf32> -> vector<1x10xf32>
    %123 = arith.addf %118, %122 : vector<1x10xf32>
    %124 = vector.extract_strided_slice %87 {offsets = [7, 0], sizes = [1, 529], strides = [1, 1]} : vector<16x529xf32> to vector<1x529xf32>
    %c7 = arith.constant 7 : index
    %c0_39 = arith.constant 0 : index
    %c0_40 = arith.constant 0 : index
    %125 = vector.load %arg6[%c7, %c0_39, %c0_40] : memref<16x529x10xf32, #tpu.memory_space<vmem>>, vector<1x529x10xf32>
    %126 = vector.shape_cast %125 : vector<1x529x10xf32> to vector<529x10xf32>
    %cst_41 = arith.constant dense<0.000000e+00> : vector<1x10xf32>
    %127 = tpu.matmul %124, %126, %cst_41 {dimension_numbers = #tpu.dot_dimension_numbers<[1], [0], [0], [1], [0, 0, 1, 1], [], []>} : vector<1x529xf32>, vector<529x10xf32>, vector<1x10xf32> -> vector<1x10xf32>
    %128 = arith.addf %123, %127 : vector<1x10xf32>
    %129 = vector.extract_strided_slice %87 {offsets = [8, 0], sizes = [1, 529], strides = [1, 1]} : vector<16x529xf32> to vector<1x529xf32>
    %c8 = arith.constant 8 : index
    %c0_42 = arith.constant 0 : index
    %c0_43 = arith.constant 0 : index
    %130 = vector.load %arg6[%c8, %c0_42, %c0_43] : memref<16x529x10xf32, #tpu.memory_space<vmem>>, vector<1x529x10xf32>
    %131 = vector.shape_cast %130 : vector<1x529x10xf32> to vector<529x10xf32>
    %cst_44 = arith.constant dense<0.000000e+00> : vector<1x10xf32>
    %132 = tpu.matmul %129, %131, %cst_44 {dimension_numbers = #tpu.dot_dimension_numbers<[1], [0], [0], [1], [0, 0, 1, 1], [], []>} : vector<1x529xf32>, vector<529x10xf32>, vector<1x10xf32> -> vector<1x10xf32>
    %133 = arith.addf %128, %132 : vector<1x10xf32>
    %134 = vector.extract_strided_slice %87 {offsets = [9, 0], sizes = [1, 529], strides = [1, 1]} : vector<16x529xf32> to vector<1x529xf32>
    %c9 = arith.constant 9 : index
    %c0_45 = arith.constant 0 : index
    %c0_46 = arith.constant 0 : index
    %135 = vector.load %arg6[%c9, %c0_45, %c0_46] : memref<16x529x10xf32, #tpu.memory_space<vmem>>, vector<1x529x10xf32>
    %136 = vector.shape_cast %135 : vector<1x529x10xf32> to vector<529x10xf32>
    %cst_47 = arith.constant dense<0.000000e+00> : vector<1x10xf32>
    %137 = tpu.matmul %134, %136, %cst_47 {dimension_numbers = #tpu.dot_dimension_numbers<[1], [0], [0], [1], [0, 0, 1, 1], [], []>} : vector<1x529xf32>, vector<529x10xf32>, vector<1x10xf32> -> vector<1x10xf32>
    %138 = arith.addf %133, %137 : vector<1x10xf32>
    %139 = vector.extract_strided_slice %87 {offsets = [10, 0], sizes = [1, 529], strides = [1, 1]} : vector<16x529xf32> to vector<1x529xf32>
    %c10 = arith.constant 10 : index
    %c0_48 = arith.constant 0 : index
    %c0_49 = arith.constant 0 : index
    %140 = vector.load %arg6[%c10, %c0_48, %c0_49] : memref<16x529x10xf32, #tpu.memory_space<vmem>>, vector<1x529x10xf32>
    %141 = vector.shape_cast %140 : vector<1x529x10xf32> to vector<529x10xf32>
    %cst_50 = arith.constant dense<0.000000e+00> : vector<1x10xf32>
    %142 = tpu.matmul %139, %141, %cst_50 {dimension_numbers = #tpu.dot_dimension_numbers<[1], [0], [0], [1], [0, 0, 1, 1], [], []>} : vector<1x529xf32>, vector<529x10xf32>, vector<1x10xf32> -> vector<1x10xf32>
    %143 = arith.addf %138, %142 : vector<1x10xf32>
    %144 = vector.extract_strided_slice %87 {offsets = [11, 0], sizes = [1, 529], strides = [1, 1]} : vector<16x529xf32> to vector<1x529xf32>
    %c11 = arith.constant 11 : index
    %c0_51 = arith.constant 0 : index
    %c0_52 = arith.constant 0 : index
    %145 = vector.load %arg6[%c11, %c0_51, %c0_52] : memref<16x529x10xf32, #tpu.memory_space<vmem>>, vector<1x529x10xf32>
    %146 = vector.shape_cast %145 : vector<1x529x10xf32> to vector<529x10xf32>
    %cst_53 = arith.constant dense<0.000000e+00> : vector<1x10xf32>
    %147 = tpu.matmul %144, %146, %cst_53 {dimension_numbers = #tpu.dot_dimension_numbers<[1], [0], [0], [1], [0, 0, 1, 1], [], []>} : vector<1x529xf32>, vector<529x10xf32>, vector<1x10xf32> -> vector<1x10xf32>
    %148 = arith.addf %143, %147 : vector<1x10xf32>
    %149 = vector.extract_strided_slice %87 {offsets = [12, 0], sizes = [1, 529], strides = [1, 1]} : vector<16x529xf32> to vector<1x529xf32>
    %c12 = arith.constant 12 : index
    %c0_54 = arith.constant 0 : index
    %c0_55 = arith.constant 0 : index
    %150 = vector.load %arg6[%c12, %c0_54, %c0_55] : memref<16x529x10xf32, #tpu.memory_space<vmem>>, vector<1x529x10xf32>
    %151 = vector.shape_cast %150 : vector<1x529x10xf32> to vector<529x10xf32>
    %cst_56 = arith.constant dense<0.000000e+00> : vector<1x10xf32>
    %152 = tpu.matmul %149, %151, %cst_56 {dimension_numbers = #tpu.dot_dimension_numbers<[1], [0], [0], [1], [0, 0, 1, 1], [], []>} : vector<1x529xf32>, vector<529x10xf32>, vector<1x10xf32> -> vector<1x10xf32>
    %153 = arith.addf %148, %152 : vector<1x10xf32>
    %154 = vector.extract_strided_slice %87 {offsets = [13, 0], sizes = [1, 529], strides = [1, 1]} : vector<16x529xf32> to vector<1x529xf32>
    %c13 = arith.constant 13 : index
    %c0_57 = arith.constant 0 : index
    %c0_58 = arith.constant 0 : index
    %155 = vector.load %arg6[%c13, %c0_57, %c0_58] : memref<16x529x10xf32, #tpu.memory_space<vmem>>, vector<1x529x10xf32>
    %156 = vector.shape_cast %155 : vector<1x529x10xf32> to vector<529x10xf32>
    %cst_59 = arith.constant dense<0.000000e+00> : vector<1x10xf32>
    %157 = tpu.matmul %154, %156, %cst_59 {dimension_numbers = #tpu.dot_dimension_numbers<[1], [0], [0], [1], [0, 0, 1, 1], [], []>} : vector<1x529xf32>, vector<529x10xf32>, vector<1x10xf32> -> vector<1x10xf32>
    %158 = arith.addf %153, %157 : vector<1x10xf32>
    %159 = vector.extract_strided_slice %87 {offsets = [14, 0], sizes = [1, 529], strides = [1, 1]} : vector<16x529xf32> to vector<1x529xf32>
    %c14 = arith.constant 14 : index
    %c0_60 = arith.constant 0 : index
    %c0_61 = arith.constant 0 : index
    %160 = vector.load %arg6[%c14, %c0_60, %c0_61] : memref<16x529x10xf32, #tpu.memory_space<vmem>>, vector<1x529x10xf32>
    %161 = vector.shape_cast %160 : vector<1x529x10xf32> to vector<529x10xf32>
    %cst_62 = arith.constant dense<0.000000e+00> : vector<1x10xf32>
    %162 = tpu.matmul %159, %161, %cst_62 {dimension_numbers = #tpu.dot_dimension_numbers<[1], [0], [0], [1], [0, 0, 1, 1], [], []>} : vector<1x529xf32>, vector<529x10xf32>, vector<1x10xf32> -> vector<1x10xf32>
    %163 = arith.addf %158, %162 : vector<1x10xf32>
    %164 = vector.extract_strided_slice %87 {offsets = [15, 0], sizes = [1, 529], strides = [1, 1]} : vector<16x529xf32> to vector<1x529xf32>
    %c15 = arith.constant 15 : index
    %c0_63 = arith.constant 0 : index
    %c0_64 = arith.constant 0 : index
    %165 = vector.load %arg6[%c15, %c0_63, %c0_64] : memref<16x529x10xf32, #tpu.memory_space<vmem>>, vector<1x529x10xf32>
    %166 = vector.shape_cast %165 : vector<1x529x10xf32> to vector<529x10xf32>
    %cst_65 = arith.constant dense<0.000000e+00> : vector<1x10xf32>
    %167 = tpu.matmul %164, %166, %cst_65 {dimension_numbers = #tpu.dot_dimension_numbers<[1], [0], [0], [1], [0, 0, 1, 1], [], []>} : vector<1x529xf32>, vector<529x10xf32>, vector<1x10xf32> -> vector<1x10xf32>
    %168 = arith.addf %163, %167 : vector<1x10xf32>
    %c0_66 = arith.constant 0 : index
    %c0_67 = arith.constant 0 : index
    %c0_68 = arith.constant 0 : index
    %169 = vector.load %arg8[%c0_66, %c0_67, %c0_68] : memref<1x1x10xf32, #tpu.memory_space<vmem>>, vector<1x1x10xf32>
    %170 = vector.shape_cast %169 : vector<1x1x10xf32> to vector<1x10xf32>
    %171 = vector.shape_cast %168 : vector<1x10xf32> to vector<1x1x10xf32>
    tpu.vector_store %arg8[%c0_66, %c0_67, %c0_68], %171 {strides = array<i32>} : memref<1x1x10xf32, #tpu.memory_space<vmem>>, vector<1x1x10xf32>,
    return
  }
  func.func @transform_0(%arg0: i32) -> (i32, i32, i32) {
    %c0_i32 = arith.constant 0 : i32
    %c0_i32_0 = arith.constant 0 : i32
    %c0_i32_1 = arith.constant 0 : i32
    return %arg0, %c0_i32, %c0_i32_0 : i32, i32, i32
  }
  func.func @transform_1(%arg0: i32) -> (i32, i32) {
    %c0_i32 = arith.constant 0 : i32
    %c0_i32_0 = arith.constant 0 : i32
    %c0_i32_1 = arith.constant 0 : i32
    return %c0_i32, %c0_i32_0 : i32, i32
  }
  func.func @transform_2(%arg0: i32) -> (i32, i32) {
    %c0_i32 = arith.constant 0 : i32
    %c0_i32_0 = arith.constant 0 : i32
    %c0_i32_1 = arith.constant 0 : i32
    return %c0_i32, %c0_i32_0 : i32, i32
  }
  func.func @transform_3(%arg0: i32) -> (i32, i32) {
    %c0_i32 = arith.constant 0 : i32
    %c0_i32_0 = arith.constant 0 : i32
    %c0_i32_1 = arith.constant 0 : i32
    return %c0_i32, %c0_i32_0 : i32, i32
  }
  func.func @transform_4(%arg0: i32) -> (i32, i32) {
    %c0_i32 = arith.constant 0 : i32
    %c0_i32_0 = arith.constant 0 : i32
    %c0_i32_1 = arith.constant 0 : i32
    return %c0_i32, %c0_i32_0 : i32, i32
  }
  func.func @transform_5(%arg0: i32) -> (i32, i32, i32) {
    %c0_i32 = arith.constant 0 : i32
    %c0_i32_0 = arith.constant 0 : i32
    %c0_i32_1 = arith.constant 0 : i32
    %c0_i32_2 = arith.constant 0 : i32
    return %c0_i32, %c0_i32_0, %c0_i32_1 : i32, i32, i32
  }
  func.func @transform_6(%arg0: i32) -> (i32, i32) {
    %c0_i32 = arith.constant 0 : i32
    %c0_i32_0 = arith.constant 0 : i32
    %c0_i32_1 = arith.constant 0 : i32
    return %c0_i32, %c0_i32_0 : i32, i32
  }
  func.func @transform_7(%arg0: i32) -> (i32, i32, i32) {
    %c0_i32 = arith.constant 0 : i32
    %c0_i32_0 = arith.constant 0 : i32
    %c0_i32_1 = arith.constant 0 : i32
    return %arg0, %c0_i32, %c0_i32_0 : i32, i32, i32
  }
}

</mosaic_0001>

<bundles_post_ra>
// kernel: swd_cnn_forward.1
= control target key start
LH: loop header
LB: loop body
LE: loop exit
PB: predicated region body
PF: predicated region fallthrough
CT: control target
= control target key end

     0   :  { %12 = vsyncpa [#allocation3], 0  ;;  %s17965_s0 = inlined_call_operand.vmem [shape: f32[2,3,1024], index: 0, kind: input, shape index: {}]   ;;  %s17966_s1 = inlined_call_operand.vmem [shape: f32[6,80], index: 1, kind: input, shape index: {}]   ;;  %s17967_s2 = inlined_call_operand.vmem [shape: f32[6,1], index: 2, kind: input, shape index: {}]   ;;  %s17968_s3 = inlined_call_operand.vmem [shape: f32[16,152], index: 3, kind: input, shape index: {}]   ;;  %s17969_s4 = inlined_call_operand.vmem [shape: f32[16,1], index: 4, kind: input, shape index: {}]   ;;  %s17970_s5 = inlined_call_operand.vmem [shape: f32[16,529,10], index: 5, kind: input, shape index: {}]   ;;  %s17971_s6 = inlined_call_operand.vmem [shape: f32[1,10], index: 6, kind: input, shape index: {}]   ;;  %s17972_s7 = inlined_call_operand.hbm [shape: f32[2,1,10], index: 7, kind: output, shape index: {}]  }
   0x1   :  { %14 = vsyncpa [#allocation3 + $0x1], 0  ;;  %s12036_s24 = smov 0   ;;  %s12038_s25 = smov 0  }
   0x2   :  { %s12040_s26 = smov 0   ;;  %s12042_s27 = smov 0  }
   0x3 LB: > { %s12057_s28 = sadd.s32 4294967295, %s11967_s27   ;;  %s7394_s29 = sadd.s32 4294967294, %s11967_s27   ;;  %s11967_s27 = sphi %s12042_s27, %s18108_s27   ;;  %s11963_s26 = sphi %s12040_s26, %s18107_s26   ;;  %s11959_s25 = sphi %s12038_s25, %s18106_s25   ;;  %s11955_s24 = sphi %s12036_s24, %s18105_s24  }
   0x4   : > { %s12061_s30 = sadd.s32 1, %s11967_s27   ;;  %s179_s8 = sadd.s32 1, %s11963_s26 }
   0x5   : > { %s176_s9 = ssub.s32 %s11967_s27, %s12061_s30  ;;  %p189_p0 = scmp.ne.s32.totalorder %s11963_s26, %s11959_s25 }
   0x6   : > { %p177_p1 = scmp.eq.s32.totalorder %s176_s9, 0  ;;  %p190_p2 = scmp.eq.s32.totalorder %s12057_s28, 1 }
   0x7   : > { %p195_p3 = scmp.ne.s32.totalorder %s11959_s25, %s11955_s24  ;;  %p196_p4 = scmp.eq.s32.totalorder %s7394_s29, 1 }
   0x8   : > { %s12072_s10 = scalar_select %p177_p1, %s11963_s26, %s179_s8  }
   0x9   : > { %p12074_p5 = por %p190_p2, %p189_p0  ;;  %p12078_p6 = por %p196_p4, %p195_p3 }
   0xa   : > { %p7397_p7 = scmp.ge.s32.totalorder %s11967_s27, 1  ;;  %p240_p8 = scmp.lt.s32.totalorder %s11967_s27, 3 }
   0xc   : > { %p241_p9 = pnand %p7397_p7, %p240_p8 }
   0xe   : > { %244 = sbr.rel (%p241_p9) target bundleno = 2145 (0x861), region = 48 }
  0x15   : > { %p271_p10 = scmp.lt.s32.totalorder %s12057_s28, 1  ;;  %s11969_s18 = smov 125   ;;  %vm381_vm0 = vcmask 1022976   ;;  %vm17988_vm1 = vcmask 1031168   ;;  %vm311_vm2 = vcmask 1039360   ;;  %vm931_vm3 = vcmask 793600  }
  0x16   : > { %s11970_s19 = smov 126   ;;  %s11971_s20 = smov 127   ;;  %vm812_vm4 = vcmask 1040384   ;;  %vm17990_vm5 = vcmask 785408   ;;  %vm17989_vm6 = vcmask 777216   ;;  %vm796_vm7 = vcmask 1042432  }
  0x17   : > { %s272_s13 = scalar_select %p271_p10, %s12057_s28, 1  ;;  %vm836_vm8 = vcmask 1041408   ;;  %vm844_vm9 = vcmask 1044480   ;;  %vm561_vm10 = vcmask 760832   ;;  %vm530_vm11 = vcmask 769024  }
  0x18   : > { %s11972_s21 = smov 97   ;;  %s11973_s22 = smov 96   ;;  %vm804_vm12 = vcmask 1045504   ;;  %vm820_vm13 = vcmask 1043456   ;;  %vm828_vm14 = vcmask 1046528   ;;  %vm413_vm15 = vcmask 1014784  }
  0x19   : > { %s8450_s14 = sshll.u32 %s272_s13, 5  ;;  %s11974_s23 = smov 95  }
  0x1a   : > { %s12089_s17 = scalar_lea.vmem %s17965_s0, %s8450_s14  ;;  %s11975_s29 = smov 94  }
  0x1b   : > { %v12092_v0 = vld [vmem:[%s12089_s17] sm:$0x77]  ;;  %v12095_v1 = vld [vmem:[%s12089_s17 + $0x8] sm:$0x77]  ;;  %v12126_v20 = vld [vmem:[%s12089_s17 + $0x10] sm:$0x77] }
  0x1c   : > { %v12099_v2 = vcombine.high %v12092_v0, %v12092_v0  ;;  %v362_v3 = vrot.slane %v12095_v1, 7  ;;  %v327_v4 = vrot.slane %v12095_v1, 2  ;;  %v12105_v5 = vcombine.high %v12095_v1, %v12095_v1  ;;  %v12216_v62 = vld [vmem:[%s12089_s17 + $0x18] sm:$0x77]  ;;  %s11976_s8 = smov 93   ;;  %s11977_s9 = smov 124  }
  0x1d   : > { %v360_v6 = vrot.slane %v12092_v0, 7  ;;  %v325_v7 = vrot.slane %v12092_v0, 2  ;;  %v290_v14 = vrot.slane %v12092_v0, 5  ;;  %v292_v15 = vrot.slane %v12095_v1, 5  ;;  %s11978_s13 = smov 92   ;;  %s11979_s14 = smov 64  }
  0x1e   : > { %v361_v8 = vrot.slane %v12099_v2, 7  ;;  %v326_v9 = vrot.slane %v12099_v2, 2  ;;  %v363_v10 = vrot.slane %v12105_v5, 7  ;;  %v328_v11 = vrot.slane %v12105_v5, 2  ;;  %s11980_s15 = smov 63   ;;  %s11981_s16 = smov 62  }
  0x1f   : > { %v293_v18 = vrot.slane %v12105_v5, 5  ;;  %v291_v19 = vrot.slane %v12099_v2, 5  ;;  %v12130_v21 = vcombine.low %v12126_v20, %v12126_v20  ;;  %v396_v22 = vcombine.low %v12095_v1, %v12095_v1  ;;  %s11982_s17 = smov 60  }
  0x20   : > { %v12113_v12 = vpack.i.bf16 %v362_v3, %v361_v8  ;;  %v12115_v13 = vpack.i.bf16 %v327_v4, %v326_v9  ;;  %v11185_v16 = vpack.i.bf16 %v360_v6, %v363_v10  ;;  %v11175_v17 = vpack.i.bf16 %v325_v7, %v328_v11 }
  0x21   : > { %v11200_v23 = vpack.i.bf16 %v290_v14, %v293_v18  ;;  %v12140_v24 = vpack.i.bf16 %v292_v15, %v291_v19  ;;  %v11205_v25 = vpack.i.bf16 %v12130_v21, %v12095_v1  ;;  %v12145_v26 = vpack.i.bf16 %v396_v22, %v12092_v0 }
  0x22   : > { %11181 = vrot.lane.b32.xlu1 %v12113_v12, %s11969_s18  ;;  %11171 = vrot.lane.b32.xlu0 %v12115_v13, %s11970_s19  ;;  %v431_v27 = vrot.slane %v12105_v5, 1  ;;  %v432_v28 = vrot.slane %v12126_v20, 1  ;;  %v429_v29 = vrot.slane %v12099_v2, 1  ;;  %v430_v30 = vrot.slane %v12095_v1, 1 }
  0x23   : > { %v470_v31 = vrot.slane %v12105_v5, 6  ;;  %v471_v32 = vrot.slane %v12126_v20, 6  ;;  %v468_v35 = vrot.slane %v12099_v2, 6  ;;  %v469_v36 = vrot.slane %v12095_v1, 6 }
  0x24   : > { %v11215_v33 = vpack.i.bf16 %v432_v28, %v431_v27  ;;  %v12161_v34 = vpack.i.bf16 %v430_v30, %v429_v29  ;;  %v509_v37 = vrot.slane %v12105_v5, 3  ;;  %v510_v38 = vrot.slane %v12126_v20, 3 }
  0x25   : > { %v12169_v39 = vcombine.high %v12126_v20, %v12126_v20  ;;  %v11225_v40 = vpack.i.bf16 %v471_v32, %v470_v31  ;;  %v12176_v41 = vpack.i.bf16 %v469_v36, %v468_v35  ;;  %v507_v42 = vrot.slane %v12099_v2, 3 }
  0x26   : > { %11186 = vrot.lane.b32.xlu1 %v11185_v16, %s11969_s18  ;;  %11176 = vrot.lane.b32.xlu0 %v11175_v17, %s11970_s19  ;;  %v508_v43 = vrot.slane %v12095_v1, 3  ;;  %v12180_v44 = vpack.i.bf16 %v328_v11, %v325_v7  ;;  %v11235_v45 = vpack.i.bf16 %v510_v38, %v509_v37  ;;  %v364_v46 = vrot.slane %v12126_v20, 7 }
  0x27   : > { %v365_v47 = vrot.slane %v12169_v39, 7  ;;  %v12186_v48 = vpack.i.bf16 %v363_v10, %v360_v6  ;;  %v329_v49 = vrot.slane %v12126_v20, 2  ;;  %v330_v50 = vrot.slane %v12169_v39, 2 }
  0x28   : > { %v433_v51 = vrot.slane %v12169_v39, 1  ;;  %v12191_v52 = vpack.i.bf16 %v508_v43, %v507_v42  ;;  %v472_v53 = vrot.slane %v12169_v39, 6  ;;  %v511_v54 = vrot.slane %v12169_v39, 3 }
  0x29   : > { %v12198_v55 = vpack.i.bf16 %v365_v47, %v364_v46  ;;  %v12200_v56 = vpack.i.bf16 %v330_v50, %v329_v49  ;;  %v11245_v60 = vpack.i.bf16 %v12126_v20, %v12105_v5  ;;  %v11240_v61 = vpack.i.bf16 %v12095_v1, %v12099_v2 }
  0x2a   : > { %11201 = vrot.lane.b32.xlu1 %v11200_v23, %s11971_s20  ;;  %11191 = vrot.lane.b32.xlu0 %v12140_v24, %s11971_s20  ;;  %v12202_v57 = vpack.i.bf16 %v433_v51, %v432_v28  ;;  %v12204_v58 = vpack.i.bf16 %v472_v53, %v471_v32  ;;  %v12206_v59 = vpack.i.bf16 %v511_v54, %v510_v38  ;;  %v294_v3 = vrot.slane %v12126_v20, 5 }
  0x2b   : > { %v12220_v63 = vcombine.low %v12216_v62, %v12216_v62  ;;  %v295_v4 = vrot.slane %v12169_v39, 5  ;;  %v12228_v6 = vcombine.high %v12216_v62, %v12216_v62  ;;  %v473_v9 = vrot.slane %v12216_v62, 6 }
  0x2c   : > { %v434_v10 = vrot.slane %v12216_v62, 1  ;;  %v331_v11 = vrot.slane %v12216_v62, 2  ;;  %v512_v19 = vrot.slane %v12216_v62, 3  ;;  %v11285_v23 = vpack.i.bf16 %v12216_v62, %v12169_v39 }
  0x2d   : > { %v11265_v7 = vpack.i.bf16 %v12220_v63, %v12126_v20  ;;  %v12236_v8 = vpack.i.bf16 %v295_v4, %v294_v3  ;;  %v608_v15 = vrot.slane %v12228_v6, 2  ;;  %v11275_v16 = vpack.i.bf16 %v473_v9, %v472_v53 }
  0x2e   : > { %11206 = vrot.lane.b32.xlu1 %v11205_v25, %s11972_s21  ;;  %11196 = vrot.lane.b32.xlu0 %v12145_v26, %s11972_s21  ;;  %v11270_v17 = vpack.i.bf16 %v434_v10, %v433_v51  ;;  %v11280_v25 = vpack.i.bf16 %v512_v19, %v511_v54  ;;  %v366_v28 = vrot.slane %v12216_v62, 7  ;;  %v640_v29 = vrot.slane %v12228_v6, 7 }
  0x2f   : > { %v12246_v22 = vpack.i.bf16 %v608_v15, %v331_v11  ;;  %v296_v32 = vrot.slane %v12216_v62, 5  ;;  %v474_v35 = vrot.slane %v12228_v6, 6  ;;  %v467_v38 = vrot.slane %v12092_v0, 6 }
  0x30   : > { %v12256_v30 = vpack.i.bf16 %v640_v29, %v366_v28  ;;  %v435_v42 = vrot.slane %v12228_v6, 1  ;;  %v506_v49 = vrot.slane %v12092_v0, 3  ;;  %v513_v50 = vrot.slane %v12228_v6, 3 }
  0x31   : > { %v12268_v43 = vpack.i.bf16 %v474_v35, %v473_v9  ;;  %v11310_v46 = vpack.i.bf16 %v467_v38, %v474_v35  ;;  %v11320_v53 = vpack.i.bf16 %v12092_v0, %v12228_v6  ;;  %v11340_v3 = vpack.i.bf16 %v293_v18, %v290_v14 }
  0x32   : > { %11216 = vrot.lane.b32.xlu1 %v11215_v33, %s11973_s22  ;;  %11211 = vrot.lane.b32.xlu0 %v12161_v34, %s11973_s22  ;;  %v576_v33 = vrot.slane %v12228_v6, 5  ;;  %v12277_v51 = vpack.i.bf16 %v513_v50, %v512_v19  ;;  %v11315_v54 = vpack.i.bf16 %v506_v49, %v513_v50  ;;  %v11355_v4 = vpack.i.bf16 %v12126_v20, %v12130_v21 }
  0x33   : > { %v11405_v14 = vpack.i.bf16 %v509_v37, %v506_v49 }
  0x34   : > { %v11300_v36 = vpack.i.bf16 %v576_v33, %v296_v32 }
  0x36   : > { %11226 = vrot.lane.b32.xlu1 %v11225_v40, %s11974_s23  ;;  %11221 = vrot.lane.b32.xlu0 %v12176_v41, %s11974_s23  ;;  %v428_v40 = vrot.slane %v12092_v0, 1 }
  0x38   : > { %v11305_v47 = vpack.i.bf16 %v428_v40, %v435_v42 }
  0x3a   : > { %11236 = vrot.lane.b32.xlu1 %v11235_v45, %s11975_s29  ;;  %11231 = vrot.lane.b32.xlu0 %v12191_v52, %s11975_s29  ;;  %v12270_v45 = vpack.i.bf16 %v435_v42, %v434_v10 }
  0x3e   : > { %11246 = vrot.lane.b32.xlu1 %v11245_v60, %s11976_s8  ;;  %11241 = vrot.lane.b32.xlu0 %v11240_v61, %s11976_s8  ;;  %v395_v60 = vcombine.low %v12092_v0, %v12092_v0 }
  0x40   : > { %v11330_v61 = vpack.i.bf16 %v12095_v1, %v395_v60 }
  0x42   : > { %11256 = vrot.lane.b32.xlu1 %v12198_v55, %s11969_s18  ;;  %11251 = vrot.lane.b32.xlu0 %v12200_v56, %s11970_s19 }
  0x46   : > { %11266 = vrot.lane.b32.xlu1 %v11265_v7, %s11972_s21  ;;  %11261 = vrot.lane.b32.xlu0 %v12236_v8, %s11971_s20 }
  0x4a   : > { %11276 = vrot.lane.b32.xlu1 %v11275_v16, %s11974_s23  ;;  %11271 = vrot.lane.b32.xlu0 %v11270_v17, %s11973_s22 }
  0x4e   : > { %11286 = vrot.lane.b32.xlu1 %v11285_v23, %s11976_s8  ;;  %11281 = vrot.lane.b32.xlu0 %v11280_v25, %s11975_s29 }
  0x52   : > { %11296 = vrot.lane.b32.xlu1 %v12256_v30, %s11969_s18  ;;  %11291 = vrot.lane.b32.xlu0 %v12246_v22, %s11970_s19  ;;  %s11983_s18 = smov 61  }
  0x56   : > { %929 = vrot.lane.b32.xlu1 %v12216_v62, %s11972_s21  ;;  %11301 = vrot.lane.b32.xlu0 %v11300_v36, %s11971_s20  ;;  %s11984_s21 = smov 32  }
  0x5a   : > { %11311 = vrot.lane.b32.xlu1 %v11310_v46, %s11974_s23  ;;  %11306 = vrot.lane.b32.xlu0 %v11305_v47, %s11973_s22 }
  0x5e   : > { %11321 = vrot.lane.b32.xlu1 %v11320_v53, %s11976_s8  ;;  %11316 = vrot.lane.b32.xlu0 %v11315_v54, %s11975_s29  ;;  %s11985_s29 = smov 31  }
  0x62   : > { %11331 = vrot.lane.b32.xlu1 %v11330_v61, %s11977_s9  ;;  %11326 = vrot.lane.b32.xlu0 %v12145_v26, %s11977_s9 }
  0x66   : > { %11341 = vrot.lane.b32.xlu1 %v11340_v3, %s11978_s13  ;;  %11336 = vrot.lane.b32.xlu0 %v12140_v24, %s11978_s13 }
  0x6a   : > { %11351 = vrot.lane.b32.xlu1 %v12180_v44, %s11979_s14  ;;  %11346 = vrot.lane.b32.xlu0 %v12115_v13, %s11979_s14  ;;  %v11395_v13 = vpack.i.bf16 %v470_v31, %v467_v38 }
  0x6e   : > { %11361 = vrot.lane.b32.xlu1 %v12113_v12, %s11980_s15  ;;  %11356 = vrot.lane.b32.xlu0 %v11355_v4, %s11977_s9  ;;  %v11390_v12 = vpack.i.bf16 %v431_v27, %v428_v40 }
  0x72   : > { %11371 = vrot.lane.b32.xlu1 %v12145_v26, %s11981_s16  ;;  %11366 = vrot.lane.b32.xlu0 %v12186_v48, %s11980_s15 }
  0x76   : > { %11381 = vrot.lane.b32.xlu1 %v12176_v41, %s11982_s17  ;;  %11376 = vrot.lane.b32.xlu0 %v12161_v34, %s11983_s18 }
  0x7a   : > { %11391 = vrot.lane.b32.xlu1 %v11390_v12, %s11983_s18  ;;  %11386 = vrot.lane.b32.xlu0 %v11330_v61, %s11981_s16 }
  0x7e   : > { %11401 = vrot.lane.b32.xlu1 %v12191_v52, %s11984_s21  ;;  %11396 = vrot.lane.b32.xlu0 %v11395_v13, %s11982_s17 }
  0x82   : > { %11411 = vrot.lane.b32.xlu1 %v12236_v8, %s11978_s13  ;;  %11406 = vrot.lane.b32.xlu0 %v11405_v14, %s11984_s21 }
  0x86   : > { %11421 = vrot.lane.b32.xlu1 %v12198_v55, %s11980_s15  ;;  %11416 = vrot.lane.b32.xlu0 %v12200_v56, %s11979_s14 }
  0x8a   : > { %11431 = vrot.lane.b32.xlu1 %v12202_v57, %s11983_s18  ;;  %11426 = vrot.lane.b32.xlu0 %v11355_v4, %s11981_s16 }
  0x8e   : > { %11446 = vrot.lane.b32.xlu1 %v11300_v36, %s11978_s13  ;;  %11436 = vrot.lane.b32.xlu0 %v12204_v58, %s11982_s17 }
  0x92   : > { %11441 = vrot.lane.b32.xlu0 %v12206_v59, %s11984_s21 }
  0x94   : > { %v11182_v18 = vpop.permute.xlu1 %11181  ;;  %v11172_v21 = vpop.permute.xlu0 %11171 }
  0x95   : > { %v11184_v41 = vunpack.i.h.bf16 %v11182_v18  ;;  %v11183_v44 = vunpack.i.l.bf16 %v11182_v18  ;;  %v11174_v48 = vunpack.i.h.bf16 %v11172_v21  ;;  %v11173_v52 = vunpack.i.l.bf16 %v11172_v21 }
  0x96   : > { %411 = vrot.lane.b32.xlu0 %v12220_v63, %s11977_s9 }
  0x97   : > { %v383_v59 = vsel %vm381_vm0, %v11183_v44, %v11184_v41  ;;  %v348_v10 = vsel %vm17988_vm1, %v11173_v52, %v11174_v48 }
  0x98   : > { %v12343_v24 = vpop.permute.xlu1 %11186  ;;  %v12345_v26 = vpop.permute.xlu0 %11176  ;;  %v12366_v23 = vsel %vm812_vm4, %v348_v10, %v383_v59 }
  0x99   : > { %v11189_v7 = vunpack.i.h.bf16 %v12343_v24  ;;  %v11188_v8 = vunpack.i.l.bf16 %v12343_v24  ;;  %v11179_v17 = vunpack.i.h.bf16 %v12345_v26  ;;  %v11178_v19 = vunpack.i.l.bf16 %v12345_v26 }
  0x9b   : > { %v382_v28 = vsel %vm381_vm0, %v11189_v7, %v11183_v44  ;;  %v384_v29 = vsel %vm381_vm0, %v11184_v41, %v11188_v8  ;;  %v349_v60 = vsel %vm17988_vm1, %v11174_v48, %v11178_v19 }
  0x9c   : > { %v12347_v27 = vpop.permute.xlu1 %11201  ;;  %v11192_v31 = vpop.permute.xlu0 %11191 }
  0x9d   : > { %v11194_v55 = vunpack.i.h.bf16 %v11192_v31  ;;  %v11193_v56 = vunpack.i.l.bf16 %v11192_v31  ;;  %v11203_v9 = vunpack.i.l.bf16 %v12347_v27  ;;  %v11204_v32 = vunpack.i.h.bf16 %v12347_v27 }
  0x9f   : > { %v313_v11 = vsel %vm311_vm2, %v11193_v56, %v11194_v55  ;;  %v314_v33 = vsel %vm311_vm2, %v11194_v55, %v11203_v9  ;;  %v312_v3 = vsel %vm311_vm2, %v11204_v32, %v11193_v56 }
  0xa0   : > { %v12349_v34 = vpop.permute.xlu1 %11206  ;;  %v12351_v37 = vpop.permute.xlu0 %11196  ;;  %v798_v40 = vsel %vm796_vm7, %v12099_v2, %v313_v11  ;;  %v799_v61 = vsel %vm796_vm7, %v12095_v1, %v314_v33  ;;  %v12396_v2 = vsel %vm17988_vm1, %v11179_v17, %v11173_v52 }
  0xa1   : > { %v11199_v35 = vunpack.i.h.bf16 %v12351_v37  ;;  %v11198_v42 = vunpack.i.l.bf16 %v12351_v37  ;;  %v11209_v14 = vunpack.i.h.bf16 %v12349_v34  ;;  %v11208_v18 = vunpack.i.l.bf16 %v12349_v34 }
  0xa2   : > { %v12407_v1 = vsel %vm804_vm12, %v798_v40, %v348_v10  ;;  %v12424_v55 = vsel %vm804_vm12, %v799_v61, %v349_v60 }
  0xa3   : > { %v932_v31 = vsel %vm931_vm3, %v11198_v42, %v11199_v35 }
  0xa4   : > { %v12353_v57 = vpop.permute.xlu1 %11216  ;;  %v11212_v58 = vpop.permute.xlu0 %11211 }
  0xa5   : > { %v11218_v46 = vunpack.i.l.bf16 %v12353_v57  ;;  %v11214_v47 = vunpack.i.h.bf16 %v11212_v58  ;;  %v12385_v49 = vunpack.i.l.bf16 %v11212_v58 }
  0xa7   : > { %v12415_v41 = vsel %vm17990_vm5, %v11214_v47, %v11218_v46  ;;  %v12419_v44 = vsel %vm17990_vm5, %v12385_v49, %v11214_v47 }
  0xa8   : > { %v12361_v15 = vpop.permute.xlu1 %11226  ;;  %v11222_v16 = vpop.permute.xlu0 %11221 }
  0xa9   : > { %v11224_v36 = vunpack.i.h.bf16 %v11222_v16  ;;  %v12379_v38 = vunpack.i.l.bf16 %v11222_v16  ;;  %v11228_v54 = vunpack.i.l.bf16 %v12361_v15  ;;  %v11229_v26 = vunpack.i.h.bf16 %v12361_v15 }
  0xab   : > { %v493_v21 = vsel %vm17989_vm6, %v12379_v38, %v11224_v36  ;;  %v494_v56 = vsel %vm17989_vm6, %v11224_v36, %v11228_v54  ;;  %v976_v10 = vsel %vm836_vm8, %v12385_v49, %v12379_v38  ;;  %v495_v34 = vsel %vm17989_vm6, %v11228_v54, %v11229_v26 }
  0xac   : > { %v12387_v50 = vpop.permute.xlu1 %11236  ;;  %v11232_v53 = vpop.permute.xlu0 %11231  ;;  %v838_v17 = vsel %vm836_vm8, %v12419_v44, %v493_v21 }
  0xad   : > { %v17974_v4 = vunpack.i.l.bf16 %v12387_v50  ;;  %v11234_v12 = vunpack.i.h.bf16 %v11232_v53  ;;  %v12400_v13 = vunpack.i.l.bf16 %v11232_v53 }
  0xaf   : > { %v532_v11 = vsel %vm530_vm11, %v12400_v13, %v11234_v12  ;;  %v533_v16 = vsel %vm530_vm11, %v11234_v12, %v17974_v4  ;;  %v978_v32 = vsel %vm844_vm9, %v976_v10, %v12400_v13  ;;  %v12476_v4 = vsel %vm812_vm4, %v349_v60, %v384_v29 }
  0xb0   : > { %v12421_v48 = vpop.permute.xlu1 %11246  ;;  %v11242_v52 = vpop.permute.xlu0 %11241 }
  0xb1   : > { %v17973_v58 = vunpack.i.l.bf16 %v12421_v48  ;;  %v11244_v59 = vunpack.i.h.bf16 %v11242_v52  ;;  %v12430_v7 = vunpack.i.l.bf16 %v11242_v52  ;;  %v839_v52 = vsel %vm836_vm8, %v12415_v41, %v494_v56 }
  0xb2   : > { %v12480_v56 = vsel %vm812_vm4, %v12396_v2, %v382_v28 }
  0xb3   : > { %v980_v33 = vsel %vm796_vm7, %v12430_v7, 0.0  ;;  %v12448_v36 = vsel %vm561_vm10, %v12430_v7, %v11244_v59  ;;  %v12453_v40 = vsel %vm561_vm10, %v11244_v59, %v17973_v58  ;;  %v12468_v59 = vsel %vm844_vm9, %v838_v17, %v532_v11 }
  0xb4   : > { %v12455_v47 = vpop.permute.xlu1 %11256  ;;  %v12457_v53 = vpop.permute.xlu0 %11251  ;;  %v11455_v61 = vpack.i.bf16 %v980_v33, %v978_v32  ;;  %v981_v12 = vsel %vm796_vm7, %v12448_v36, 0.0  ;;  %v982_v21 = vsel %vm796_vm7, %v12453_v40, 0.0  ;;  %v12471_v58 = vsel %vm844_vm9, %v839_v52, %v533_v16 }
  0xb5   : > { %v11258_v10 = vunpack.i.l.bf16 %v12455_v47  ;;  %v11253_v25 = vunpack.i.l.bf16 %v12457_v53  ;;  %v11219_v32 = vunpack.i.h.bf16 %v12353_v57  ;;  %v11450_v33 = vpack.i.bf16 %v982_v21, %v981_v12 }
  0xb6   : > { %11456 = vrot.lane.b32.xlu1 %v11455_v61, %s11985_s29  ;;  %v934_v11 = vsel %vm931_vm3, %v11208_v18, %v11209_v14  ;;  %v933_v16 = vsel %vm931_vm3, %v11199_v35, %v11208_v18  ;;  %v11460_v17 = vpack.i.bf16 %v12424_v55, %v12407_v1  ;;  %v797_v61 = vsel %vm796_vm7, %v12092_v0, %v312_v3 }
  0xb7   : > { %v17977_v12 = vunpack.i.h.bf16 %v12455_v47  ;;  %v17976_v29 = vunpack.i.h.bf16 %v12457_v53  ;;  %11451 = vrot.lane.b32.xlu0 %v11450_v33, %s11985_s29  ;;  %v11465_v21 = vpack.i.bf16 %v12471_v58, %v12468_v59  ;;  %v961_v35 = vsel %vm820_vm13, %v12366_v23, %v932_v31 }
  0xb8   : > { %v12493_v28 = vpop.permute.xlu1 %11266  ;;  %v12495_v60 = vpop.permute.xlu0 %11261  ;;  %v385_v0 = vsel %vm381_vm0, %v11188_v8, %v11258_v10  ;;  %v350_v52 = vsel %vm17988_vm1, %v11178_v19, %v11253_v25  ;;  %v12514_v31 = vsel %vm17990_vm5, %v11218_v46, %v11219_v32  ;;  %v962_v24 = vsel %vm820_vm13, %v12476_v4, %v933_v16 }
  0xb9   : > { %v17975_v3 = vunpack.i.h.bf16 %v12495_v60  ;;  %v11263_v18 = vunpack.i.l.bf16 %v12495_v60  ;;  %v17978_v33 = vunpack.i.l.bf16 %v12493_v28  ;;  %v960_v8 = vsel %vm820_vm13, %v12480_v56, %v11198_v42 }
  0xba   : > { %11466 = vrot.lane.b32.xlu1 %v11465_v21, %s11985_s29  ;;  %v12531_v46 = vsel %vm828_vm14, %v960_v8, %v12385_v49  ;;  %v11239_v16 = vunpack.i.h.bf16 %v12387_v50  ;;  %v12544_v21 = vsel %vm812_vm4, %v350_v52, %v385_v0 }
  0xbb   : > { %v315_v19 = vsel %vm311_vm2, %v11203_v9, %v11263_v18  ;;  %v316_v57 = vsel %vm311_vm2, %v11263_v18, %v17975_v3  ;;  %11461 = vrot.lane.b32.xlu0 %v11460_v17, %s11985_s29  ;;  %v386_v18 = vsel %vm381_vm0, %v11258_v10, %v17977_v12  ;;  %v351_v17 = vsel %vm17988_vm1, %v11253_v25, %v17976_v29 }
  0xbc   : > { %v12535_v37 = vpop.permute.xlu1 %11276  ;;  %v12537_v42 = vpop.permute.xlu0 %11271  ;;  %v800_v27 = vsel %vm796_vm7, %v12105_v5, %v315_v19  ;;  %v801_v9 = vsel %vm796_vm7, %v12126_v20, %v316_v57  ;;  %v969_v3 = vsel %vm828_vm14, %v961_v35, %v12419_v44  ;;  %v11249_v5 = vunpack.i.h.bf16 %v12421_v48 }
  0xbd   : > { %v11273_v8 = vunpack.i.l.bf16 %v12537_v42  ;;  %v935_v20 = vsel %vm931_vm3, %v11209_v14, %v17978_v33  ;;  %v12562_v0 = vsel %vm804_vm12, %v800_v27, %v350_v52  ;;  %v12565_v10 = vsel %vm804_vm12, %v801_v9, %v351_v17 }
  0xbe   : > { %18011 = vst [vmem:[#allocation5_spill] sm:$0xff] %v12565_v10  ;;  %v11278_v19 = vunpack.i.l.bf16 %v12535_v37  ;;  %v11470_v25 = vpack.i.bf16 %v12565_v10, %v12562_v0  ;;  %v963_v35 = vsel %vm820_vm13, %v12544_v21, %v934_v11  ;;  %v970_v57 = vsel %vm828_vm14, %v962_v24, %v12415_v41 }
  0xbf   : > { %v12582_v27 = vsel %vm17990_vm5, %v11219_v32, %v11273_v8  ;;  %v12585_v9 = vsel %vm812_vm4, %v351_v17, %v386_v18  ;;  %v18012_v29 = vunpack.i.l.bf16 %v12387_v50  ;;  %v971_v18 = vsel %vm828_vm14, %v963_v35, %v12514_v31 }
  0xc0   : > { %v12577_v14 = vpop.permute.xlu1 %11286  ;;  %v12579_v52 = vpop.permute.xlu0 %11281  ;;  %11471 = vrot.lane.b32.xlu1 %v11470_v25, %s11985_s29  ;;  %v964_v12 = vsel %vm820_vm13, %v12585_v9, %v935_v20  ;;  %v496_v33 = vsel %vm17989_vm6, %v11229_v26, %v11278_v19  ;;  %v11475_v25 = vpack.i.bf16 %v970_v57, %v969_v3  ;;  %v12609_v20 = vsel %vm804_vm12, %v797_v61, %v12396_v2 }
  0xc1   : > { %v534_v11 = vsel %vm530_vm11, %v18012_v29, %v11239_v16  ;;  %v11288_v15 = vunpack.i.l.bf16 %v12577_v14  ;;  %v11283_v54 = vunpack.i.l.bf16 %v12579_v52  ;;  %v972_v50 = vsel %vm828_vm14, %v964_v12, %v12582_v27 }
  0xc2   : > { %v18013_v29 = vunpack.i.l.bf16 %v12421_v48  ;;  %v11485_v24 = vpack.i.bf16 %v972_v50, %v971_v18  ;;  %v11480_v35 = vpack.i.bf16 %v12531_v46, %v12609_v20  ;;  %v11269_v26 = vunpack.i.h.bf16 %v12493_v28 }
  0xc3   : > { %v12614_v12 = vsel %vm561_vm10, %v11249_v5, %v11288_v15  ;;  %v535_v48 = vsel %vm530_vm11, %v11239_v16, %v11283_v54  ;;  %v18016_v3 = vunpack.i.h.bf16 %v12535_v37  ;;  %v18018_v16 = vunpack.i.h.bf16 %v12537_v42 }
  0xc4   : > { %v12604_v17 = vsel %vm561_vm10, %v18013_v29, %v11249_v5  ;;  %v11297_v32 = vpop.permute.xlu1 %11296  ;;  %v11292_v10 = vpop.permute.xlu0 %11291  ;;  %18015 = vst [vmem:[#allocation7_spill] sm:$0xff] %v12614_v12  ;;  %v840_v29 = vsel %vm836_vm8, %v12514_v31, %v495_v34  ;;  %11486 = vrot.lane.b32.xlu0 %v11485_v24, %s11985_s29  ;;  %11476 = vrot.lane.b32.xlu1 %v11475_v25, %s11985_s29  ;;  %v984_v50 = vsel %vm796_vm7, %v12614_v12, 0.0 }
  0xc5   : > { %18014 = vst [vmem:[#allocation6_spill] sm:$0xff] %v12604_v17  ;;  %v497_v2 = vsel %vm17989_vm6, %v11278_v19, %v18016_v3  ;;  %v983_v61 = vsel %vm796_vm7, %v12604_v17, 0.0  ;;  %v12628_v46 = vsel %vm844_vm9, %v840_v29, %v534_v11  ;;  %v12633_v5 = vsel %vm17990_vm5, %v11273_v8, %v18018_v16 }
  0xc6   : > { %18017 = vst [vmem:[#allocation8_spill] sm:$0xff] %v12628_v46  ;;  %v11298_v57 = vunpack.i.l.bf16 %v11297_v32  ;;  %v11293_v34 = vunpack.i.l.bf16 %v11292_v10  ;;  %v841_v19 = vsel %vm836_vm8, %v12582_v27, %v496_v33  ;;  %v11299_v25 = vunpack.i.h.bf16 %v11297_v32 }
  0xc7   : > { %v12642_v11 = vsel %vm844_vm9, %v841_v19, %v535_v48  ;;  %v11294_v29 = vunpack.i.h.bf16 %v11292_v10  ;;  %v18021_v17 = vunpack.i.l.bf16 %v12493_v28  ;;  %v842_v32 = vsel %vm836_vm8, %v12633_v5, %v497_v2 }
  0xc8   : > { %18019 = vst [vmem:[#allocation9_spill] sm:$0xff] %v12642_v11  ;;  %v930_v3 = vpop.permute.xlu1 %929  ;;  %v11302_v8 = vpop.permute.xlu0 %11301  ;;  %v12645_v16 = vsel %vm812_vm4, %v11293_v34, %v11298_v57  ;;  %11491 = vrot.lane.b32.xlu0 %v12246_v22, %s11979_s14  ;;  %11481 = vrot.lane.b32.xlu1 %v11480_v35, %s11985_s29  ;;  %v18022_v10 = vunpack.i.h.bf16 %v12455_v47  ;;  %v11500_v19 = vpack.i.bf16 %v984_v50, %v983_v61  ;;  %v18024_v22 = vunpack.i.h.bf16 %v12495_v60 }
  0xc9   : > { %18020 = vst [vmem:[#allocation10_spill] sm:$0xff] %v12645_v16  ;;  %v936_v33 = vsel %vm931_vm3, %v18021_v17, %v11269_v26  ;;  %v11304_v24 = vunpack.i.h.bf16 %v11302_v8  ;;  %v11303_v18 = vunpack.i.l.bf16 %v11302_v8  ;;  %v18023_v16 = vunpack.i.h.bf16 %v12457_v53 }
  0xca   : > { %v387_v48 = vsel %vm381_vm0, %v18022_v10, %v11298_v57  ;;  %v17982_v17 = vmov 0.0   ;;  %v11495_v61 = vpack.i.bf16 %v12642_v11, %v12628_v46  ;;  %v914_v53 = vsel %vm381_vm0, %v11298_v57, %v11299_v25 }
  0xcb   : > { %v352_v28 = vsel %vm17988_vm1, %v18023_v16, %v11293_v34  ;;  %1216 = vmatprep.mubr.f32.mxu0 %v17982_v17  ;;  %1287 = vmatprep.mubr.f32.mxu1 %v17982_v17  ;;  %v317_v35 = vsel %vm311_vm2, %v18024_v22, %v11303_v18  ;;  %v803_v2 = vsel %vm796_vm7, %v12216_v62, %v11303_v18  ;;  %v18025_v10 = vunpack.i.h.bf16 %v12579_v52 }
  0xcc   : > { %v904_v47 = vsel %vm311_vm2, %v11303_v18, %v11304_v24  ;;  %v909_v50 = vsel %vm17988_vm1, %v11293_v34, %v11294_v29  ;;  %v11312_v8 = vpop.permute.xlu1 %11311  ;;  %v11307_v16 = vpop.permute.xlu0 %11306  ;;  %v18026_v22 = vunpack.i.h.bf16 %v12577_v14  ;;  %v959_v18 = vsel %vm812_vm4, %v11294_v29, %v11299_v25  ;;  %11501 = vrot.lane.b32.xlu0 %v11500_v19, %s11985_s29  ;;  %11496 = vrot.lane.b32.xlu1 %v11495_v61, %s11985_s29 }
  0xcd   : > { %v536_v60 = vsel %vm530_vm11, %v11283_v54, %v18025_v10  ;;  %v11313_v11 = vunpack.i.l.bf16 %v11312_v8  ;;  %v11308_v57 = vunpack.i.l.bf16 %v11307_v16  ;;  %v12685_v46 = vsel %vm812_vm4, %v352_v28, %v387_v48 }
  0xce   : > { %v12679_v17 = vsel %vm561_vm10, %v11288_v15, %v18026_v22  ;;  %v11314_v12 = vunpack.i.h.bf16 %v11312_v8  ;;  %v802_v54 = vsel %vm796_vm7, %v12169_v39, %v317_v35  ;;  %v954_v10 = vsel %vm796_vm7, %v12216_v62, %v904_v47 }
  0xcf   : > { %v12692_v15 = vsel %vm804_vm12, %v803_v2, %v11293_v34  ;;  %v937_v25 = vsel %vm931_vm3, %v11269_v26, %v930_v3  ;;  %v958_v19 = vsel %vm812_vm4, %v909_v50, %v914_v53  ;;  %v11309_v22 = vunpack.i.h.bf16 %v11307_v16 }
  0xd0   : > { %v955_v61 = vsel %vm796_vm7, %v12228_v6, %v11304_v24  ;;  %v967_v48 = vsel %vm820_vm13, %v959_v18, %v930_v3  ;;  %v18027_v8 = vunpack.i.h.bf16 %v12537_v42  ;;  %v12704_v35 = vpop.permute.xlu1 %11321  ;;  %v12706_v47 = vpop.permute.xlu0 %11316  ;;  %vm593_vm0 = vcmask 752640   ;;  %11506 = vrot.lane.b32.xlu1 %v12256_v30, %s11980_s15 }
  0xd1   : > { %v12709_v26 = vsel %vm844_vm9, %v842_v32, %v536_v60  ;;  %v965_v34 = vsel %vm820_vm13, %v12685_v46, %v936_v33  ;;  %v18028_v6 = vunpack.i.h.bf16 %v12535_v37  ;;  %v18029_v42 = vpack.i.bf16 %v12216_v62, %v12220_v63 }
  0xd2   : > { %v12702_v39 = vsel %vm17990_vm5, %v18027_v8, %v11308_v57  ;;  %v11318_v3 = vunpack.i.l.bf16 %v12706_v47  ;;  %v12724_v32 = vsel %vm804_vm12, %v802_v54, %v352_v28  ;;  %v956_v2 = vsel %vm804_vm12, %v954_v10, %v909_v50 }
  0xd3   : > { %v498_v24 = vsel %vm17989_vm6, %v18028_v6, %v11313_v11  ;;  %11511 = vrot.lane.b32.xlu0 %v18029_v42, %s11981_s16  ;;  %v966_v33 = vsel %vm820_vm13, %v958_v19, %v937_v25  ;;  %v492_v37 = vsel %vm17989_vm6, %v11314_v12, %v12379_v38  ;;  %v12731_v53 = vsel %vm804_vm12, %v955_v61, %v11294_v29 }
  0xd4   : > { %v12735_v62 = vsel %vm796_vm7, %v12679_v17, 0.0  ;;  %v11324_v63 = vunpack.i.h.bf16 %v12704_v35  ;;  %v974_v30 = vsel %vm828_vm14, %v966_v33, %v12702_v39  ;;  %v453_v28 = vsel %vm17990_vm5, %v11309_v22, %v12385_v49  ;;  %v12746_v12 = vpop.permute.xlu1 %11331  ;;  %v11327_v29 = vpop.permute.xlu0 %11326  ;;  %11516 = vrot.lane.b32.xlu1 %v12270_v45, %s11983_s18 }
  0xd5   : > { %v12743_v50 = vsel %vm828_vm14, %v967_v48, %v11308_v57  ;;  %v11323_v38 = vunpack.i.l.bf16 %v12704_v35  ;;  %v11530_v16 = vpack.i.bf16 %v956_v2, %v12724_v32  ;;  %v843_v60 = vsel %vm836_vm8, %v12702_v39, %v498_v24 }
  0xd6   : > { %v973_v18 = vsel %vm828_vm14, %v965_v34, %v12633_v5  ;;  %vm625_vm3 = vcmask 523264   ;;  %v11333_v49 = vunpack.i.l.bf16 %v12746_v12  ;;  %v11329_v54 = vunpack.i.h.bf16 %v11327_v29 }
  0xd7   : > { %11521 = vrot.lane.b32.xlu0 %v12268_v43, %s11982_s17  ;;  %v11328_v10 = vunpack.i.l.bf16 %v11327_v29  ;;  %v18030_v25 = vunpack.i.h.bf16 %v12579_v52  ;;  %v11319_v22 = vunpack.i.h.bf16 %v12706_v47  ;;  %v11535_v61 = vpack.i.bf16 %v974_v30, %v973_v18 }
  0xd8   : > { %v837_v48 = vsel %vm836_vm8, %v453_v28, %v492_v37  ;;  %v11550_v8 = vpack.i.bf16 %v12743_v50, %v12731_v53  ;;  %v562_v43 = vsel %vm561_vm10, %v11324_v63, %v12430_v7  ;;  %v977_v45 = vsel %vm836_vm8, %v11308_v57, %v11313_v11  ;;  %v12770_v52 = vpop.permute.xlu1 %11341  ;;  %v11337_v6 = vpop.permute.xlu0 %11336  ;;  %11526 = vrot.lane.b32.xlu1 %v12277_v51, %s11984_s21  ;;  %s11993_s21 = smov 66  }
  0xd9   : > { %v537_v19 = vsel %vm530_vm11, %v18030_v25, %v11318_v3  ;;  %v415_v35 = vsel %vm413_vm15, %v11328_v10, %v11329_v54  ;;  %v414_v34 = vsel %vm413_vm15, %v11333_v49, %v11328_v10  ;;  %v18031_v7 = vunpack.i.h.bf16 %v12577_v14 }
  0xda   : > { %v12773_v47 = vsel %vm844_vm9, %v843_v60, %v537_v19  ;;  %v822_v24 = vsel %vm820_vm13, %v12366_v23, %v415_v35  ;;  %v821_v42 = vsel %vm820_vm13, %v12480_v56, %v414_v34  ;;  %v11344_v11 = vunpack.i.h.bf16 %v12770_v52 }
  0xdb   : > { %v12782_v2 = vsel %vm561_vm10, %v18031_v7, %v11323_v38  ;;  %11531 = vrot.lane.b32.xlu0 %v11530_v16, %s11985_s29  ;;  %v11343_v57 = vunpack.i.l.bf16 %v12770_v52  ;;  %v11339_v33 = vunpack.i.h.bf16 %v11337_v6  ;;  %v11338_v37 = vunpack.i.l.bf16 %v11337_v6 }
  0xdc   : > { %v11334_v23 = vunpack.i.h.bf16 %v12746_v12  ;;  %v830_v56 = vsel %vm828_vm14, %v822_v24, %v12419_v44  ;;  %v829_v14 = vsel %vm828_vm14, %v821_v42, %v453_v28  ;;  %v979_v53 = vsel %vm844_vm9, %v977_v45, %v11318_v3  ;;  %v12802_v12 = vpop.permute.xlu1 %11351  ;;  %v11347_v44 = vpop.permute.xlu0 %11346  ;;  %11536 = vrot.lane.b32.xlu1 %v11535_v61, %s11985_s29 }
  0xdd   : > { %v594_v63 = vsel %vm593_vm0, %v11343_v57, %v11338_v37  ;;  %v595_v30 = vsel %vm593_vm0, %v11338_v37, %v11339_v33  ;;  %v11540_v50 = vpack.i.bf16 %v12773_v47, %v12709_v26  ;;  %v9813_v29 = vpack.c.bf16 %v830_v56, %v12407_v1 }
  0xde   : > { %v596_v51 = vsel %vm593_vm0, %v11339_v33, %v11344_v11  ;;  %v9815_v28 = vpack.c.bf16 %v829_v14, %v12609_v20  ;;  %vm657_vm10 = vcmask 515072   ;;  %v986_v3 = vsel %vm796_vm7, %v12782_v2, 0.0 }
  0xdf   : > { %v531_v16 = vsel %vm530_vm11, %v11319_v22, %v12400_v13  ;;  %11541 = vrot.lane.b32.xlu0 %v11540_v50, %s11985_s29  ;;  %v11354_v1 = vunpack.i.h.bf16 %v12802_v12  ;;  %v11353_v60 = vunpack.i.l.bf16 %v12802_v12  ;;  %v11349_v18 = vunpack.i.h.bf16 %v11347_v44  ;;  %9814 = vmatprep.subr.bf16.mxu0 %v9813_v29 }
  0xe0   : > { %v11348_v49 = vunpack.i.l.bf16 %v11347_v44  ;;  %9816 = vmatpush1.bf16.msra.mxu0 %v9815_v28  ;;  %v853_v20 = vsel %vm796_vm7, %v12448_v36, %v595_v30  ;;  %v987_v10 = vsel %vm796_vm7, %v11323_v38, 0.0  ;;  %v852_v25 = vsel %vm796_vm7, %v562_v43, %v594_v63  ;;  %v12829_v36 = vpop.permute.xlu1 %11361  ;;  %v12831_v38 = vpop.permute.xlu0 %11356 }
  0xe1   : > { %v416_v13 = vsel %vm413_vm15, %v11329_v54, %v11334_v23  ;;  %v12825_v35 = vsel %vm625_vm3, %v11349_v18, %v11354_v1  ;;  %v854_v61 = vsel %vm796_vm7, %v12453_v40, %v596_v51  ;;  %v11545_v43 = vpack.i.bf16 %v986_v3, %v12735_v62 }
  0xe2   : > { %v627_v19 = vsel %vm625_vm3, %v11348_v49, %v11349_v18  ;;  %v12820_v22 = vsel %vm625_vm3, %v11353_v60, %v11348_v49  ;;  %v12839_v45 = vsel %vm804_vm12, %v854_v61, %v12825_v35  ;;  %v11359_v6 = vunpack.i.h.bf16 %v12831_v38 }
  0xe3   : > { %v860_v54 = vsel %vm804_vm12, %v853_v20, %v627_v19  ;;  %v859_v34 = vsel %vm804_vm12, %v852_v25, %v12820_v22  ;;  %11551 = vrot.lane.b32.xlu0 %v11550_v8, %s11985_s29  ;;  %v11358_v40 = vunpack.i.l.bf16 %v12831_v38  ;;  %v845_v24 = vsel %vm844_vm9, %v837_v48, %v531_v16  ;;  %11546 = vrot.lane.b32.xlu1 %v11545_v43, %s11985_s29  ;;  %v1142_v8 = vld [vmem:[%s17967_s2] sm:$0x3f] }
  0xe4   : > { %v823_v62 = vsel %vm820_vm13, %v12476_v4, %v416_v13  ;;  %v9817_v42 = vpack.c.bf16 %v860_v54, %v12468_v59  ;;  %v9819_v7 = vpack.c.bf16 %v859_v34, %v845_v24  ;;  %v9839_v57 = vpack.c.bf16 %v12839_v45, %v12471_v58  ;;  %v12862_v14 = vpop.permute.xlu1 %11371  ;;  %v12864_v63 = vpop.permute.xlu0 %11366  ;;  %v18032_v16 = vld [vmem:[#allocation5_spill] sm:$0xff] }
  0xe5   : > { %v11364_v33 = vunpack.i.h.bf16 %v12829_v36  ;;  %v11363_v37 = vunpack.i.l.bf16 %v12829_v36  ;;  %v418_v4 = vsel %vm413_vm15, %v11358_v40, %v11359_v6  ;;  %v417_v48 = vsel %vm413_vm15, %v11334_v23, %v11358_v40 }
  0xe6   : > { %v11987_v56 = vmov 0   ;;  %v825_v59 = vsel %vm820_vm13, %v12585_v9, %v418_v4  ;;  %9818 = vmatprep.subr.bf16.mxu0 %v9817_v42  ;;  %v11555_v30 = vpack.i.bf16 %v987_v10, %v979_v53  ;;  %v824_v50 = vsel %vm820_vm13, %v12544_v21, %v417_v48 }
  0xe7   : > { %11560 = vset.pattern.permute.xlu0 %v11987_v56  ;;  %11866 = vset.pattern.permute.xlu1 %v11987_v56  ;;  %v831_v29 = vsel %vm828_vm14, %v823_v62, %v12415_v41  ;;  %v832_v23 = vsel %vm828_vm14, %v824_v50, %v12514_v31  ;;  %v12875_v9 = vsel %vm828_vm14, %v825_v59, %v12582_v27  ;;  %vm688_vm11 = vcmask 506880  }
  0xe8   : > { %9820 = vmatpush1.bf16.msra.mxu0 %v9819_v7  ;;  %1145 = vperm.xlu0 %11560, %v1142_v8   ;;  %v659_v51 = vsel %vm657_vm10, %v11363_v37, %v11364_v33  ;;  %v9833_v53 = vpack.c.bf16 %v832_v23, %v12562_v0  ;;  %v9835_v21 = vpack.c.bf16 %v831_v29, %v12424_v55  ;;  %v11374_v41 = vunpack.i.h.bf16 %v12862_v14  ;;  %v12883_v3 = vpop.permute.xlu1 %11381  ;;  %v12885_v31 = vpop.permute.xlu0 %11376 }
  0xe9   : > { %11556 = vrot.lane.b32.xlu1 %v11555_v30, %s11985_s29  ;;  %v11373_v44 = vunpack.i.l.bf16 %v12862_v14  ;;  %v11368_v28 = vunpack.i.l.bf16 %v12864_v63  ;;  %v9855_v27 = vpack.c.bf16 %v12875_v9, %v18032_v16  ;;  %v11384_v60 = vunpack.i.h.bf16 %v12883_v3  ;;  %s11994_s29 = smov 56  }
  0xea   : > { %v11383_v18 = vunpack.i.l.bf16 %v12883_v3  ;;  %v11379_v0 = vunpack.i.h.bf16 %v12885_v31  ;;  %v11378_v55 = vunpack.i.l.bf16 %v12885_v31  ;;  %9834 = vmatprep.subr.bf16.mxu1 %v9833_v53  ;;  %vm750_vm1 = vcmask 490496  }
  0xeb   : > { %9836 = vmatpush1.bf16.msra.mxu1 %v9835_v21  ;;  %vm719_vm6 = vcmask 498688   ;;  %v690_v49 = vsel %vm688_vm11, %v11373_v44, %v11374_v41  ;;  %v867_v25 = vsel %vm812_vm4, %v627_v19, %v659_v51  ;;  %v658_v13 = vsel %vm657_vm10, %v11368_v28, %v11363_v37 }
  0xec   : > { %v12896_v20 = vpop.permute.xlu1 %11391  ;;  %v12898_v10 = vpop.permute.xlu0 %11386  ;;  %v752_v61 = vsel %vm750_vm1, %v11383_v18, %v11384_v60  ;;  %v721_v43 = vsel %vm719_vm6, %v11378_v55, %v11379_v0  ;;  %vm781_vm5 = vcmask 261120   ;;  %v11369_v34 = vunpack.i.h.bf16 %v12864_v63 }
  0xed   : > { %v11388_v36 = vunpack.i.l.bf16 %v12898_v10  ;;  %v11393_v54 = vunpack.i.l.bf16 %v12896_v20  ;;  %v874_v24 = vsel %vm820_vm13, %v867_v25, %v690_v49  ;;  %v888_v62 = vsel %vm836_vm8, %v721_v43, %v752_v61 }
  0xee   : > { %v866_v42 = vsel %vm812_vm4, %v12820_v22, %v658_v13  ;;  %v881_v63 = vsel %vm828_vm14, %v874_v24, %v721_v43  ;;  %v660_v22 = vsel %vm657_vm10, %v11364_v33, %v11369_v34  ;;  %v11389_v28 = vunpack.i.h.bf16 %v12898_v10  ;;  %v18033_v13 = vld [vmem:[#allocation7_spill] sm:$0xff] }
  0xef   : > { %v689_v7 = vsel %vm688_vm11, %v11388_v36, %v11373_v44  ;;  %v720_v48 = vsel %vm719_vm6, %v11393_v54, %v11378_v55  ;;  %v868_v54 = vsel %vm812_vm4, %v12825_v35, %v660_v22 }
  0xf0   : > { %v12911_v40 = vpop.permute.xlu1 %11401  ;;  %v12913_v19 = vpop.permute.xlu0 %11396  ;;  %v873_v23 = vsel %vm820_vm13, %v866_v42, %v689_v7  ;;  %v11394_v42 = vunpack.i.h.bf16 %v12896_v20  ;;  %v691_v7 = vsel %vm688_vm11, %v11374_v41, %v11389_v28  ;;  %v18034_v20 = vld [vmem:[#allocation6_spill] sm:$0xff] }
  0xf1   : > { %v11404_v8 = vunpack.i.h.bf16 %v12911_v40  ;;  %v11403_v37 = vunpack.i.l.bf16 %v12911_v40  ;;  %v11398_v4 = vunpack.i.l.bf16 %v12913_v19  ;;  %v880_v49 = vsel %vm828_vm14, %v873_v23, %v720_v48 }
  0xf3   : > { %v751_v56 = vsel %vm750_vm1, %v11398_v4, %v11383_v18  ;;  %v783_v59 = vsel %vm781_vm5, %v11403_v37, %v11404_v8 }
  0xf4   : > { %v12930_v30 = vpop.permute.xlu1 %11411  ;;  %v12932_v50 = vpop.permute.xlu0 %11406  ;;  %v895_v29 = vsel %vm844_vm9, %v888_v62, %v783_v59  ;;  %v887_v44 = vsel %vm836_vm8, %v720_v48, %v751_v56 }
  0xf5   : > { %v11414_v51 = vunpack.i.h.bf16 %v12930_v30  ;;  %v11413_v53 = vunpack.i.l.bf16 %v12930_v30  ;;  %v11408_v21 = vunpack.i.l.bf16 %v12932_v50  ;;  %v9821_v18 = vpack.c.bf16 %v895_v29, %v881_v63 }
  0xf7   : > { %v598_v33 = vsel %vm593_vm0, %v11413_v53, %v11414_v51  ;;  %v782_v55 = vsel %vm781_vm5, %v11408_v21, %v11403_v37  ;;  %v597_v25 = vsel %vm593_vm0, %v11344_v11, %v11413_v53  ;;  %9822 = vmatprep.subr.bf16.mxu0 %v9821_v18  ;;  %v11399_v37 = vunpack.i.h.bf16 %v12913_v19  ;;  %v18035_v21 = vld [vmem:[#allocation8_spill] sm:$0xff] }
  0xf8   : > { %v856_v61 = vsel %vm796_vm7, %v18033_v13, %v598_v33  ;;  %v12951_v36 = vpop.permute.xlu1 %11421  ;;  %v12953_v43 = vpop.permute.xlu0 %11416  ;;  %v894_v10 = vsel %vm844_vm9, %v887_v44, %v782_v55  ;;  %v855_v14 = vsel %vm796_vm7, %v18034_v20, %v597_v25  ;;  %v722_v18 = vsel %vm719_vm6, %v11379_v0, %v11394_v42  ;;  %v18036_v33 = vld [vmem:[#allocation9_spill] sm:$0xff] }
  0xf9   : > { %v11424_v24 = vunpack.i.h.bf16 %v12951_v36  ;;  %v11423_v62 = vunpack.i.l.bf16 %v12951_v36  ;;  %v11419_v52 = vunpack.i.h.bf16 %v12953_v43  ;;  %v11418_v11 = vunpack.i.l.bf16 %v12953_v43 }
  0xfa   : > { %v9823_v4 = vpack.c.bf16 %v894_v10, %v880_v49  ;;  %v753_v53 = vsel %vm750_vm1, %v11384_v60, %v11399_v37  ;;  %v11409_v13 = vunpack.i.h.bf16 %v12932_v50  ;;  %v875_v10 = vsel %vm820_vm13, %v868_v54, %v691_v7 }
  0xfb   : > { %v662_v35 = vsel %vm657_vm10, %v11423_v62, %v11424_v24  ;;  %v630_v48 = vsel %vm625_vm3, %v11418_v11, %v11419_v52  ;;  %v629_v56 = vsel %vm625_vm3, %v11354_v1, %v11418_v11  ;;  %v661_v41 = vsel %vm657_vm10, %v11369_v34, %v11423_v62 }
  0xfc   : > { %v870_v19 = vsel %vm812_vm4, %v630_v48, %v662_v35  ;;  %v12980_v59 = vpop.permute.xlu1 %11431  ;;  %v12982_v63 = vpop.permute.xlu0 %11426  ;;  %v862_v22 = vsel %vm804_vm12, %v855_v14, %v629_v56  ;;  %9824 = vmatpush1.bf16.msra.mxu0 %v9823_v4  ;;  %v12986_v29 = vsel %vm804_vm12, %v856_v61, %v630_v48  ;;  %v869_v60 = vsel %vm812_vm4, %v629_v56, %v661_v41 }
  0xfd   : > { %v11434_v12 = vunpack.i.h.bf16 %v12980_v59  ;;  %v11433_v1 = vunpack.i.l.bf16 %v12980_v59  ;;  %v11429_v23 = vunpack.i.h.bf16 %v12982_v63  ;;  %v11428_v34 = vunpack.i.l.bf16 %v12982_v63 }
  0xfe   : > { %v9837_v44 = vpack.c.bf16 %v862_v22, %v18035_v21  ;;  %v9859_v55 = vpack.c.bf16 %v12986_v29, %v18036_v33  ;;  %v889_v48 = vsel %vm836_vm8, %v722_v18, %v753_v53  ;;  %v784_v30 = vsel %vm781_vm5, %v11404_v8, %v11409_v13  ;;  %v18037_v21 = vld [vmem:[#allocation10_spill] sm:$0xff] }
  0xff   : > { %v724_v49 = vsel %vm719_vm6, %v11433_v1, %v11434_v12  ;;  %v692_v25 = vsel %vm688_vm11, %v11389_v28, %v11428_v34  ;;  %v693_v3 = vsel %vm688_vm11, %v11428_v34, %v11429_v23  ;;  %v723_v50 = vsel %vm719_vm6, %v11394_v42, %v11433_v1 }
 0x100   : > { %v877_v31 = vsel %vm820_vm13, %v870_v19, %v693_v3  ;;  %9838 = vmatprep.subr.bf16.mxu1 %v9837_v44  ;;  %v11447_v0 = vpop.permute.xlu1 %11446  ;;  %v13011_v61 = vpop.permute.xlu0 %11436  ;;  %v876_v35 = vsel %vm820_vm13, %v869_v60, %v692_v25  ;;  %v882_v8 = vsel %vm828_vm14, %v875_v10, %v722_v18  ;;  %v896_v22 = vsel %vm844_vm9, %v889_v48, %v784_v30 }
 0x101   : > { %v11449_v62 = vunpack.i.h.bf16 %v11447_v0  ;;  %v11448_v11 = vunpack.i.l.bf16 %v11447_v0  ;;  %v11439_v28 = vunpack.i.h.bf16 %v13011_v61  ;;  %v11438_v4 = vunpack.i.l.bf16 %v13011_v61  ;;  %9840 = vmatpush1.bf16.msra.mxu1 %v9839_v57 }
 0x102   : > { %v13023_v56 = vsel %vm828_vm14, %v877_v31, %v724_v49  ;;  %v9843_v60 = vpack.c.bf16 %v896_v22, %v882_v8 }
 0x103   : > { %v599_v54 = vsel %vm593_vm0, %v11414_v51, %v11448_v11  ;;  %v600_v7 = vsel %vm593_vm0, %v11448_v11, %v11449_v62  ;;  %v754_v20 = vsel %vm750_vm1, %v11399_v37, %v11438_v4  ;;  %v755_v58 = vsel %vm750_vm1, %v11438_v4, %v11439_v28 }
 0x104   : > { %v13035_v45 = vsel %vm796_vm7, %v12782_v2, %v600_v7  ;;  %v891_v57 = vsel %vm836_vm8, %v724_v49, %v755_v58  ;;  %v13038_v42 = vpop.permute.xlu0 %11441  ;;  %v13045_v51 = vsel %vm796_vm7, %v12679_v17, %v599_v54  ;;  %v890_v41 = vsel %vm836_vm8, %v723_v50, %v754_v20 }
 0x105   : > { %v11444_v37 = vunpack.i.h.bf16 %v13038_v42  ;;  %v11443_v14 = vunpack.i.l.bf16 %v13038_v42  ;;  %v883_v2 = vsel %vm828_vm14, %v876_v35, %v723_v50  ;;  %vm1084_vm7 = vcmask 252928  }
 0x106   : > { %vm1148_vm0 = vcmask 654336  }
 0x107   : > { %v786_v19 = vsel %vm781_vm5, %v11443_v14, %v11444_v37  ;;  %v785_v40 = vsel %vm781_vm5, %v11409_v13, %v11443_v14 }
 0x108   : > { %v412_v17 = vpop.permute.xlu0 %411  ;;  %v897_v1 = vsel %vm844_vm9, %v890_v41, %v785_v40  ;;  %v13059_v34 = vsel %vm844_vm9, %v891_v57, %v786_v19 }
 0x109   : > { %v419_v53 = vsel %vm413_vm15, %v11359_v6, %v412_v17  ;;  %v827_v44 = vsel %vm820_vm13, %v18037_v21, %v412_v17  ;;  %v9841_v49 = vpack.c.bf16 %v897_v1, %v883_v2  ;;  %v9863_v25 = vpack.c.bf16 %v13059_v34, %v13023_v56 }
 0x10a   : > { %v826_v18 = vsel %vm820_vm13, %v12685_v46, %v419_v53  ;;  %v13072_v3 = vsel %vm828_vm14, %v827_v44, %v12702_v39 }
 0x10b   : > { %v9874_v38 = vpack.c.bf16 %v13072_v3, %v12692_v15  ;;  %9842 = vmatprep.subr.bf16.mxu1 %v9841_v49  ;;  %v13078_v6 = vsel %vm828_vm14, %v826_v18, %v12633_v5 }
 0x10c   : > { %9844 = vmatpush1.bf16.msra.mxu1 %v9843_v60  ;;  %v9853_v13 = vpack.c.bf16 %v13078_v6, %v12724_v32 }
 0x128   : > { %v11457_v31 = vpop.permute.xlu1 %11456 }
 0x129   : > { %v11452_v0 = vpop.permute.xlu0 %11451 }
 0x12a   : > { %v11454_v30 = vunpack.i.h.bf16 %v11452_v0  ;;  %v11453_v14 = vunpack.i.l.bf16 %v11452_v0  ;;  %v11459_v0 = vunpack.i.h.bf16 %v11457_v31 }
 0x12c   : > { %v11467_v46 = vpop.permute.xlu1 %11466 }
 0x12d   : > { %v11462_v10 = vpop.permute.xlu0 %11461  ;;  %v11469_v35 = vunpack.i.h.bf16 %v11467_v46  ;;  %v11468_v48 = vunpack.i.l.bf16 %v11467_v46  ;;  %v11458_v46 = vunpack.i.l.bf16 %v11457_v31 }
 0x12e   : > { %v11464_v39 = vunpack.i.h.bf16 %v11462_v10  ;;  %v11463_v11 = vunpack.i.l.bf16 %v11462_v10 }
 0x12f   : > { %v1100_v60 = vsel %vm1084_vm7, %v11468_v48, %v11469_v35 }
 0x130   : > { %v1086_v2 = vsel %vm1084_vm7, %v11463_v11, %v11464_v39 }
 0x132   : > { %v13082_v62 = vpop.permute.xlu1 %11471 }
 0x133   : > { %v11474_v4 = vunpack.i.h.bf16 %v13082_v62  ;;  %v11473_v50 = vunpack.i.l.bf16 %v13082_v62 }
 0x135   : > { %v1088_v41 = vsel %vm1084_vm7, %v11473_v50, %v11474_v4  ;;  %v1087_v8 = vsel %vm1084_vm7, %v11464_v39, %v11473_v50  ;;  %v1107_v50 = vsel %vm1084_vm7, %v11453_v14, %v11454_v30 }
 0x136   : > { %v13086_v5 = vpop.permute.xlu0 %11486  ;;  %v11477_v54 = vpop.permute.xlu1 %11476 }
 0x137   : > { %v11489_v7 = vunpack.i.h.bf16 %v13086_v5  ;;  %v11488_v20 = vunpack.i.l.bf16 %v13086_v5  ;;  %v11479_v58 = vunpack.i.h.bf16 %v11477_v54  ;;  %v11478_v57 = vunpack.i.l.bf16 %v11477_v54 }
 0x139   : > { %v1095_v19 = vsel %vm1084_vm7, %v11488_v20, %v11489_v7  ;;  %v1093_v40 = vsel %vm1084_vm7, %v11478_v57, %v11479_v58  ;;  %v1094_v22 = vsel %vm1084_vm7, %v11479_v58, %v11488_v20 }
 0x13a   : > { %v11492_v17 = vpop.permute.xlu0 %11491  ;;  %v11482_v1 = vpop.permute.xlu1 %11481  ;;  %v9845_v53 = vpack.c.bf16 %v1095_v19, %v1088_v41  ;;  %v9825_v21 = vpack.c.bf16 %v1093_v40, %v1086_v2  ;;  %v9847_v44 = vpack.c.bf16 %v1094_v22, %v1087_v8  ;;  %v9829_v2 = vpack.c.bf16 %v1107_v50, %v1100_v60 }
 0x13b   : > { %v11484_v49 = vunpack.i.h.bf16 %v11482_v1  ;;  %v11483_v18 = vunpack.i.l.bf16 %v11482_v1  ;;  %v11493_v10 = vunpack.i.l.bf16 %v11492_v17  ;;  %v1099_v19 = vsel %vm1084_vm7, %v11458_v46, %v11468_v48 }
 0x13c   : > { %9846 = vmatprep.subr.bf16.mxu1 %v9845_v53  ;;  %9826 = vmatprep.subr.bf16.mxu0 %v9825_v21  ;;  %v11494_v22 = vunpack.i.h.bf16 %v11492_v17 }
 0x13d   : > { %9848 = vmatpush1.bf16.msra.mxu1 %v9847_v44  ;;  %v1085_v54 = vsel %vm1084_vm7, %v11483_v18, %v11463_v11  ;;  %v1092_v39 = vsel %vm1084_vm7, %v11484_v49, %v11478_v57  ;;  %v1106_v57 = vsel %vm1084_vm7, %v11459_v0, %v11453_v14  ;;  %v631_v1 = vsel %vm625_vm3, %v11419_v52, %v11493_v10 }
 0x13e   : > { %v13104_v20 = vpop.permute.xlu0 %11501  ;;  %v13106_v58 = vpop.permute.xlu1 %11496  ;;  %v9827_v41 = vpack.c.bf16 %v1092_v39, %v1085_v54  ;;  %v9831_v14 = vpack.c.bf16 %v1106_v57, %v1099_v19  ;;  %v864_v0 = vsel %vm804_vm12, %v13045_v51, %v631_v1  ;;  %v13130_v54 = vld [vmem:[%s17966_s1] sm:$0x3f] }
 0x13f   : > { %v11504_v31 = vunpack.i.h.bf16 %v13104_v20  ;;  %v11503_v40 = vunpack.i.l.bf16 %v13104_v20  ;;  %v11499_v8 = vunpack.i.h.bf16 %v13106_v58  ;;  %v11498_v11 = vunpack.i.l.bf16 %v13106_v58 }
 0x140   : > { %9828 = vmatpush1.bf16.msra.mxu0 %v9827_v41  ;;  %v9857_v19 = vpack.c.bf16 %v864_v0, %v12709_v26 }
 0x141   : > { %9830 = vmatprep.subr.bf16.mxu0 %v9829_v2  ;;  %v1102_v48 = vsel %vm1084_vm7, %v11498_v11, %v11499_v8  ;;  %v1109_v53 = vsel %vm1084_vm7, %v11503_v40, %v11504_v31  ;;  %v1101_v21 = vsel %vm1084_vm7, %v11469_v35, %v11498_v11  ;;  %v1108_v17 = vsel %vm1084_vm7, %v11454_v30, %v11503_v40 }
 0x142   : > { %v11507_v49 = vpop.permute.xlu1 %11506  ;;  %v9849_v18 = vpack.c.bf16 %v1109_v53, %v1102_v48  ;;  %v9851_v43 = vpack.c.bf16 %v1108_v17, %v1101_v21  ;;  %v632_v35 = vsel %vm625_vm3, %v11493_v10, %v11494_v22  ;;  %v17991_v2 = vmov 0.0|0.0  }
 0x143   : > { %v11509_v60 = vunpack.i.h.bf16 %v11507_v49  ;;  %v11508_v52 = vunpack.i.l.bf16 %v11507_v49  ;;  %v865_v26 = vsel %vm804_vm12, %v13035_v45, %v632_v35  ;;  %v18038_v45 = vmov 0.0  }
 0x144   : > { %9832 = vmatpush1.bf16.msra.mxu0 %v9831_v14  ;;  %9850 = vmatprep.subr.bf16.mxu1 %v9849_v18  ;;  %v9877_v61 = vpack.c.bf16 %v865_v26, %v12773_v47 }
 0x145   : > { %v11512_v44 = vpop.permute.xlu0 %11511  ;;  %v664_v30 = vsel %vm657_vm10, %v11508_v52, %v11509_v60  ;;  %9852 = vmatpush1.bf16.msra.mxu1 %v9851_v43  ;;  %v663_v50 = vsel %vm657_vm10, %v11424_v24, %v11508_v52  ;;  %9854 = vmatprep.subr.bf16.mxu0 %v9853_v13  ;;  %vm11989_vm10 = vmmov 0  }
 0x146   : > { %v11514_v46 = vunpack.i.h.bf16 %v11512_v44  ;;  %v11513_v39 = vunpack.i.l.bf16 %v11512_v44  ;;  %v11517_v41 = vpop.permute.xlu1 %11516  ;;  %9873 = vmatprep.subr.bf16.mxu1 %v17991_v2  ;;  %v872_v24 = vsel %vm812_vm4, %v632_v35, %v664_v30  ;;  %v871_v13 = vsel %vm812_vm4, %v631_v1, %v663_v50 }
 0x147   : > { %v11519_v11 = vunpack.i.h.bf16 %v11517_v41  ;;  %v11518_v22 = vunpack.i.l.bf16 %v11517_v41  ;;  %7400 = vmatmul.mubr.msk.f32.vlgmr.msra.gmra.mrb[0].mxu0 %vm1148_vm0, %v13130_v54 }
 0x148   : > { %v695_v36 = vsel %vm688_vm11, %v11513_v39, %v11514_v46  ;;  %7401 = vmatmul.mubr.msk.f32.vlgmr.msra.gmra.mrb[0].mxu1 %vm1148_vm0, %v13130_v54  ;;  %9856 = vmatpush1.bf16.msra.mxu0 %v9855_v27  ;;  %v694_v15 = vsel %vm688_vm11, %v11429_v23, %v11513_v39 }
 0x149   : > { %v11522_v51 = vpop.permute.xlu0 %11521  ;;  %v726_v6 = vsel %vm719_vm6, %v11518_v22, %v11519_v11  ;;  %9858 = vmatprep.subr.bf16.mxu0 %v9857_v19  ;;  %9875 = vmatpush3.bf16.msra.mxu1 %v9874_v38  ;;  %v725_v27 = vsel %vm719_vm6, %v11434_v12, %v11518_v22  ;;  %v878_v59 = vsel %vm820_vm13, %v871_v13, %v694_v15 }
 0x14a   : > { %v11524_v10 = vunpack.i.h.bf16 %v11522_v51  ;;  %v11523_v40 = vunpack.i.l.bf16 %v11522_v51  ;;  %v11527_v16 = vpop.permute.xlu1 %11526  ;;  %9876 = vmatprep.subr.bf16.mxu1 %v17991_v2  ;;  %1358 = vmatprep.mubr.f32.mxu0 %v18038_v45  ;;  %v879_v63 = vsel %vm820_vm13, %v872_v24, %v695_v36  ;;  %v885_v29 = vsel %vm828_vm14, %v878_v59, %v725_v27 }
 0x14b   : > { %v11529_v3 = vunpack.i.h.bf16 %v11527_v16  ;;  %v11528_v38 = vunpack.i.l.bf16 %v11527_v16  ;;  %9666 = vmatprep.mubr.msk.f32.mxu1 %vm11989_vm10, %v18038_v45 }
 0x14c   : > { %v757_v32 = vsel %vm750_vm1, %v11523_v40, %v11524_v10  ;;  %v756_v57 = vsel %vm750_vm1, %v11439_v28, %v11523_v40  ;;  %9860 = vmatpush1.bf16.msra.mxu0 %v9859_v55  ;;  %v886_v55 = vsel %vm828_vm14, %v879_v63, %v726_v6  ;;  %vm18042_vm14 = vcmask 777216  }
 0x14d   : > { %v11532_v9 = vpop.permute.xlu0 %11531  ;;  %v893_v28 = vsel %vm836_vm8, %v726_v6, %v757_v32  ;;  %v788_v23 = vsel %vm781_vm5, %v11528_v38, %v11529_v3  ;;  %9878 = vmatpush3.bf16.msra.mxu1 %v9877_v61  ;;  %v787_v47 = vsel %vm781_vm5, %v11444_v37, %v11528_v38  ;;  %v892_v48 = vsel %vm836_vm8, %v725_v27, %v756_v57 }
 0x14e   : > { %v11534_v1 = vunpack.i.h.bf16 %v11532_v9  ;;  %v11533_v12 = vunpack.i.l.bf16 %v11532_v9  ;;  %9879 = vmatprep.subr.bf16.mxu1 %v17991_v2  ;;  %v899_v33 = vsel %vm844_vm9, %v892_v48, %v787_v47  ;;  %v900_v21 = vsel %vm844_vm9, %v893_v28, %v788_v23  ;;  %v11537_v17 = vpop.permute.xlu1 %11536 }
 0x14f   : > { %v9861_v44 = vpack.c.bf16 %v899_v33, %v885_v29  ;;  %v9880_v49 = vpack.c.bf16 %v900_v21, %v886_v55  ;;  %v11539_v14 = vunpack.i.h.bf16 %v11537_v17  ;;  %v11538_v42 = vunpack.i.l.bf16 %v11537_v17 }
 0x150   : > { %v1090_v37 = vsel %vm1084_vm7, %v11533_v12, %v11534_v1  ;;  %v1089_v46 = vsel %vm1084_vm7, %v11474_v4, %v11533_v12  ;;  %vm18039_vm5 = vcmask 785408  }
 0x151   : > { %v11542_v53 = vpop.permute.xlu0 %11541  ;;  %9862 = vmatprep.subr.bf16.mxu0 %v9861_v44  ;;  %9881 = vmatpush3.bf16.msra.mxu1 %v9880_v49  ;;  %v1096_v60 = vsel %vm1084_vm7, %v11489_v7, %v11538_v42  ;;  %v1097_v0 = vsel %vm1084_vm7, %v11538_v42, %v11539_v14  ;;  %vm18040_vm6 = vmmov %vm18039_vm5 }
 0x152   : > { %v11544_v18 = vunpack.i.h.bf16 %v11542_v53  ;;  %v11543_v43 = vunpack.i.l.bf16 %v11542_v53  ;;  %9864 = vmatpush1.bf16.msra.mxu0 %v9863_v25  ;;  %9882 = vmatprep.subr.bf16.mxu1 %v17991_v2  ;;  %v9865_v50 = vpack.c.bf16 %v1097_v0, %v1090_v37  ;;  %v9867_v7 = vpack.c.bf16 %v1096_v60, %v1089_v46  ;;  %vm18041_vm9 = vmmov %vm18039_vm5 }
 0x154   : > { %9866 = vmatprep.subr.bf16.mxu0 %v9865_v50  ;;  %v1104_v62 = vsel %vm1084_vm7, %v11543_v43, %v11544_v18  ;;  %v1103_v19 = vsel %vm1084_vm7, %v11499_v8, %v11543_v43 }
 0x155   : > { %v11552_v52 = vpop.permute.xlu0 %11551  ;;  %v11547_v39 = vpop.permute.xlu1 %11546 }
 0x156   : > { %v11554_v35 = vunpack.i.h.bf16 %v11552_v52  ;;  %v11553_v30 = vunpack.i.l.bf16 %v11552_v52  ;;  %v11549_v5 = vunpack.i.h.bf16 %v11547_v39  ;;  %v11548_v51 = vunpack.i.l.bf16 %v11547_v39  ;;  %9868 = vmatpush1.bf16.msra.mxu0 %v9867_v7 }
 0x158   : > { %v1091_v41 = vsel %vm1084_vm7, %v11534_v1, %v11553_v30  ;;  %v1098_v56 = vsel %vm1084_vm7, %v11539_v14, %v11554_v35  ;;  %v1110_v34 = vsel %vm1084_vm7, %v11504_v31, %v11548_v51  ;;  %v1111_v4 = vsel %vm1084_vm7, %v11548_v51, %v11549_v5 }
 0x159   : > { %v9883_v25 = vpack.c.bf16 %v1098_v56, %v1091_v41  ;;  %v9869_v40 = vpack.c.bf16 %v1111_v4, %v1104_v62  ;;  %v9871_v36 = vpack.c.bf16 %v1110_v34, %v1103_v19 }
 0x15b   : > { %v11557_v10 = vpop.permute.xlu1 %11556  ;;  %9884 = vmatpush3.bf16.msra.mxu1 %v9883_v25  ;;  %9870 = vmatprep.subr.bf16.mxu0 %v9869_v40 }
 0x15c   : > { %v11559_v11 = vunpack.i.h.bf16 %v11557_v10  ;;  %v11558_v22 = vunpack.i.l.bf16 %v11557_v10  ;;  %9885 = vmatprep.subr.bf16.mxu1 %v17991_v2  ;;  %9872 = vmatpush1.bf16.msra.mxu0 %v9871_v36 }
 0x15e   : > { %v1105_v20 = vsel %vm1084_vm7, %v11544_v18, %v11558_v22  ;;  %v1112_v31 = vsel %vm1084_vm7, %v11549_v5, %v11559_v11  ;;  %vm18043_vm7 = vmmov %vm18042_vm14 }
 0x15f   : > { %v9886_v24 = vpack.c.bf16 %v1112_v31, %v1105_v20  ;;  %7402 = vmatmul.mubr.msk.f32.vlgmr.msra.gmra.mrb[2].mxu0 %vm1148_vm0, %v13130_v54 }
 0x161   : > { %9887 = vmatpush3.bf16.msra.mxu1 %v9886_v24 }
 0x164   : > { %9667 = vmatmul.mubr.msk.f32.vlgmr.msra.gmra.mrb[2].mxu1 %vm1148_vm0, %v13130_v54  ;;  %vm18044_vm0 = vmmov %vm18043_vm7 }
 0x167   : > { %v1146_v58 = vpop.permute.xlu0 %1145 }
 0x21a   : > { %v1218_v8 = vpop.f32.mrb[0].mxu0 }
 0x21b   : > { %v1219_v26 = vadd.f32 %v1218_v8, %v1146_v58  ;;  %v1289_v32 = vpop.f32.mrb[0].mxu1  ;;  %v1220_v6 = vpop.f32.mrb[1].mxu0 }
 0x21c   : > { %v1290_v13 = vadd.f32 %v1289_v32, %v1146_v58  ;;  %v1221_v57 = vadd.f32 %v1220_v6, %v1146_v58  ;;  %v1291_v9 = vpop.f32.mrb[1].mxu1 }
 0x21d   : > { %v1435_v16 = vmax.f32 %v1219_v26, 0.0  ;;  %v1292_v38 = vadd.f32 %v1291_v9, %v1146_v58 }
 0x21e   : > { %v1437_v27 = vmax.f32 %v1290_v13, 0.0  ;;  %v1436_v15 = vmax.f32 %v1221_v57, 0.0 }
 0x21f   : > { %v13222_v54 = vmax.f32 %v1292_v38, 0.0 }
 0x220   : > { %1521 = vrot.lane.b32.xlu0 %v1437_v27, %s11974_s23  ;;  %1453 = vrot.lane.b32.xlu1 %v1437_v27, %s11971_s20  ;;  %v11561_v3 = vpack.i.bf16 %v1435_v16, %v1436_v15 }
 0x224   : > { %1487 = vrot.lane.b32.xlu1 %v1437_v27, %s11973_s22  ;;  %11562 = vrot.lane.b32.xlu0 %v11561_v3, %s11971_s20 }
 0x228   : > { %1455 = vrot.lane.b32.xlu1 %v13222_v54, %s11971_s20  ;;  %1489 = vrot.lane.b32.xlu0 %v13222_v54, %s11973_s22 }
 0x22c   : > { %11567 = vrot.lane.b32.xlu1 %v11561_v3, %s11973_s22  ;;  %11572 = vrot.lane.b32.xlu0 %v11561_v3, %s11974_s23 }
 0x230   : > { %1523 = vrot.lane.b32.xlu1 %v13222_v54, %s11974_s23 }
 0x232   : > { %v1360_v61 = vpop.f32.mrb[2].mxu0 }
 0x233   : > { %v1361_v28 = vadd.f32 %v1360_v61, %v1146_v58  ;;  %v1362_v1 = vpop.f32.mrb[3].mxu0 }
 0x234   : > { %v1363_v63 = vadd.f32 %v1362_v1, %v1146_v58 }
 0x235   : > { %v13232_v59 = vmax.f32 %v1361_v28, 0.0 }
 0x236   : > { %v13238_v47 = vmax.f32 %v1363_v63, 0.0 }
 0x237   : > { %v1431_v12 = vpop.f32.mrb[2].mxu1  ;;  %1491 = vrot.lane.b32.xlu1 %v13232_v59, %s11973_s22  ;;  %1457 = vrot.lane.b32.xlu0 %v13232_v59, %s11971_s20 }
 0x238   : > { %v9668_v23 = vpop.f32.mrb[3].mxu1  ;;  %v1432_v48 = vadd.f32 %v1431_v12, %v1146_v58 }
 0x23a   : > { %v13248_v53 = vmax.f32 %v1432_v48, 0.0 }
 0x23b   : > { %1459 = vrot.lane.b32.xlu1 %v13238_v47, %s11971_s20  ;;  %1525 = vrot.lane.b32.xlu0 %v13232_v59, %s11974_s23 }
 0x23f   : > { %1527 = vrot.lane.b32.xlu1 %v13238_v47, %s11974_s23  ;;  %1493 = vrot.lane.b32.xlu0 %v13238_v47, %s11973_s22 }
 0x243   : > { %1461 = vrot.lane.b32.xlu1 %v13248_v53, %s11971_s20  ;;  %1495 = vrot.lane.b32.xlu0 %v13248_v53, %s11973_s22  ;;  %s11990_s20 = smov 58   ;;  %s11991_s22 = smov 120  }
 0x247   : > { %1529 = vrot.lane.b32.xlu1 %v13248_v53, %s11974_s23  ;;  %s11992_s23 = smov 122  }
 0x292   : > { %v1522_v29 = vpop.permute.xlu0 %1521  ;;  %v1454_v33 = vpop.permute.xlu1 %1453 }
 0x296   : > { %v1488_v55 = vpop.permute.xlu1 %1487  ;;  %v11563_v21 = vpop.permute.xlu0 %11562 }
 0x297   : > { %v11565_v17 = vunpack.i.h.bf16 %v11563_v21  ;;  %v11564_v44 = vunpack.i.l.bf16 %v11563_v21 }
 0x299   : > { %v1463_v37 = vsel %vm311_vm2, %v11565_v17, %v11564_v44  ;;  %v1464_v18 = vsel %vm311_vm2, %v11564_v44, %v1454_v33 }
 0x29a   : > { %v1456_v49 = vpop.permute.xlu1 %1455  ;;  %v1490_v14 = vpop.permute.xlu0 %1489  ;;  %v1476_v39 = vmax.f32 %v1435_v16, %v1463_v37  ;;  %v1477_v50 = vmax.f32 %v1436_v15, %v1464_v18 }
 0x29b   : > { %v1465_v42 = vsel %vm311_vm2, %v1454_v33, %v1456_v49  ;;  %v1499_v5 = vsel %vm18039_vm5, %v1488_v55, %v1490_v14 }
 0x29c   : > { %v1478_v43 = vmax.f32 %v1437_v27, %v1465_v42 }
 0x29e   : > { %v11568_v60 = vpop.permute.xlu1 %11567  ;;  %v11573_v52 = vpop.permute.xlu0 %11572  ;;  %v1512_v41 = vmax.f32 %v1478_v43, %v1499_v5 }
 0x29f   : > { %v11570_v0 = vunpack.i.h.bf16 %v11568_v60  ;;  %v11569_v46 = vunpack.i.l.bf16 %v11568_v60  ;;  %v11575_v35 = vunpack.i.h.bf16 %v11573_v52  ;;  %v11574_v30 = vunpack.i.l.bf16 %v11573_v52 }
 0x2a1   : > { %v1497_v51 = vsel %vm18040_vm6, %v11570_v0, %v11569_v46  ;;  %v1498_v7 = vsel %vm18041_vm9, %v11569_v46, %v1488_v55  ;;  %v1531_v62 = vsel %vm18042_vm14, %v11575_v35, %v11574_v30  ;;  %v1532_v4 = vsel %vm18043_vm7, %v11574_v30, %v1522_v29  ;;  %vm18045_vm6 = vmmov %vm18044_vm0 }
 0x2a2   : > { %v1510_v56 = vmax.f32 %v1476_v39, %v1497_v51  ;;  %v1511_v34 = vmax.f32 %v1477_v50, %v1498_v7  ;;  %v1524_v25 = vpop.permute.xlu1 %1523  ;;  %vm18046_vm9 = vmmov %vm18039_vm5 }
 0x2a3   : > { %v1533_v19 = vsel %vm18044_vm0, %v1522_v29, %v1524_v25  ;;  %vm18047_vm14 = vmmov %vm18039_vm5 }
 0x2a4   : > { %v13265_v10 = vmax.f32 %v1510_v56, %v1531_v62  ;;  %v13267_v40 = vmax.f32 %v1511_v34, %v1532_v4  ;;  %v13269_v11 = vmax.f32 %v1512_v41, %v1533_v19  ;;  %vm18049_vm7 = vmmov %vm18044_vm0 }
 0x2a6   : > { %1723 = vrot.lane.b32.xlu1 %v13269_v11, %s11990_s20  ;;  %v11576_v22 = vpack.i.bf16 %v13269_v11, %v13267_v40  ;;  %v1580_v36 = vrot.slane %v13265_v10, 4  ;;  %v1556_v20 = vrot.slane %v13265_v10, 2  ;;  %v1606_v31 = vrot.slane %v13269_v11, 6 }
 0x2a7   : > { %v13284_v32 = vrot.slane %v13269_v11, 2  ;;  %v1604_v6 = vrot.slane %v13265_v10, 6  ;;  %v13324_v18 = vrot.slane %v13267_v40, 2  ;;  %v13338_v35 = vrot.slane %v13267_v40, 4 }
 0x2a8   : > { %11577 = vrot.lane.b32.xlu0 %v11576_v22, %s11991_s22  ;;  %v11586_v26 = vpack.i.bf16 %v13269_v11, %v1580_v36  ;;  %v11581_v9 = vpack.i.bf16 %v1606_v31, %v1556_v20  ;;  %v1605_v51 = vrot.slane %v13267_v40, 6 }
 0x2a9   : > { %v1492_v24 = vpop.permute.xlu1 %1491  ;;  %v1458_v58 = vpop.permute.xlu0 %1457  ;;  %v11591_v38 = vpack.i.bf16 %v13284_v32, %v1604_v6 }
 0x2aa   : > { %v1466_v8 = vsel %vm311_vm2, %v1456_v49, %v1458_v58  ;;  %v1500_v57 = vsel %vm18039_vm5, %v1490_v14, %v1492_v24  ;;  %11587 = vrot.lane.b32.xlu1 %v11586_v26, %s11977_s9  ;;  %vm1639_vm5 = vcmask 982016  }
 0x2ab   : > { %v1479_v13 = vmax.f32 %v13222_v54, %v1466_v8 }
 0x2ac   : > { %11582 = vrot.lane.b32.xlu0 %v11581_v9, %s11970_s19 }
 0x2ad   : > { %v1460_v16 = vpop.permute.xlu1 %1459  ;;  %v1513_v27 = vmax.f32 %v1479_v13, %v1500_v57  ;;  %v1526_v15 = vpop.permute.xlu0 %1525 }
 0x2ae   : > { %v1534_v3 = vsel %vm18045_vm6, %v1524_v25, %v1526_v15  ;;  %11592 = vrot.lane.b32.xlu1 %v11591_v38, %s11992_s23  ;;  %v1467_v29 = vsel %vm311_vm2, %v1458_v58, %v1460_v16  ;;  %v13366_v25 = vrot.slane %v13269_v11, 4  ;;  %vm1969_vm6 = vcmask 539648  }
 0x2af   : > { %v13299_v54 = vmax.f32 %v1513_v27, %v1534_v3  ;;  %v1480_v14 = vmax.f32 %v13232_v59, %v1467_v29 }
 0x2b1   : > { %v1528_v61 = vpop.permute.xlu1 %1527  ;;  %v1494_v28 = vpop.permute.xlu0 %1493  ;;  %v11601_v1 = vpack.i.bf16 %v13299_v54, %v13269_v11  ;;  %v11606_v49 = vpack.i.bf16 %v13299_v54, %v13265_v10  ;;  %v1559_v5 = vrot.slane %v13299_v54, 2  ;;  %v13361_v34 = vrot.slane %v13299_v54, 4 }
 0x2b2   : > { %11597 = vrot.lane.b32.xlu1 %v11581_v9, %s11979_s14  ;;  %v1501_v21 = vsel %vm18046_vm9, %v1492_v24, %v1494_v28  ;;  %v1535_v0 = vsel %vm18049_vm7, %v1526_v15, %v1528_v61  ;;  %v1607_v22 = vrot.slane %v13299_v54, 6  ;;  %vm1619_vm9 = vcmask 998400  }
 0x2b3   : > { %11602 = vrot.lane.b32.xlu0 %v11601_v1, %s11993_s21  ;;  %v11631_v41 = vpack.i.bf16 %v1559_v5, %v13284_v32  ;;  %v11636_v4 = vpack.i.bf16 %v13361_v34, %v13366_v25  ;;  %v11716_v1 = vpack.i.bf16 %v13284_v32, %v13324_v18  ;;  %v11741_v32 = vpack.i.bf16 %v13338_v35, %v13361_v34 }
 0x2b4   : > { %v11641_v58 = vpack.i.bf16 %v1607_v22, %v1606_v31 }
 0x2b5   : > { %v1462_v63 = vpop.permute.xlu1 %1461  ;;  %v1496_v48 = vpop.permute.xlu0 %1495 }
 0x2b6   : > { %v1468_v12 = vsel %vm311_vm2, %v1460_v16, %v1462_v63  ;;  %v1482_v23 = vmax.f32 %v13248_v53, %v1462_v63  ;;  %v1502_v17 = vsel %vm18047_vm14, %v1494_v28, %v1496_v48  ;;  %vm18048_vm2 = vmmov %vm18044_vm0  ;;  %v11706_v28 = vpack.i.bf16 %v13265_v10, %v13267_v40 }
 0x2b7   : > { %v1481_v33 = vmax.f32 %v13238_v47, %v1468_v12  ;;  %1725 = vrot.lane.b32.xlu0 %v13299_v54, %s11990_s20  ;;  %v1514_v47 = vmax.f32 %v1480_v14, %v1501_v21  ;;  %v11721_v63 = vpack.i.bf16 %v1559_v5, %v1556_v20  ;;  %v11726_v12 = vpack.i.bf16 %v1605_v51, %v1607_v22 }
 0x2b8   : > { %v1516_v55 = vmax.f32 %v1482_v23, %v1496_v48  ;;  %v11736_v23 = vpack.i.bf16 %v13324_v18, %v1559_v5  ;;  %vm1731_vm0 = vcmask 474112   ;;  %vm18057_vm14 = vcmask 1031168  }
 0x2b9   : > { %v1530_v44 = vpop.permute.xlu1 %1529  ;;  %v1515_v53 = vmax.f32 %v1481_v33, %v1502_v17  ;;  %v13332_v46 = vmax.f32 %v1514_v47, %v1535_v0 }
 0x2ba   : > { %v13317_v42 = vmax.f32 %v1516_v55, %v1530_v44  ;;  %v1536_v37 = vsel %vm18048_vm2, %v1528_v61, %v1530_v44  ;;  %vm18059_vm2 = vmmov %vm18057_vm14 }
 0x2bb   : > { %11607 = vrot.lane.b32.xlu0 %v11606_v49, %s11991_s22  ;;  %v13327_v60 = vmax.f32 %v1515_v53, %v1536_v37  ;;  %v1560_v56 = vrot.slane %v13332_v46, 2  ;;  %v13372_v19 = vrot.slane %v13332_v46, 4  ;;  %v1608_v8 = vrot.slane %v13332_v46, 6  ;;  %vm18060_vm7 = vmmov %vm18059_vm2 }
 0x2bc   : > { %1967 = vrot.lane.b32.xlu1 %v13317_v42, %s11993_s21  ;;  %v1930_v43 = vrot.slane %v13317_v42, 2  ;;  %v1940_v52 = vrot.slane %v13317_v42, 4  ;;  %v13349_v50 = vrot.slane %v13317_v42, 6  ;;  %v11701_v38 = vpack.i.bf16 %v13366_v25, %v13332_v46 }
 0x2bd   : > { %v13342_v30 = vpack.i.bf16 %v13327_v60, %v13332_v46  ;;  %v11661_v62 = vpack.i.bf16 %v13324_v18, %v1560_v56  ;;  %18051 = vst [vmem:[#allocation7_spill] sm:$0xff] %v13372_v19  ;;  %v11666_v24 = vpack.i.bf16 %v13338_v35, %v13372_v19  ;;  %v11671_v26 = vpack.i.bf16 %v1605_v51, %v1608_v8 }
 0x2be   : > { %v11616_v59 = vpack.i.bf16 %v13324_v18, %v1930_v43  ;;  %v11621_v39 = vpack.i.bf16 %v13338_v35, %v1940_v52  ;;  %18050 = vst [vmem:[#allocation5_spill] sm:$0xff] %v13349_v50  ;;  %v11626_v7 = vpack.i.bf16 %v1605_v51, %v13349_v50  ;;  %v13385_v13 = vrot.slane %v13327_v60, 2 }
 0x2bf   : > { %v13391_v9 = vrot.slane %v13327_v60, 4  ;;  %v1696_v15 = vrot.slane %v13327_v60, 6 }
 0x2c0   : > { %1998 = vrot.lane.b32.xlu1 %v13317_v42, %s11990_s20  ;;  %11617 = vrot.lane.b32.xlu0 %v11616_v59, %s11979_s14  ;;  %18052 = vst [vmem:[#allocation6_spill] sm:$0xff] %v13385_v13  ;;  %v11676_v57 = vpack.i.bf16 %v13385_v13, %v1560_v56  ;;  %v11681_v27 = vpack.i.bf16 %v1930_v43, %v13385_v13 }
 0x2c1   : > { %v11686_v31 = vpack.i.bf16 %v1940_v52, %v13391_v9  ;;  %v11691_v16 = vpack.i.bf16 %v13391_v9, %v13372_v19  ;;  %v11696_v3 = vpack.i.bf16 %v1696_v15, %v1608_v8  ;;  %v11711_v61 = vpack.i.bf16 %v13349_v50, %v1696_v15 }
 0x2c4   : > { %11612 = vrot.lane.b32.xlu1 %v13342_v30, %s11993_s21  ;;  %11622 = vrot.lane.b32.xlu0 %v11621_v39, %s11981_s16 }
 0x2c8   : > { %1727 = vrot.lane.b32.xlu1 %v13332_v46, %s11990_s20  ;;  %1729 = vrot.lane.b32.xlu0 %v13327_v60, %s11990_s20 }
 0x2cc   : > { %11627 = vrot.lane.b32.xlu1 %v11626_v7, %s11982_s17  ;;  %11632 = vrot.lane.b32.xlu0 %v11631_v41, %s11970_s19 }
 0x2d0   : > { %11662 = vrot.lane.b32.xlu1 %v11661_v62, %s11970_s19  ;;  %11637 = vrot.lane.b32.xlu0 %v11636_v4, %s11977_s9 }
 0x2d4   : > { %11667 = vrot.lane.b32.xlu1 %v11666_v24, %s11977_s9  ;;  %11642 = vrot.lane.b32.xlu0 %v11641_v58, %s11992_s23 }
 0x2d8   : > { %11672 = vrot.lane.b32.xlu1 %v11671_v26, %s11992_s23  ;;  %11647 = vrot.lane.b32.xlu0 %v11631_v41, %s11979_s14 }
 0x2dc   : > { %11677 = vrot.lane.b32.xlu1 %v11676_v57, %s11979_s14  ;;  %11652 = vrot.lane.b32.xlu0 %v11636_v4, %s11981_s16 }
 0x2e0   : > { %11687 = vrot.lane.b32.xlu1 %v11686_v31, %s11977_s9  ;;  %11657 = vrot.lane.b32.xlu0 %v11641_v58, %s11982_s17 }
 0x2e4   : > { %11692 = vrot.lane.b32.xlu1 %v11691_v16, %s11981_s16  ;;  %11682 = vrot.lane.b32.xlu0 %v11681_v27, %s11970_s19 }
 0x2e8   : > { %11697 = vrot.lane.b32.xlu1 %v11696_v3, %s11982_s17  ;;  %11702 = vrot.lane.b32.xlu0 %v11701_v38, %s11991_s22 }
 0x2ec   : > { %1697 = vrot.lane.b32.xlu1 %v1604_v6, %s11982_s17  ;;  %11712 = vrot.lane.b32.xlu0 %v11711_v61, %s11992_s23  ;;  %v11731_v6 = vpack.i.bf16 %v13267_v40, %v13299_v54 }
 0x2f0   : > { %11707 = vrot.lane.b32.xlu1 %v11706_v28, %s11990_s20  ;;  %11717 = vrot.lane.b32.xlu0 %v11716_v1, %s11994_s29 }
 0x2f4   : > { %11722 = vrot.lane.b32.xlu1 %v11721_v63, %s11994_s29  ;;  %11727 = vrot.lane.b32.xlu0 %v11726_v12, %s11970_s19 }
 0x2f8   : > { %11732 = vrot.lane.b32.xlu1 %v11731_v6, %s11977_s9  ;;  %11737 = vrot.lane.b32.xlu0 %v11736_v23, %s11992_s23 }
 0x2fc   : > { %11747 = vrot.lane.b32.xlu1 %v11726_v12, %s11979_s14  ;;  %11742 = vrot.lane.b32.xlu0 %v11741_v32, %s11991_s22 }
 0x300   : > { %11752 = vrot.lane.b32.xlu1 %v13342_v30, %s11977_s9  ;;  %11757 = vrot.lane.b32.xlu0 %v11696_v3, %s11970_s19  ;;  %s8447_s9 = sshll.u32 %s12057_s28, 4  ;;  %s11995_s28 = smov [#allocation2]  }
 0x301   : > { %s17923_s15 = scalar_lea.hbm %s17972_s7, %s8447_s9  ;;  %s11909_s20 = sshll.u32 %s11995_s28, 4  ;;  %s11910_s20 = int_to_ptr.vmem [resolvable:$false] %s11909_s20 }
 0x304   : > { %1750 = vrot.lane.b32.xlu1 %v1560_v56, %s11994_s29  ;;  %11762 = vrot.lane.b32.xlu0 %v11676_v57, %s11992_s23 }
 0x308   : > { %11767 = vrot.lane.b32.xlu1 %v11691_v16, %s11991_s22  ;;  %11772 = vrot.lane.b32.xlu0 %v11696_v3, %s11979_s14  ;;  %s11911_s22 = scalar_lea.vmem %s11910_s20, 32 }
 0x318   : > { %v13439_v20 = vpop.permute.xlu1 %1723 }
 0x319   : > { %v13479_v4 = vsel %vm804_vm12, %v13439_v20, 0.0 }
 0x31a   : > { %v11578_v48 = vpop.permute.xlu0 %11577 }
 0x31b   : > { %v11580_v52 = vunpack.i.h.bf16 %v11578_v48  ;;  %v11579_v0 = vunpack.i.l.bf16 %v11578_v48 }
 0x31c   : > { %v13441_v29 = vpop.permute.xlu1 %11587 }
 0x31d   : > { %v11589_v24 = vunpack.i.l.bf16 %v13441_v29  ;;  %v13487_v57 = vsel %vm1639_vm5, %v11579_v0, %v11580_v52 }
 0x31e   : > { %v13443_v33 = vpop.permute.xlu0 %11582 }
 0x31f   : > { %v11584_v3 = vunpack.i.l.bf16 %v13443_v33 }
 0x320   : > { %v13445_v55 = vpop.permute.xlu1 %11592 }
 0x324   : > { %v13449_v44 = vpop.permute.xlu1 %11597 }
 0x325   : > { %v13447_v21 = vpop.permute.xlu0 %11602  ;;  %v11599_v16 = vunpack.i.l.bf16 %v13449_v44 }
 0x326   : > { %v11605_v7 = vunpack.i.h.bf16 %v13447_v21  ;;  %v17994_v41 = vunpack.i.l.bf16 %v13447_v21 }
 0x328   : > { %v13496_v61 = vsel %vm1969_vm6, %v17994_v41, %v11605_v7 }
 0x329   : > { %v1726_v17 = vpop.permute.xlu0 %1725 }
 0x32a   : > { %v13453_v49 = vsel %vm1731_vm0, %v13439_v20, %v1726_v17 }
 0x32b   : > { %v2026_v14 = vsel %vm804_vm12, %v13453_v49, 0.0 }
 0x32c   : > { %2147 = vrot.lane.b32.xlu0 %v2026_v14, %s11981_s16 }
 0x32d   : > { %v13458_v53 = vpop.permute.xlu0 %11607 }
 0x32e   : > { %v1968_v37 = vpop.permute.xlu1 %1967  ;;  %v17993_v56 = vunpack.i.h.bf16 %v13458_v53  ;;  %v11609_v58 = vunpack.i.l.bf16 %v13458_v53 }
 0x330   : > { %v13504_v1 = vsel %vm1639_vm5, %v11580_v52, %v17993_v56  ;;  %v1640_v23 = vsel %vm1639_vm5, %v11609_v58, %v11579_v0 }
 0x332   : > { %v13460_v47 = vpop.permute.xlu1 %1998  ;;  %v13462_v18 = vpop.permute.xlu0 %11617 }
 0x333   : > { %18053 = vst [vmem:[#allocation8_spill] sm:$0xff] %v13460_v47  ;;  %v17995_v62 = vunpack.i.h.bf16 %v13462_v18  ;;  %v13499_v28 = vunpack.i.l.bf16 %v13462_v18 }
 0x335   : > { %18055 = vst [vmem:[#allocation10_spill] sm:$0xff] %v13499_v28  ;;  %v13509_v63 = vsel %vm625_vm3, %v11599_v16, %v17995_v62  ;;  %v13522_v31 = vsel %vm804_vm12, %v1968_v37, %v13499_v28 }
 0x336   : > { %v11613_v43 = vpop.permute.xlu1 %11612  ;;  %v13464_v59 = vpop.permute.xlu0 %11622  ;;  %18056 = vst [vmem:[#allocation11_spill] sm:$0xff] %v13509_v63  ;;  %18058 = vst [vmem:[#allocation12_spill] sm:$0xff] %v13522_v31 }
 0x337   : > { %18054 = vst [vmem:[#allocation9_spill] sm:$0xff] %v13464_v59  ;;  %v11615_v12 = vunpack.i.h.bf16 %v11613_v43  ;;  %v11614_v32 = vunpack.i.l.bf16 %v11613_v43  ;;  %v13525_v0 = vunpack.i.l.bf16 %v13464_v59 }
 0x339   : > { %v13535_v58 = vsel %vm1969_vm6, %v11615_v12, %v1968_v37  ;;  %v13542_v41 = vsel %vm1969_vm6, %v11605_v7, %v11614_v32  ;;  %v13545_v62 = vsel %vm1969_vm6, %v11614_v32, %v11615_v12  ;;  %vm18062_vm6 = vmmov %vm18059_vm2 }
 0x33a   : > { %v1728_v30 = vpop.permute.xlu1 %1727  ;;  %v1730_v39 = vpop.permute.xlu0 %1729 }
 0x33b   : > { %v13467_v5 = vsel %vm1731_vm0, %v1726_v17, %v1728_v30  ;;  %v13471_v51 = vsel %vm1731_vm0, %v1730_v39, %v13460_v47 }
 0x33e   : > { %v13484_v8 = vpop.permute.xlu1 %11627  ;;  %v11633_v26 = vpop.permute.xlu0 %11632 }
 0x33f   : > { %v11635_v27 = vunpack.i.h.bf16 %v11633_v26  ;;  %v11634_v15 = vunpack.i.l.bf16 %v11633_v26  ;;  %v17997_v48 = vunpack.i.l.bf16 %v13484_v8 }
 0x341   : > { %v1573_v6 = vsel %vm18057_vm14, %v11634_v15, %v11635_v27  ;;  %v13554_v37 = vsel %vm836_vm8, %v13525_v0, %v17997_v48  ;;  %vm18067_vm14 = vmmov %vm18059_vm2 }
 0x342   : > { %v11663_v17 = vpop.permute.xlu1 %11662  ;;  %v11638_v14 = vpop.permute.xlu0 %11637  ;;  %v13516_v26 = vsel %vm804_vm12, %v13269_v11, %v1573_v6  ;;  %v13532_v11 = vsel %vm804_vm12, %v1640_v23, %v13509_v63  ;;  %18061 = vst [vmem:[#allocation13_spill] sm:$0xff] %v13554_v37 }
 0x343   : > { %v11665_v52 = vunpack.i.h.bf16 %v11663_v17  ;;  %v13518_v2 = vunpack.i.l.bf16 %v11663_v17  ;;  %v11640_v22 = vunpack.i.h.bf16 %v11638_v14  ;;  %v11639_v16 = vunpack.i.l.bf16 %v11638_v14 }
 0x344   : > { %v11776_v43 = vpack.i.bf16 %v13516_v26, %v1580_v36  ;;  %v13548_v36 = vsel %vm1731_vm0, %v1728_v30, %v1730_v39 }
 0x345   : > { %v1572_v17 = vsel %vm18059_vm2, %v11665_v52, %v11634_v15  ;;  %v1597_v14 = vsel %vm413_vm15, %v11639_v16, %v11640_v22  ;;  %v1574_v56 = vsel %vm18060_vm7, %v11635_v27, %v13518_v2  ;;  %v1571_v12 = vsel %vm18062_vm6, %v11584_v3, %v11665_v52 }
 0x346   : > { %11777 = vrot.lane.b32.xlu0 %v11776_v43, %s11981_s16  ;;  %v11668_v15 = vpop.permute.xlu1 %11667  ;;  %v11643_v23 = vpop.permute.xlu0 %11642  ;;  %v1873_v30 = vsel %vm804_vm12, %v13299_v54, %v1574_v56  ;;  %v1877_v39 = vsel %vm820_vm13, %v1573_v6, %v1597_v14  ;;  %v1871_v32 = vsel %vm804_vm12, %v13267_v40, %v1572_v17  ;;  %vm1754_vm7 = vcmask 457728  }
 0x347   : > { %v11670_v27 = vunpack.i.h.bf16 %v11668_v15  ;;  %v13557_v38 = vunpack.i.l.bf16 %v11668_v15  ;;  %v11645_v7 = vunpack.i.h.bf16 %v11643_v23  ;;  %v11644_v45 = vunpack.i.l.bf16 %v11643_v23 }
 0x348   : > { %v11786_v19 = vpack.i.bf16 %v1877_v39, %v1873_v30 }
 0x349   : > { %v1595_v48 = vsel %vm413_vm15, %v11589_v24, %v11670_v27  ;;  %v1596_v43 = vsel %vm413_vm15, %v11670_v27, %v11639_v16  ;;  %v1622_v63 = vsel %vm1619_vm9, %v11644_v45, %v11645_v7  ;;  %v1598_v15 = vsel %vm413_vm15, %v11640_v22, %v13557_v38 }
 0x34a   : > { %v11673_v23 = vpop.permute.xlu1 %11672  ;;  %v11648_v47 = vpop.permute.xlu0 %11647  ;;  %v1878_v3 = vsel %vm820_vm13, %v1574_v56, %v1598_v15  ;;  %v1876_v54 = vsel %vm820_vm13, %v1572_v17, %v1596_v43  ;;  %v13573_v6 = vsel %vm836_vm8, %v1597_v14, %v1622_v63  ;;  %v1875_v40 = vsel %vm820_vm13, %v1571_v12, %v1595_v48 }
 0x34b   : > { %v11675_v52 = vunpack.i.h.bf16 %v11673_v23  ;;  %v13576_v24 = vunpack.i.l.bf16 %v11673_v23  ;;  %v11650_v16 = vunpack.i.h.bf16 %v11648_v47  ;;  %v13578_v27 = vunpack.i.l.bf16 %v11648_v47 }
 0x34c   : > { %v9924_v37 = vpack.c.bf16 %v1878_v3, %v1873_v30  ;;  %v11791_v31 = vpack.i.bf16 %v1871_v32, %v1878_v3  ;;  %v11781_v22 = vpack.i.bf16 %v13573_v6, %v1876_v54  ;;  %v9888_v50 = vpack.c.bf16 %v1876_v54, %v1871_v32 }
 0x34d   : > { %v1621_v56 = vsel %vm1619_vm9, %v11675_v52, %v11644_v45  ;;  %v1623_v17 = vsel %vm1619_vm9, %v11645_v7, %v13576_v24  ;;  %v13587_v63 = vsel %vm836_vm8, %v13557_v38, %v13576_v24  ;;  %v1870_v14 = vsel %vm804_vm12, %v13265_v10, %v1571_v12 }
 0x34e   : > { %v18004_v47 = vunpack.i.h.bf16 %v13464_v59  ;;  %v13594_v23 = vsel %vm625_vm3, %v13578_v27, %v11650_v16  ;;  %9925 = vmatprep.subr.bf16.mxu1 %v9924_v37  ;;  %11782 = vrot.lane.b32.xlu1 %v11781_v22, %s11981_s16  ;;  %v11678_v45 = vpop.permute.xlu1 %11677  ;;  %v11653_v32 = vpop.permute.xlu0 %11652  ;;  %v9890_v7 = vpack.c.bf16 %v1875_v40, %v1870_v14  ;;  %v9926_v3 = vpack.c.bf16 %v1877_v39, %v13516_v26 }
 0x34f   : > { %v18063_v54 = vunpack.i.l.bf16 %v13445_v55  ;;  %11792 = vrot.lane.b32.xlu0 %v11791_v31, %s11981_s16  ;;  %9889 = vmatprep.subr.bf16.mxu0 %v9888_v50  ;;  %v11679_v10 = vunpack.i.l.bf16 %v11678_v45  ;;  %v13603_v12 = vsel %vm836_vm8, %v1598_v15, %v1623_v17  ;;  %v18005_v37 = vunpack.i.h.bf16 %v13484_v8 }
 0x350   : > { %9891 = vmatpush1.bf16.msra.mxu0 %v9890_v7  ;;  %9927 = vmatpush1.bf16.msra.mxu1 %v9926_v3  ;;  %v2014_v26 = vsel %vm804_vm12, %v13496_v61, %v13594_v23  ;;  %v18064_v40 = vunpack.i.h.bf16 %v13462_v18  ;;  %v1881_v31 = vsel %vm836_vm8, %v1596_v43, %v1621_v56  ;;  %v11680_v50 = vunpack.i.h.bf16 %v11678_v45 }
 0x351   : > { %v1620_v13 = vsel %vm1619_vm9, %v18063_v54, %v11675_v52  ;;  %v13615_v39 = vsel %vm625_vm3, %v11650_v16, %v11679_v10  ;;  %v11655_v15 = vunpack.i.h.bf16 %v11653_v32  ;;  %v13617_v52 = vunpack.i.l.bf16 %v11653_v32 }
 0x352   : > { %v1664_v30 = vsel %vm625_vm3, %v18064_v40, %v13578_v27  ;;  %11787 = vrot.lane.b32.xlu1 %v11786_v19, %s11981_s16  ;;  %v11796_v22 = vpack.i.bf16 %v2014_v26, %v13603_v12  ;;  %v2015_v18 = vsel %vm804_vm12, %v13542_v41, %v13615_v39  ;;  %v11688_v17 = vpop.permute.xlu1 %11687  ;;  %v11658_v43 = vpop.permute.xlu0 %11657  ;;  %v1880_v56 = vsel %vm836_vm8, %v1595_v48, %v1620_v13 }
 0x353   : > { %v1886_v61 = vsel %vm804_vm12, %v13487_v57, %v1664_v30  ;;  %v11801_v14 = vpack.i.bf16 %v1881_v31, %v2015_v18  ;;  %v13627_v45 = vunpack.i.h.bf16 %v11688_v17  ;;  %v11689_v32 = vunpack.i.l.bf16 %v11688_v17 }
 0x354   : > { %v9892_v16 = vpack.c.bf16 %v1886_v61, %v1881_v31  ;;  %11797 = vrot.lane.b32.xlu0 %v11796_v22, %s11981_s16  ;;  %v11660_v19 = vunpack.i.h.bf16 %v11658_v43  ;;  %v11659_v7 = vunpack.i.l.bf16 %v11658_v43  ;;  %v9894_v3 = vpack.c.bf16 %v13532_v11, %v1880_v56 }
 0x355   : > { %v13634_v57 = vsel %vm804_vm12, %v13332_v46, %v13518_v2  ;;  %v13637_v41 = vsel %vm625_vm3, %v11679_v10, %v11680_v50  ;;  %v13641_v13 = vsel %vm625_vm3, %v11680_v50, %v13499_v28  ;;  %v1688_v48 = vsel %vm688_vm11, %v13617_v52, %v11655_v15 }
 0x356   : > { %18065 = vst [vmem:[#allocation14_spill] sm:$0xff] %v13634_v57  ;;  %9893 = vmatprep.subr.bf16.mxu0 %v9892_v16  ;;  %v1687_v11 = vsel %vm688_vm11, %v18004_v47, %v13617_v52  ;;  %v13652_v26 = vsel %vm413_vm15, %v13557_v38, %v11689_v32  ;;  %v1710_v10 = vsel %vm750_vm1, %v18005_v37, %v11659_v7  ;;  %v13659_v31 = vpop.permute.xlu1 %11692  ;;  %v11683_v50 = vpop.permute.xlu0 %11682 }
 0x357   : > { %v1711_v40 = vsel %vm750_vm1, %v11659_v7, %v11660_v19  ;;  %9895 = vmatpush1.bf16.msra.mxu0 %v9894_v3  ;;  %11802 = vrot.lane.b32.xlu1 %v11801_v14, %s11981_s16  ;;  %v13663_v22 = vsel %vm413_vm15, %v11689_v32, %v13627_v45  ;;  %v11694_v61 = vunpack.i.l.bf16 %v13659_v31  ;;  %v11685_v18 = vunpack.i.h.bf16 %v11683_v50 }
 0x358   : > { %v11684_v17 = vunpack.i.l.bf16 %v11683_v50  ;;  %v13668_v43 = vsel %vm836_vm8, %v13617_v52, %v11659_v7  ;;  %v1891_v56 = vsel %vm820_vm13, %v1664_v30, %v1687_v11  ;;  %v1896_v16 = vsel %vm836_vm8, %v1687_v11, %v1710_v10 }
 0x359   : > { %v18066_v14 = vunpack.i.l.bf16 %v13447_v21  ;;  %v13678_v47 = vsel %vm836_vm8, %v1688_v48, %v1711_v40  ;;  %v13682_v50 = vsel %vm820_vm13, %v13594_v23, %v1688_v48  ;;  %v1887_v30 = vsel %vm804_vm12, %v13504_v1, %v13594_v23 }
 0x35a   : > { %v1689_v7 = vsel %vm688_vm11, %v11655_v15, %v11694_v61  ;;  %v1935_v21 = vsel %vm18067_vm14, %v13518_v2, %v11684_v17  ;;  %v1936_v11 = vsel %vm18059_vm2, %v11684_v17, %v11685_v18  ;;  %v9896_v10 = vpack.c.bf16 %v1896_v16, %v1891_v56  ;;  %v13693_v40 = vpop.permute.xlu0 %11702 }
 0x35b   : > { %v2013_v3 = vsel %vm804_vm12, %v18066_v14, %v13578_v27  ;;  %v13691_v14 = vpop.permute.xlu1 %11697  ;;  %v13697_v48 = vsel %vm804_vm12, %v13317_v42, %v11685_v18  ;;  %v13701_v1 = vsel %vm820_vm13, %v11685_v18, %v13627_v45  ;;  %v11704_v15 = vunpack.i.l.bf16 %v13693_v40 }
 0x35c   : > { %v11699_v23 = vunpack.i.l.bf16 %v13691_v14  ;;  %9897 = vmatprep.subr.bf16.mxu0 %v9896_v10  ;;  %v2005_v56 = vsel %vm804_vm12, %v13327_v60, %v1936_v11  ;;  %v2007_v16 = vsel %vm820_vm13, %v1935_v21, %v13652_v26  ;;  %v2004_v42 = vsel %vm804_vm12, %v13332_v46, %v1935_v21 }
 0x35d   : > { %v18068_v18 = vunpack.i.h.bf16 %v13458_v53  ;;  %v13718_v10 = vsel %vm804_vm12, %v11704_v15, %v13637_v41  ;;  %v1893_v17 = vsel %vm820_vm13, %v13615_v39, %v1689_v7  ;;  %v11811_v37 = vpack.i.bf16 %v2007_v16, %v2005_v56 }
 0x35e   : > { %v1712_v54 = vsel %vm750_vm1, %v11660_v19, %v11699_v23  ;;  %v9964_v60 = vpack.c.bf16 %v13718_v10, %v13587_v63  ;;  %v11806_v59 = vpack.i.bf16 %v2004_v42, %v2013_v3  ;;  %v13724_v46 = vpop.permute.xlu0 %11712  ;;  %v18069_v19 = vunpack.i.h.bf16 %v13484_v8 }
 0x35f   : > { %v1643_v32 = vsel %vm1639_vm5, %v18068_v18, %v11704_v15  ;;  %v1698_v28 = vpop.permute.xlu1 %1697  ;;  %v11715_v15 = vunpack.i.h.bf16 %v13724_v46  ;;  %v11714_v18 = vunpack.i.l.bf16 %v13724_v46  ;;  %v11600_v56 = vunpack.i.h.bf16 %v13449_v44  ;;  %11812 = vrot.lane.b32.xlu1 %v11811_v37, %s11981_s16 }
 0x360   : > { %v1888_v53 = vsel %vm804_vm12, %v1643_v32, %v13615_v39  ;;  %v13731_v21 = vsel %vm750_vm1, %v1698_v28, %v18069_v19  ;;  %v18070_v3 = vunpack.i.h.bf16 %v13659_v31  ;;  %11807 = vrot.lane.b32.xlu0 %v11806_v59, %s11981_s16  ;;  %v2008_v28 = vsel %vm820_vm13, %v1936_v11, %v13663_v22 }
 0x361   : > { %v9928_v57 = vpack.c.bf16 %v1888_v53, %v13603_v12  ;;  %v9930_v39 = vpack.c.bf16 %v1887_v30, %v13573_v6  ;;  %v11851_v32 = vpack.i.bf16 %v13701_v1, %v13697_v48  ;;  %v18071_v12 = vunpack.i.h.bf16 %v13691_v14  ;;  %v18092_v48 = vld [vmem:[#allocation8_spill] sm:$0xff] }
 0x362   : > { %v1690_v16 = vsel %vm688_vm11, %v11694_v61, %v18070_v3  ;;  %v1954_v53 = vsel %vm1619_vm9, %v13576_v24, %v11714_v18  ;;  %v11821_v37 = vpack.i.bf16 %v13678_v47, %v1893_v17  ;;  %v1955_v59 = vsel %vm1619_vm9, %v11714_v18, %v11715_v15  ;;  %v11718_v30 = vpop.permute.xlu0 %11717 }
 0x363   : > { %v1713_v42 = vsel %vm750_vm1, %v11699_v23, %v18071_v12  ;;  %9929 = vmatprep.subr.bf16.mxu1 %v9928_v57  ;;  %v11816_v61 = vpack.i.bf16 %v13682_v50, %v2008_v28  ;;  %v11708_v6 = vpop.permute.xlu1 %11707  ;;  %v1898_v11 = vsel %vm836_vm8, %v1689_v7, %v1712_v54  ;;  %v2010_v23 = vsel %vm836_vm8, %v13652_v26, %v1954_v53 }
 0x364   : > { %9931 = vmatpush1.bf16.msra.mxu1 %v9930_v39  ;;  %v11710_v19 = vunpack.i.h.bf16 %v11708_v6  ;;  %v11709_v3 = vunpack.i.l.bf16 %v11708_v6  ;;  %v11720_v24 = vunpack.i.h.bf16 %v11718_v30  ;;  %v11719_v57 = vunpack.i.l.bf16 %v11718_v30  ;;  %11822 = vrot.lane.b32.xlu1 %v11821_v37, %s11981_s16 }
 0x365   : > { %v13762_v12 = vsel %vm804_vm12, %v13467_v5, 0.0  ;;  %11817 = vrot.lane.b32.xlu0 %v11816_v61, %s11981_s16  ;;  %v2019_v18 = vsel %vm820_vm13, %v13578_v27, %v13617_v52  ;;  %v9932_v54 = vpack.c.bf16 %v1898_v11, %v1893_v17  ;;  %v11831_v7 = vpack.i.bf16 %v2010_v23, %v13668_v43 }
 0x366   : > { %v1732_v26 = vsel %vm1731_vm0, %v11710_v19, %v11709_v3  ;;  %v1733_v28 = vsel %vm1731_vm0, %v11709_v3, %v13439_v20  ;;  %v1756_v39 = vsel %vm1754_vm7, %v11719_v57, %v11720_v24  ;;  %v9934_v53 = vpack.c.bf16 %v13678_v47, %v13682_v50  ;;  %v13778_v6 = vpop.permute.xlu0 %11727  ;;  %vm18074_vm0 = vmmov %vm18059_vm2 }
 0x367   : > { %v11826_v37 = vpack.i.bf16 %v2019_v18, %v1898_v11  ;;  %9933 = vmatprep.subr.bf16.mxu1 %v9932_v54  ;;  %v13776_v61 = vpop.permute.xlu1 %11722  ;;  %v13782_v27 = vsel %vm820_vm13, %v13637_v41, %v1690_v16  ;;  %v2017_v52 = vsel %vm804_vm12, %v13535_v58, %v13641_v13  ;;  %v2011_v20 = vsel %vm836_vm8, %v13663_v22, %v1955_v59  ;;  %vm18076_vm6 = vmmov %vm18074_vm0 }
 0x368   : > { %v11725_v43 = vunpack.i.h.bf16 %v13776_v61  ;;  %v11724_v47 = vunpack.i.l.bf16 %v13776_v61  ;;  %v11730_v50 = vunpack.i.h.bf16 %v13778_v6  ;;  %v11729_v17 = vunpack.i.l.bf16 %v13778_v6  ;;  %9935 = vmatpush1.bf16.msra.mxu1 %v9934_v53  ;;  %11832 = vrot.lane.b32.xlu1 %v11831_v7, %s11981_s16  ;;  %vm18083_vm14 = vmmov %vm18074_vm0 }
 0x369   : > { %v11705_v30 = vunpack.i.h.bf16 %v13693_v40  ;;  %11827 = vrot.lane.b32.xlu0 %v11826_v37, %s11981_s16  ;;  %v11841_v58 = vpack.i.bf16 %v13782_v27, %v2017_v52  ;;  %v2016_v22 = vsel %vm804_vm12, %v13545_v62, %v13637_v41  ;;  %v18072_v59 = vunpack.i.h.bf16 %v13659_v31  ;;  %vm18102_vm2 = vmmov %vm18074_vm0 }
 0x36a   : > { %v1755_v23 = vsel %vm1754_vm7, %v11724_v47, %v11719_v57  ;;  %v1757_v40 = vsel %vm1754_vm7, %v11720_v24, %v11725_v43  ;;  %v18073_v19 = vunpack.i.h.bf16 %v13443_v33  ;;  %v11836_v18 = vpack.i.bf16 %v2016_v22, %v2011_v20  ;;  %v13816_v54 = vpop.permute.xlu0 %11737  ;;  %v13831_v33 = vld [vmem:[%s17968_s3 + $0x8] sm:$0xff] }
 0x36b   : > { %v1988_v11 = vsel %vm688_vm11, %v18072_v59, %v13525_v0  ;;  %v11733_v31 = vpop.permute.xlu1 %11732  ;;  %v18077_v57 = vunpack.i.l.bf16 %v13484_v8  ;;  %v18078_v7 = vunpack.i.h.bf16 %v13691_v14  ;;  %v13826_v37 = vsel %vm836_vm8, %v1690_v16, %v1713_v42 }
 0x36c   : > { %v1780_v3 = vsel %vm18074_vm0, %v11730_v50, %v18073_v19  ;;  %v18075_v62 = vmov %v18073_v19  ;;  %v2020_v53 = vsel %vm820_vm13, %v13641_v13, %v1988_v11  ;;  %v11735_v52 = vunpack.i.h.bf16 %v11733_v31  ;;  %11842 = vrot.lane.b32.xlu1 %v11841_v58, %s11981_s16 }
 0x36d   : > { %v1781_v41 = vsel %vm18076_vm6, %v18075_v62, %v11729_v17  ;;  %v1994_v24 = vsel %vm750_vm1, %v18078_v7, %v18077_v57  ;;  %v11734_v20 = vunpack.i.l.bf16 %v11733_v31  ;;  %v11740_v47 = vunpack.i.h.bf16 %v13816_v54  ;;  %11837 = vrot.lane.b32.xlu0 %v11836_v18, %s11981_s16  ;;  %vm18104_vm6 = vmmov %vm18074_vm0 }
 0x36e   : > { %v11739_v8 = vunpack.i.l.bf16 %v13816_v54  ;;  %v2023_v13 = vsel %vm836_vm8, %v1988_v11, %v1994_v24  ;;  %v11846_v14 = vpack.i.bf16 %v13826_v37, %v2020_v53  ;;  %v13841_v16 = vsel %vm804_vm12, %v13453_v49, %v1757_v40  ;;  %v13861_v62 = vpop.permute.xlu0 %11742 }
 0x36f   : > { %vm2243_vm1 = vcmask 195584   ;;  %v18079_v42 = vunpack.i.h.bf16 %v13441_v29  ;;  %v18081_v58 = vunpack.i.h.bf16 %v13445_v55  ;;  %v13859_v18 = vpop.permute.xlu1 %11747  ;;  %v13865_v29 = vsel %vm820_vm13, %v1757_v40, %v13361_v34 }
 0x370   : > { %7404 = vmatprep.mubr.msk.f32.mxu0 %vm2243_vm1, %v13831_v33  ;;  %v13868_v31 = vsel %vm804_vm12, %v1733_v28, %v1756_v39  ;;  %v13872_v57 = vsel %vm820_vm13, %v1756_v39, %v13366_v25  ;;  %v13875_v55 = vsel %vm804_vm12, %v1732_v26, %v1755_v23  ;;  %7406 = vmatprep.mubr.msk.f32.mxu1 %vm2243_vm1, %v13831_v33  ;;  %v11750_v7 = vunpack.i.h.bf16 %v13859_v18 }
 0x371   : > { %v1799_v50 = vsel %vm413_vm15, %v11735_v52, %v18079_v42  ;;  %v18080_v22 = vmov %v18079_v42  ;;  %v1818_v19 = vsel %vm1619_vm9, %v11740_v47, %v18081_v58  ;;  %v18082_v11 = vmov %v18081_v58  ;;  %2141 = vrot.lane.b32.xlu1 %v2023_v13, %s11981_s16  ;;  %11847 = vrot.lane.b32.xlu0 %v11846_v14, %s11981_s16 }
 0x372   : > { %v1800_v59 = vsel %vm413_vm15, %v18080_v22, %v11734_v20  ;;  %v1819_v49 = vsel %vm1619_vm9, %v18082_v11, %v11739_v8  ;;  %v11749_v24 = vunpack.i.l.bf16 %v13859_v18  ;;  %v11745_v40 = vunpack.i.h.bf16 %v13861_v62  ;;  %v11758_v22 = vpop.permute.xlu0 %11757 }
 0x373   : > { %v11744_v53 = vunpack.i.l.bf16 %v13861_v62  ;;  %v2028_v28 = vsel %vm804_vm12, %v13548_v36, 0.0  ;;  %v9900_v26 = vpack.c.bf16 %v13872_v57, %v13868_v31  ;;  %v13891_v39 = vsel %vm820_vm13, %v1755_v23, %v13338_v35  ;;  %v11753_v42 = vpop.permute.xlu1 %11752 }
 0x374   : > { %v13895_v52 = vsel %vm836_vm8, %v13366_v25, %v1781_v41  ;;  %v1860_v47 = vsel %vm625_vm3, %v11750_v7, %v11600_v56  ;;  %v1861_v13 = vsel %vm625_vm3, %v11600_v56, %v11749_v24  ;;  %v1837_v14 = vsel %vm1639_vm5, %v11745_v40, %v11705_v30 }
 0x375   : > { %v1838_v23 = vsel %vm1639_vm5, %v11705_v30, %v11744_v53  ;;  %v9902_v25 = vpack.c.bf16 %v13891_v39, %v13875_v55  ;;  %v13912_v41 = vsel %vm804_vm12, %v1800_v59, %v1819_v49  ;;  %v13916_v58 = vsel %vm836_vm8, %v13338_v35, %v1780_v3  ;;  %2149 = vrot.lane.b32.xlu1 %v13762_v12, %s11981_s16 }
 0x376   : > { %v13919_v44 = vsel %vm804_vm12, %v1799_v50, %v1818_v19  ;;  %v11755_v56 = vunpack.i.h.bf16 %v11753_v42  ;;  %v11754_v11 = vunpack.i.l.bf16 %v11753_v42  ;;  %v11760_v7 = vunpack.i.h.bf16 %v11758_v22  ;;  %2145 = vrot.lane.b32.xlu0 %v13479_v4, %s11981_s16  ;;  %v11763_v46 = vpop.permute.xlu0 %11762 }
 0x377   : > { %v11759_v40 = vunpack.i.l.bf16 %v11758_v22  ;;  %v2029_v30 = vsel %vm804_vm12, %v13471_v51, 0.0  ;;  %v9904_v35 = vpack.c.bf16 %v13912_v41, %v13895_v52  ;;  %v9906_v3 = vpack.c.bf16 %v13919_v44, %v13916_v58  ;;  %v13949_v22 = vpop.permute.xlu1 %1750 }
 0x378   : > { %v13932_v50 = vsel %vm820_vm13, %v1819_v49, %v1838_v23  ;;  %v2012_v51 = vsel %vm836_vm8, %v13627_v45, %v11715_v15  ;;  %v1801_v59 = vsel %vm413_vm15, %v11734_v20, %v11754_v11  ;;  %v1802_v12 = vsel %vm413_vm15, %v11754_v11, %v11755_v56  ;;  %vm18084_vm15 = vmmov %vm18074_vm0 }
 0x379   : > { %v9938_v4 = vpack.c.bf16 %v13865_v29, %v13841_v16  ;;  %v13944_v42 = vsel %vm836_vm8, %v13391_v9, %v11760_v7  ;;  %v1782_v49 = vsel %vm18083_vm14, %v11729_v17, %v11759_v40  ;;  %v13952_v45 = vsel %vm836_vm8, %v1838_v23, %v1861_v13  ;;  %2151 = vrot.lane.b32.xlu1 %v2028_v28, %s11981_s16  ;;  %v18085_v13 = vld [vmem:[#allocation7_spill] sm:$0xff] }
 0x37a   : > { %v13955_v15 = vsel %vm820_vm13, %v1818_v19, %v1837_v14  ;;  %v1783_v20 = vsel %vm18084_vm15, %v11759_v40, %v11760_v7  ;;  %v1758_v16 = vsel %vm1754_vm7, %v11725_v43, %v13949_v22  ;;  %v13962_v29 = vunpack.i.h.bf16 %v11763_v46  ;;  %2153 = vrot.lane.b32.xlu0 %v2029_v30, %s11981_s16  ;;  %v13983_v40 = vpop.permute.xlu0 %11772 }
 0x37b   : > { %v11764_v6 = vunpack.i.l.bf16 %v11763_v46  ;;  %v1903_v17 = vsel %vm804_vm12, %v13467_v5, %v1758_v16  ;;  %v1908_v19 = vsel %vm820_vm13, %v1758_v16, %v18085_v13  ;;  %v9908_v23 = vpack.c.bf16 %v13952_v45, %v13932_v50  ;;  %v11768_v7 = vpop.permute.xlu1 %11767 }
 0x37c   : > { %v13974_v61 = vsel %vm804_vm12, %v11755_v56, %v13962_v29  ;;  %v9936_v11 = vpack.c.bf16 %v1908_v19, %v1903_v17  ;;  %v1913_v30 = vsel %vm836_vm8, %v18085_v13, %v1783_v20  ;;  %v13989_v46 = vsel %vm836_vm8, %v1837_v14, %v1860_v47  ;;  %v18086_v17 = vld [vmem:[#allocation6_spill] sm:$0xff]  ;;  %v18087_v19 = vld [vmem:[#allocation5_spill] sm:$0xff] }
 0x37d   : > { %v1820_v43 = vsel %vm1619_vm9, %v11739_v8, %v11764_v6  ;;  %v1821_v28 = vsel %vm1619_vm9, %v11764_v6, %v13962_v29  ;;  %v9973_v5 = vpack.c.bf16 %v13974_v61, %v13944_v42  ;;  %v13991_v54 = vunpack.i.h.bf16 %v11768_v7  ;;  %1752 = vrot.lane.b32.xlu1 %v18086_v17, %s11994_s29  ;;  %s269_s29 = sand.u32 1, %s11959_s25  }
 0x37e   : > { %v1918_v56 = vsel %vm804_vm12, %v1802_v12, %v1821_v28  ;;  %v11769_v8 = vunpack.i.l.bf16 %v11768_v7  ;;  %v11775_v16 = vunpack.i.h.bf16 %v13983_v40  ;;  %v11774_v6 = vunpack.i.l.bf16 %v13983_v40  ;;  %9937 = vmatprep.subr.bf16.mxu1 %v9936_v11  ;;  %1858 = vrot.lane.b32.xlu0 %v18087_v19, %s11979_s14  ;;  %v18093_v19 = vld [vmem:[#allocation9_spill] sm:$0xff]  ;;  %s270_s17 = scalar_lea.vmem [#allocation2], %s269_s29  ;;  %s7327_s18 = scalar_lea.sflag [#allocation3], %s269_s29 }
 0x37f   : > { %v9940_v20 = vpack.c.bf16 %v1918_v56, %v1913_v30  ;;  %v1917_v12 = vsel %vm804_vm12, %v1801_v59, %v1820_v43  ;;  %v9910_v47 = vpack.c.bf16 %v13989_v46, %v13955_v15  ;;  %9939 = vmatpush1.bf16.msra.mxu1 %v9938_v4  ;;  %v18088_v59 = vld [vmem:[#allocation12_spill] sm:$0xff]  ;;  %v1912_v62 = vsel %vm836_vm8, %v13361_v34, %v1782_v49 }
 0x380   : > { %v1839_v14 = vsel %vm1639_vm5, %v11744_v53, %v11769_v8  ;;  %v1840_v13 = vsel %vm1639_vm5, %v11769_v8, %v13991_v54  ;;  %v1862_v11 = vsel %vm625_vm3, %v11749_v24, %v11774_v6  ;;  %v1863_v7 = vsel %vm625_vm3, %v11774_v6, %v11775_v16  ;;  %v2231_v8 = vld [vmem:[%s17969_s4] sm:$0xff]  ;;  %vm18101_vm5 = vmmov %vm18074_vm0 }
 0x381   : > { %v11856_v30 = vpack.i.bf16 %v18088_v59, %v2012_v51  ;;  %9941 = vmatprep.subr.bf16.mxu1 %v9940_v20  ;;  %v1923_v53 = vsel %vm820_vm13, %v1821_v28, %v1840_v13  ;;  %v1928_v15 = vsel %vm836_vm8, %v1840_v13, %v1863_v7  ;;  %v9942_v56 = vpack.c.bf16 %v1917_v12, %v1912_v62  ;;  %v18089_v51 = vld [vmem:[#allocation14_spill] sm:$0xff] }
 0x382   : > { %v9944_v46 = vpack.c.bf16 %v1928_v15, %v1923_v53  ;;  %v1922_v18 = vsel %vm820_vm13, %v1820_v43, %v1839_v14  ;;  %v14022_v24 = vsel %vm820_vm13, %v13518_v2, %v13557_v38  ;;  %11852 = vrot.lane.b32.xlu1 %v11851_v32, %s11981_s16  ;;  %v1927_v34 = vsel %vm836_vm8, %v1839_v14, %v1862_v11  ;;  %v18090_v43 = vld [vmem:[#allocation10_spill] sm:$0xff]  ;;  %v18091_v38 = vld [vmem:[#allocation13_spill] sm:$0xff]  ;;  %v18095_v14 = vld [vmem:[#allocation11_spill] sm:$0xff] }
 0x383   : > { %11857 = vrot.lane.b32.xlu0 %v11856_v30, %s11981_s16  ;;  %v9961_v4 = vpack.c.bf16 %v14022_v24, %v18089_v51  ;;  %v9967_v49 = vpack.c.bf16 %v13826_v37, %v13782_v27  ;;  %v2021_v2 = vsel %vm820_vm13, %v18090_v43, %v13525_v0  ;;  %9943 = vmatpush1.bf16.msra.mxu1 %v9942_v56  ;;  %v2030_v1 = vsel %vm804_vm12, %v18092_v48, 0.0 }
 0x384   : > { %v11861_v28 = vpack.i.bf16 %v18091_v38, %v2021_v2  ;;  %9945 = vmatprep.subr.bf16.mxu1 %v9944_v46  ;;  %v9946_v32 = vpack.c.bf16 %v1927_v34, %v1922_v18  ;;  %v18094_v20 = vunpack.i.h.bf16 %v18093_v19  ;;  %v1924_v27 = vsel %vm820_vm13, %v13962_v29, %v13991_v54 }
 0x385   : > { %vm2711_vm9 = vcmask 138240  }
 0x386   : > { %11862 = vrot.lane.b32.xlu1 %v11861_v28, %s11981_s16 }
 0x387   : > { %2155 = vrot.lane.b32.xlu0 %v2030_v1, %s11981_s16  ;;  %9947 = vmatpush1.bf16.msra.mxu1 %v9946_v32 }
 0x38a   : > { %2235 = vperm.xlu1 %11866, %v2231_v8  }
 0x39e   : > { %v14045_v6 = vpop.permute.xlu0 %2147 }
 0x3b8   : > { %v11778_v0 = vpop.permute.xlu0 %11777 }
 0x3b9   : > { %v11779_v17 = vunpack.i.l.bf16 %v11778_v0  ;;  %v11780_v53 = vunpack.i.h.bf16 %v11778_v0 }
 0x3bb   : > { %v1686_v12 = vsel %vm688_vm11, %v11779_v17, %v18094_v20 }
 0x3bc   : > { %v1890_v13 = vsel %vm820_vm13, %v18095_v14, %v1686_v12  ;;  %v1895_v11 = vsel %vm836_vm8, %v1686_v12, %v13731_v21 }
 0x3bd   : > { %v9898_v7 = vpack.c.bf16 %v1895_v11, %v1890_v13 }
 0x3bf   : > { %9899 = vmatpush1.bf16.msra.mxu0 %v9898_v7 }
 0x3c0   : > { %v11783_v59 = vpop.permute.xlu1 %11782  ;;  %9901 = vmatprep.subr.bf16.mxu0 %v9900_v26 }
 0x3c1   : > { %v11793_v30 = vpop.permute.xlu0 %11792  ;;  %v11784_v57 = vunpack.i.l.bf16 %v11783_v59 }
 0x3c2   : > { %v11794_v56 = vunpack.i.l.bf16 %v11793_v30  ;;  %v11795_v55 = vunpack.i.h.bf16 %v11793_v30 }
 0x3c3   : > { %9903 = vmatpush1.bf16.msra.mxu0 %v9902_v25 }
 0x3c4   : > { %v11788_v62 = vpop.permute.xlu1 %11787  ;;  %9905 = vmatprep.subr.bf16.mxu0 %v9904_v35  ;;  %v11785_v35 = vunpack.i.h.bf16 %v11783_v59  ;;  %v2157_v18 = vsel %vm688_vm11, %v11795_v55, %v11780_v53 }
 0x3c5   : > { %v11790_v15 = vunpack.i.h.bf16 %v11788_v62  ;;  %v11789_v21 = vunpack.i.l.bf16 %v11788_v62 }
 0x3c6   : > { %v14063_v46 = vpop.permute.xlu0 %11797 }
 0x3c7   : > { %9907 = vmatpush1.bf16.msra.mxu0 %v9906_v3  ;;  %v2158_v31 = vsel %vm688_vm11, %v11780_v53, %v11789_v21  ;;  %v2163_v39 = vsel %vm688_vm11, %v11790_v15, %v11794_v56  ;;  %v11800_v52 = vunpack.i.h.bf16 %v14063_v46  ;;  %v11799_v25 = vunpack.i.l.bf16 %v14063_v46 }
 0x3c8   : > { %9909 = vmatprep.subr.bf16.mxu0 %v9908_v23  ;;  %v2162_v58 = vsel %vm688_vm11, %v11784_v57, %v11790_v15  ;;  %v9912_v44 = vpack.c.bf16 %v2163_v39, %v2158_v31 }
 0x3c9   : > { %v14069_v26 = vpop.permute.xlu1 %11802  ;;  %v9914_v50 = vpack.c.bf16 %v2162_v58, %v2157_v18  ;;  %v2168_v45 = vsel %vm688_vm11, %v11785_v35, %v11799_v25 }
 0x3ca   : > { %v11804_v41 = vunpack.i.l.bf16 %v14069_v26  ;;  %v11805_v34 = vunpack.i.h.bf16 %v14069_v26 }
 0x3cb   : > { %9911 = vmatpush1.bf16.msra.mxu0 %v9910_v47 }
 0x3cc   : > { %v2173_v3 = vsel %vm688_vm11, %v11800_v52, %v11804_v41  ;;  %9913 = vmatprep.subr.bf16.mxu0 %v9912_v44  ;;  %v2167_v48 = vsel %vm688_vm11, %v11805_v34, %v11785_v35 }
 0x3cd   : > { %v9916_v23 = vpack.c.bf16 %v2173_v3, %v2168_v45 }
 0x3cf   : > { %9915 = vmatpush1.bf16.msra.mxu0 %v9914_v50 }
 0x3d0   : > { %9917 = vmatprep.subr.bf16.mxu0 %v9916_v23 }
 0x3d1   : > { %v14083_v43 = vpop.permute.xlu1 %11812 }
 0x3d2   : > { %v11808_v2 = vpop.permute.xlu0 %11807  ;;  %v11815_v38 = vunpack.i.h.bf16 %v14083_v43  ;;  %v11814_v1 = vunpack.i.l.bf16 %v14083_v43 }
 0x3d3   : > { %v11810_v28 = vunpack.i.h.bf16 %v11808_v2  ;;  %v11809_v47 = vunpack.i.l.bf16 %v11808_v2 }
 0x3d4   : > { %v2164_v19 = vsel %vm688_vm11, %v11794_v56, %v11815_v38 }
 0x3d5   : > { %v2172_v32 = vsel %vm688_vm11, %v11809_v47, %v11800_v52  ;;  %v2159_v20 = vsel %vm688_vm11, %v11789_v21, %v11810_v28  ;;  %v2160_v11 = vsel %vm688_vm11, %v11810_v28, %v11814_v1 }
 0x3d6   : > { %v9918_v8 = vpack.c.bf16 %v2172_v32, %v2167_v48  ;;  %v11823_v0 = vpop.permute.xlu1 %11822  ;;  %v9950_v59 = vpack.c.bf16 %v2164_v19, %v2159_v20 }
 0x3d7   : > { %v14089_v17 = vpop.permute.xlu0 %11817  ;;  %v11824_v14 = vunpack.i.l.bf16 %v11823_v0  ;;  %v11825_v15 = vunpack.i.h.bf16 %v11823_v0 }
 0x3d8   : > { %v11819_v12 = vunpack.i.l.bf16 %v14089_v17  ;;  %9919 = vmatpush1.bf16.msra.mxu0 %v9918_v8  ;;  %v11820_v13 = vunpack.i.h.bf16 %v14089_v17 }
 0x3da   : > { %v2165_v7 = vsel %vm688_vm11, %v11815_v38, %v11819_v12  ;;  %v11833_v30 = vpop.permute.xlu1 %11832  ;;  %v2178_v26 = vsel %vm688_vm11, %v11820_v13, %v11824_v14 }
 0x3db   : > { %v11828_v62 = vpop.permute.xlu0 %11827  ;;  %v9948_v53 = vpack.c.bf16 %v2165_v7, %v2160_v11  ;;  %v11834_v21 = vunpack.i.l.bf16 %v11833_v30  ;;  %v11835_v31 = vunpack.i.h.bf16 %v11833_v30 }
 0x3dc   : > { %v11830_v56 = vunpack.i.h.bf16 %v11828_v62  ;;  %v11829_v46 = vunpack.i.l.bf16 %v11828_v62  ;;  %v14141_v62 = vld [vmem:[%s17968_s3] sm:$0xff] }
 0x3dd   : > { %9949 = vmatprep.subr.bf16.mxu1 %v9948_v53  ;;  %v2182_v57 = vsel %vm688_vm11, %v11834_v21, %v11825_v15  ;;  %v2169_v45 = vsel %vm688_vm11, %v11799_v25, %v11835_v31  ;;  %v14146_v53 = vld [vmem:[%s17968_s3 + $0x18] sm:$0xff] }
 0x3de   : > { %v2177_v55 = vsel %vm688_vm11, %v11830_v56, %v11820_v13  ;;  %9951 = vmatpush1.bf16.msra.mxu1 %v9950_v59  ;;  %v2183_v39 = vsel %vm688_vm11, %v11825_v15, %v11829_v46  ;;  %v14105_v58 = vpop.permute.xlu1 %11842  ;;  %v18096_v56 = vmov 0.0|0.0  }
 0x3df   : > { %v9922_v52 = vpack.c.bf16 %v2182_v57, %v2177_v55  ;;  %v14107_v44 = vpop.permute.xlu0 %11837  ;;  %v9920_v35 = vpack.c.bf16 %v2183_v39, %v2178_v26  ;;  %v11844_v3 = vunpack.i.l.bf16 %v14105_v58  ;;  %v11845_v23 = vunpack.i.h.bf16 %v14105_v58 }
 0x3e0   : > { %v11840_v18 = vunpack.i.h.bf16 %v14107_v44  ;;  %v11839_v50 = vunpack.i.l.bf16 %v14107_v44  ;;  %v18097_v58 = vmov 0.0  }
 0x3e1   : > { %9921 = vmatprep.subr.bf16.mxu0 %v9920_v35  ;;  %v2660_v35 = vld [vmem:[%s17970_s5 + $0x80] sm:$0xff] }
 0x3e2   : > { %v2174_v34 = vsel %vm688_vm11, %v11804_v41, %v11840_v18  ;;  %9923 = vmatpush1.bf16.msra.mxu0 %v9922_v52  ;;  %v2170_v2 = vsel %vm688_vm11, %v11835_v31, %v11839_v50  ;;  %v2175_v38 = vsel %vm688_vm11, %v11840_v18, %v11844_v3  ;;  %v2179_v41 = vsel %vm688_vm11, %v11824_v14, %v11845_v23  ;;  %v2229_v31 = vld [vmem:[%s17968_s3 + $0x10] sm:$0xff]  ;;  %v2644_v18 = vld [vmem:[%s17970_s5] sm:$0xff] }
 0x3e3   : > { %v9954_v28 = vpack.c.bf16 %v2174_v34, %v2169_v45  ;;  %v14121_v47 = vpop.permute.xlu1 %2141  ;;  %v14123_v48 = vpop.permute.xlu0 %11847  ;;  %v9952_v25 = vpack.c.bf16 %v2175_v38, %v2170_v2  ;;  %v2645_v45 = vld [vmem:[%s17970_s5 + $0x8] sm:$0xff]  ;;  %v7429_v34 = vld [vmem:[%s17970_s5 + $0x2a0] sm:$0xff] }
 0x3e4   : > { %v11850_v32 = vunpack.i.h.bf16 %v14123_v48  ;;  %v11849_v8 = vunpack.i.l.bf16 %v14123_v48  ;;  %v9989_v2 = vpack.c.bf16 %v2645_v45, %v2644_v18  ;;  %v7412_v48 = vld [vmem:[%s17970_s5 + $0x218] sm:$0xff] }
 0x3e5   : > { %9953 = vmatprep.subr.bf16.mxu1 %v9952_v25  ;;  %v7420_v18 = vld [vmem:[%s17970_s5 + $0x258] sm:$0xff] }
 0x3e6   : > { %v2184_v0 = vsel %vm688_vm11, %v11829_v46, %v11850_v32  ;;  %9955 = vmatpush1.bf16.msra.mxu1 %v9954_v28  ;;  %v2180_v19 = vsel %vm688_vm11, %v11845_v23, %v11849_v8  ;;  %v2185_v20 = vsel %vm688_vm11, %v11850_v32, %v14121_v47  ;;  %v7428_v23 = vld [vmem:[%s17970_s5 + $0x298] sm:$0xff]  ;;  %v2662_v28 = vld [vmem:[%s17970_s5 + $0x90] sm:$0xff]  ;;  %v7413_v32 = vld [vmem:[%s17970_s5 + $0x220] sm:$0xff] }
 0x3e7   : > { %v9958_v13 = vpack.c.bf16 %v2184_v0, %v2179_v41  ;;  %v2150_v11 = vpop.permute.xlu1 %2149  ;;  %v9956_v59 = vpack.c.bf16 %v2185_v20, %v2180_v19  ;;  %v10054_v38 = vpack.c.bf16 %v7429_v34, %v7428_v23  ;;  %v2647_v41 = vld [vmem:[%s17970_s5 + $0x18] sm:$0xff]  ;;  %v10056_v0 = vpack.c.bf16 %v7413_v32, %v7412_v48  ;;  %v7430_v20 = vld [vmem:[%s17970_s5 + $0x2a8] sm:$0xff] }
 0x3e8   : > { %v2146_v7 = vpop.permute.xlu0 %2145  ;;  %v2188_v14 = vsel %vm688_vm11, %v14045_v6, %v2150_v11 }
 0x3e9   : > { %v2187_v30 = vsel %vm688_vm11, %v2146_v7, %v14045_v6  ;;  %2286 = vmatprep.subr.mxu0 %v2188_v14  ;;  %9957 = vmatprep.subr.bf16.mxu1 %v9956_v59  ;;  %v2665_v59 = vld [vmem:[%s17970_s5 + $0xa8] sm:$0xff]  ;;  %v7415_v14 = vld [vmem:[%s17970_s5 + $0x230] sm:$0xff] }
 0x3ea   : > { %2287 = vmatpush1.msra.mxu0 %v2187_v30  ;;  %9959 = vmatpush1.bf16.msra.mxu1 %v9958_v13  ;;  %v7431_v13 = vld [vmem:[%s17970_s5 + $0x2b0] sm:$0xff]  ;;  %v7414_v30 = vld [vmem:[%s17970_s5 + $0x228] sm:$0xff] }
 0x3eb   : > { %v2152_v15 = vpop.permute.xlu1 %2151  ;;  %2315 = vmatmul.mubr.f32.vlgmr.msra.gmra.mrb[4].mxu0 %v14141_v62  ;;  %9960 = vmatprep.subr.bf16.mxu0 %v18096_v56  ;;  %v10058_v7 = vpack.c.bf16 %v7431_v13, %v7430_v20  ;;  %v2672_v20 = vld [vmem:[%s17970_s5 + $0xe0] sm:$0xff] }
 0x3ec   : > { %v2154_v21 = vpop.permute.xlu0 %2153  ;;  %v2189_v6 = vsel %vm688_vm11, %v2150_v11, %v2152_v15  ;;  %9962 = vmatpush1.bf16.msra.mxu0 %v9961_v4  ;;  %7405 = vmatprep.mubr.msk.f32.mxu0 %vm2243_vm1, %v14146_v53  ;;  %v2664_v11 = vld [vmem:[%s17970_s5 + $0xa0] sm:$0xff] }
 0x3ed   : > { %v2190_v46 = vsel %vm688_vm11, %v2152_v15, %v2154_v21  ;;  %9963 = vmatprep.subr.bf16.mxu0 %v18096_v56  ;;  %v2648_v15 = vld [vmem:[%s17970_s5 + $0x20] sm:$0xff] }
 0x3ee   : > { %2363 = vmatprep.subr.mxu1 %v2190_v46  ;;  %v7433_v46 = vld [vmem:[%s17970_s5 + $0x2c0] sm:$0xff] }
 0x3ef   : > { %2364 = vmatpush1.msra.mxu1 %v2189_v6  ;;  %v1753_v57 = vpop.permute.xlu1 %1752  ;;  %2321 = vmatmul.mubr.f32.gmra.mrb[6].mxu0 %v2229_v31  ;;  %v7432_v6 = vld [vmem:[%s17970_s5 + $0x2b8] sm:$0xff] }
 0x3f0   : > { %2392 = vmatmul.mubr.f32.vlgmr.msra.gmra.mrb[4].mxu1 %v14141_v62  ;;  %v1759_v24 = vsel %vm1754_vm7, %v13949_v22, %v1753_v57  ;;  %9965 = vmatpush1.bf16.msra.mxu0 %v9964_v60  ;;  %v1859_v63 = vpop.permute.xlu0 %1858  ;;  %v2667_v57 = vld [vmem:[%s17970_s5 + $0xb8] sm:$0xff]  ;;  %vm18103_vm7 = vmmov %vm18074_vm0 }
 0x3f1   : > { %7408 = vmatprep.mubr.msk.f32.mxu0 %vm2243_vm1, %v13831_v33  ;;  %9966 = vmatprep.subr.bf16.mxu0 %v18096_v56  ;;  %v1904_v51 = vsel %vm804_vm12, %v13548_v36, %v1759_v24  ;;  %v1909_v4 = vsel %vm820_vm13, %v1759_v24, %v13391_v9  ;;  %v1864_v60 = vsel %vm625_vm3, %v11775_v16, %v1859_v63  ;;  %v7417_v63 = vld [vmem:[%s17970_s5 + $0x240] sm:$0xff]  ;;  %vm18099_vm12 = vmmov %vm18074_vm0 }
 0x3f2   : > { %7407 = vmatprep.mubr.msk.f32.mxu1 %vm2243_vm1, %v14146_v53  ;;  %v9970_v10 = vpack.c.bf16 %v1909_v4, %v1904_v51  ;;  %v1929_v9 = vsel %vm836_vm8, %v13991_v54, %v1864_v60  ;;  %v10062_v51 = vpack.c.bf16 %v7433_v46, %v7432_v6  ;;  %v7416_v4 = vld [vmem:[%s17970_s5 + $0x238] sm:$0xff]  ;;  %vm18098_vm8 = vmmov %vm18074_vm0 }
 0x3f3   : > { %v9976_v37 = vpack.c.bf16 %v1929_v9, %v1924_v27  ;;  %v10064_v60 = vpack.c.bf16 %v7417_v63, %v7416_v4  ;;  %v2651_v9 = vld [vmem:[%s17970_s5 + $0x38] sm:$0xff]  ;;  %v2668_v27 = vld [vmem:[%s17970_s5 + $0xc0] sm:$0xff]  ;;  %vm18100_vm13 = vmmov %vm18074_vm0 }
 0x3f4   : > { %2398 = vmatmul.mubr.f32.gmra.mrb[6].mxu1 %v2229_v31  ;;  %9968 = vmatpush1.bf16.msra.mxu0 %v9967_v49  ;;  %v11853_v33 = vpop.permute.xlu1 %11852  ;;  %v7440_v46 = vld [vmem:[%s17970_s5 + $0x2f8] sm:$0xff]  ;;  %v7425_v63 = vld [vmem:[%s17970_s5 + $0x280] sm:$0xff] }
 0x3f5   : > { %9969 = vmatprep.subr.bf16.mxu0 %v18096_v56  ;;  %v11855_v36 = vunpack.i.h.bf16 %v11853_v33  ;;  %v11854_v22 = vunpack.i.l.bf16 %v11853_v33  ;;  %v11858_v55 = vpop.permute.xlu0 %11857  ;;  %v2650_v33 = vld [vmem:[%s17970_s5 + $0x30] sm:$0xff]  ;;  %v7424_v4 = vld [vmem:[%s17970_s5 + $0x278] sm:$0xff] }
 0x3f6   : > { %v11860_v49 = vunpack.i.h.bf16 %v11858_v55  ;;  %v11859_v26 = vunpack.i.l.bf16 %v11858_v55  ;;  %v7435_v55 = vld [vmem:[%s17970_s5 + $0x2d0] sm:$0xff] }
 0x3f7   : > { %v2161_v40 = vsel %vm688_vm11, %v11814_v1, %v11854_v22  ;;  %v2166_v16 = vsel %vm688_vm11, %v11819_v12, %v11855_v36  ;;  %v7434_v36 = vld [vmem:[%s17970_s5 + $0x2c8] sm:$0xff]  ;;  %v10001_v22 = vpack.c.bf16 %v2651_v9, %v2650_v33  ;;  %v2658_v33 = vld [vmem:[%s17970_s5 + $0x70] sm:$0xff]  ;;  %v2659_v9 = vld [vmem:[%s17970_s5 + $0x78] sm:$0xff] }
 0x3f8   : > { %9971 = vmatpush1.bf16.msra.mxu0 %v9970_v10  ;;  %v11863_v39 = vpop.permute.xlu1 %11862  ;;  %v9979_v42 = vpack.c.bf16 %v2166_v16, %v2161_v40  ;;  %v2176_v29 = vsel %vm688_vm11, %v11844_v3, %v11860_v49  ;;  %v2171_v61 = vsel %vm688_vm11, %v11839_v50, %v11859_v26  ;;  %v2661_v3 = vld [vmem:[%s17970_s5 + $0x88] sm:$0xff]  ;;  %v10066_v40 = vpack.c.bf16 %v7435_v55, %v7434_v36  ;;  %v7419_v26 = vld [vmem:[%s17970_s5 + $0x250] sm:$0xff] }
 0x3f9   : > { %9972 = vmatprep.subr.bf16.mxu0 %v18096_v56  ;;  %v11864_v54 = vunpack.i.l.bf16 %v11863_v39  ;;  %v9982_v43 = vpack.c.bf16 %v2176_v29, %v2171_v61  ;;  %v2156_v52 = vpop.permute.xlu0 %2155  ;;  %v9987_v50 = vpack.c.bf16 %v2661_v3, %v2660_v35  ;;  %v7418_v49 = vld [vmem:[%s17970_s5 + $0x248] sm:$0xff]  ;;  %v2671_v3 = vld [vmem:[%s17970_s5 + $0xd8] sm:$0xff]  ;;  %v7443_v55 = vld [vmem:[%s17970_s5 + $0x310] sm:$0xff] }
 0x3fa   : > { %v2191_v44 = vsel %vm688_vm11, %v2154_v21, %v2156_v52  ;;  %v2649_v21 = vld [vmem:[%s17970_s5 + $0x28] sm:$0xff]  ;;  %v2670_v52 = vld [vmem:[%s17970_s5 + $0xd0] sm:$0xff] }
 0x3fb   : > { %v2181_v17 = vsel %vm688_vm11, %v11849_v8, %v11864_v54  ;;  %9988 = vmatprep.subr.bf16.mxu1 %v9987_v50  ;;  %v2646_v8 = vld [vmem:[%s17970_s5 + $0x10] sm:$0xff]  ;;  %v9997_v24 = vpack.c.bf16 %v2649_v21, %v2648_v15  ;;  %v2653_v29 = vld [vmem:[%s17970_s5 + $0x48] sm:$0xff]  ;;  %v7421_v50 = vld [vmem:[%s17970_s5 + $0x260] sm:$0xff]  ;;  %v10007_v23 = vpack.c.bf16 %v2671_v3, %v2670_v52 }
 0x3fc   : > { %9974 = vmatpush1.bf16.msra.mxu0 %v9973_v5  ;;  %v11865_v5 = vunpack.i.h.bf16 %v11863_v39  ;;  %9990 = vmatpush3.bf16.msra.mxu1 %v9989_v2  ;;  %v9993_v19 = vpack.c.bf16 %v2647_v41, %v2646_v8  ;;  %v10068_v39 = vpack.c.bf16 %v7419_v26, %v7418_v49  ;;  %v10072_v34 = vpack.c.bf16 %v7421_v50, %v7420_v18  ;;  %v2654_v2 = vld [vmem:[%s17970_s5 + $0x50] sm:$0xff]  ;;  %v2657_v15 = vld [vmem:[%s17970_s5 + $0x68] sm:$0xff] }
 0x3fd   : > { %9975 = vmatprep.subr.bf16.mxu0 %v18096_v56  ;;  %v7442_v36 = vld [vmem:[%s17970_s5 + $0x308] sm:$0xff]  ;;  %v7427_v26 = vld [vmem:[%s17970_s5 + $0x290] sm:$0xff] }
 0x3fe   : > { %v2186_v1 = vsel %vm688_vm11, %v14121_v47, %v11865_v5  ;;  %v2663_v47 = vld [vmem:[%s17970_s5 + $0x98] sm:$0xff]  ;;  %v7426_v49 = vld [vmem:[%s17970_s5 + $0x288] sm:$0xff] }
 0x3ff   : > { %v9985_v12 = vpack.c.bf16 %v2186_v1, %v2181_v17  ;;  %v9991_v25 = vpack.c.bf16 %v2663_v47, %v2662_v28  ;;  %v7436_v17 = vld [vmem:[%s17970_s5 + $0x2d8] sm:$0xff] }
 0x400   : > { %9977 = vmatpush1.bf16.msra.mxu0 %v9976_v37  ;;  %v2669_v37 = vld [vmem:[%s17970_s5 + $0xc8] sm:$0xff] }
 0x401   : > { %9978 = vmatprep.subr.bf16.mxu0 %v18096_v56  ;;  %9992 = vmatprep.subr.bf16.mxu1 %v9991_v25  ;;  %v10003_v16 = vpack.c.bf16 %v2669_v37, %v2668_v27  ;;  %v2692_v27 = vld [vmem:[%s17970_s5 + $0x180] sm:$0xff]  ;;  %v2693_v37 = vld [vmem:[%s17970_s5 + $0x188] sm:$0xff] }
 0x402   : > { %9994 = vmatpush3.bf16.msra.mxu1 %v9993_v19  ;;  %v7439_v19 = vld [vmem:[%s17970_s5 + $0x2f0] sm:$0xff] }
 0x404   : > { %9980 = vmatpush1.bf16.msra.mxu0 %v9979_v42  ;;  %v2652_v42 = vld [vmem:[%s17970_s5 + $0x40] sm:$0xff] }
 0x405   : > { %9981 = vmatprep.subr.bf16.mxu0 %v18096_v56  ;;  %v10005_v61 = vpack.c.bf16 %v2653_v29, %v2652_v42 }
 0x408   : > { %9983 = vmatpush1.bf16.msra.mxu0 %v9982_v43 }
 0x409   : > { %9984 = vmatprep.subr.bf16.mxu0 %v18096_v56  ;;  %v14326_v5 = vpop.permute.xlu1 %2235 }
 0x40c   : > { %9986 = vmatpush1.bf16.msra.mxu0 %v9985_v12  ;;  %v7437_v12 = vld [vmem:[%s17970_s5 + $0x2e0] sm:$0xff] }
 0x40d   : > { %2440 = vmatprep.subr.mxu0 %v18097_v58  ;;  %v10070_v35 = vpack.c.bf16 %v7437_v12, %v7436_v17 }
 0x410   : > { %2441 = vmatpush1.msra.mxu0 %v2191_v44 }
 0x411   : > { %2469 = vmatmul.mubr.f32.vlgmr.msra.gmra.mrb[8].mxu0 %v14141_v62  ;;  %10055 = vmatprep.subr.bf16.mxu0 %v10054_v38  ;;  %v9995_v62 = vpack.c.bf16 %v2665_v59, %v2664_v11  ;;  %v2655_v38 = vld [vmem:[%s17970_s5 + $0x58] sm:$0xff]  ;;  %v2673_v11 = vld [vmem:[%s17970_s5 + $0xe8] sm:$0xff]  ;;  %v7423_v59 = vld [vmem:[%s17970_s5 + $0x270] sm:$0xff] }
 0x412   : > { %7409 = vmatprep.mubr.msk.f32.mxu0 %vm2243_vm1, %v14146_v53  ;;  %10057 = vmatpush3.bf16.msra.mxu0 %v10056_v0  ;;  %v10060_v53 = vpack.c.bf16 %v7415_v14, %v7414_v30  ;;  %v10009_v48 = vpack.c.bf16 %v2655_v38, %v2654_v2  ;;  %v7438_v0 = vld [vmem:[%s17970_s5 + $0x2e8] sm:$0xff]  ;;  %v10011_v14 = vpack.c.bf16 %v2673_v11, %v2672_v20 }
 0x413   : > { %10059 = vmatprep.subr.bf16.mxu0 %v10058_v7  ;;  %9996 = vmatprep.subr.bf16.mxu1 %v9995_v62  ;;  %v10074_v13 = vpack.c.bf16 %v7439_v19, %v7438_v0  ;;  %v7422_v7 = vld [vmem:[%s17970_s5 + $0x268] sm:$0xff] }
 0x414   : > { %9998 = vmatpush3.bf16.msra.mxu1 %v9997_v24  ;;  %v10076_v62 = vpack.c.bf16 %v7423_v59, %v7422_v7 }
 0x415   : > { %2474 = vmatmul.mubr.f32.gmra.mrb[10].mxu0 %v2229_v31  ;;  %v2666_v31 = vld [vmem:[%s17970_s5 + $0xb0] sm:$0xff] }
 0x416   : > { %v9999_v10 = vpack.c.bf16 %v2667_v57, %v2666_v31  ;;  %10061 = vmatpush3.bf16.msra.mxu0 %v10060_v53  ;;  %v2656_v53 = vld [vmem:[%s17970_s5 + $0x60] sm:$0xff]  ;;  %v2674_v57 = vld [vmem:[%s17970_s5 + $0xf0] sm:$0xff] }
 0x417   : > { %10063 = vmatprep.subr.bf16.mxu0 %v10062_v51  ;;  %v10013_v21 = vpack.c.bf16 %v2657_v15, %v2656_v53  ;;  %v7441_v31 = vld [vmem:[%s17970_s5 + $0x300] sm:$0xff]  ;;  %v2675_v51 = vld [vmem:[%s17970_s5 + $0xf8] sm:$0xff] }
 0x418   : > { %10000 = vmatprep.subr.bf16.mxu1 %v9999_v10  ;;  %v10078_v24 = vpack.c.bf16 %v7441_v31, %v7440_v46  ;;  %v10015_v10 = vpack.c.bf16 %v2675_v51, %v2674_v57  ;;  %v7476_v46 = vld [vmem:[%s17970_s5 + $0x418] sm:$0xff]  ;;  %v7477_v31 = vld [vmem:[%s17970_s5 + $0x420] sm:$0xff] }
 0x419   : > { %10002 = vmatpush3.bf16.msra.mxu1 %v10001_v22  ;;  %v10017_v22 = vpack.c.bf16 %v2659_v9, %v2658_v33  ;;  %v2696_v9 = vld [vmem:[%s17970_s5 + $0x1a0] sm:$0xff] }
 0x41a   : > { %10065 = vmatpush3.bf16.msra.mxu0 %v10064_v60  ;;  %10004 = vmatprep.subr.bf16.mxu1 %v10003_v16  ;;  %v10080_v60 = vpack.c.bf16 %v7425_v63, %v7424_v4  ;;  %v10019_v16 = vpack.c.bf16 %v2693_v37, %v2692_v27  ;;  %v2678_v63 = vld [vmem:[%s17970_s5 + $0x110] sm:$0xff]  ;;  %v7498_v37 = vld [vmem:[%s17970_s5 + $0x4b8] sm:$0xff] }
 0x41b   : > { %10067 = vmatprep.subr.bf16.mxu0 %v10066_v40  ;;  %v10082_v40 = vpack.c.bf16 %v7443_v55, %v7442_v36  ;;  %v2697_v36 = vld [vmem:[%s17970_s5 + $0x1a8] sm:$0xff]  ;;  %v7497_v27 = vld [vmem:[%s17970_s5 + $0x4b0] sm:$0xff] }
 0x41d   : > { %10006 = vmatpush3.bf16.msra.mxu1 %v10005_v61  ;;  %v2232_v61 = vld [vmem:[%s17969_s4 + $0x8] sm:$0xff] }
 0x41e   : > { %10069 = vmatpush3.bf16.msra.mxu0 %v10068_v39  ;;  %10008 = vmatprep.subr.bf16.mxu1 %v10007_v23  ;;  %v10084_v39 = vpack.c.bf16 %v7427_v26, %v7426_v49  ;;  %v2681_v49 = vld [vmem:[%s17970_s5 + $0x128] sm:$0xff]  ;;  %v2698_v26 = vld [vmem:[%s17970_s5 + $0x1b0] sm:$0xff] }
 0x41f   : > { %10071 = vmatprep.subr.bf16.mxu0 %v10070_v35 }
 0x421   : > { %10010 = vmatpush3.bf16.msra.mxu1 %v10009_v48 }
 0x422   : > { %10073 = vmatpush3.bf16.msra.mxu0 %v10072_v34  ;;  %10012 = vmatprep.subr.bf16.mxu1 %v10011_v14  ;;  %v2676_v14 = vld [vmem:[%s17970_s5 + $0x100] sm:$0xff] }
 0x423   : > { %10075 = vmatprep.subr.bf16.mxu0 %v10074_v13 }
 0x425   : > { %10014 = vmatpush3.bf16.msra.mxu1 %v10013_v21 }
 0x426   : > { %10077 = vmatpush3.bf16.msra.mxu0 %v10076_v62  ;;  %10016 = vmatprep.subr.bf16.mxu1 %v10015_v10  ;;  %v2677_v62 = vld [vmem:[%s17970_s5 + $0x108] sm:$0xff]  ;;  %v2679_v10 = vld [vmem:[%s17970_s5 + $0x118] sm:$0xff] }
 0x427   : > { %10079 = vmatprep.subr.bf16.mxu0 %v10078_v24  ;;  %v10021_v51 = vpack.c.bf16 %v2677_v62, %v2676_v14  ;;  %v10025_v55 = vpack.c.bf16 %v2679_v10, %v2678_v63  ;;  %v2686_v62 = vld [vmem:[%s17970_s5 + $0x150] sm:$0xff] }
 0x429   : > { %10018 = vmatpush3.bf16.msra.mxu1 %v10017_v22  ;;  %v10119_v22 = vpack.c.bf16 %v7477_v31, %v7476_v46  ;;  %v2688_v46 = vld [vmem:[%s17970_s5 + $0x160] sm:$0xff]  ;;  %v2689_v31 = vld [vmem:[%s17970_s5 + $0x168] sm:$0xff] }
 0x42a   : > { %10081 = vmatpush3.bf16.msra.mxu0 %v10080_v60  ;;  %10020 = vmatprep.subr.bf16.mxu1 %v10019_v16  ;;  %v2680_v16 = vld [vmem:[%s17970_s5 + $0x120] sm:$0xff] }
 0x42b   : > { %10083 = vmatprep.subr.bf16.mxu0 %v10082_v40  ;;  %v10027_v40 = vpack.c.bf16 %v2697_v36, %v2696_v9  ;;  %v2691_v9 = vld [vmem:[%s17970_s5 + $0x178] sm:$0xff] }
 0x42e   : > { %10085 = vmatpush3.bf16.msra.mxu0 %v10084_v39  ;;  %v2699_v39 = vld [vmem:[%s17970_s5 + $0x1b8] sm:$0xff] }
 0x42f   : > { %10118 = vmatprep.subr.bf16.mxu0 %v18096_v56 }
 0x4be   : > { %v2316_v54 = vpop.f32.mrb[4].mxu0 }
 0x4bf   : > { %v2317_v43 = vadd.f32 %v2316_v54, %v14326_v5  ;;  %v2318_v1 = vpop.f32.mrb[5].mxu0 }
 0x4c0   : > { %v14339_v44 = vadd.f32 %v2318_v1, %v14326_v5 }
 0x4c1   : > { %v14350_v45 = vmax.f32 %v2317_v43, 0.0 }
 0x4c2   : > { %v14358_v47 = vpop.f32.mrb[6].mxu0  ;;  %v2480_v25 = vmax.f32 %v14339_v44, 0.0  ;;  %v2694_v44 = vld [vmem:[%s17970_s5 + $0x190] sm:$0xff] }
 0x4c3   : > { %v2393_v28 = vpop.f32.mrb[4].mxu1  ;;  %2499 = vrot.lane.b32.xlu1 %v14350_v45, %s11970_s19  ;;  %v14366_v41 = vpop.f32.mrb[7].mxu0 }
 0x4c4   : > { %v14362_v32 = vadd.f32 %v2393_v28, %v14326_v5  ;;  %v2395_v8 = vpop.f32.mrb[5].mxu1 }
 0x4c5   : > { %v2396_v42 = vadd.f32 %v2395_v8, %v14326_v5 }
 0x4c6   : > { %v2481_v30 = vmax.f32 %v14362_v32, 0.0 }
 0x4c7   : > { %2547 = vrot.lane.b32.xlu1 %v14350_v45, %s11979_s14  ;;  %v14448_v29 = vmax.f32 %v2396_v42, 0.0  ;;  %v14459_v54 = vpop.f32.mrb[6].mxu1  ;;  %v7478_v42 = vld [vmem:[%s17970_s5 + $0x428] sm:$0x1] }
 0x4c8   : > { %v11867_v6 = vpack.i.bf16 %v2481_v30, %v2480_v25  ;;  %v14461_v43 = vpop.f32.mrb[7].mxu1 }
 0x4ca   : > { %11868 = vrot.lane.b32.xlu0 %v11867_v6, %s11970_s19 }
 0x4cb   : > { %2595 = vrot.lane.b32.xlu1 %v14350_v45, %s11981_s16 }
 0x4ce   : > { %11873 = vrot.lane.b32.xlu0 %v11867_v6, %s11979_s14 }
 0x4d2   : > { %11878 = vrot.lane.b32.xlu0 %v11867_v6, %s11981_s16 }
 0x4d6   : > { %2505 = vrot.lane.b32.xlu0 %v14448_v29, %s11970_s19 }
 0x4da   : > { %2553 = vrot.lane.b32.xlu0 %v14448_v29, %s11979_s14 }
 0x4de   : > { %2601 = vrot.lane.b32.xlu0 %v14448_v29, %s11981_s16 }
 0x4e2   : > { %2240 = vperm.xlu0 %11560, %v2232_v61   ;;  %v10121_v61 = vpack.c.bf16 %v7498_v37, %v7497_v27 }
 0x4e4   : > { %v2470_v1 = vpop.f32.mrb[8].mxu0 }
 0x4e5   : > { %v2471_v17 = vadd.f32 %v2470_v1, %v14326_v5  ;;  %v2472_v12 = vpop.f32.mrb[9].mxu0  ;;  %v10029_v1 = vpack.c.bf16 %v2681_v49, %v2680_v16 }
 0x4e6   : > { %v10031_v12 = vpack.c.bf16 %v2699_v39, %v2698_v26 }
 0x4e7   : > { %v14464_v52 = vmax.f32 %v2471_v17, 0.0 }
 0x4e8   : > { %v14466_v35 = vpop.f32.mrb[10].mxu0 }
 0x4e9   : > { %2507 = vrot.lane.b32.xlu1 %v14464_v52, %s11970_s19  ;;  %v2477_v3 = vpop.f32.mrb[11].mxu0 }
 0x4ea   : > { %v2682_v3 = vld [vmem:[%s17970_s5 + $0x130] sm:$0xff] }
 0x4ed   : > { %2555 = vrot.lane.b32.xlu1 %v14464_v52, %s11979_s14 }
 0x4f1   : > { %2603 = vrot.lane.b32.xlu1 %v14464_v52, %s11981_s16 }
 0x535   : > { %v2500_v18 = vpop.permute.xlu1 %2499 }
 0x539   : > { %v2548_v34 = vpop.permute.xlu1 %2547 }
 0x53c   : > { %v14474_v50 = vpop.permute.xlu0 %11868 }
 0x53d   : > { %v11871_v5 = vunpack.i.h.bf16 %v14474_v50  ;;  %v11870_v23 = vunpack.i.l.bf16 %v14474_v50  ;;  %v2596_v53 = vpop.permute.xlu1 %2595 }
 0x53f   : > { %v2519_v38 = vsel %vm18098_vm8, %v2500_v18, %v11870_v23  ;;  %v2520_v28 = vsel %vm18099_vm12, %v11870_v23, %v11871_v5  ;;  %v2683_v18 = vld [vmem:[%s17970_s5 + $0x138] sm:$0xff]  ;;  %v2700_v23 = vld [vmem:[%s17970_s5 + $0x1c0] sm:$0xff] }
 0x540   : > { %v14478_v2 = vpop.permute.xlu0 %11873  ;;  %v2537_v20 = vmax.f32 %v14350_v45, %v2519_v38  ;;  %v2538_v13 = vmax.f32 %v2480_v25, %v2520_v28  ;;  %v2695_v25 = vld [vmem:[%s17970_s5 + $0x198] sm:$0xff]  ;;  %v10033_v38 = vpack.c.bf16 %v2683_v18, %v2682_v3 }
 0x541   : > { %v11876_v48 = vunpack.i.h.bf16 %v14478_v2  ;;  %v11875_v8 = vunpack.i.l.bf16 %v14478_v2  ;;  %v10023_v4 = vpack.c.bf16 %v2695_v25, %v2694_v44 }
 0x543   : > { %v2567_v0 = vsel %vm625_vm3, %v2548_v34, %v11875_v8  ;;  %v2568_v19 = vsel %vm625_vm3, %v11875_v8, %v11876_v48  ;;  %v2701_v34 = vld [vmem:[%s17970_s5 + $0x1c8] sm:$0xff]  ;;  %v2684_v8 = vld [vmem:[%s17970_s5 + $0x140] sm:$0xff] }
 0x544   : > { %v14493_v11 = vpop.permute.xlu0 %11878  ;;  %v2585_v15 = vmax.f32 %v2537_v20, %v2567_v0  ;;  %v2586_v45 = vmax.f32 %v2538_v13, %v2568_v19  ;;  %v10035_v28 = vpack.c.bf16 %v2701_v34, %v2700_v23  ;;  %v2685_v0 = vld [vmem:[%s17970_s5 + $0x148] sm:$0xff]  ;;  %v2702_v19 = vld [vmem:[%s17970_s5 + $0x1d0] sm:$0xff]  ;;  %v2703_v20 = vld [vmem:[%s17970_s5 + $0x1d8] sm:$0xff] }
 0x545   : > { %v11881_v7 = vunpack.i.h.bf16 %v14493_v11  ;;  %v11880_v59 = vunpack.i.l.bf16 %v14493_v11  ;;  %v10039_v14 = vpack.c.bf16 %v2703_v20, %v2702_v19  ;;  %v7499_v23 = vld [vmem:[%s17970_s5 + $0x4c0] sm:$0xff]  ;;  %v7500_v11 = vld [vmem:[%s17970_s5 + $0x4c8] sm:$0xff]  ;;  %v7501_v20 = vld [vmem:[%s17970_s5 + $0x4d0] sm:$0xff] }
 0x546   : > { %v10125_v19 = vpack.c.bf16 %v7500_v11, %v7499_v23  ;;  %v7507_v23 = vld [vmem:[%s17970_s5 + $0x500] sm:$0xff]  ;;  %v7508_v11 = vld [vmem:[%s17970_s5 + $0x508] sm:$0xff] }
 0x547   : > { %v2615_v21 = vsel %vm688_vm11, %v2596_v53, %v11880_v59  ;;  %v2616_v6 = vsel %vm688_vm11, %v11880_v59, %v11881_v7  ;;  %v10037_v59 = vpack.c.bf16 %v2685_v0, %v2684_v8  ;;  %v2687_v53 = vld [vmem:[%s17970_s5 + $0x158] sm:$0xff] }
 0x548   : > { %v14519_v57 = vmax.f32 %v2585_v15, %v2615_v21  ;;  %v14521_v24 = vmax.f32 %v2586_v45, %v2616_v6  ;;  %v2506_v17 = vpop.permute.xlu0 %2505  ;;  %v2704_v15 = vld [vmem:[%s17970_s5 + $0x1e0] sm:$0xff]  ;;  %v2705_v45 = vld [vmem:[%s17970_s5 + $0x1e8] sm:$0xff]  ;;  %v10041_v25 = vpack.c.bf16 %v2687_v53, %v2686_v62  ;;  %v7460_v62 = vld [vmem:[%s17970_s5 + $0x398] sm:$0xff] }
 0x549   : > { %v10043_v6 = vpack.c.bf16 %v2705_v45, %v2704_v15  ;;  %v2521_v36 = vsel %vm18101_vm5, %v11871_v5, %v2506_v17  ;;  %v7461_v53 = vld [vmem:[%s17970_s5 + $0x3a0] sm:$0xff]  ;;  %v7444_v15 = vld [vmem:[%s17970_s5 + $0x318] sm:$0xff] }
 0x54a   : > { %2782 = vmatprep.mubr.f32.mxu1 %v14521_v24  ;;  %v3002_v60 = vrot.slane %v14521_v24, 1  ;;  %v3001_v33 = vrot.slane %v14519_v57, 1  ;;  %v7445_v45 = vld [vmem:[%s17970_s5 + $0x320] sm:$0xff] }
 0x54b   : > { %2783 = vmatmul.mubr.f32.vlgmr.msra.gmra.mrb[8].mxu1 %v14519_v57 }
 0x54c   : > { %10022 = vmatpush3.bf16.msra.mxu1 %v10021_v51  ;;  %3079 = vmatprep.mubr.f32.mxu0 %v3002_v60  ;;  %v2554_v13 = vpop.permute.xlu0 %2553  ;;  %v2706_v51 = vld [vmem:[%s17970_s5 + $0x1f0] sm:$0xff]  ;;  %v10045_v60 = vpack.c.bf16 %v2689_v31, %v2688_v46  ;;  %v7462_v46 = vld [vmem:[%s17970_s5 + $0x3a8] sm:$0xff] }
 0x54d   : > { %3080 = vmatmul.mubr.f32.vlgmr.msra.gmra.mrb[12].mxu0 %v3001_v33  ;;  %10024 = vmatprep.subr.bf16.mxu1 %v10023_v4  ;;  %v2707_v4 = vld [vmem:[%s17970_s5 + $0x1f8] sm:$0xff]  ;;  %v2690_v33 = vld [vmem:[%s17970_s5 + $0x170] sm:$0xff] }
 0x54e   : > { %10120 = vmatpush3.bf16.msra.mxu0 %v10119_v22  ;;  %9684 = vmatprep.mubr.msk.f32.mxu0 %vm11989_vm10, %v18097_v58  ;;  %v10047_v37 = vpack.c.bf16 %v2707_v4, %v2706_v51  ;;  %v10049_v26 = vpack.c.bf16 %v2691_v9, %v2690_v33  ;;  %v7463_v31 = vld [vmem:[%s17970_s5 + $0x3b0] sm:$0xff]  ;;  %v10086_v51 = vpack.c.bf16 %v7461_v53, %v7460_v62  ;;  %v7510_v53 = vld [vmem:[%s17970_s5 + $0x518] sm:$0xff] }
 0x54f   : > { %9682 = vmatprep.subr.mxu0 %v18097_v58  ;;  %v10088_v4 = vpack.c.bf16 %v7445_v45, %v7444_v15  ;;  %v7509_v62 = vld [vmem:[%s17970_s5 + $0x510] sm:$0xff] }
 0x550   : > { %10026 = vmatpush3.bf16.msra.mxu1 %v10025_v55  ;;  %v2602_v21 = vpop.permute.xlu0 %2601 }
 0x551   : > { %10028 = vmatprep.subr.bf16.mxu1 %v10027_v40  ;;  %v2617_v3 = vsel %vm688_vm11, %v11881_v7, %v2602_v21 }
 0x552   : > { %9683 = vmatpush3.msk.msra.mxu0 %vm812_vm4, %v7478_v42 }
 0x553   : > { %10122 = vmatprep.subr.bf16.mxu0 %v10121_v61 }
 0x554   : > { %10030 = vmatpush3.bf16.msra.mxu1 %v10029_v1 }
 0x555   : > { %10032 = vmatprep.subr.bf16.mxu1 %v10031_v12  ;;  %v2709_v12 = vld [vmem:[%s17970_s5 + $0x208] sm:$0xff] }
 0x558   : > { %10034 = vmatpush3.bf16.msra.mxu1 %v10033_v38  ;;  %v7483_v38 = vld [vmem:[%s17970_s5 + $0x440] sm:$0xff] }
 0x559   : > { %10036 = vmatprep.subr.bf16.mxu1 %v10035_v28  ;;  %v7484_v28 = vld [vmem:[%s17970_s5 + $0x448] sm:$0xff] }
 0x55b   : > { %v2508_v44 = vpop.permute.xlu1 %2507 }
 0x55c   : > { %10038 = vmatpush3.bf16.msra.mxu1 %v10037_v59  ;;  %v2522_v63 = vsel %vm18100_vm13, %v2506_v17, %v2508_v44  ;;  %v2541_v22 = vmax.f32 %v14464_v52, %v2508_v44  ;;  %v2569_v52 = vsel %vm625_vm3, %v11876_v48, %v2554_v13  ;;  %v2539_v48 = vmax.f32 %v2481_v30, %v2521_v36  ;;  %v2708_v17 = vld [vmem:[%s17970_s5 + $0x200] sm:$0xff] }
 0x55d   : > { %10040 = vmatprep.subr.bf16.mxu1 %v10039_v14  ;;  %v2540_v40 = vmax.f32 %v14448_v29, %v2522_v63  ;;  %v7481_v29 = vld [vmem:[%s17970_s5 + $0x430] sm:$0xff]  ;;  %v10052_v8 = vpack.c.bf16 %v2709_v12, %v2708_v17  ;;  %v3295_v59 = vrot.slane %v14521_v24, 2  ;;  %v10127_v14 = vpack.c.bf16 %v7484_v28, %v7483_v38  ;;  %v7490_v12 = vld [vmem:[%s17970_s5 + $0x478] sm:$0xff]  ;;  %v7450_v38 = vld [vmem:[%s17970_s5 + $0x348] sm:$0xff] }
 0x55e   : > { %v2587_v7 = vmax.f32 %v2539_v48, %v2569_v52  ;;  %v7489_v17 = vld [vmem:[%s17970_s5 + $0x470] sm:$0xff] }
 0x55f   : > { %v2556_v10 = vpop.permute.xlu1 %2555  ;;  %v7451_v28 = vld [vmem:[%s17970_s5 + $0x350] sm:$0xff] }
 0x560   : > { %10042 = vmatpush3.bf16.msra.mxu1 %v10041_v25  ;;  %v2570_v55 = vsel %vm625_vm3, %v2554_v13, %v2556_v10  ;;  %v2589_v5 = vmax.f32 %v2541_v22, %v2556_v10  ;;  %v14686_v0 = vmax.f32 %v2587_v7, %v2617_v3  ;;  %v7502_v13 = vld [vmem:[%s17970_s5 + $0x4d8] sm:$0xff]  ;;  %v7485_v25 = vld [vmem:[%s17970_s5 + $0x450] sm:$0xff]  ;;  %v7503_v10 = vld [vmem:[%s17970_s5 + $0x4e0] sm:$0xff]  ;;  %v10090_v22 = vpack.c.bf16 %v7463_v31, %v7462_v46 }
 0x561   : > { %v14624_v27 = vpop.permute.xlu0 %2240  ;;  %10044 = vmatprep.subr.bf16.mxu1 %v10043_v6  ;;  %v2588_v39 = vmax.f32 %v2540_v40, %v2570_v55  ;;  %v10129_v44 = vpack.c.bf16 %v7502_v13, %v7501_v20  ;;  %v2710_v6 = vld [vmem:[%s17970_s5 + $0x210] sm:$0x1]  ;;  %v7464_v40 = vld [vmem:[%s17970_s5 + $0x3b8] sm:$0xff]  ;;  %v7492_v20 = vld [vmem:[%s17970_s5 + $0x488] sm:$0xff]  ;;  %v10100_v15 = vpack.c.bf16 %v7451_v28, %v7450_v38 }
 0x562   : > { %v14629_v16 = vadd.f32 %v14366_v41, %v14624_v27  ;;  %v14633_v49 = vadd.f32 %v14459_v54, %v14624_v27  ;;  %v2323_v50 = vadd.f32 %v14358_v47, %v14624_v27  ;;  %v7482_v41 = vld [vmem:[%s17970_s5 + $0x438] sm:$0xff]  ;;  %v2476_v63 = vadd.f32 %v14466_v35, %v14624_v27  ;;  %v7446_v35 = vld [vmem:[%s17970_s5 + $0x328] sm:$0xff]  ;;  %v7447_v55 = vld [vmem:[%s17970_s5 + $0x330] sm:$0xff] }
 0x563   : > { %v2604_v47 = vpop.permute.xlu1 %2603  ;;  %v10123_v18 = vpack.c.bf16 %v7482_v41, %v7481_v29  ;;  %v2402_v9 = vadd.f32 %v14461_v43, %v14624_v27  ;;  %v7488_v43 = vld [vmem:[%s17970_s5 + $0x468] sm:$0xff]  ;;  %v10092_v41 = vpack.c.bf16 %v7447_v55, %v7446_v35  ;;  %v7468_v13 = vld [vmem:[%s17970_s5 + $0x3d8] sm:$0xff]  ;;  %v7493_v46 = vld [vmem:[%s17970_s5 + $0x490] sm:$0xff] }
 0x564   : > { %v2485_v54 = vmax.f32 %v14629_v16, 0.0  ;;  %v2486_v42 = vmax.f32 %v14633_v49, 0.0  ;;  %10046 = vmatpush3.bf16.msra.mxu1 %v10045_v60  ;;  %v14648_v2 = vmax.f32 %v2323_v50, 0.0  ;;  %v2618_v61 = vsel %vm688_vm11, %v2602_v21, %v2604_v47  ;;  %v7486_v21 = vld [vmem:[%s17970_s5 + $0x458] sm:$0xff]  ;;  %v7504_v60 = vld [vmem:[%s17970_s5 + $0x4e8] sm:$0xff]  ;;  %v7465_v50 = vld [vmem:[%s17970_s5 + $0x3c0] sm:$0xff] }
 0x565   : > { %v14653_v1 = vmax.f32 %v2589_v5, %v2604_v47  ;;  %10048 = vmatprep.subr.bf16.mxu1 %v10047_v37  ;;  %v14664_v32 = vmax.f32 %v2588_v39, %v2618_v61  ;;  %v10131_v33 = vpack.c.bf16 %v7486_v21, %v7485_v25  ;;  %v7487_v37 = vld [vmem:[%s17970_s5 + $0x460] sm:$0xff]  ;;  %v10133_v27 = vpack.c.bf16 %v7504_v60, %v7503_v10  ;;  %v7505_v5 = vld [vmem:[%s17970_s5 + $0x4f0] sm:$0xff]  ;;  %v7448_v47 = vld [vmem:[%s17970_s5 + $0x338] sm:$0xff] }
 0x566   : > { %2509 = vrot.lane.b32.xlu0 %v14648_v2, %s11970_s19  ;;  %v11882_v30 = vpack.i.bf16 %v2486_v42, %v2485_v54  ;;  %v14767_v52 = vmax.f32 %v2476_v63, 0.0  ;;  %v14775_v29 = vmax.f32 %v2402_v9, 0.0  ;;  %v10135_v39 = vpack.c.bf16 %v7488_v43, %v7487_v37  ;;  %v7449_v61 = vld [vmem:[%s17970_s5 + $0x340] sm:$0xff]  ;;  %v7494_v31 = vld [vmem:[%s17970_s5 + $0x498] sm:$0xff]  ;;  %v7512_v10 = vld [vmem:[%s17970_s5 + $0x528] sm:$0xff] }
 0x567   : > { %v3005_v34 = vrot.slane %v14653_v1, 1  ;;  %2852 = vmatprep.mubr.f32.mxu1 %v14664_v32  ;;  %v3004_v36 = vrot.slane %v14664_v32, 1  ;;  %v10094_v48 = vpack.c.bf16 %v7465_v50, %v7464_v40  ;;  %v10096_v7 = vpack.c.bf16 %v7449_v61, %v7448_v47  ;;  %v7453_v25 = vld [vmem:[%s17970_s5 + $0x360] sm:$0xff]  ;;  %v7454_v9 = vld [vmem:[%s17970_s5 + $0x368] sm:$0xff]  ;;  %v7472_v43 = vld [vmem:[%s17970_s5 + $0x3f8] sm:$0xff] }
 0x568   : > { %10050 = vmatpush3.bf16.msra.mxu1 %v10049_v26  ;;  %11883 = vrot.lane.b32.xlu1 %v11882_v30, %s11970_s19  ;;  %v7506_v26 = vld [vmem:[%s17970_s5 + $0x4f8] sm:$0xff]  ;;  %v7511_v63 = vld [vmem:[%s17970_s5 + $0x520] sm:$0xff]  ;;  %v7496_v37 = vld [vmem:[%s17970_s5 + $0x4a8] sm:$0xff] }
 0x569   : > { %9685 = vmatmul.mubr.msk.f32.vlgmr.msra.gmra.mrb[14].mxu0 %vm2711_vm9, %v3005_v34  ;;  %10051 = vmatprep.subr.bf16.mxu1 %v18096_v56  ;;  %v10137_v3 = vpack.c.bf16 %v7506_v26, %v7505_v5  ;;  %v10139_v34 = vpack.c.bf16 %v7490_v12, %v7489_v17  ;;  %v7495_v55 = vld [vmem:[%s17970_s5 + $0x4a0] sm:$0xff]  ;;  %v7456_v5 = vld [vmem:[%s17970_s5 + $0x378] sm:$0xff]  ;;  %v7475_v61 = vld [vmem:[%s17970_s5 + $0x410] sm:$0xff] }
 0x56a   : > { %10124 = vmatpush3.bf16.msra.mxu0 %v10123_v18  ;;  %2557 = vrot.lane.b32.xlu0 %v14648_v2, %s11979_s14  ;;  %v7467_v18 = vld [vmem:[%s17970_s5 + $0x3d0] sm:$0xff]  ;;  %v10151_v50 = vpack.c.bf16 %v7496_v37, %v7495_v55  ;;  %v7546_v47 = vld [vmem:[%s17970_s5 + $0x638] sm:$0xff] }
 0x56b   : > { %2853 = vmatmul.mubr.f32.vlgmr.msra.gmra.mrb[10].mxu1 %v14686_v0  ;;  %3372 = vmatprep.mubr.f32.mxu0 %v3295_v59  ;;  %v10141_v59 = vpack.c.bf16 %v7508_v11, %v7507_v23  ;;  %v7459_v23 = vld [vmem:[%s17970_s5 + $0x390] sm:$0xff]  ;;  %v7566_v11 = vld [vmem:[%s17970_s5 + $0x6c8] sm:$0xff]  ;;  %v7534_v37 = vld [vmem:[%s17970_s5 + $0x5d8] sm:$0xff] }
 0x56c   : > { %10053 = vmatpush3.bf16.msra.mxu1 %v10052_v8  ;;  %11888 = vrot.lane.b32.xlu1 %v11882_v30, %s11979_s14  ;;  %v7551_v38 = vld [vmem:[%s17970_s5 + $0x650] sm:$0xff] }
 0x56d   : > { %10126 = vmatprep.subr.bf16.mxu0 %v10125_v19  ;;  %9673 = vmatprep.subr.mxu1 %v18097_v58  ;;  %v7491_v19 = vld [vmem:[%s17970_s5 + $0x480] sm:$0xff]  ;;  %v7533_v55 = vld [vmem:[%s17970_s5 + $0x5d0] sm:$0xff] }
 0x56e   : > { %10128 = vmatpush3.bf16.msra.mxu0 %v10127_v14  ;;  %2605 = vrot.lane.b32.xlu0 %v14648_v2, %s11981_s16  ;;  %v7469_v14 = vld [vmem:[%s17970_s5 + $0x3e0] sm:$0xff]  ;;  %v10143_v45 = vpack.c.bf16 %v7492_v20, %v7491_v19  ;;  %v7529_v19 = vld [vmem:[%s17970_s5 + $0x5b0] sm:$0xff]  ;;  %v7530_v20 = vld [vmem:[%s17970_s5 + $0x5b8] sm:$0xff] }
 0x56f   : > { %9675 = vmatprep.mubr.msk.f32.mxu1 %vm11989_vm10, %v18097_v58  ;;  %10130 = vmatprep.subr.bf16.mxu0 %v10129_v44  ;;  %v7452_v44 = vld [vmem:[%s17970_s5 + $0x358] sm:$0xff]  ;;  %v10102_v21 = vpack.c.bf16 %v7469_v14, %v7468_v13 }
 0x570   : > { %9674 = vmatpush3.msk.msra.mxu1 %vm812_vm4, %v2710_v6  ;;  %11893 = vrot.lane.b32.xlu1 %v11882_v30, %s11981_s16  ;;  %v7466_v30 = vld [vmem:[%s17970_s5 + $0x3c8] sm:$0xff]  ;;  %v10145_v6 = vpack.c.bf16 %v7510_v53, %v7509_v62  ;;  %v10104_v60 = vpack.c.bf16 %v7453_v25, %v7452_v44  ;;  %v7514_v14 = vld [vmem:[%s17970_s5 + $0x538] sm:$0xff]  ;;  %v3298_v25 = vrot.slane %v14653_v1, 2 }
 0x571   : > { %9676 = vmatmul.mubr.msk.f32.vlgmr.msra.gmra.mrb[12].mxu1 %vm2711_vm9, %v14653_v1  ;;  %10087 = vmatprep.subr.bf16.mxu1 %v10086_v51  ;;  %v10098_v8 = vpack.c.bf16 %v7467_v18, %v7466_v30  ;;  %v7470_v51 = vld [vmem:[%s17970_s5 + $0x3e8] sm:$0xff]  ;;  %v7568_v62 = vld [vmem:[%s17970_s5 + $0x6d8] sm:$0xff] }
 0x572   : > { %3149 = vmatprep.mubr.f32.mxu1 %v3004_v36  ;;  %10089 = vmatpush3.bf16.msra.mxu1 %v10088_v4  ;;  %v7471_v4 = vld [vmem:[%s17970_s5 + $0x3f0] sm:$0xff]  ;;  %v10149_v36 = vpack.c.bf16 %v7512_v10, %v7511_v63  ;;  %v7458_v18 = vld [vmem:[%s17970_s5 + $0x388] sm:$0xff]  ;;  %v3003_v10 = vrot.slane %v14686_v0, 1 }
 0x573   : > { %10132 = vmatpush3.bf16.msra.mxu0 %v10131_v33  ;;  %2517 = vrot.lane.b32.xlu0 %v14767_v52, %s11970_s19  ;;  %v10147_v33 = vpack.c.bf16 %v7494_v31, %v7493_v46  ;;  %v10106_v35 = vpack.c.bf16 %v7471_v4, %v7470_v51  ;;  %v10116_v28 = vpack.c.bf16 %v7459_v23, %v7458_v18  ;;  %v7532_v44 = vld [vmem:[%s17970_s5 + $0x5c8] sm:$0xff]  ;;  %v7553_v46 = vld [vmem:[%s17970_s5 + $0x660] sm:$0xff]  ;;  %v3588_v31 = vrot.slane %v14521_v24, 3  ;;  %v7571_v63 = vld [vmem:[%s17970_s5 + $0x6f0] sm:$0xff] }
 0x574   : > { %10091 = vmatprep.subr.bf16.mxu1 %v10090_v22  ;;  %2515 = vrot.lane.b32.xlu1 %v14775_v29, %s11970_s19  ;;  %v7455_v22 = vld [vmem:[%s17970_s5 + $0x370] sm:$0xff]  ;;  %v7570_v4 = vld [vmem:[%s17970_s5 + $0x6e8] sm:$0xff]  ;;  %s7339_s19 = sshll.u32 %s270_s17, 4  ;;  %s17925_s19 = int_to_ptr.vmem [resolvable:$true] %s7339_s19 }
 0x575   : > { %10134 = vmatprep.subr.bf16.mxu0 %v10133_v27  ;;  %v7473_v27 = vld [vmem:[%s17970_s5 + $0x400] sm:$0xff]  ;;  %v10108_v40 = vpack.c.bf16 %v7455_v22, %v7454_v9  ;;  %v7574_v23 = vld [vmem:[%s17970_s5 + $0x708] sm:$0xff]  ;;  %p11912_p0 = scmp.lt.s32.totalorder %s17925_s19, %s11910_s20 }
 0x576   : > { %10093 = vmatpush3.bf16.msra.mxu1 %v10092_v41  ;;  %v10110_v26 = vpack.c.bf16 %v7473_v27, %v7472_v43  ;;  %v7457_v41 = vld [vmem:[%s17970_s5 + $0x380] sm:$0xff]  ;;  %v10196_v43 = vpack.c.bf16 %v7571_v63, %v7570_v4  ;;  %v7554_v27 = vld [vmem:[%s17970_s5 + $0x668] sm:$0xff] }
 0x577   : > { %10136 = vmatpush3.bf16.msra.mxu0 %v10135_v39  ;;  %2565 = vrot.lane.b32.xlu0 %v14767_v52, %s11979_s14  ;;  %v7545_v39 = vld [vmem:[%s17970_s5 + $0x630] sm:$0xff]  ;;  %v10112_v17 = vpack.c.bf16 %v7457_v41, %v7456_v5  ;;  %v7515_v9 = vld [vmem:[%s17970_s5 + $0x540] sm:$0xff]  ;;  %v7572_v5 = vld [vmem:[%s17970_s5 + $0x6f8] sm:$0xff]  ;;  %v10161_v41 = vpack.c.bf16 %v7534_v37, %v7533_v55 }
 0x578   : > { %10095 = vmatprep.subr.bf16.mxu1 %v10094_v48  ;;  %2563 = vrot.lane.b32.xlu1 %v14775_v29, %s11979_s14  ;;  %v7474_v48 = vld [vmem:[%s17970_s5 + $0x408] sm:$0xff]  ;;  %v10186_v12 = vpack.c.bf16 %v7546_v47, %v7545_v39  ;;  %v7517_v39 = vld [vmem:[%s17970_s5 + $0x550] sm:$0xff]  ;;  %v7518_v47 = vld [vmem:[%s17970_s5 + $0x558] sm:$0xff]  ;;  %s11905_s14 = scalar_lea.vmem %s17925_s19, 16 }
 0x579   : > { %10138 = vmatprep.subr.bf16.mxu0 %v10137_v3  ;;  %v3294_v3 = vrot.slane %v14519_v57, 2  ;;  %v10114_v30 = vpack.c.bf16 %v7475_v61, %v7474_v48  ;;  %v7535_v61 = vld [vmem:[%s17970_s5 + $0x5e0] sm:$0xff]  ;;  %v10163_v18 = vpack.c.bf16 %v7518_v47, %v7517_v39  ;;  %v7578_v63 = vld [vmem:[%s17970_s5 + $0x728] sm:$0xff]  ;;  %p11906_p11 = scmp.ne.s32.totalorder %s17925_s19, %s11905_s14  ;;  %p11913_p1 = scmp.lt.s32.totalorder %s11911_s22, %s11905_s14 }
 0x57a   : > { %10097 = vmatpush3.bf16.msra.mxu1 %v10096_v7  ;;  %v7567_v7 = vld [vmem:[%s17970_s5 + $0x6d0] sm:$0xff]  ;;  %v7562_v37 = vld [vmem:[%s17970_s5 + $0x6a8] sm:$0xff]  ;;  %v7543_v47 = vld [vmem:[%s17970_s5 + $0x620] sm:$0xff] }
 0x57b   : > { %10140 = vmatpush3.bf16.msra.mxu0 %v10139_v34  ;;  %2613 = vrot.lane.b32.xlu0 %v14767_v52, %s11981_s16  ;;  %v7550_v34 = vld [vmem:[%s17970_s5 + $0x648] sm:$0xff]  ;;  %v10188_v13 = vpack.c.bf16 %v7567_v7, %v7566_v11  ;;  %v7575_v11 = vld [vmem:[%s17970_s5 + $0x710] sm:$0xff]  ;;  %p11907_p12 = pnand %p11906_p11, %p12074_p5  ;;  %p11914_p2 = por %p11913_p1, %p11912_p0 }
 0x57c   : > { %10099 = vmatprep.subr.bf16.mxu1 %v10098_v8  ;;  %2611 = vrot.lane.b32.xlu1 %v14775_v29, %s11981_s16  ;;  %v7547_v8 = vld [vmem:[%s17970_s5 + $0x640] sm:$0x1]  ;;  %v10190_v53 = vpack.c.bf16 %v7551_v38, %v7550_v34  ;;  %v7520_v38 = vld [vmem:[%s17970_s5 + $0x568] sm:$0xff] }
 0x57d   : > { %10142 = vmatprep.subr.bf16.mxu0 %v10141_v59  ;;  %v7513_v59 = vld [vmem:[%s17970_s5 + $0x530] sm:$0xff]  ;;  %v7519_v34 = vld [vmem:[%s17970_s5 + $0x560] sm:$0xff]  ;;  %p11908_p13 = pneg %p11907_p12 }
 0x57e   : > { %10101 = vmatpush3.bf16.msra.mxu1 %v10100_v15  ;;  %v7569_v15 = vld [vmem:[%s17970_s5 + $0x6e0] sm:$0xff]  ;;  %v10155_v51 = vpack.c.bf16 %v7514_v14, %v7513_v59  ;;  %v7559_v59 = vld [vmem:[%s17970_s5 + $0x690] sm:$0xff]  ;;  %v10167_v14 = vpack.c.bf16 %v7520_v38, %v7519_v34  ;;  %v7614_v38 = vld [vmem:[%s17970_s5 + $0x848] sm:$0xff] }
 0x57f   : > { %10144 = vmatpush3.bf16.msra.mxu0 %v10143_v45  ;;  %10103 = vmatprep.subr.bf16.mxu1 %v10102_v21  ;;  %v7531_v45 = vld [vmem:[%s17970_s5 + $0x5c0] sm:$0xff]  ;;  %v10153_v21 = vpack.c.bf16 %v7530_v20, %v7529_v19  ;;  %v7538_v19 = vld [vmem:[%s17970_s5 + $0x5f8] sm:$0xff]  ;;  %v10204_v20 = vpack.c.bf16 %v7575_v11, %v7574_v23  ;;  %v7528_v23 = vld [vmem:[%s17970_s5 + $0x5a8] sm:$0xff]  ;;  %p11915_p3 = pnand %p11914_p2, %p11908_p13 }
 0x580   : > { %10146 = vmatprep.subr.bf16.mxu0 %v10145_v6  ;;  %v7552_v6 = vld [vmem:[%s17970_s5 + $0x658] sm:$0xff]  ;;  %v7599_v34 = vld [vmem:[%s17970_s5 + $0x7d0] sm:$0xff] }
 0x581   : > { %v10194_v22 = vpack.c.bf16 %v7553_v46, %v7552_v6  ;;  %v7540_v6 = vld [vmem:[%s17970_s5 + $0x608] sm:$0xff] }
 0x582   : > { %10105 = vmatpush3.bf16.msra.mxu1 %v10104_v60  ;;  %v10192_v60 = vpack.c.bf16 %v7569_v15, %v7568_v62  ;;  %v7576_v62 = vld [vmem:[%s17970_s5 + $0x718] sm:$0xff] }
 0x583   : > { %10148 = vmatpush3.bf16.msra.mxu0 %v10147_v33  ;;  %10107 = vmatprep.subr.bf16.mxu1 %v10106_v35  ;;  %v10157_v33 = vpack.c.bf16 %v7532_v44, %v7531_v45  ;;  %v7516_v35 = vld [vmem:[%s17970_s5 + $0x548] sm:$0xff]  ;;  %v7521_v45 = vld [vmem:[%s17970_s5 + $0x570] sm:$0xff]  ;;  %v7522_v44 = vld [vmem:[%s17970_s5 + $0x578] sm:$0xff] }
 0x584   : > { %10150 = vmatprep.subr.bf16.mxu0 %v10149_v36  ;;  %v3297_v36 = vrot.slane %v14664_v32, 2  ;;  %v10171_v4 = vpack.c.bf16 %v7522_v44, %v7521_v45  ;;  %v7635_v45 = vld [vmem:[%s17970_s5 + $0x8e0] sm:$0xff]  ;;  %v7636_v44 = vld [vmem:[%s17970_s5 + $0x8e8] sm:$0xff] }
 0x586   : > { %10109 = vmatpush3.bf16.msra.mxu1 %v10108_v40  ;;  %v7555_v40 = vld [vmem:[%s17970_s5 + $0x670] sm:$0xff] }
 0x587   : > { %10152 = vmatpush3.bf16.msra.mxu0 %v10151_v50  ;;  %10111 = vmatprep.subr.bf16.mxu1 %v10110_v26  ;;  %v10159_v50 = vpack.c.bf16 %v7516_v35, %v7515_v9  ;;  %v7573_v26 = vld [vmem:[%s17970_s5 + $0x700] sm:$0xff]  ;;  %v10198_v48 = vpack.c.bf16 %v7555_v40, %v7554_v27  ;;  %v7524_v9 = vld [vmem:[%s17970_s5 + $0x588] sm:$0xff]  ;;  %v7580_v40 = vld [vmem:[%s17970_s5 + $0x738] sm:$0xff] }
 0x588   : > { %10185 = vmatprep.subr.bf16.mxu0 %v18096_v56 }
 0x58a   : > { %3373 = vmatmul.mubr.f32.vlgmr.msra.gmra.mrb[16].mxu0 %v3294_v3  ;;  %10113 = vmatpush3.bf16.msra.mxu1 %v10112_v17  ;;  %v7536_v17 = vld [vmem:[%s17970_s5 + $0x5e8] sm:$0xff]  ;;  %v7556_v3 = vld [vmem:[%s17970_s5 + $0x678] sm:$0xff] }
 0x58b   : > { %10187 = vmatpush3.bf16.msra.mxu0 %v10186_v12  ;;  %10115 = vmatprep.subr.bf16.mxu1 %v10114_v30  ;;  %v10200_v12 = vpack.c.bf16 %v7573_v26, %v7572_v5  ;;  %v7557_v30 = vld [vmem:[%s17970_s5 + $0x680] sm:$0xff]  ;;  %v10165_v7 = vpack.c.bf16 %v7536_v17, %v7535_v61  ;;  %v7525_v26 = vld [vmem:[%s17970_s5 + $0x590] sm:$0xff]  ;;  %v7564_v17 = vld [vmem:[%s17970_s5 + $0x6b8] sm:$0xff] }
 0x58c   : > { %9691 = vmatprep.subr.mxu0 %v18097_v58  ;;  %9693 = vmatprep.mubr.msk.f32.mxu0 %vm11989_vm10, %v18097_v58 }
 0x58e   : > { %10117 = vmatpush3.bf16.msra.mxu1 %v10116_v28  ;;  %v10202_v28 = vpack.c.bf16 %v7557_v30, %v7556_v3 }
 0x58f   : > { %9692 = vmatpush3.msk.msra.mxu0 %vm812_vm4, %v7547_v8  ;;  %10154 = vmatprep.subr.bf16.mxu1 %v10153_v21  ;;  %v7537_v8 = vld [vmem:[%s17970_s5 + $0x5f0] sm:$0xff]  ;;  %v7539_v21 = vld [vmem:[%s17970_s5 + $0x600] sm:$0xff] }
 0x590   : > { %9694 = vmatmul.mubr.msk.f32.vlgmr.msra.gmra.mrb[14].mxu0 %vm2711_vm9, %v3298_v25  ;;  %10189 = vmatprep.subr.bf16.mxu0 %v10188_v13  ;;  %v7558_v13 = vld [vmem:[%s17970_s5 + $0x688] sm:$0xff]  ;;  %v10169_v15 = vpack.c.bf16 %v7538_v19, %v7537_v8 }
 0x591   : > { %10191 = vmatpush3.bf16.msra.mxu0 %v10190_v53  ;;  %3665 = vmatprep.mubr.f32.mxu0 %v3588_v31  ;;  %v7577_v53 = vld [vmem:[%s17970_s5 + $0x720] sm:$0xff]  ;;  %v10206_v25 = vpack.c.bf16 %v7559_v59, %v7558_v13  ;;  %v7560_v31 = vld [vmem:[%s17970_s5 + $0x698] sm:$0xff]  ;;  %v7583_v13 = vld [vmem:[%s17970_s5 + $0x750] sm:$0xff] }
 0x592   : > { %3150 = vmatmul.mubr.f32.vlgmr.msra.gmra.mrb[14].mxu1 %v3003_v10  ;;  %10193 = vmatprep.subr.bf16.mxu0 %v10192_v60  ;;  %v10208_v46 = vpack.c.bf16 %v7577_v53, %v7576_v62  ;;  %v7579_v10 = vld [vmem:[%s17970_s5 + $0x730] sm:$0xff]  ;;  %v10173_v60 = vpack.c.bf16 %v7540_v6, %v7539_v21  ;;  %v7601_v62 = vld [vmem:[%s17970_s5 + $0x7e0] sm:$0xff]  ;;  %v3587_v53 = vrot.slane %v14519_v57, 3  ;;  %v3296_v21 = vrot.slane %v14686_v0, 2 }
 0x593   : > { %10156 = vmatpush3.bf16.msra.mxu1 %v10155_v51  ;;  %3442 = vmatprep.mubr.f32.mxu1 %v3297_v36  ;;  %v7561_v51 = vld [vmem:[%s17970_s5 + $0x6a0] sm:$0xff]  ;;  %v7541_v36 = vld [vmem:[%s17970_s5 + $0x610] sm:$0xff]  ;;  %v10212_v55 = vpack.c.bf16 %v7579_v10, %v7578_v63  ;;  %v7602_v63 = vld [vmem:[%s17970_s5 + $0x7e8] sm:$0xff] }
 0x594   : > { %10158 = vmatprep.subr.bf16.mxu1 %v10157_v33  ;;  %v7523_v33 = vld [vmem:[%s17970_s5 + $0x580] sm:$0xff]  ;;  %v10210_v35 = vpack.c.bf16 %v7561_v51, %v7560_v31  ;;  %v7620_v51 = vld [vmem:[%s17970_s5 + $0x868] sm:$0xff]  ;;  %v7603_v10 = vld [vmem:[%s17970_s5 + $0x7f0] sm:$0xff] }
 0x595   : > { %10195 = vmatpush3.bf16.msra.mxu0 %v10194_v22  ;;  %v7542_v22 = vld [vmem:[%s17970_s5 + $0x618] sm:$0xff]  ;;  %v10175_v27 = vpack.c.bf16 %v7524_v9, %v7523_v33  ;;  %v7619_v31 = vld [vmem:[%s17970_s5 + $0x860] sm:$0xff]  ;;  %v10255_v33 = vpack.c.bf16 %v7636_v44, %v7635_v45  ;;  %v7637_v9 = vld [vmem:[%s17970_s5 + $0x8f0] sm:$0xff] }
 0x596   : > { %10197 = vmatprep.subr.bf16.mxu0 %v10196_v43  ;;  %v7563_v43 = vld [vmem:[%s17970_s5 + $0x6b0] sm:$0xff]  ;;  %v10177_v5 = vpack.c.bf16 %v7542_v22, %v7541_v36  ;;  %v10257_v22 = vpack.c.bf16 %v7620_v51, %v7619_v31  ;;  %v7609_v45 = vld [vmem:[%s17970_s5 + $0x820] sm:$0xff] }
 0x597   : > { %10160 = vmatpush3.bf16.msra.mxu1 %v10159_v50  ;;  %v7581_v50 = vld [vmem:[%s17970_s5 + $0x740] sm:$0xff]  ;;  %v10214_v39 = vpack.c.bf16 %v7563_v43, %v7562_v37  ;;  %v7587_v37 = vld [vmem:[%s17970_s5 + $0x770] sm:$0xff]  ;;  %v3591_v43 = vrot.slane %v14653_v1, 3 }
 0x598   : > { %10162 = vmatprep.subr.bf16.mxu1 %v10161_v41  ;;  %v7526_v41 = vld [vmem:[%s17970_s5 + $0x598] sm:$0xff]  ;;  %v10216_v61 = vpack.c.bf16 %v7581_v50, %v7580_v40  ;;  %v7621_v40 = vld [vmem:[%s17970_s5 + $0x870] sm:$0xff]  ;;  %v7643_v44 = vld [vmem:[%s17970_s5 + $0x920] sm:$0xff] }
 0x599   : > { %10199 = vmatpush3.bf16.msra.mxu0 %v10198_v48  ;;  %v7544_v48 = vld [vmem:[%s17970_s5 + $0x628] sm:$0xff]  ;;  %v10179_v3 = vpack.c.bf16 %v7526_v41, %v7525_v26  ;;  %v7622_v50 = vld [vmem:[%s17970_s5 + $0x878] sm:$0xff]  ;;  %v7605_v41 = vld [vmem:[%s17970_s5 + $0x800] sm:$0xff] }
 0x59a   : > { %10201 = vmatprep.subr.bf16.mxu0 %v10200_v12  ;;  %v7565_v12 = vld [vmem:[%s17970_s5 + $0x6c0] sm:$0xff]  ;;  %v10181_v30 = vpack.c.bf16 %v7544_v48, %v7543_v47  ;;  %v7640_v47 = vld [vmem:[%s17970_s5 + $0x908] sm:$0xff]  ;;  %v3881_v48 = vrot.slane %v14521_v24, 4 }
 0x59b   : > { %10164 = vmatpush3.bf16.msra.mxu1 %v10163_v18  ;;  %v7527_v18 = vld [vmem:[%s17970_s5 + $0x5a0] sm:$0xff]  ;;  %v10218_v11 = vpack.c.bf16 %v7565_v12, %v7564_v17  ;;  %v10261_v17 = vpack.c.bf16 %v7622_v50, %v7621_v40  ;;  %v7588_v12 = vld [vmem:[%s17970_s5 + $0x778] sm:$0xff]  ;;  %v7629_v40 = vld [vmem:[%s17970_s5 + $0x8b0] sm:$0xff] }
 0x59c   : > { %10166 = vmatprep.subr.bf16.mxu1 %v10165_v7  ;;  %v7598_v7 = vld [vmem:[%s17970_s5 + $0x7c8] sm:$0xff]  ;;  %v10183_v8 = vpack.c.bf16 %v7528_v23, %v7527_v18  ;;  %v7623_v23 = vld [vmem:[%s17970_s5 + $0x880] sm:$0xff]  ;;  %v7630_v50 = vld [vmem:[%s17970_s5 + $0x8b8] sm:$0xff] }
 0x59d   : > { %10203 = vmatpush3.bf16.msra.mxu0 %v10202_v28  ;;  %v7615_v28 = vld [vmem:[%s17970_s5 + $0x850] sm:$0xff]  ;;  %v10220_v19 = vpack.c.bf16 %v7599_v34, %v7598_v7  ;;  %v7606_v7 = vld [vmem:[%s17970_s5 + $0x808] sm:$0xff]  ;;  %v7593_v31 = vld [vmem:[%s17970_s5 + $0x7a0] sm:$0xff] }
 0x59e   : > { %10205 = vmatprep.subr.bf16.mxu0 %v10204_v20  ;;  %v7582_v20 = vld [vmem:[%s17970_s5 + $0x748] sm:$0xff]  ;;  %v10253_v59 = vpack.c.bf16 %v7615_v28, %v7614_v38  ;;  %v7607_v34 = vld [vmem:[%s17970_s5 + $0x810] sm:$0xff]  ;;  %v7642_v28 = vld [vmem:[%s17970_s5 + $0x918] sm:$0xff] }
 0x59f   : > { %10168 = vmatpush3.bf16.msra.mxu1 %v10167_v14  ;;  %v7600_v14 = vld [vmem:[%s17970_s5 + $0x7d8] sm:$0xff]  ;;  %v7641_v38 = vld [vmem:[%s17970_s5 + $0x910] sm:$0xff] }
 0x5a0   : > { %10170 = vmatprep.subr.bf16.mxu1 %v10169_v15  ;;  %v10222_v15 = vpack.c.bf16 %v7583_v13, %v7582_v20  ;;  %v10224_v6 = vpack.c.bf16 %v7601_v62, %v7600_v14  ;;  %v7590_v20 = vld [vmem:[%s17970_s5 + $0x788] sm:$0xff]  ;;  %v7591_v13 = vld [vmem:[%s17970_s5 + $0x790] sm:$0xff]  ;;  %v10267_v14 = vpack.c.bf16 %v7642_v28, %v7641_v38 }
 0x5a1   : > { %10207 = vmatpush3.bf16.msra.mxu0 %v10206_v25  ;;  %v7584_v25 = vld [vmem:[%s17970_s5 + $0x758] sm:$0xff]  ;;  %v7625_v62 = vld [vmem:[%s17970_s5 + $0x890] sm:$0xff] }
 0x5a2   : > { %10209 = vmatprep.subr.bf16.mxu0 %v10208_v46  ;;  %v7585_v46 = vld [vmem:[%s17970_s5 + $0x760] sm:$0xff] }
 0x5a3   : > { %10172 = vmatpush3.bf16.msra.mxu1 %v10171_v4  ;;  %v3590_v4 = vrot.slane %v14664_v32, 3  ;;  %v10226_v36 = vpack.c.bf16 %v7585_v46, %v7584_v25  ;;  %v7644_v25 = vld [vmem:[%s17970_s5 + $0x928] sm:$0xff]  ;;  %v7592_v46 = vld [vmem:[%s17970_s5 + $0x798] sm:$0xff] }
 0x5a4   : > { %10174 = vmatprep.subr.bf16.mxu1 %v10173_v60  ;;  %v7616_v60 = vld [vmem:[%s17970_s5 + $0x858] sm:$0x1] }
 0x5a5   : > { %10211 = vmatpush3.bf16.msra.mxu0 %v10210_v35  ;;  %v7638_v35 = vld [vmem:[%s17970_s5 + $0x8f8] sm:$0xff] }
 0x5a6   : > { %10213 = vmatprep.subr.bf16.mxu0 %v10212_v55  ;;  %v7586_v55 = vld [vmem:[%s17970_s5 + $0x768] sm:$0xff]  ;;  %v10259_v26 = vpack.c.bf16 %v7638_v35, %v7637_v9  ;;  %v7645_v9 = vld [vmem:[%s17970_s5 + $0x930] sm:$0xff]  ;;  %v7646_v35 = vld [vmem:[%s17970_s5 + $0x938] sm:$0xff] }
 0x5a7   : > { %10176 = vmatpush3.bf16.msra.mxu1 %v10175_v27  ;;  %v10228_v27 = vpack.c.bf16 %v7603_v10, %v7602_v63  ;;  %v7627_v63 = vld [vmem:[%s17970_s5 + $0x8a0] sm:$0xff]  ;;  %v7628_v10 = vld [vmem:[%s17970_s5 + $0x8a8] sm:$0xff] }
 0x5a8   : > { %10178 = vmatprep.subr.bf16.mxu1 %v10177_v5  ;;  %v7604_v5 = vld [vmem:[%s17970_s5 + $0x7f8] sm:$0xff] }
 0x5a9   : > { %10215 = vmatpush3.bf16.msra.mxu0 %v10214_v39  ;;  %v7639_v39 = vld [vmem:[%s17970_s5 + $0x900] sm:$0xff] }
 0x5aa   : > { %10217 = vmatprep.subr.bf16.mxu0 %v10216_v61  ;;  %v10230_v61 = vpack.c.bf16 %v7587_v37, %v7586_v55  ;;  %v10263_v18 = vpack.c.bf16 %v7640_v47, %v7639_v39  ;;  %v7594_v55 = vld [vmem:[%s17970_s5 + $0x7a8] sm:$0xff]  ;;  %v7595_v37 = vld [vmem:[%s17970_s5 + $0x7b0] sm:$0xff] }
 0x5ab   : > { %10180 = vmatpush3.bf16.msra.mxu1 %v10179_v3  ;;  %v7589_v3 = vld [vmem:[%s17970_s5 + $0x780] sm:$0xff]  ;;  %v7648_v39 = vld [vmem:[%s17970_s5 + $0x948] sm:$0xff]  ;;  %v10246_v47 = vpack.c.bf16 %v7595_v37, %v7594_v55  ;;  %v7720_v37 = vld [vmem:[%s17970_s5 + $0xb78] sm:$0xff] }
 0x5ac   : > { %10182 = vmatprep.subr.bf16.mxu1 %v10181_v30  ;;  %v10232_v30 = vpack.c.bf16 %v7605_v41, %v7604_v5  ;;  %v7612_v5 = vld [vmem:[%s17970_s5 + $0x838] sm:$0xff]  ;;  %v7647_v41 = vld [vmem:[%s17970_s5 + $0x940] sm:$0xff] }
 0x5ad   : > { %10219 = vmatpush3.bf16.msra.mxu0 %v10218_v11  ;;  %v7624_v11 = vld [vmem:[%s17970_s5 + $0x888] sm:$0xff]  ;;  %v7737_v55 = vld [vmem:[%s17970_s5 + $0xc00] sm:$0xff] }
 0x5ae   : > { %10252 = vmatprep.subr.bf16.mxu0 %v18096_v56 }
 0x5af   : > { %10184 = vmatpush3.bf16.msra.mxu1 %v10183_v8  ;;  %v10234_v8 = vpack.c.bf16 %v7589_v3, %v7588_v12  ;;  %v10279_v3 = vpack.c.bf16 %v7648_v39, %v7647_v41  ;;  %v7685_v41 = vld [vmem:[%s17970_s5 + $0xa70] sm:$0x1] }
 0x5b0   : > { %3666 = vmatmul.mubr.f32.vlgmr.msra.gmra.mrb[18].mxu0 %v3587_v53  ;;  %10221 = vmatprep.subr.bf16.mxu1 %v10220_v19  ;;  %v10265_v19 = vpack.c.bf16 %v7624_v11, %v7623_v23  ;;  %v7626_v53 = vld [vmem:[%s17970_s5 + $0x898] sm:$0xff]  ;;  %v7649_v23 = vld [vmem:[%s17970_s5 + $0x950] sm:$0xff] }
 0x5b1   : > { %10254 = vmatpush3.bf16.msra.mxu0 %v10253_v59  ;;  %9702 = vmatprep.mubr.msk.f32.mxu0 %vm11989_vm10, %v18097_v58  ;;  %v10236_v59 = vpack.c.bf16 %v7607_v34, %v7606_v7  ;;  %v7650_v11 = vld [vmem:[%s17970_s5 + $0x958] sm:$0xff]  ;;  %v7667_v7 = vld [vmem:[%s17970_s5 + $0x9e0] sm:$0xff]  ;;  %v7668_v34 = vld [vmem:[%s17970_s5 + $0x9e8] sm:$0xff] }
 0x5b2   : > { %3443 = vmatmul.mubr.f32.vlgmr.msra.gmra.mrb[16].mxu1 %v3296_v21  ;;  %9700 = vmatprep.subr.mxu0 %v18097_v58  ;;  %v10238_v21 = vpack.c.bf16 %v7591_v13, %v7590_v20  ;;  %v10287_v20 = vpack.c.bf16 %v7668_v34, %v7667_v7  ;;  %v7634_v13 = vld [vmem:[%s17970_s5 + $0x8d8] sm:$0xff]  ;;  %v4176_v7 = vrot.slane %v14664_v32, 5 }
 0x5b3   : > { %10223 = vmatpush3.bf16.msra.mxu1 %v10222_v15  ;;  %3735 = vmatprep.mubr.f32.mxu1 %v3590_v4  ;;  %v7608_v15 = vld [vmem:[%s17970_s5 + $0x818] sm:$0xff]  ;;  %v10271_v4 = vpack.c.bf16 %v7644_v25, %v7643_v44  ;;  %v7653_v44 = vld [vmem:[%s17970_s5 + $0x970] sm:$0xff]  ;;  %v3589_v25 = vrot.slane %v14686_v0, 3 }
 0x5b4   : > { %10225 = vmatprep.subr.bf16.mxu1 %v10224_v6  ;;  %v10269_v6 = vpack.c.bf16 %v7626_v53, %v7625_v62  ;;  %v10240_v51 = vpack.c.bf16 %v7609_v45, %v7608_v15  ;;  %v7669_v62 = vld [vmem:[%s17970_s5 + $0x9f0] sm:$0xff]  ;;  %v7670_v53 = vld [vmem:[%s17970_s5 + $0x9f8] sm:$0xff] }
 0x5b5   : > { %9701 = vmatpush3.msk.msra.mxu0 %vm812_vm4, %v7616_v60  ;;  %v7610_v60 = vld [vmem:[%s17970_s5 + $0x828] sm:$0xff] }
 0x5b6   : > { %9703 = vmatmul.mubr.msk.f32.vlgmr.msra.gmra.mrb[14].mxu0 %vm2711_vm9, %v3591_v43  ;;  %10256 = vmatprep.subr.bf16.mxu0 %v10255_v33  ;;  %v7611_v33 = vld [vmem:[%s17970_s5 + $0x830] sm:$0xff] }
 0x5b7   : > { %10227 = vmatpush3.bf16.msra.mxu1 %v10226_v36  ;;  %10258 = vmatpush3.bf16.msra.mxu0 %v10257_v22  ;;  %v10242_v36 = vpack.c.bf16 %v7593_v31, %v7592_v46  ;;  %v10273_v22 = vpack.c.bf16 %v7628_v10, %v7627_v63  ;;  %v10244_v43 = vpack.c.bf16 %v7611_v33, %v7610_v60  ;;  %v7683_v46 = vld [vmem:[%s17970_s5 + $0xa60] sm:$0xff]  ;;  %v7684_v31 = vld [vmem:[%s17970_s5 + $0xa68] sm:$0xff]  ;;  %v3883_v63 = vrot.slane %v14664_v32, 4 }
 0x5b8   : > { %3958 = vmatprep.mubr.f32.mxu0 %v3881_v48  ;;  %10229 = vmatprep.subr.bf16.mxu1 %v10228_v27  ;;  %v10275_v27 = vpack.c.bf16 %v7646_v35, %v7645_v9  ;;  %v10277_v48 = vpack.c.bf16 %v7630_v50, %v7629_v40  ;;  %v10320_v60 = vpack.c.bf16 %v7684_v31, %v7683_v46  ;;  %v3880_v33 = vrot.slane %v14519_v57, 4  ;;  %v7655_v35 = vld [vmem:[%s17970_s5 + $0x980] sm:$0xff]  ;;  %v7674_v50 = vld [vmem:[%s17970_s5 + $0xa18] sm:$0xff] }
 0x5b9   : > { %10260 = vmatprep.subr.bf16.mxu0 %v10259_v26  ;;  %v7613_v26 = vld [vmem:[%s17970_s5 + $0x840] sm:$0xff]  ;;  %v7662_v46 = vld [vmem:[%s17970_s5 + $0x9b8] sm:$0xff] }
 0x5ba   : > { %v10248_v12 = vpack.c.bf16 %v7613_v26, %v7612_v5  ;;  %v7738_v5 = vld [vmem:[%s17970_s5 + $0xc08] sm:$0xff]  ;;  %v7739_v26 = vld [vmem:[%s17970_s5 + $0xc10] sm:$0xff] }
 0x5bb   : > { %10231 = vmatpush3.bf16.msra.mxu1 %v10230_v61  ;;  %10262 = vmatpush3.bf16.msra.mxu0 %v10261_v17  ;;  %v7596_v61 = vld [vmem:[%s17970_s5 + $0x7b8] sm:$0xff]  ;;  %v7597_v17 = vld [vmem:[%s17970_s5 + $0x7c0] sm:$0xff] }
 0x5bc   : > { %10233 = vmatprep.subr.bf16.mxu1 %v10232_v30  ;;  %10264 = vmatprep.subr.bf16.mxu0 %v10263_v18  ;;  %v7631_v30 = vld [vmem:[%s17970_s5 + $0x8c0] sm:$0xff]  ;;  %v7632_v18 = vld [vmem:[%s17970_s5 + $0x8c8] sm:$0xff]  ;;  %v10250_v38 = vpack.c.bf16 %v7597_v17, %v7596_v61 }
 0x5bd   : > { %v10281_v28 = vpack.c.bf16 %v7632_v18, %v7631_v30  ;;  %v7675_v17 = vld [vmem:[%s17970_s5 + $0xa20] sm:$0xff]  ;;  %v10358_v18 = vpack.c.bf16 %v7739_v26, %v7738_v5 }
 0x5be   : > { %v7729_v5 = vld [vmem:[%s17970_s5 + $0xbc0] sm:$0xff] }
 0x5bf   : > { %10235 = vmatpush3.bf16.msra.mxu1 %v10234_v8  ;;  %10266 = vmatpush3.bf16.msra.mxu0 %v10265_v19  ;;  %v7633_v8 = vld [vmem:[%s17970_s5 + $0x8d0] sm:$0xff]  ;;  %v10283_v19 = vpack.c.bf16 %v7650_v11, %v7649_v23  ;;  %v7722_v23 = vld [vmem:[%s17970_s5 + $0xb88] sm:$0xff] }
 0x5c0   : > { %10237 = vmatprep.subr.bf16.mxu1 %v10236_v59  ;;  %10268 = vmatprep.subr.bf16.mxu0 %v10267_v14  ;;  %v7651_v59 = vld [vmem:[%s17970_s5 + $0x960] sm:$0xff]  ;;  %v7652_v14 = vld [vmem:[%s17970_s5 + $0x968] sm:$0xff]  ;;  %v10285_v15 = vpack.c.bf16 %v7634_v13, %v7633_v8  ;;  %v7723_v11 = vld [vmem:[%s17970_s5 + $0xb90] sm:$0xff] }
 0x5c1   : > { %v10289_v45 = vpack.c.bf16 %v7652_v14, %v7651_v59  ;;  %v10360_v13 = vpack.c.bf16 %v7723_v11, %v7722_v23  ;;  %v7677_v59 = vld [vmem:[%s17970_s5 + $0xa30] sm:$0xff]  ;;  %v7678_v14 = vld [vmem:[%s17970_s5 + $0xa38] sm:$0xff] }
 0x5c2   : > { %v7731_v23 = vld [vmem:[%s17970_s5 + $0xbd0] sm:$0xff] }
 0x5c3   : > { %10239 = vmatpush3.bf16.msra.mxu1 %v10238_v21  ;;  %10270 = vmatpush3.bf16.msra.mxu0 %v10269_v6  ;;  %v10291_v21 = vpack.c.bf16 %v7670_v53, %v7669_v62  ;;  %v7654_v6 = vld [vmem:[%s17970_s5 + $0x978] sm:$0xff] }
 0x5c4   : > { %10241 = vmatprep.subr.bf16.mxu1 %v10240_v51  ;;  %10272 = vmatprep.subr.bf16.mxu0 %v10271_v4  ;;  %v7671_v51 = vld [vmem:[%s17970_s5 + $0xa00] sm:$0xff]  ;;  %v7672_v4 = vld [vmem:[%s17970_s5 + $0xa08] sm:$0xff]  ;;  %v10293_v10 = vpack.c.bf16 %v7654_v6, %v7653_v44  ;;  %v7724_v53 = vld [vmem:[%s17970_s5 + $0xb98] sm:$0xff] }
 0x5c5   : > { %v10295_v9 = vpack.c.bf16 %v7672_v4, %v7671_v51  ;;  %v7742_v44 = vld [vmem:[%s17970_s5 + $0xc28] sm:$0xff]  ;;  %v7661_v6 = vld [vmem:[%s17970_s5 + $0x9b0] sm:$0xff]  ;;  %v7679_v51 = vld [vmem:[%s17970_s5 + $0xa40] sm:$0xff] }
 0x5c6   : > { %v7680_v4 = vld [vmem:[%s17970_s5 + $0xa48] sm:$0xff] }
 0x5c7   : > { %10243 = vmatpush3.bf16.msra.mxu1 %v10242_v36  ;;  %10274 = vmatpush3.bf16.msra.mxu0 %v10273_v22  ;;  %v7656_v36 = vld [vmem:[%s17970_s5 + $0x988] sm:$0xff]  ;;  %v7736_v22 = vld [vmem:[%s17970_s5 + $0xbf8] sm:$0xff] }
 0x5c8   : > { %10245 = vmatprep.subr.bf16.mxu1 %v10244_v43  ;;  %10276 = vmatprep.subr.bf16.mxu0 %v10275_v27  ;;  %v7721_v43 = vld [vmem:[%s17970_s5 + $0xb80] sm:$0xff]  ;;  %v7673_v27 = vld [vmem:[%s17970_s5 + $0xa10] sm:$0xff]  ;;  %v10297_v40 = vpack.c.bf16 %v7656_v36, %v7655_v35  ;;  %v10354_v39 = vpack.c.bf16 %v7737_v55, %v7736_v22  ;;  %v10311_v36 = vpack.c.bf16 %v7680_v4, %v7679_v51  ;;  %v7664_v55 = vld [vmem:[%s17970_s5 + $0x9c8] sm:$0xff] }
 0x5c9   : > { %v10356_v61 = vpack.c.bf16 %v7721_v43, %v7720_v37  ;;  %v10299_v30 = vpack.c.bf16 %v7674_v50, %v7673_v27  ;;  %v7745_v35 = vld [vmem:[%s17970_s5 + $0xc40] sm:$0xff]  ;;  %v7681_v43 = vld [vmem:[%s17970_s5 + $0xa50] sm:$0xff]  ;;  %v7682_v27 = vld [vmem:[%s17970_s5 + $0xa58] sm:$0xff] }
 0x5ca   : > { %v7663_v22 = vld [vmem:[%s17970_s5 + $0x9c0] sm:$0xff]  ;;  %v7728_v50 = vld [vmem:[%s17970_s5 + $0xbb8] sm:$0xff] }
 0x5cb   : > { %10247 = vmatpush3.bf16.msra.mxu1 %v10246_v47  ;;  %10278 = vmatpush3.bf16.msra.mxu0 %v10277_v48  ;;  %v7657_v47 = vld [vmem:[%s17970_s5 + $0x990] sm:$0xff]  ;;  %v7658_v48 = vld [vmem:[%s17970_s5 + $0x998] sm:$0xff]  ;;  %v10313_v26 = vpack.c.bf16 %v7664_v55, %v7663_v22  ;;  %v7709_v4 = vld [vmem:[%s17970_s5 + $0xb20] sm:$0xff] }
 0x5cc   : > { %10249 = vmatprep.subr.bf16.mxu1 %v10248_v12  ;;  %10280 = vmatprep.subr.bf16.mxu0 %v10279_v3  ;;  %v7676_v12 = vld [vmem:[%s17970_s5 + $0xa28] sm:$0xff]  ;;  %v3884_v3 = vrot.slane %v14653_v1, 4  ;;  %v10301_v34 = vpack.c.bf16 %v7658_v48, %v7657_v47  ;;  %v10315_v47 = vpack.c.bf16 %v7682_v27, %v7681_v43  ;;  %v7665_v48 = vld [vmem:[%s17970_s5 + $0x9d0] sm:$0xff]  ;;  %v7708_v51 = vld [vmem:[%s17970_s5 + $0xb18] sm:$0xff] }
 0x5cd   : > { %v10303_v8 = vpack.c.bf16 %v7676_v12, %v7675_v17  ;;  %v10372_v17 = vpack.c.bf16 %v7729_v5, %v7728_v50  ;;  %v7704_v12 = vld [vmem:[%s17970_s5 + $0xaf8] sm:$0xff]  ;;  %v7710_v55 = vld [vmem:[%s17970_s5 + $0xb28] sm:$0xff]  ;;  %v7753_v27 = vld [vmem:[%s17970_s5 + $0xc80] sm:$0xff] }
 0x5ce   : > { %v7752_v43 = vld [vmem:[%s17970_s5 + $0xc78] sm:$0xff]  ;;  %v7694_v5 = vld [vmem:[%s17970_s5 + $0xaa8] sm:$0xff] }
 0x5cf   : > { %10251 = vmatpush3.bf16.msra.mxu1 %v10250_v38  ;;  %10282 = vmatpush3.bf16.msra.mxu0 %v10281_v28  ;;  %v7740_v38 = vld [vmem:[%s17970_s5 + $0xc18] sm:$0xff]  ;;  %v7741_v28 = vld [vmem:[%s17970_s5 + $0xc20] sm:$0xff] }
 0x5d0   : > { %10284 = vmatprep.subr.bf16.mxu0 %v10283_v19  ;;  %10288 = vmatprep.subr.bf16.mxu1 %v10287_v20  ;;  %v7659_v19 = vld [vmem:[%s17970_s5 + $0x9a0] sm:$0xff]  ;;  %v7660_v20 = vld [vmem:[%s17970_s5 + $0x9a8] sm:$0xff]  ;;  %v10362_v62 = vpack.c.bf16 %v7741_v28, %v7740_v38  ;;  %v7688_v28 = vld [vmem:[%s17970_s5 + $0xa78] sm:$0xff] }
 0x5d2   : > { %3736 = vmatmul.mubr.f32.vlgmr.msra.gmra.mrb[18].mxu1 %v3589_v25  ;;  %v7743_v25 = vld [vmem:[%s17970_s5 + $0xc30] sm:$0xff] }
 0x5d3   : > { %10286 = vmatpush3.bf16.msra.mxu0 %v10285_v15  ;;  %10290 = vmatpush3.bf16.msra.mxu1 %v10289_v45  ;;  %v7725_v15 = vld [vmem:[%s17970_s5 + $0xba0] sm:$0xff]  ;;  %v10305_v45 = vpack.c.bf16 %v7660_v20, %v7659_v19  ;;  %v7706_v20 = vld [vmem:[%s17970_s5 + $0xb08] sm:$0xff] }
 0x5d4   : > { %4028 = vmatprep.mubr.f32.mxu1 %v3883_v63  ;;  %10292 = vmatprep.subr.bf16.mxu1 %v10291_v21  ;;  %v10307_v21 = vpack.c.bf16 %v7678_v14, %v7677_v59  ;;  %v10364_v31 = vpack.c.bf16 %v7725_v15, %v7724_v53  ;;  %v10366_v63 = vpack.c.bf16 %v7743_v25, %v7742_v44  ;;  %v7732_v14 = vld [vmem:[%s17970_s5 + $0xbd8] sm:$0xff]  ;;  %v7750_v15 = vld [vmem:[%s17970_s5 + $0xc68] sm:$0xff]  ;;  %v3882_v44 = vrot.slane %v14686_v0, 4 }
 0x5d5   : > { %10319 = vmatprep.subr.bf16.mxu0 %v18096_v56 }
 0x5d6   : > { %3959 = vmatmul.mubr.f32.vlgmr.msra.gmra.mrb[20].mxu0 %v3880_v33  ;;  %v10309_v33 = vpack.c.bf16 %v7662_v46, %v7661_v6  ;;  %v7691_v6 = vld [vmem:[%s17970_s5 + $0xa90] sm:$0xff]  ;;  %v4174_v46 = vrot.slane %v14521_v24, 5 }
 0x5d7   : > { %10294 = vmatpush3.bf16.msra.mxu1 %v10293_v10  ;;  %10321 = vmatpush3.bf16.msra.mxu0 %v10320_v60  ;;  %v7726_v10 = vld [vmem:[%s17970_s5 + $0xba8] sm:$0xff]  ;;  %v7727_v60 = vld [vmem:[%s17970_s5 + $0xbb0] sm:$0xff] }
 0x5d8   : > { %10296 = vmatprep.subr.bf16.mxu1 %v10295_v9  ;;  %9709 = vmatprep.subr.mxu0 %v18097_v58  ;;  %v7744_v9 = vld [vmem:[%s17970_s5 + $0xc38] sm:$0xff]  ;;  %v10368_v37 = vpack.c.bf16 %v7727_v60, %v7726_v10  ;;  %v7734_v10 = vld [vmem:[%s17970_s5 + $0xbe8] sm:$0xff]  ;;  %v7735_v60 = vld [vmem:[%s17970_s5 + $0xbf0] sm:$0xff] }
 0x5d9   : > { %9711 = vmatprep.mubr.msk.f32.mxu0 %vm11989_vm10, %v18097_v58  ;;  %v10384_v22 = vpack.c.bf16 %v7735_v60, %v7734_v10  ;;  %v7701_v10 = vld [vmem:[%s17970_s5 + $0xae0] sm:$0xff] }
 0x5db   : > { %10298 = vmatpush3.bf16.msra.mxu1 %v10297_v40  ;;  %9710 = vmatpush3.msk.msra.mxu0 %vm812_vm4, %v7685_v41  ;;  %v10370_v40 = vpack.c.bf16 %v7745_v35, %v7744_v9  ;;  %v7746_v41 = vld [vmem:[%s17970_s5 + $0xc48] sm:$0xff]  ;;  %v10330_v9 = vpack.c.bf16 %v7709_v4, %v7708_v51  ;;  %v7692_v35 = vld [vmem:[%s17970_s5 + $0xa98] sm:$0xff] }
 0x5dc   : > { %9712 = vmatmul.mubr.msk.f32.vlgmr.msra.gmra.mrb[14].mxu0 %vm2711_vm9, %v3884_v3  ;;  %10355 = vmatprep.subr.bf16.mxu0 %v10354_v39  ;;  %v7747_v39 = vld [vmem:[%s17970_s5 + $0xc50] sm:$0xff]  ;;  %v7705_v3 = vld [vmem:[%s17970_s5 + $0xb00] sm:$0xff] }
 0x5dd   : > { %10357 = vmatpush3.bf16.msra.mxu0 %v10356_v61  ;;  %4321 = vmatprep.mubr.f32.mxu0 %v4176_v7  ;;  %v7666_v61 = vld [vmem:[%s17970_s5 + $0x9d8] sm:$0xff]  ;;  %v10322_v38 = vpack.c.bf16 %v7705_v3, %v7704_v12 }
 0x5de   : > { %10300 = vmatprep.subr.bf16.mxu1 %v10299_v30  ;;  %10359 = vmatprep.subr.bf16.mxu0 %v10358_v18  ;;  %v10374_v30 = vpack.c.bf16 %v7747_v39, %v7746_v41  ;;  %v7730_v18 = vld [vmem:[%s17970_s5 + $0xbc8] sm:$0xff]  ;;  %v10317_v11 = vpack.c.bf16 %v7666_v61, %v7665_v48  ;;  %v7748_v7 = vld [vmem:[%s17970_s5 + $0xc58] sm:$0xff]  ;;  %v10387_v41 = vpack.c.bf16 %v7753_v27, %v7752_v43  ;;  %v4175_v48 = vrot.slane %v14686_v0, 5 }
 0x5df   : > { %10302 = vmatpush3.bf16.msra.mxu1 %v10301_v34  ;;  %v7749_v34 = vld [vmem:[%s17970_s5 + $0xc60] sm:$0xff]  ;;  %v10376_v19 = vpack.c.bf16 %v7731_v23, %v7730_v18  ;;  %v7712_v39 = vld [vmem:[%s17970_s5 + $0xb38] sm:$0xff]  ;;  %v7789_v23 = vld [vmem:[%s17970_s5 + $0xd90] sm:$0xff] }
 0x5e0   : > { %10304 = vmatprep.subr.bf16.mxu1 %v10303_v8  ;;  %v7689_v8 = vld [vmem:[%s17970_s5 + $0xa80] sm:$0xff]  ;;  %v10378_v59 = vpack.c.bf16 %v7749_v34, %v7748_v7  ;;  %v7806_v12 = vld [vmem:[%s17970_s5 + $0xe18] sm:$0xff]  ;;  %v7714_v7 = vld [vmem:[%s17970_s5 + $0xb48] sm:$0xff] }
 0x5e1   : > { %10361 = vmatpush3.bf16.msra.mxu0 %v10360_v13  ;;  %v7707_v13 = vld [vmem:[%s17970_s5 + $0xb10] sm:$0xff]  ;;  %v10324_v53 = vpack.c.bf16 %v7689_v8, %v7688_v28  ;;  %v7696_v3 = vld [vmem:[%s17970_s5 + $0xab8] sm:$0xff]  ;;  %v7697_v18 = vld [vmem:[%s17970_s5 + $0xac0] sm:$0xff] }
 0x5e2   : > { %10363 = vmatprep.subr.bf16.mxu0 %v10362_v62  ;;  %v7733_v62 = vld [vmem:[%s17970_s5 + $0xbe0] sm:$0xff]  ;;  %v10326_v25 = vpack.c.bf16 %v7707_v13, %v7706_v20  ;;  %v7715_v34 = vld [vmem:[%s17970_s5 + $0xb50] sm:$0xff]  ;;  %v10340_v20 = vpack.c.bf16 %v7697_v18, %v7696_v3 }
 0x5e3   : > { %10306 = vmatpush3.bf16.msra.mxu1 %v10305_v45  ;;  %v7751_v45 = vld [vmem:[%s17970_s5 + $0xc70] sm:$0xff]  ;;  %v7807_v8 = vld [vmem:[%s17970_s5 + $0xe20] sm:$0xff] }
 0x5e4   : > { %10308 = vmatprep.subr.bf16.mxu1 %v10307_v21  ;;  %v7690_v21 = vld [vmem:[%s17970_s5 + $0xa88] sm:$0xff] }
 0x5e5   : > { %10365 = vmatpush3.bf16.msra.mxu0 %v10364_v31  ;;  %v10380_v31 = vpack.c.bf16 %v7733_v62, %v7732_v14  ;;  %v7699_v14 = vld [vmem:[%s17970_s5 + $0xad0] sm:$0xff]  ;;  %v4177_v62 = vrot.slane %v14653_v1, 5 }
 0x5e6   : > { %10367 = vmatprep.subr.bf16.mxu0 %v10366_v63  ;;  %v10382_v63 = vpack.c.bf16 %v7751_v45, %v7750_v15  ;;  %v7791_v15 = vld [vmem:[%s17970_s5 + $0xda0] sm:$0xff]  ;;  %v7792_v45 = vld [vmem:[%s17970_s5 + $0xda8] sm:$0xff] }
 0x5e7   : > { %10310 = vmatpush3.bf16.msra.mxu1 %v10309_v33  ;;  %v10328_v33 = vpack.c.bf16 %v7691_v6, %v7690_v21  ;;  %v7717_v21 = vld [vmem:[%s17970_s5 + $0xb60] sm:$0xff]  ;;  %v7809_v6 = vld [vmem:[%s17970_s5 + $0xe30] sm:$0xff]  ;;  %v10427_v4 = vpack.c.bf16 %v7792_v45, %v7791_v15  ;;  %v4467_v45 = vrot.slane %v14521_v24, 6 }
 0x5e8   : > { %10312 = vmatprep.subr.bf16.mxu1 %v10311_v36  ;;  %v7693_v36 = vld [vmem:[%s17970_s5 + $0xaa0] sm:$0xff] }
 0x5e9   : > { %10369 = vmatpush3.bf16.msra.mxu0 %v10368_v37  ;;  %v7711_v37 = vld [vmem:[%s17970_s5 + $0xb30] sm:$0xff]  ;;  %v7799_v15 = vld [vmem:[%s17970_s5 + $0xde0] sm:$0xff] }
 0x5ea   : > { %10371 = vmatprep.subr.bf16.mxu0 %v10370_v40  ;;  %v10332_v40 = vpack.c.bf16 %v7693_v36, %v7692_v35  ;;  %v10334_v50 = vpack.c.bf16 %v7711_v37, %v7710_v55  ;;  %v7794_v35 = vld [vmem:[%s17970_s5 + $0xdb8] sm:$0xff]  ;;  %v7718_v36 = vld [vmem:[%s17970_s5 + $0xb68] sm:$0xff]  ;;  %v7811_v55 = vld [vmem:[%s17970_s5 + $0xe40] sm:$0xff] }
 0x5eb   : > { %10314 = vmatpush3.bf16.msra.mxu1 %v10313_v26  ;;  %v7695_v26 = vld [vmem:[%s17970_s5 + $0xab0] sm:$0xff]  ;;  %v7812_v37 = vld [vmem:[%s17970_s5 + $0xe48] sm:$0xff] }
 0x5ec   : > { %10316 = vmatprep.subr.bf16.mxu1 %v10315_v47  ;;  %v7713_v47 = vld [vmem:[%s17970_s5 + $0xb40] sm:$0xff]  ;;  %v10336_v61 = vpack.c.bf16 %v7695_v26, %v7694_v5  ;;  %v10433_v26 = vpack.c.bf16 %v7812_v37, %v7811_v55  ;;  %v7820_v37 = vld [vmem:[%s17970_s5 + $0xe88] sm:$0xff] }
 0x5ed   : > { %10373 = vmatpush3.bf16.msra.mxu0 %v10372_v17  ;;  %v7805_v17 = vld [vmem:[%s17970_s5 + $0xe10] sm:$0xff]  ;;  %v7819_v55 = vld [vmem:[%s17970_s5 + $0xe80] sm:$0xff] }
 0x5ee   : > { %10375 = vmatprep.subr.bf16.mxu0 %v10374_v30  ;;  %v10338_v30 = vpack.c.bf16 %v7713_v47, %v7712_v39  ;;  %v10421_v28 = vpack.c.bf16 %v7806_v12, %v7805_v17  ;;  %v7796_v39 = vld [vmem:[%s17970_s5 + $0xdc8] sm:$0xff]  ;;  %v7773_v47 = vld [vmem:[%s17970_s5 + $0xd10] sm:$0xff]  ;;  %v7814_v17 = vld [vmem:[%s17970_s5 + $0xe58] sm:$0xff] }
 0x5ef   : > { %10318 = vmatpush3.bf16.msra.mxu1 %v10317_v11  ;;  %v7790_v11 = vld [vmem:[%s17970_s5 + $0xd98] sm:$0xff] }
 0x5f0   : > { %10323 = vmatprep.subr.bf16.mxu1 %v10322_v38  ;;  %v7754_v38 = vld [vmem:[%s17970_s5 + $0xc88] sm:$0x1]  ;;  %v10423_v13 = vpack.c.bf16 %v7790_v11, %v7789_v23  ;;  %v7757_v23 = vld [vmem:[%s17970_s5 + $0xc90] sm:$0xff]  ;;  %v7758_v11 = vld [vmem:[%s17970_s5 + $0xc98] sm:$0xff] }
 0x5f1   : > { %10377 = vmatpush3.bf16.msra.mxu0 %v10376_v19  ;;  %v7808_v19 = vld [vmem:[%s17970_s5 + $0xe28] sm:$0xff] }
 0x5f2   : > { %4029 = vmatmul.mubr.f32.vlgmr.msra.gmra.mrb[20].mxu1 %v3882_v44  ;;  %10379 = vmatprep.subr.bf16.mxu0 %v10378_v59  ;;  %v7698_v59 = vld [vmem:[%s17970_s5 + $0xac8] sm:$0xff]  ;;  %v7716_v44 = vld [vmem:[%s17970_s5 + $0xb58] sm:$0xff] }
 0x5f3   : > { %10325 = vmatpush3.bf16.msra.mxu1 %v10324_v53  ;;  %4251 = vmatprep.mubr.f32.mxu1 %v4174_v46  ;;  %v10342_v53 = vpack.c.bf16 %v7715_v34, %v7714_v7  ;;  %v7810_v46 = vld [vmem:[%s17970_s5 + $0xe38] sm:$0xff]  ;;  %v10344_v51 = vpack.c.bf16 %v7699_v14, %v7698_v59  ;;  %v10346_v60 = vpack.c.bf16 %v7717_v21, %v7716_v44  ;;  %v7797_v7 = vld [vmem:[%s17970_s5 + $0xdd0] sm:$0xff] }
 0x5f4   : > { %10327 = vmatprep.subr.bf16.mxu1 %v10326_v25  ;;  %v10425_v25 = vpack.c.bf16 %v7808_v19, %v7807_v8  ;;  %v7798_v34 = vld [vmem:[%s17970_s5 + $0xdd8] sm:$0xff]  ;;  %v7815_v8 = vld [vmem:[%s17970_s5 + $0xe60] sm:$0xff]  ;;  %v7816_v19 = vld [vmem:[%s17970_s5 + $0xe68] sm:$0xff] }
 0x5f5   : > { %10381 = vmatpush3.bf16.msra.mxu0 %v10380_v31  ;;  %v4469_v31 = vrot.slane %v14664_v32, 6  ;;  %v10439_v59 = vpack.c.bf16 %v7798_v34, %v7797_v7  ;;  %v10441_v44 = vpack.c.bf16 %v7816_v19, %v7815_v8  ;;  %v7777_v21 = vld [vmem:[%s17970_s5 + $0xd30] sm:$0xff]  ;;  %v7784_v7 = vld [vmem:[%s17970_s5 + $0xd68] sm:$0xff] }
 0x5f6   : > { %10383 = vmatprep.subr.bf16.mxu0 %v10382_v63  ;;  %v7700_v63 = vld [vmem:[%s17970_s5 + $0xad8] sm:$0xff] }
 0x5f7   : > { %10329 = vmatpush3.bf16.msra.mxu1 %v10328_v33  ;;  %v10429_v33 = vpack.c.bf16 %v7810_v46, %v7809_v6  ;;  %v10348_v43 = vpack.c.bf16 %v7701_v10, %v7700_v63  ;;  %v7778_v6 = vld [vmem:[%s17970_s5 + $0xd38] sm:$0xff]  ;;  %v7817_v46 = vld [vmem:[%s17970_s5 + $0xe70] sm:$0xff] }
 0x5f8   : > { %10331 = vmatprep.subr.bf16.mxu1 %v10330_v9  ;;  %v7793_v9 = vld [vmem:[%s17970_s5 + $0xdb0] sm:$0xff]  ;;  %v10397_v63 = vpack.c.bf16 %v7778_v6, %v7777_v21 }
 0x5f9   : > { %10385 = vmatpush3.bf16.msra.mxu0 %v10384_v22  ;;  %v7719_v22 = vld [vmem:[%s17970_s5 + $0xb70] sm:$0xff]  ;;  %v10431_v27 = vpack.c.bf16 %v7794_v35, %v7793_v9  ;;  %v7802_v35 = vld [vmem:[%s17970_s5 + $0xdf8] sm:$0xff] }
 0x5fa   : > { %10386 = vmatprep.subr.bf16.mxu0 %v18096_v56  ;;  %v10350_v5 = vpack.c.bf16 %v7719_v22, %v7718_v36  ;;  %v7761_v10 = vld [vmem:[%s17970_s5 + $0xcb0] sm:$0xff]  ;;  %v7779_v36 = vld [vmem:[%s17970_s5 + $0xd40] sm:$0xff]  ;;  %v7780_v22 = vld [vmem:[%s17970_s5 + $0xd48] sm:$0xff] }
 0x5fb   : > { %10333 = vmatpush3.bf16.msra.mxu1 %v10332_v40  ;;  %v7702_v40 = vld [vmem:[%s17970_s5 + $0xae8] sm:$0xff]  ;;  %v7875_v21 = vld [vmem:[%s17970_s5 + $0x1030] sm:$0xff] }
 0x5fc   : > { %4322 = vmatmul.mubr.f32.vlgmr.msra.gmra.mrb[22].mxu0 %v4175_v48  ;;  %10335 = vmatprep.subr.bf16.mxu1 %v10334_v50  ;;  %v7703_v50 = vld [vmem:[%s17970_s5 + $0xaf0] sm:$0xff]  ;;  %v7774_v48 = vld [vmem:[%s17970_s5 + $0xd18] sm:$0xff] }
 0x5fd   : > { %10388 = vmatpush3.bf16.msra.mxu0 %v10387_v41  ;;  %9720 = vmatprep.mubr.msk.f32.mxu0 %vm11989_vm10, %v18097_v58  ;;  %v7795_v41 = vld [vmem:[%s17970_s5 + $0xdc0] sm:$0xff]  ;;  %v10352_v12 = vpack.c.bf16 %v7703_v50, %v7702_v40  ;;  %v10401_v40 = vpack.c.bf16 %v7780_v22, %v7779_v36  ;;  %v7788_v36 = vld [vmem:[%s17970_s5 + $0xd88] sm:$0xff] }
 0x5fe   : > { %9718 = vmatprep.subr.mxu0 %v18097_v58  ;;  %v10435_v3 = vpack.c.bf16 %v7796_v39, %v7795_v41  ;;  %v7763_v50 = vld [vmem:[%s17970_s5 + $0xcc0] sm:$0xff]  ;;  %v10449_v41 = vpack.c.bf16 %v7820_v37, %v7819_v55  ;;  %v7804_v39 = vld [vmem:[%s17970_s5 + $0xe08] sm:$0xff]  ;;  %v4470_v55 = vrot.slane %v14653_v1, 6 }
 0x5ff   : > { %10337 = vmatpush3.bf16.msra.mxu1 %v10336_v61  ;;  %v7813_v61 = vld [vmem:[%s17970_s5 + $0xe50] sm:$0xff] }
 0x600   : > { %10339 = vmatprep.subr.bf16.mxu1 %v10338_v30  ;;  %v10389_v30 = vpack.c.bf16 %v7774_v48, %v7773_v47  ;;  %v10437_v18 = vpack.c.bf16 %v7814_v17, %v7813_v61  ;;  %v7781_v47 = vld [vmem:[%s17970_s5 + $0xd50] sm:$0xff]  ;;  %v7782_v48 = vld [vmem:[%s17970_s5 + $0xd58] sm:$0xff] }
 0x601   : > { %9719 = vmatpush3.msk.msra.mxu0 %vm812_vm4, %v7754_v38  ;;  %v7775_v38 = vld [vmem:[%s17970_s5 + $0xd20] sm:$0xff] }
 0x602   : > { %9721 = vmatmul.mubr.msk.f32.vlgmr.msra.gmra.mrb[14].mxu0 %vm2711_vm9, %v4177_v62  ;;  %10422 = vmatprep.subr.bf16.mxu0 %v10421_v28  ;;  %v7776_v28 = vld [vmem:[%s17970_s5 + $0xd28] sm:$0xff]  ;;  %v7759_v62 = vld [vmem:[%s17970_s5 + $0xca0] sm:$0xff] }
 0x603   : > { %10341 = vmatpush3.bf16.msra.mxu1 %v10340_v20  ;;  %10424 = vmatpush3.bf16.msra.mxu0 %v10423_v13  ;;  %v10391_v20 = vpack.c.bf16 %v7758_v11, %v7757_v23  ;;  %v4173_v13 = vrot.slane %v14519_v57, 5  ;;  %v10393_v14 = vpack.c.bf16 %v7776_v28, %v7775_v38  ;;  %v7822_v23 = vld [vmem:[%s17970_s5 + $0xe98] sm:$0xff]  ;;  %v7783_v11 = vld [vmem:[%s17970_s5 + $0xd60] sm:$0xff] }
 0x604   : > { %4614 = vmatprep.mubr.f32.mxu0 %v4469_v31  ;;  %10343 = vmatprep.subr.bf16.mxu1 %v10342_v53  ;;  %v7760_v53 = vld [vmem:[%s17970_s5 + $0xca8] sm:$0xff]  ;;  %v7818_v31 = vld [vmem:[%s17970_s5 + $0xe78] sm:$0xff] }
 0x605   : > { %10426 = vmatprep.subr.bf16.mxu0 %v10425_v25  ;;  %v7800_v25 = vld [vmem:[%s17970_s5 + $0xde8] sm:$0xff]  ;;  %v10445_v9 = vpack.c.bf16 %v7818_v31, %v7817_v46  ;;  %v7859_v31 = vld [vmem:[%s17970_s5 + $0xfb0] sm:$0xff] }
 0x606   : > { %v7858_v46 = vld [vmem:[%s17970_s5 + $0xfa8] sm:$0xff] }
 0x607   : > { %10345 = vmatpush3.bf16.msra.mxu1 %v10344_v51  ;;  %10428 = vmatpush3.bf16.msra.mxu0 %v10427_v4  ;;  %v10395_v51 = vpack.c.bf16 %v7760_v53, %v7759_v62  ;;  %v10443_v4 = vpack.c.bf16 %v7800_v25, %v7799_v15  ;;  %v4468_v62 = vrot.slane %v14686_v0, 6  ;;  %v7785_v15 = vld [vmem:[%s17970_s5 + $0xd70] sm:$0xff]  ;;  %v7874_v25 = vld [vmem:[%s17970_s5 + $0x1028] sm:$0xff]  ;;  %v10490_v22 = vpack.c.bf16 %v7859_v31, %v7858_v46 }
 0x608   : > { %10347 = vmatprep.subr.bf16.mxu1 %v10346_v60  ;;  %10430 = vmatprep.subr.bf16.mxu0 %v10429_v33  ;;  %v7762_v60 = vld [vmem:[%s17970_s5 + $0xcb8] sm:$0xff]  ;;  %v7801_v33 = vld [vmem:[%s17970_s5 + $0xdf0] sm:$0xff] }
 0x609   : > { %v7883_v46 = vld [vmem:[%s17970_s5 + $0x1070] sm:$0xff] }
 0x60b   : > { %10349 = vmatpush3.bf16.msra.mxu1 %v10348_v43  ;;  %10432 = vmatpush3.bf16.msra.mxu0 %v10431_v27  ;;  %v10399_v43 = vpack.c.bf16 %v7762_v60, %v7761_v10  ;;  %v10447_v27 = vpack.c.bf16 %v7802_v35, %v7801_v33  ;;  %v7876_v10 = vld [vmem:[%s17970_s5 + $0x1038] sm:$0xff]  ;;  %v7877_v60 = vld [vmem:[%s17970_s5 + $0x1040] sm:$0xff] }
 0x60c   : > { %10351 = vmatprep.subr.bf16.mxu1 %v10350_v5  ;;  %10434 = vmatprep.subr.bf16.mxu0 %v10433_v26  ;;  %v7764_v5 = vld [vmem:[%s17970_s5 + $0xcc8] sm:$0xff]  ;;  %v7803_v26 = vld [vmem:[%s17970_s5 + $0xe00] sm:$0xff] }
 0x60d   : > { %v10403_v61 = vpack.c.bf16 %v7764_v5, %v7763_v50  ;;  %v10451_v17 = vpack.c.bf16 %v7804_v39, %v7803_v26  ;;  %v7823_v33 = vld [vmem:[%s17970_s5 + $0xea0] sm:$0x1]  ;;  %v4762_v5 = vrot.slane %v14664_v32, 7  ;;  %v7878_v39 = vld [vmem:[%s17970_s5 + $0x1048] sm:$0xff] }
 0x60e   : > { %v7787_v35 = vld [vmem:[%s17970_s5 + $0xd80] sm:$0xff]  ;;  %v7842_v32 = vld [vmem:[%s17970_s5 + $0xf28] sm:$0xff] }
 0x60f   : > { %10353 = vmatpush3.bf16.msra.mxu1 %v10352_v12  ;;  %10436 = vmatpush3.bf16.msra.mxu0 %v10435_v3  ;;  %v10405_v12 = vpack.c.bf16 %v7782_v48, %v7781_v47  ;;  %v7765_v3 = vld [vmem:[%s17970_s5 + $0xcd0] sm:$0xff]  ;;  %v7771_v50 = vld [vmem:[%s17970_s5 + $0xd00] sm:$0xff]  ;;  %v10417_v26 = vpack.c.bf16 %v7788_v36, %v7787_v35  ;;  %v7830_v36 = vld [vmem:[%s17970_s5 + $0xec8] sm:$0xff] }
 0x610   : > { %10390 = vmatprep.subr.bf16.mxu1 %v10389_v30  ;;  %10438 = vmatprep.subr.bf16.mxu0 %v10437_v18  ;;  %v7766_v30 = vld [vmem:[%s17970_s5 + $0xcd8] sm:$0xff]  ;;  %v7821_v18 = vld [vmem:[%s17970_s5 + $0xe90] sm:$0xff] }
 0x611   : > { %v10407_v28 = vpack.c.bf16 %v7766_v30, %v7765_v3  ;;  %v7879_v47 = vld [vmem:[%s17970_s5 + $0x1050] sm:$0xff]  ;;  %v7862_v30 = vld [vmem:[%s17970_s5 + $0xfc8] sm:$0xff] }
 0x612   : > { %4252 = vmatmul.mubr.f32.vlgmr.msra.gmra.mrb[22].mxu1 %v4173_v13  ;;  %v10409_v13 = vpack.c.bf16 %v7784_v7, %v7783_v11  ;;  %v7843_v48 = vld [vmem:[%s17970_s5 + $0xf30] sm:$0xff]  ;;  %v10496_v3 = vpack.c.bf16 %v7879_v47, %v7878_v39  ;;  %v7826_v11 = vld [vmem:[%s17970_s5 + $0xea8] sm:$0xff]  ;;  %v7868_v39 = vld [vmem:[%s17970_s5 + $0xff8] sm:$0xff] }
 0x613   : > { %10392 = vmatpush3.bf16.msra.mxu1 %v10391_v20  ;;  %4544 = vmatprep.mubr.f32.mxu1 %v4467_v45  ;;  %v10454_v20 = vpack.c.bf16 %v7822_v23, %v7821_v18  ;;  %v7786_v45 = vld [vmem:[%s17970_s5 + $0xd78] sm:$0xff]  ;;  %v7863_v18 = vld [vmem:[%s17970_s5 + $0xfd0] sm:$0xff]  ;;  %v10456_v23 = vpack.c.bf16 %v7843_v48, %v7842_v32  ;;  %v7869_v47 = vld [vmem:[%s17970_s5 + $0x1000] sm:$0xff] }
 0x614   : > { %10440 = vmatpush3.bf16.msra.mxu0 %v10439_v59  ;;  %10394 = vmatprep.subr.bf16.mxu1 %v10393_v14  ;;  %v7767_v59 = vld [vmem:[%s17970_s5 + $0xce0] sm:$0xff]  ;;  %v7768_v14 = vld [vmem:[%s17970_s5 + $0xce8] sm:$0xff]  ;;  %v7827_v7 = vld [vmem:[%s17970_s5 + $0xeb0] sm:$0xff] }
 0x615   : > { %10442 = vmatprep.subr.bf16.mxu0 %v10441_v44  ;;  %v10411_v6 = vpack.c.bf16 %v7768_v14, %v7767_v59  ;;  %v10458_v59 = vpack.c.bf16 %v7827_v7, %v7826_v11  ;;  %v7864_v14 = vld [vmem:[%s17970_s5 + $0xfd8] sm:$0xff]  ;;  %v7867_v35 = vld [vmem:[%s17970_s5 + $0xff0] sm:$0xff]  ;;  %v10510_v11 = vpack.c.bf16 %v7869_v47, %v7868_v39 }
 0x616   : > { %v7832_v32 = vld [vmem:[%s17970_s5 + $0xed8] sm:$0xff] }
 0x617   : > { %10396 = vmatpush3.bf16.msra.mxu1 %v10395_v51  ;;  %v7769_v51 = vld [vmem:[%s17970_s5 + $0xcf0] sm:$0xff] }
 0x618   : > { %10444 = vmatpush3.bf16.msra.mxu0 %v10443_v4  ;;  %10398 = vmatprep.subr.bf16.mxu1 %v10397_v63  ;;  %v10413_v4 = vpack.c.bf16 %v7786_v45, %v7785_v15  ;;  %v7770_v63 = vld [vmem:[%s17970_s5 + $0xcf8] sm:$0xff]  ;;  %v4466_v15 = vrot.slane %v14519_v57, 6 }
 0x619   : > { %10446 = vmatprep.subr.bf16.mxu0 %v10445_v9  ;;  %v10488_v9 = vpack.c.bf16 %v7875_v21, %v7874_v25  ;;  %v10415_v37 = vpack.c.bf16 %v7770_v63, %v7769_v51  ;;  %v7829_v21 = vld [vmem:[%s17970_s5 + $0xec0] sm:$0xff]  ;;  %v4760_v51 = vrot.slane %v14521_v24, 7  ;;  %v7847_v63 = vld [vmem:[%s17970_s5 + $0xf50] sm:$0xff]  ;;  %v7866_v24 = vld [vmem:[%s17970_s5 + $0xfe8] sm:$0xff] }
 0x61b   : > { %10400 = vmatpush3.bf16.msra.mxu1 %v10399_v43  ;;  %v10492_v43 = vpack.c.bf16 %v7877_v60, %v7876_v10 }
 0x61c   : > { %10448 = vmatpush3.bf16.msra.mxu0 %v10447_v27  ;;  %10402 = vmatprep.subr.bf16.mxu1 %v10401_v40  ;;  %v7860_v27 = vld [vmem:[%s17970_s5 + $0xfb8] sm:$0xff]  ;;  %v7861_v40 = vld [vmem:[%s17970_s5 + $0xfc0] sm:$0xff] }
 0x61d   : > { %10450 = vmatprep.subr.bf16.mxu0 %v10449_v41  ;;  %v7772_v41 = vld [vmem:[%s17970_s5 + $0xd08] sm:$0xff] }
 0x61e   : > { %v8494_v34 = vpop.f32.mrb[8].mxu1 }
 0x61f   : > { %10404 = vmatpush3.bf16.msra.mxu1 %v10403_v61  ;;  %v8495_v38 = vpop.f32.mrb[9].mxu1  ;;  %v10494_v61 = vpack.c.bf16 %v7861_v40, %v7860_v27  ;;  %v7848_v27 = vld [vmem:[%s17970_s5 + $0xf58] sm:$0xff]  ;;  %v7849_v40 = vld [vmem:[%s17970_s5 + $0xf60] sm:$0xff] }
 0x620   : > { %10452 = vmatpush3.bf16.msra.mxu0 %v10451_v17  ;;  %v15819_v8 = vadd.f32 %v8495_v38, %v8494_v34  ;;  %v8568_v19 = vpop.f32.mrb[12].mxu0  ;;  %10406 = vmatprep.subr.bf16.mxu1 %v10405_v12  ;;  %v15901_v17 = vpop.permute.xlu1 %11883  ;;  %v10419_v12 = vpack.c.bf16 %v7772_v41, %v7771_v50  ;;  %v7880_v34 = vld [vmem:[%s17970_s5 + $0x1058] sm:$0xff]  ;;  %v10506_v50 = vpack.c.bf16 %v7867_v35, %v7866_v24  ;;  %v7837_v35 = vld [vmem:[%s17970_s5 + $0xf00] sm:$0xff] }
 0x621   : > { %10453 = vmatprep.subr.bf16.mxu0 %v18096_v56  ;;  %v8569_v53 = vpop.f32.mrb[13].mxu0  ;;  %v15918_v38 = vpop.permute.xlu0 %2509  ;;  %v10468_v48 = vpack.c.bf16 %v7849_v40, %v7848_v27  ;;  %v7836_v24 = vld [vmem:[%s17970_s5 + $0xef8] sm:$0xff] }
 0x622   : > { %v15835_v44 = vadd.f32 %v8569_v53, %v8568_v19  ;;  %v7844_v19 = vld [vmem:[%s17970_s5 + $0xf38] sm:$0xff]  ;;  %v10478_v40 = vpack.c.bf16 %v7837_v35, %v7836_v24 }
 0x623   : > { %4615 = vmatmul.mubr.f32.vlgmr.msra.gmra.mrb[24].mxu0 %v4468_v62  ;;  %10408 = vmatpush3.bf16.msra.mxu1 %v10407_v28  ;;  %v7881_v28 = vld [vmem:[%s17970_s5 + $0x1060] sm:$0xff]  ;;  %v7828_v53 = vld [vmem:[%s17970_s5 + $0xeb8] sm:$0xff] }
 0x624   : > { %10455 = vmatpush3.bf16.msra.mxu0 %v10454_v20  ;;  %10410 = vmatprep.subr.bf16.mxu1 %v10409_v13  ;;  %v7845_v20 = vld [vmem:[%s17970_s5 + $0xf40] sm:$0xff]  ;;  %v10498_v13 = vpack.c.bf16 %v7863_v18, %v7862_v30  ;;  %v10500_v45 = vpack.c.bf16 %v7881_v28, %v7880_v34  ;;  %v15948_v31 = vpop.permute.xlu1 %11888  ;;  %v7850_v18 = vld [vmem:[%s17970_s5 + $0xf68] sm:$0xff] }
 0x625   : > { %9727 = vmatprep.subr.mxu0 %v18097_v58  ;;  %9729 = vmatprep.mubr.msk.f32.mxu0 %vm11989_vm10, %v18097_v58  ;;  %v7865_v62 = vld [vmem:[%s17970_s5 + $0xfe0] sm:$0xff]  ;;  %v10460_v25 = vpack.c.bf16 %v7845_v20, %v7844_v19  ;;  %v15957_v60 = vpop.permute.xlu0 %2557  ;;  %v7870_v28 = vld [vmem:[%s17970_s5 + $0x1008] sm:$0xff]  ;;  %v7871_v19 = vld [vmem:[%s17970_s5 + $0x1010] sm:$0xff] }
 0x626   : > { %v10502_v10 = vpack.c.bf16 %v7865_v62, %v7864_v14  ;;  %v7834_v20 = vld [vmem:[%s17970_s5 + $0xee8] sm:$0xff]  ;;  %v7888_v14 = vld [vmem:[%s17970_s5 + $0x1098] sm:$0xff]  ;;  %v7889_v62 = vld [vmem:[%s17970_s5 + $0x10a0] sm:$0xff] }
 0x627   : > { %10412 = vmatpush3.bf16.msra.mxu1 %v10411_v6  ;;  %v7882_v6 = vld [vmem:[%s17970_s5 + $0x1068] sm:$0xff] }
 0x628   : > { %9728 = vmatpush3.msk.msra.mxu0 %vm812_vm4, %v7823_v33  ;;  %10414 = vmatprep.subr.bf16.mxu1 %v10413_v4  ;;  %v7846_v4 = vld [vmem:[%s17970_s5 + $0xf48] sm:$0xff]  ;;  %v10462_v33 = vpack.c.bf16 %v7829_v21, %v7828_v53  ;;  %v10514_v21 = vpack.c.bf16 %v7871_v19, %v7870_v28  ;;  %v7943_v19 = vld [vmem:[%s17970_s5 + $0x1240] sm:$0xff] }
 0x629   : > { %9730 = vmatmul.mubr.msk.f32.vlgmr.msra.gmra.mrb[14].mxu0 %vm2711_vm9, %v4470_v55  ;;  %10489 = vmatprep.subr.bf16.mxu0 %v10488_v9  ;;  %v10504_v9 = vpack.c.bf16 %v7883_v46, %v7882_v6  ;;  %v7831_v55 = vld [vmem:[%s17970_s5 + $0xed0] sm:$0xff]  ;;  %v16003_v30 = vpop.permute.xlu0 %2605 }
 0x62a   : > { %10491 = vmatpush3.bf16.msra.mxu0 %v10490_v22  ;;  %4907 = vmatprep.mubr.f32.mxu0 %v4762_v5  ;;  %v10464_v22 = vpack.c.bf16 %v7847_v63, %v7846_v4  ;;  %v15983_v5 = vpop.permute.xlu1 %11893  ;;  %v10516_v4 = vpack.c.bf16 %v7889_v62, %v7888_v14  ;;  %v7872_v63 = vld [vmem:[%s17970_s5 + $0x1018] sm:$0xff]  ;;  %v11891_v14 = vunpack.i.h.bf16 %v15948_v31  ;;  %v11890_v62 = vunpack.i.l.bf16 %v15948_v31  ;;  %v7965_v31 = vld [vmem:[%s17970_s5 + $0x12e0] sm:$0xff] }
 0x62b   : > { %10416 = vmatpush3.bf16.msra.mxu1 %v10415_v37  ;;  %10493 = vmatprep.subr.bf16.mxu0 %v10492_v43  ;;  %v7884_v37 = vld [vmem:[%s17970_s5 + $0x1078] sm:$0xff]  ;;  %v7885_v43 = vld [vmem:[%s17970_s5 + $0x1080] sm:$0xff] }
 0x62c   : > { %10418 = vmatprep.subr.bf16.mxu1 %v10417_v26  ;;  %v10466_v26 = vpack.c.bf16 %v7831_v55, %v7830_v36  ;;  %v10508_v41 = vpack.c.bf16 %v7885_v43, %v7884_v37  ;;  %v2643_v36 = vld [vmem:[%s17971_s6] sm:$0x1]  ;;  %v7855_v55 = vld [vmem:[%s17970_s5 + $0xf90] sm:$0xff] }
 0x62d   : > { %v16037_v6 = vpop.permute.xlu0 %2517 }
 0x62e   : > { %10495 = vmatpush3.bf16.msra.mxu0 %v10494_v61  ;;  %v7833_v61 = vld [vmem:[%s17970_s5 + $0xee0] sm:$0xff]  ;;  %v16029_v53 = vpop.permute.xlu1 %2515 }
 0x62f   : > { %10420 = vmatpush3.bf16.msra.mxu1 %v10419_v12  ;;  %10497 = vmatprep.subr.bf16.mxu0 %v10496_v3  ;;  %v7886_v12 = vld [vmem:[%s17970_s5 + $0x1088] sm:$0xff]  ;;  %v7887_v3 = vld [vmem:[%s17970_s5 + $0x1090] sm:$0xff]  ;;  %v10470_v7 = vpack.c.bf16 %v7833_v61, %v7832_v32 }
 0x630   : > { %10457 = vmatprep.subr.bf16.mxu1 %v10456_v23  ;;  %v7851_v23 = vld [vmem:[%s17970_s5 + $0xf70] sm:$0xff]  ;;  %v10512_v34 = vpack.c.bf16 %v7887_v3, %v7886_v12  ;;  %v7856_v12 = vld [vmem:[%s17970_s5 + $0xf98] sm:$0xff]  ;;  %v7857_v3 = vld [vmem:[%s17970_s5 + $0xfa0] sm:$0xff] }
 0x631   : > { %v7839_v32 = vld [vmem:[%s17970_s5 + $0xf10] sm:$0xff] }
 0x632   : > { %10499 = vmatpush3.bf16.msra.mxu0 %v10498_v13  ;;  %4545 = vmatmul.mubr.f32.vlgmr.msra.gmra.mrb[24].mxu1 %v4466_v15  ;;  %v10472_v13 = vpack.c.bf16 %v7851_v23, %v7850_v18  ;;  %v7852_v15 = vld [vmem:[%s17970_s5 + $0xf78] sm:$0xff]  ;;  %v16061_v27 = vpop.permute.xlu1 %2563 }
 0x633   : > { %10459 = vmatpush3.bf16.msra.mxu1 %v10458_v59  ;;  %4837 = vmatprep.mubr.f32.mxu1 %v4760_v51  ;;  %v7835_v59 = vld [vmem:[%s17970_s5 + $0xef0] sm:$0xff] }
 0x634   : > { %10501 = vmatprep.subr.bf16.mxu0 %v10500_v45  ;;  %10461 = vmatprep.subr.bf16.mxu1 %v10460_v25  ;;  %v7853_v45 = vld [vmem:[%s17970_s5 + $0xf80] sm:$0xff]  ;;  %v10474_v51 = vpack.c.bf16 %v7835_v59, %v7834_v20  ;;  %v7944_v20 = vld [vmem:[%s17970_s5 + $0x1248] sm:$0xff]  ;;  %v10484_v59 = vpack.c.bf16 %v7857_v3, %v7856_v12  ;;  %v7913_v12 = vld [vmem:[%s17970_s5 + $0x1150] sm:$0xff] }
 0x635   : > { %v7914_v3 = vld [vmem:[%s17970_s5 + $0x1158] sm:$0xff] }
 0x636   : > { %10503 = vmatpush3.bf16.msra.mxu0 %v10502_v10  ;;  %v7873_v10 = vld [vmem:[%s17970_s5 + $0x1020] sm:$0xff] }
 0x637   : > { %10463 = vmatpush3.bf16.msra.mxu1 %v10462_v33  ;;  %10505 = vmatprep.subr.bf16.mxu0 %v10504_v9  ;;  %v10476_v9 = vpack.c.bf16 %v7853_v45, %v7852_v15  ;;  %v10518_v43 = vpack.c.bf16 %v7873_v10, %v7872_v63  ;;  %v16103_v15 = vpop.permute.xlu1 %2611  ;;  %v7841_v45 = vld [vmem:[%s17970_s5 + $0xf20] sm:$0xff]  ;;  %v7912_v63 = vld [vmem:[%s17970_s5 + $0x1148] sm:$0xff] }
 0x638   : > { %10465 = vmatprep.subr.bf16.mxu1 %v10464_v22  ;;  %v7854_v22 = vld [vmem:[%s17970_s5 + $0xf88] sm:$0xff] }
 0x639   : > { %v10480_v47 = vpack.c.bf16 %v7855_v55, %v7854_v22  ;;  %v7945_v22 = vld [vmem:[%s17970_s5 + $0x1250] sm:$0xff]  ;;  %v7946_v55 = vld [vmem:[%s17970_s5 + $0x1258] sm:$0xff] }
 0x63a   : > { %10507 = vmatpush3.bf16.msra.mxu0 %v10506_v50  ;;  %v7890_v50 = vld [vmem:[%s17970_s5 + $0x10a8] sm:$0xff] }
 0x63b   : > { %10467 = vmatpush3.bf16.msra.mxu1 %v10466_v26  ;;  %10509 = vmatprep.subr.bf16.mxu0 %v10508_v41  ;;  %v7891_v26 = vld [vmem:[%s17970_s5 + $0x10b0] sm:$0xff] }
 0x63c   : > { %10469 = vmatprep.subr.bf16.mxu1 %v10468_v48  ;;  %v16075_v48 = vpop.permute.xlu0 %2565  ;;  %v10521_v23 = vpack.c.bf16 %v7891_v26, %v7890_v50  ;;  %v4763_v26 = vrot.slane %v14653_v1, 7  ;;  %v7930_v1 = vld [vmem:[%s17970_s5 + $0x11d8] sm:$0xff] }
 0x63e   : > { %10511 = vmatpush3.bf16.msra.mxu0 %v10510_v11  ;;  %v8529_v25 = vpop.f32.mrb[10].mxu1  ;;  %v11886_v11 = vunpack.i.h.bf16 %v15901_v17 }
 0x63f   : > { %10471 = vmatpush3.bf16.msra.mxu1 %v10470_v7  ;;  %v8530_v46 = vpop.f32.mrb[11].mxu1  ;;  %10513 = vmatprep.subr.bf16.mxu0 %v10512_v34  ;;  %v11885_v7 = vunpack.i.l.bf16 %v15901_v17  ;;  %v4761_v34 = vrot.slane %v14686_v0, 7  ;;  %v7840_v0 = vld [vmem:[%s17970_s5 + $0xf18] sm:$0xff] }
 0x640   : > { %v8531_v33 = vadd.f32 %v8530_v46, %v8529_v25  ;;  %10473 = vmatprep.subr.bf16.mxu1 %v10472_v13  ;;  %v2526_v13 = vsel %vm18102_vm2, %v16029_v53, %v16037_v6  ;;  %v7927_v25 = vld [vmem:[%s17970_s5 + $0x11c0] sm:$0xff]  ;;  %v2574_v46 = vsel %vm625_vm3, %v16061_v27, %v16075_v48  ;;  %v16133_v35 = vpop.permute.xlu0 %2613 }
 0x641   : > { %v2524_v10 = vsel %vm18103_vm7, %v11885_v7, %v11886_v11  ;;  %v2545_v24 = vmax.f32 %v14775_v29, %v2526_v13  ;;  %v2622_v29 = vsel %vm688_vm11, %v16103_v15, %v16133_v35 }
 0x642   : > { %v2855_v37 = vadd.f32 %v8531_v33, %v15819_v8  ;;  %10515 = vmatpush3.bf16.msra.mxu0 %v10514_v21  ;;  %v7838_v8 = vld [vmem:[%s17970_s5 + $0xf08] sm:$0xff]  ;;  %v11896_v33 = vunpack.i.h.bf16 %v15983_v5 }
 0x643   : > { %10475 = vmatpush3.bf16.msra.mxu1 %v10474_v51  ;;  %10517 = vmatprep.subr.bf16.mxu0 %v10516_v4  ;;  %v10482_v28 = vpack.c.bf16 %v7839_v32, %v7838_v8  ;;  %v7928_v21 = vld [vmem:[%s17970_s5 + $0x11c8] sm:$0xff]  ;;  %v10555_v51 = vpack.c.bf16 %v7944_v20, %v7943_v19  ;;  %v7911_v4 = vld [vmem:[%s17970_s5 + $0x1140] sm:$0xff]  ;;  %v2593_v50 = vmax.f32 %v2545_v24, %v2574_v46  ;;  %v7929_v8 = vld [vmem:[%s17970_s5 + $0x11d0] sm:$0xff]  ;;  %v4759_v20 = vrot.slane %v14519_v57, 7 }
 0x644   : > { %v2924_v41 = vpop.f32.mrb[12].mxu1  ;;  %v11059_v39 = vadd.f32 %v2855_v37, %v2643_v36  ;;  %10477 = vmatprep.subr.bf16.mxu1 %v10476_v9  ;;  %v11895_v9 = vunpack.i.l.bf16 %v15983_v5  ;;  %v7892_v36 = vld [vmem:[%s17970_s5 + $0x10b8] sm:$0x1]  ;;  %v10486_v37 = vpack.c.bf16 %v7841_v45, %v7840_v0  ;;  %v2543_v32 = vmax.f32 %v2485_v54, %v2524_v10  ;;  %v7897_v0 = vld [vmem:[%s17970_s5 + $0x10d0] sm:$0xff]  ;;  %v7932_v57 = vld [vmem:[%s17970_s5 + $0x11e8] sm:$0xff] }
 0x645   : > { %v9677_v61 = vpop.f32.mrb[13].mxu1  ;;  %v16180_v54 = vmax.f32 %v2593_v50, %v2622_v29  ;;  %v10561_v13 = vpack.c.bf16 %v7930_v1, %v7929_v8  ;;  %v7898_v45 = vld [vmem:[%s17970_s5 + $0x10d8] sm:$0xff]  ;;  %v7900_v29 = vld [vmem:[%s17970_s5 + $0x10e8] sm:$0xff]  ;;  %v7917_v50 = vld [vmem:[%s17970_s5 + $0x1170] sm:$0xff]  ;;  %v2621_v17 = vsel %vm688_vm11, %v11896_v33, %v16103_v15 }
 0x646   : > { %v16083_v18 = vadd.f32 %v11059_v39, %v2924_v41  ;;  %10519 = vmatpush3.bf16.msra.mxu0 %v10518_v43  ;;  %v10557_v43 = vpack.c.bf16 %v7928_v21, %v7927_v25  ;;  %v10523_v41 = vpack.c.bf16 %v7912_v63, %v7911_v4  ;;  %v7895_v39 = vld [vmem:[%s17970_s5 + $0x10c0] sm:$0xff]  ;;  %v10559_v61 = vpack.c.bf16 %v7946_v55, %v7945_v22  ;;  %v7916_v4 = vld [vmem:[%s17970_s5 + $0x1168] sm:$0xff]  ;;  %v7949_v63 = vld [vmem:[%s17970_s5 + $0x1270] sm:$0xff] }
 0x647   : > { %10479 = vmatpush3.bf16.msra.mxu1 %v10478_v40  ;;  %10520 = vmatprep.subr.bf16.mxu0 %v18096_v56  ;;  %v2572_v40 = vsel %vm625_vm3, %v11890_v62, %v11891_v14  ;;  %v2620_v16 = vsel %vm688_vm11, %v11895_v9, %v11896_v33  ;;  %v7931_v25 = vld [vmem:[%s17970_s5 + $0x11e0] sm:$0xff]  ;;  %v7950_v10 = vld [vmem:[%s17970_s5 + $0x1278] sm:$0xff]  ;;  %v10529_v24 = vpack.c.bf16 %v7898_v45, %v7897_v0 }
 0x648   : > { %10481 = vmatprep.subr.bf16.mxu1 %v10480_v47  ;;  %v7896_v47 = vld [vmem:[%s17970_s5 + $0x10c8] sm:$0xff]  ;;  %v7899_v55 = vld [vmem:[%s17970_s5 + $0x10e0] sm:$0xff]  ;;  %v7902_v1 = vld [vmem:[%s17970_s5 + $0x10f8] sm:$0xff] }
 0x649   : > { %4908 = vmatmul.mubr.f32.vlgmr.msra.gmra.mrb[26].mxu0 %v4761_v34  ;;  %v7948_v34 = vld [vmem:[%s17970_s5 + $0x1268] sm:$0xff]  ;;  %v10525_v19 = vpack.c.bf16 %v7896_v47, %v7895_v39  ;;  %v10533_v47 = vpack.c.bf16 %v7900_v29, %v7899_v55  ;;  %v7903_v45 = vld [vmem:[%s17970_s5 + $0x1100] sm:$0xff]  ;;  %v7964_v15 = vld [vmem:[%s17970_s5 + $0x12d8] sm:$0xff] }
 0x64a   : > { %10522 = vmatpush3.bf16.msra.mxu0 %v10521_v23  ;;  %9738 = vmatprep.mubr.msk.f32.mxu0 %vm11989_vm10, %v18097_v58  ;;  %v7947_v23 = vld [vmem:[%s17970_s5 + $0x1260] sm:$0xff]  ;;  %v7952_v39 = vld [vmem:[%s17970_s5 + $0x1288] sm:$0xff]  ;;  %v8012_v5 = vld [vmem:[%s17970_s5 + $0x1458] sm:$0xff] }
 0x64b   : > { %10483 = vmatpush3.bf16.msra.mxu1 %v10482_v28  ;;  %9736 = vmatprep.subr.mxu0 %v18097_v58  ;;  %v2591_v28 = vmax.f32 %v2543_v32, %v2572_v40  ;;  %v10563_v46 = vpack.c.bf16 %v7948_v34, %v7947_v23  ;;  %v7934_v40 = vld [vmem:[%s17970_s5 + $0x11f8] sm:$0xff]  ;;  %v7919_v23 = vld [vmem:[%s17970_s5 + $0x1180] sm:$0xff]  ;;  %v7920_v34 = vld [vmem:[%s17970_s5 + $0x1188] sm:$0xff] }
 0x64c   : > { %10485 = vmatprep.subr.bf16.mxu1 %v10484_v59  ;;  %v10527_v59 = vpack.c.bf16 %v7914_v3, %v7913_v12  ;;  %v7935_v12 = vld [vmem:[%s17970_s5 + $0x1200] sm:$0xff]  ;;  %v10539_v0 = vpack.c.bf16 %v7920_v34, %v7919_v23  ;;  %v7908_v23 = vld [vmem:[%s17970_s5 + $0x1128] sm:$0xff]  ;;  %v7941_v34 = vld [vmem:[%s17970_s5 + $0x1230] sm:$0xff] }
 0x64d   : > { %v16200_v21 = vmax.f32 %v2591_v28, %v2620_v16  ;;  %v7936_v16 = vld [vmem:[%s17970_s5 + $0x1208] sm:$0xff]  ;;  %v7953_v28 = vld [vmem:[%s17970_s5 + $0x1290] sm:$0xff] }
 0x64e   : > { %9737 = vmatpush3.msk.msra.mxu0 %vm812_vm4, %v7892_v36  ;;  %v10565_v36 = vpack.c.bf16 %v7932_v57, %v7931_v25  ;;  %v7904_v25 = vld [vmem:[%s17970_s5 + $0x1108] sm:$0xff] }
 0x64f   : > { %9739 = vmatmul.mubr.msk.f32.vlgmr.msra.gmra.mrb[14].mxu0 %vm2711_vm9, %v4763_v26  ;;  %10556 = vmatprep.subr.bf16.mxu0 %v10555_v51  ;;  %v7915_v51 = vld [vmem:[%s17970_s5 + $0x1160] sm:$0xff]  ;;  %v7918_v26 = vld [vmem:[%s17970_s5 + $0x1178] sm:$0xff]  ;;  %v10541_v55 = vpack.c.bf16 %v7904_v25, %v7903_v45  ;;  %v2573_v25 = vsel %vm625_vm3, %v11891_v14, %v16061_v27  ;;  %v7960_v14 = vld [vmem:[%s17970_s5 + $0x12c8] sm:$0xff] }
 0x650   : > { %10487 = vmatpush3.bf16.msra.mxu1 %v10486_v37  ;;  %10558 = vmatpush3.bf16.msra.mxu0 %v10557_v43  ;;  %v10531_v22 = vpack.c.bf16 %v7916_v4, %v7915_v51  ;;  %v7933_v37 = vld [vmem:[%s17970_s5 + $0x11f0] sm:$0xff]  ;;  %v10567_v43 = vpack.c.bf16 %v7950_v10, %v7949_v63  ;;  %v10535_v32 = vpack.c.bf16 %v7918_v26, %v7917_v50  ;;  %v7938_v4 = vld [vmem:[%s17970_s5 + $0x1218] sm:$0xff]  ;;  %v7939_v50 = vld [vmem:[%s17970_s5 + $0x1220] sm:$0xff] }
 0x651   : > { %5192 = vmatprep.mubr.f32.mxu0 %v16180_v54  ;;  %10524 = vmatprep.subr.bf16.mxu1 %v10523_v41  ;;  %v7951_v41 = vld [vmem:[%s17970_s5 + $0x1280] sm:$0xff]  ;;  %v10569_v8 = vpack.c.bf16 %v7934_v40, %v7933_v37  ;;  %v7921_v63 = vld [vmem:[%s17970_s5 + $0x1190] sm:$0xff]  ;;  %v7922_v10 = vld [vmem:[%s17970_s5 + $0x1198] sm:$0xff] }
 0x652   : > { %10560 = vmatprep.subr.bf16.mxu0 %v10559_v61  ;;  %v7901_v61 = vld [vmem:[%s17970_s5 + $0x10f0] sm:$0xff]  ;;  %v10571_v3 = vpack.c.bf16 %v7952_v39, %v7951_v41  ;;  %v10543_v37 = vpack.c.bf16 %v7922_v10, %v7921_v63  ;;  %v7906_v40 = vld [vmem:[%s17970_s5 + $0x1118] sm:$0xff]  ;;  %v7940_v41 = vld [vmem:[%s17970_s5 + $0x1228] sm:$0xff] }
 0x653   : > { %4838 = vmatmul.mubr.f32.vlgmr.msra.gmra.mrb[26].mxu1 %v4759_v20  ;;  %v10537_v20 = vpack.c.bf16 %v7902_v1, %v7901_v61  ;;  %v7923_v39 = vld [vmem:[%s17970_s5 + $0x11a0] sm:$0xff]  ;;  %v7909_v63 = vld [vmem:[%s17970_s5 + $0x1130] sm:$0xff]  ;;  %v7980_v10 = vld [vmem:[%s17970_s5 + $0x1358] sm:$0xff] }
 0x654   : > { %10526 = vmatpush3.bf16.msra.mxu1 %v10525_v19  ;;  %5122 = vmatprep.mubr.f32.mxu1 %v16200_v21  ;;  %v7954_v19 = vld [vmem:[%s17970_s5 + $0x1298] sm:$0xff]  ;;  %v7959_v27 = vld [vmem:[%s17970_s5 + $0x12c0] sm:$0xff] }
 0x655   : > { %10562 = vmatpush3.bf16.msra.mxu0 %v10561_v13  ;;  %10528 = vmatprep.subr.bf16.mxu1 %v10527_v59  ;;  %v10573_v59 = vpack.c.bf16 %v7936_v16, %v7935_v12  ;;  %v10575_v51 = vpack.c.bf16 %v7954_v19, %v7953_v28  ;;  %v10581_v12 = vpack.c.bf16 %v7940_v41, %v7939_v50  ;;  %v7907_v16 = vld [vmem:[%s17970_s5 + $0x1120] sm:$0xff]  ;;  %v7966_v50 = vld [vmem:[%s17970_s5 + $0x12e8] sm:$0xff] }
 0x656   : > { %10564 = vmatprep.subr.bf16.mxu0 %v10563_v46  ;;  %v7937_v46 = vld [vmem:[%s17970_s5 + $0x1210] sm:$0xff]  ;;  %v8014_v41 = vld [vmem:[%s17970_s5 + $0x1468] sm:$0xff] }
 0x657   : > { %v10577_v29 = vpack.c.bf16 %v7938_v4, %v7937_v46  ;;  %v10549_v46 = vpack.c.bf16 %v7908_v23, %v7907_v16 }
 0x658   : > { %10530 = vmatpush3.bf16.msra.mxu1 %v10529_v24 }
 0x659   : > { %10566 = vmatpush3.bf16.msra.mxu0 %v10565_v36  ;;  %10532 = vmatprep.subr.bf16.mxu1 %v10531_v22  ;;  %v7955_v36 = vld [vmem:[%s17970_s5 + $0x12a0] sm:$0xff]  ;;  %v7956_v22 = vld [vmem:[%s17970_s5 + $0x12a8] sm:$0xff] }
 0x65a   : > { %10568 = vmatprep.subr.bf16.mxu0 %v10567_v43  ;;  %v7905_v43 = vld [vmem:[%s17970_s5 + $0x1110] sm:$0xff]  ;;  %v10579_v26 = vpack.c.bf16 %v7956_v22, %v7955_v36  ;;  %v7981_v36 = vld [vmem:[%s17970_s5 + $0x1360] sm:$0xff] }
 0x65b   : > { %v10545_v61 = vpack.c.bf16 %v7906_v40, %v7905_v43  ;;  %v7996_v43 = vld [vmem:[%s17970_s5 + $0x13d8] sm:$0xff]  ;;  %v7997_v40 = vld [vmem:[%s17970_s5 + $0x13e0] sm:$0xff] }
 0x65c   : > { %10534 = vmatpush3.bf16.msra.mxu1 %v10533_v47  ;;  %v7924_v47 = vld [vmem:[%s17970_s5 + $0x11a8] sm:$0xff] }
 0x65d   : > { %10570 = vmatpush3.bf16.msra.mxu0 %v10569_v8  ;;  %v8642_v13 = vpop.f32.mrb[16].mxu0  ;;  %10536 = vmatprep.subr.bf16.mxu1 %v10535_v32  ;;  %v7957_v8 = vld [vmem:[%s17970_s5 + $0x12b0] sm:$0xff]  ;;  %v7958_v32 = vld [vmem:[%s17970_s5 + $0x12b8] sm:$0xff] }
 0x65e   : > { %v8643_v57 = vpop.f32.mrb[17].mxu0  ;;  %10572 = vmatprep.subr.bf16.mxu0 %v10571_v3  ;;  %v10547_v3 = vpack.c.bf16 %v7924_v47, %v7923_v39  ;;  %v10583_v19 = vpack.c.bf16 %v7958_v32, %v7957_v8  ;;  %v8015_v39 = vld [vmem:[%s17970_s5 + $0x1470] sm:$0xff]  ;;  %v5342_v32 = vrot.slane %v16200_v21, 1 }
 0x65f   : > { %v16284_v24 = vadd.f32 %v8643_v57, %v8642_v13  ;;  %v7925_v13 = vld [vmem:[%s17970_s5 + $0x11b0] sm:$0xff]  ;;  %v10626_v23 = vpack.c.bf16 %v8015_v39, %v8014_v41  ;;  %v7992_v41 = vld [vmem:[%s17970_s5 + $0x13b8] sm:$0xff]  ;;  %v7993_v39 = vld [vmem:[%s17970_s5 + $0x13c0] sm:$0xff] }
 0x660   : > { %10538 = vmatpush3.bf16.msra.mxu1 %v10537_v20  ;;  %v7942_v20 = vld [vmem:[%s17970_s5 + $0x1238] sm:$0xff]  ;;  %v7961_v8 = vld [vmem:[%s17970_s5 + $0x12d0] sm:$0x1] }
 0x661   : > { %10574 = vmatpush3.bf16.msra.mxu0 %v10573_v59  ;;  %10540 = vmatprep.subr.bf16.mxu1 %v10539_v0  ;;  %v7926_v59 = vld [vmem:[%s17970_s5 + $0x11b8] sm:$0xff]  ;;  %v2525_v0 = vsel %vm18074_vm0, %v11886_v11, %v16029_v53 }
 0x662   : > { %10576 = vmatprep.subr.bf16.mxu0 %v10575_v51  ;;  %v10585_v51 = vpack.c.bf16 %v7942_v20, %v7941_v34  ;;  %v10551_v4 = vpack.c.bf16 %v7926_v59, %v7925_v13  ;;  %v7910_v53 = vld [vmem:[%s17970_s5 + $0x1138] sm:$0xff]  ;;  %v2544_v11 = vmax.f32 %v2486_v42, %v2525_v0  ;;  %v2571_v42 = vsel %vm625_vm3, %v15957_v60, %v11890_v62  ;;  %v7983_v62 = vld [vmem:[%s17970_s5 + $0x1370] sm:$0xff]  ;;  %v7998_v34 = vld [vmem:[%s17970_s5 + $0x13e8] sm:$0xff] }
 0x663   : > { %v2619_v60 = vsel %vm688_vm11, %v16003_v30, %v11895_v9  ;;  %v8013_v30 = vld [vmem:[%s17970_s5 + $0x1460] sm:$0xff]  ;;  %v2546_v9 = vmax.f32 %v14767_v52, %v16037_v6  ;;  %v7967_v6 = vld [vmem:[%s17970_s5 + $0x12f0] sm:$0xff]  ;;  %v8016_v59 = vld [vmem:[%s17970_s5 + $0x1478] sm:$0xff] }
 0x664   : > { %10542 = vmatpush3.bf16.msra.mxu1 %v10541_v55  ;;  %v10588_v55 = vpack.c.bf16 %v7960_v14, %v7959_v27  ;;  %v10596_v16 = vpack.c.bf16 %v7967_v6, %v7966_v50  ;;  %v7969_v13 = vld [vmem:[%s17970_s5 + $0x1300] sm:$0xff]  ;;  %v8019_v14 = vld [vmem:[%s17970_s5 + $0x1490] sm:$0xff] }
 0x665   : > { %10578 = vmatpush3.bf16.msra.mxu0 %v10577_v29  ;;  %v8603_v1 = vpop.f32.mrb[14].mxu1  ;;  %10544 = vmatprep.subr.bf16.mxu1 %v10543_v37  ;;  %v10590_v29 = vpack.c.bf16 %v7981_v36, %v7980_v10  ;;  %v10592_v37 = vpack.c.bf16 %v7965_v31, %v7964_v15  ;;  %v2594_v47 = vmax.f32 %v2546_v9, %v16075_v48  ;;  %v7985_v48 = vld [vmem:[%s17970_s5 + $0x1380] sm:$0xff]  ;;  %v7988_v10 = vld [vmem:[%s17970_s5 + $0x1398] sm:$0xff]  ;;  %v7975_v50 = vld [vmem:[%s17970_s5 + $0x1330] sm:$0xff] }
 0x666   : > { %v8604_v28 = vpop.f32.mrb[15].mxu1  ;;  %10580 = vmatprep.subr.bf16.mxu0 %v10579_v26  ;;  %v8017_v0 = vld [vmem:[%s17970_s5 + $0x1480] sm:$0xff]  ;;  %v8020_v31 = vld [vmem:[%s17970_s5 + $0x1498] sm:$0xff]  ;;  %v8023_v6 = vld [vmem:[%s17970_s5 + $0x14b0] sm:$0xff] }
 0x667   : > { %v8605_v45 = vadd.f32 %v8604_v28, %v8603_v1  ;;  %v7984_v1 = vld [vmem:[%s17970_s5 + $0x1378] sm:$0xff]  ;;  %v7999_v28 = vld [vmem:[%s17970_s5 + $0x13f0] sm:$0xff]  ;;  %v7989_v36 = vld [vmem:[%s17970_s5 + $0x13a0] sm:$0xff] }
 0x668   : > { %10546 = vmatpush3.bf16.msra.mxu1 %v10545_v61  ;;  %v10622_v61 = vpack.c.bf16 %v8013_v30, %v8012_v5  ;;  %v10598_v20 = vpack.c.bf16 %v7985_v48, %v7984_v1  ;;  %v7973_v15 = vld [vmem:[%s17970_s5 + $0x1320] sm:$0xff]  ;;  %v8004_v9 = vld [vmem:[%s17970_s5 + $0x1418] sm:$0xff]  ;;  %v8006_v48 = vld [vmem:[%s17970_s5 + $0x1428] sm:$0xff] }
 0x669   : > { %v3152_v57 = vadd.f32 %v8605_v45, %v15835_v44  ;;  %10582 = vmatpush3.bf16.msra.mxu0 %v10581_v12  ;;  %10548 = vmatprep.subr.bf16.mxu1 %v10547_v3  ;;  %v2523_v44 = vsel %vm18104_vm6, %v15918_v38, %v11885_v7  ;;  %v2592_v38 = vmax.f32 %v2544_v11, %v2573_v25  ;;  %v7986_v45 = vld [vmem:[%s17970_s5 + $0x1388] sm:$0xff]  ;;  %v7987_v25 = vld [vmem:[%s17970_s5 + $0x1390] sm:$0xff] }
 0x66a   : > { %10584 = vmatprep.subr.bf16.mxu0 %v10583_v19  ;;  %v10553_v7 = vpack.c.bf16 %v7910_v53, %v7909_v63  ;;  %v2542_v22 = vmax.f32 %v14648_v2, %v2523_v44  ;;  %v7982_v2 = vld [vmem:[%s17970_s5 + $0x1368] sm:$0xff]  ;;  %v10624_v12 = vpack.c.bf16 %v7997_v40, %v7996_v43  ;;  %v16443_v3 = vmax.f32 %v2594_v47, %v16133_v35  ;;  %v7968_v19 = vld [vmem:[%s17970_s5 + $0x12f8] sm:$0xff]  ;;  %v8001_v63 = vld [vmem:[%s17970_s5 + $0x1400] sm:$0xff] }
 0x66b   : > { %v16372_v49 = vadd.f32 %v16083_v18, %v3152_v57  ;;  %v16389_v18 = vmax.f32 %v2592_v38, %v2621_v17  ;;  %v10594_v52 = vpack.c.bf16 %v7983_v62, %v7982_v2  ;;  %v5344_v35 = vrot.slane %v16180_v54, 1  ;;  %v7970_v53 = vld [vmem:[%s17970_s5 + $0x1308] sm:$0xff]  ;;  %v7971_v44 = vld [vmem:[%s17970_s5 + $0x1310] sm:$0xff] }
 0x66c   : > { %10550 = vmatpush3.bf16.msra.mxu1 %v10549_v46  ;;  %v2590_v33 = vmax.f32 %v2542_v22, %v2571_v42  ;;  %v10628_v46 = vpack.c.bf16 %v7999_v28, %v7998_v34  ;;  %v10600_v57 = vpack.c.bf16 %v7969_v13, %v7968_v19  ;;  %v10602_v27 = vpack.c.bf16 %v7987_v25, %v7986_v45  ;;  %v8018_v11 = vld [vmem:[%s17970_s5 + $0x1488] sm:$0xff]  ;;  %v8003_v22 = vld [vmem:[%s17970_s5 + $0x1410] sm:$0xff]  ;;  %v7977_v19 = vld [vmem:[%s17970_s5 + $0x1340] sm:$0xff] }
 0x66d   : > { %10586 = vmatpush3.bf16.msra.mxu0 %v10585_v51  ;;  %10552 = vmatprep.subr.bf16.mxu1 %v10551_v4  ;;  %v10630_v51 = vpack.c.bf16 %v8017_v0, %v8016_v59  ;;  %v8000_v4 = vld [vmem:[%s17970_s5 + $0x13f8] sm:$0xff]  ;;  %v10604_v42 = vpack.c.bf16 %v7971_v44, %v7970_v53  ;;  %v10634_v38 = vpack.c.bf16 %v8019_v14, %v8018_v11  ;;  %v7990_v2 = vld [vmem:[%s17970_s5 + $0x13a8] sm:$0xff]  ;;  %v7991_v62 = vld [vmem:[%s17970_s5 + $0x13b0] sm:$0xff] }
 0x66e   : > { %10587 = vmatprep.subr.bf16.mxu0 %v18096_v56  ;;  %v16416_v26 = vmax.f32 %v2590_v33, %v2619_v60  ;;  %v10632_v17 = vpack.c.bf16 %v8001_v63, %v8000_v4  ;;  %v8021_v60 = vld [vmem:[%s17970_s5 + $0x14a0] sm:$0xff]  ;;  %v7974_v43 = vld [vmem:[%s17970_s5 + $0x1328] sm:$0xff]  ;;  %v10610_v40 = vpack.c.bf16 %v7991_v62, %v7990_v2  ;;  %v10614_v28 = vpack.c.bf16 %v7993_v39, %v7992_v41  ;;  %v7995_v0 = vld [vmem:[%s17970_s5 + $0x13d0] sm:$0xff] }
 0x66f   : > { %v10638_v30 = vpack.c.bf16 %v8021_v60, %v8020_v31  ;;  %v7994_v59 = vld [vmem:[%s17970_s5 + $0x13c8] sm:$0xff]  ;;  %v8009_v4 = vld [vmem:[%s17970_s5 + $0x1440] sm:$0xff]  ;;  %v7979_v44 = vld [vmem:[%s17970_s5 + $0x1350] sm:$0xff] }
 0x670   : > { %5193 = vmatmul.mubr.f32.vlgmr.msra.gmra.mrb[28].mxu0 %v16389_v18  ;;  %10554 = vmatpush3.bf16.msra.mxu1 %v10553_v7  ;;  %v8002_v7 = vld [vmem:[%s17970_s5 + $0x1408] sm:$0xff]  ;;  %v8027_v14 = vld [vmem:[%s17970_s5 + $0x14d0] sm:$0xff]  ;;  %v8028_v62 = vld [vmem:[%s17970_s5 + $0x14d8] sm:$0xff] }
 0x671   : > { %10589 = vmatpush3.bf16.msra.mxu0 %v10588_v55  ;;  %10591 = vmatprep.subr.bf16.mxu1 %v10590_v29  ;;  %v7972_v55 = vld [vmem:[%s17970_s5 + $0x1318] sm:$0xff]  ;;  %v10606_v29 = vpack.c.bf16 %v7989_v36, %v7988_v10  ;;  %v10636_v33 = vpack.c.bf16 %v8003_v22, %v8002_v7  ;;  %v7978_v63 = vld [vmem:[%s17970_s5 + $0x1348] sm:$0xff]  ;;  %v8049_v10 = vld [vmem:[%s17970_s5 + $0x1570] sm:$0xff] }
 0x672   : > { %9745 = vmatprep.subr.mxu0 %v18097_v58  ;;  %9747 = vmatprep.mubr.msk.f32.mxu0 %vm11989_vm10, %v18097_v58  ;;  %v10608_v5 = vpack.c.bf16 %v7973_v15, %v7972_v55  ;;  %v8026_v11 = vld [vmem:[%s17970_s5 + $0x14c8] sm:$0xff]  ;;  %v8011_v22 = vld [vmem:[%s17970_s5 + $0x1450] sm:$0xff]  ;;  %v8051_v15 = vld [vmem:[%s17970_s5 + $0x1580] sm:$0xff] }
 0x673   : > { %5123 = vmatmul.mubr.f32.vlgmr.msra.gmra.mrb[28].mxu1 %v16416_v26  ;;  %v8010_v7 = vld [vmem:[%s17970_s5 + $0x1448] sm:$0xff] }
 0x674   : > { %10593 = vmatpush3.bf16.msra.mxu1 %v10592_v37  ;;  %5419 = vmatprep.mubr.f32.mxu1 %v5342_v32  ;;  %v8005_v37 = vld [vmem:[%s17970_s5 + $0x1420] sm:$0xff]  ;;  %v8052_v31 = vld [vmem:[%s17970_s5 + $0x1588] sm:$0xff]  ;;  %v10652_v60 = vpack.c.bf16 %v8011_v22, %v8010_v7  ;;  %v5638_v22 = vrot.slane %v16443_v3, 2 }
 0x675   : > { %9746 = vmatpush3.msk.msra.mxu0 %vm812_vm4, %v7961_v8  ;;  %10595 = vmatprep.subr.bf16.mxu1 %v10594_v52  ;;  %v8022_v52 = vld [vmem:[%s17970_s5 + $0x14a8] sm:$0xff]  ;;  %v10640_v8 = vpack.c.bf16 %v8005_v37, %v8004_v9  ;;  %v8035_v9 = vld [vmem:[%s17970_s5 + $0x1500] sm:$0xff] }
 0x676   : > { %9748 = vmatmul.mubr.msk.f32.vlgmr.msra.gmra.mrb[14].mxu0 %vm2711_vm9, %v16443_v3  ;;  %10623 = vmatprep.subr.bf16.mxu0 %v10622_v61  ;;  %v10612_v61 = vpack.c.bf16 %v7975_v50, %v7974_v43  ;;  %v10642_v1 = vpack.c.bf16 %v8023_v6, %v8022_v52  ;;  %v8036_v37 = vld [vmem:[%s17970_s5 + $0x1508] sm:$0xff]  ;;  %v5635_v43 = vrot.slane %v16200_v21, 2  ;;  %v8054_v50 = vld [vmem:[%s17970_s5 + $0x1598] sm:$0xff]  ;;  %v5343_v6 = vrot.slane %v16389_v18, 1 }
 0x677   : > { %10625 = vmatpush3.bf16.msra.mxu0 %v10624_v12  ;;  %5489 = vmatprep.mubr.f32.mxu0 %v5344_v35  ;;  %v8007_v12 = vld [vmem:[%s17970_s5 + $0x1430] sm:$0xff]  ;;  %v8024_v35 = vld [vmem:[%s17970_s5 + $0x14b8] sm:$0xff]  ;;  %v10663_v41 = vpack.c.bf16 %v8036_v37, %v8035_v9  ;;  %v8044_v7 = vld [vmem:[%s17970_s5 + $0x1548] sm:$0xff] }
 0x678   : > { %10597 = vmatpush3.bf16.msra.mxu1 %v10596_v16  ;;  %10627 = vmatprep.subr.bf16.mxu0 %v10626_v23  ;;  %v7976_v16 = vld [vmem:[%s17970_s5 + $0x1338] sm:$0xff]  ;;  %v10644_v25 = vpack.c.bf16 %v8007_v12, %v8006_v48  ;;  %v8030_v12 = vld [vmem:[%s17970_s5 + $0x14e8] sm:$0x1] }
 0x679   : > { %10599 = vmatprep.subr.bf16.mxu1 %v10598_v20  ;;  %v8025_v20 = vld [vmem:[%s17970_s5 + $0x14c0] sm:$0xff]  ;;  %v8098_v48 = vld [vmem:[%s17970_s5 + $0x16f8] sm:$0xff]  ;;  %v8106_v37 = vld [vmem:[%s17970_s5 + $0x1728] sm:$0xff] }
 0x67b   : > { %10629 = vmatpush3.bf16.msra.mxu0 %v10628_v46  ;;  %v10616_v46 = vpack.c.bf16 %v7977_v19, %v7976_v16  ;;  %v8040_v19 = vld [vmem:[%s17970_s5 + $0x1528] sm:$0xff] }
 0x67c   : > { %10601 = vmatpush3.bf16.msra.mxu1 %v10600_v57  ;;  %10631 = vmatprep.subr.bf16.mxu0 %v10630_v51  ;;  %v10646_v57 = vpack.c.bf16 %v8025_v20, %v8024_v35  ;;  %v8008_v51 = vld [vmem:[%s17970_s5 + $0x1438] sm:$0xff]  ;;  %v5345_v35 = vrot.slane %v16443_v3, 1 }
 0x67d   : > { %10603 = vmatprep.subr.bf16.mxu1 %v10602_v27  ;;  %v10618_v27 = vpack.c.bf16 %v7995_v0, %v7994_v59  ;;  %v8058_v59 = vld [vmem:[%s17970_s5 + $0x15b8] sm:$0xff] }
 0x67f   : > { %10633 = vmatpush3.bf16.msra.mxu0 %v10632_v17  ;;  %v10648_v17 = vpack.c.bf16 %v8009_v4, %v8008_v51  ;;  %v8041_v51 = vld [vmem:[%s17970_s5 + $0x1530] sm:$0xff]  ;;  %v8042_v4 = vld [vmem:[%s17970_s5 + $0x1538] sm:$0xff] }
 0x680   : > { %10605 = vmatpush3.bf16.msra.mxu1 %v10604_v42  ;;  %10635 = vmatprep.subr.bf16.mxu0 %v10634_v38  ;;  %v10620_v42 = vpack.c.bf16 %v7979_v44, %v7978_v63  ;;  %v10650_v38 = vpack.c.bf16 %v8027_v14, %v8026_v11  ;;  %v8102_v63 = vld [vmem:[%s17970_s5 + $0x1708] sm:$0xff]  ;;  %v8121_v11 = vld [vmem:[%s17970_s5 + $0x17a0] sm:$0xff] }
 0x681   : > { %10607 = vmatprep.subr.bf16.mxu1 %v10606_v29  ;;  %v8034_v29 = vld [vmem:[%s17970_s5 + $0x14f8] sm:$0xff]  ;;  %v8059_v14 = vld [vmem:[%s17970_s5 + $0x15c0] sm:$0xff] }
 0x683   : > { %10637 = vmatpush3.bf16.msra.mxu0 %v10636_v33  ;;  %v8716_v47 = vpop.f32.mrb[18].mxu0  ;;  %v8029_v33 = vld [vmem:[%s17970_s5 + $0x14e0] sm:$0xff] }
 0x684   : > { %10609 = vmatpush3.bf16.msra.mxu1 %v10608_v5  ;;  %v8717_v32 = vpop.f32.mrb[19].mxu0  ;;  %10639 = vmatprep.subr.bf16.mxu0 %v10638_v30  ;;  %v5341_v5 = vrot.slane %v16416_v26, 1  ;;  %v10661_v30 = vpack.c.bf16 %v8052_v31, %v8051_v15  ;;  %v10655_v52 = vpack.c.bf16 %v8029_v33, %v8028_v62  ;;  %v8061_v15 = vld [vmem:[%s17970_s5 + $0x15d0] sm:$0xff]  ;;  %v8062_v31 = vld [vmem:[%s17970_s5 + $0x15d8] sm:$0xff] }
 0x685   : > { %v16554_v23 = vadd.f32 %v8717_v32, %v8716_v47  ;;  %v8677_v34 = vpop.f32.mrb[16].mxu1  ;;  %10611 = vmatprep.subr.bf16.mxu1 %v10610_v40  ;;  %v8053_v40 = vld [vmem:[%s17970_s5 + $0x1590] sm:$0xff]  ;;  %v8055_v32 = vld [vmem:[%s17970_s5 + $0x15a0] sm:$0xff]  ;;  %v10681_v9 = vpack.c.bf16 %v8062_v31, %v8061_v15 }
 0x686   : > { %v8678_v13 = vpop.f32.mrb[17].mxu1  ;;  %v10665_v39 = vpack.c.bf16 %v8054_v50, %v8053_v40  ;;  %v8037_v47 = vld [vmem:[%s17970_s5 + $0x1510] sm:$0xff]  ;;  %v8046_v40 = vld [vmem:[%s17970_s5 + $0x1558] sm:$0xff]  ;;  %v8113_v31 = vld [vmem:[%s17970_s5 + $0x1760] sm:$0xff] }
 0x687   : > { %10641 = vmatpush3.bf16.msra.mxu0 %v10640_v8  ;;  %v8679_v45 = vadd.f32 %v8678_v13, %v8677_v34  ;;  %v8038_v8 = vld [vmem:[%s17970_s5 + $0x1518] sm:$0xff]  ;;  %v8057_v13 = vld [vmem:[%s17970_s5 + $0x15b0] sm:$0xff] }
 0x688   : > { %10613 = vmatpush3.bf16.msra.mxu1 %v10612_v61  ;;  %10643 = vmatprep.subr.bf16.mxu0 %v10642_v1  ;;  %v8056_v61 = vld [vmem:[%s17970_s5 + $0x15a8] sm:$0xff]  ;;  %v8097_v1 = vld [vmem:[%s17970_s5 + $0x16f0] sm:$0xff]  ;;  %v10667_v16 = vpack.c.bf16 %v8038_v8, %v8037_v47  ;;  %v8124_v8 = vld [vmem:[%s17970_s5 + $0x17b8] sm:$0xff] }
 0x689   : > { %v3445_v53 = vadd.f32 %v8679_v45, %v16284_v24  ;;  %10615 = vmatprep.subr.bf16.mxu1 %v10614_v28  ;;  %v8050_v24 = vld [vmem:[%s17970_s5 + $0x1578] sm:$0xff]  ;;  %v10669_v34 = vpack.c.bf16 %v8056_v61, %v8055_v32  ;;  %v8039_v28 = vld [vmem:[%s17970_s5 + $0x1520] sm:$0xff]  ;;  %v10722_v20 = vpack.c.bf16 %v8098_v48, %v8097_v1  ;;  %v8118_v45 = vld [vmem:[%s17970_s5 + $0x1788] sm:$0xff] }
 0x68a   : > { %v10657_v55 = vpack.c.bf16 %v8050_v24, %v8049_v10  ;;  %v10671_v0 = vpack.c.bf16 %v8040_v19, %v8039_v28  ;;  %v8060_v10 = vld [vmem:[%s17970_s5 + $0x15c8] sm:$0xff]  ;;  %v10675_v24 = vpack.c.bf16 %v8042_v4, %v8041_v51  ;;  %v8123_v62 = vld [vmem:[%s17970_s5 + $0x17b0] sm:$0xff]  ;;  %v8125_v32 = vld [vmem:[%s17970_s5 + $0x17c0] sm:$0xff] }
 0x68b   : > { %v16597_v36 = vadd.f32 %v16372_v49, %v3445_v53  ;;  %10645 = vmatpush3.bf16.msra.mxu0 %v10644_v25  ;;  %v8033_v49 = vld [vmem:[%s17970_s5 + $0x14f0] sm:$0xff]  ;;  %v8047_v28 = vld [vmem:[%s17970_s5 + $0x1560] sm:$0xff]  ;;  %v8048_v19 = vld [vmem:[%s17970_s5 + $0x1568] sm:$0xff] }
 0x68c   : > { %10617 = vmatpush3.bf16.msra.mxu1 %v10616_v46  ;;  %10647 = vmatprep.subr.bf16.mxu0 %v10646_v57  ;;  %v10659_v2 = vpack.c.bf16 %v8034_v29, %v8033_v49  ;;  %v8119_v25 = vld [vmem:[%s17970_s5 + $0x1790] sm:$0xff]  ;;  %v8099_v46 = vld [vmem:[%s17970_s5 + $0x1700] sm:$0x1]  ;;  %v10673_v57 = vpack.c.bf16 %v8058_v59, %v8057_v13  ;;  %v10677_v49 = vpack.c.bf16 %v8060_v10, %v8059_v14  ;;  %v8082_v59 = vld [vmem:[%s17970_s5 + $0x1678] sm:$0xff] }
 0x68d   : > { %10619 = vmatprep.subr.bf16.mxu1 %v10618_v27  ;;  %v8103_v53 = vld [vmem:[%s17970_s5 + $0x1710] sm:$0xff]  ;;  %v8120_v27 = vld [vmem:[%s17970_s5 + $0x1798] sm:$0xff]  ;;  %v10724_v44 = vpack.c.bf16 %v8119_v25, %v8118_v45  ;;  %v8105_v29 = vld [vmem:[%s17970_s5 + $0x1720] sm:$0xff] }
 0x68e   : > { %v8081_v13 = vld [vmem:[%s17970_s5 + $0x1670] sm:$0xff]  ;;  %v8126_v25 = vld [vmem:[%s17970_s5 + $0x17c8] sm:$0xff]  ;;  %v8128_v10 = vld [vmem:[%s17970_s5 + $0x17d8] sm:$0xff] }
 0x68f   : > { %10649 = vmatpush3.bf16.msra.mxu0 %v10648_v17  ;;  %v10726_v17 = vpack.c.bf16 %v8103_v53, %v8102_v63  ;;  %v10689_v4 = vpack.c.bf16 %v8082_v59, %v8081_v13  ;;  %v8065_v63 = vld [vmem:[%s17970_s5 + $0x15f0] sm:$0xff]  ;;  %v8066_v53 = vld [vmem:[%s17970_s5 + $0x15f8] sm:$0xff]  ;;  %v8084_v14 = vld [vmem:[%s17970_s5 + $0x1688] sm:$0xff] }
 0x690   : > { %10621 = vmatpush3.bf16.msra.mxu1 %v10620_v42  ;;  %10651 = vmatprep.subr.bf16.mxu0 %v10650_v38  ;;  %v8104_v42 = vld [vmem:[%s17970_s5 + $0x1718] sm:$0xff]  ;;  %v8043_v38 = vld [vmem:[%s17970_s5 + $0x1540] sm:$0xff]  ;;  %v8166_v13 = vld [vmem:[%s17970_s5 + $0x1908] sm:$0xff] }
 0x691   : > { %10658 = vmatprep.subr.bf16.mxu1 %v10657_v55  ;;  %v10728_v55 = vpack.c.bf16 %v8121_v11, %v8120_v27  ;;  %v10679_v33 = vpack.c.bf16 %v8044_v7, %v8043_v38  ;;  %v8083_v11 = vld [vmem:[%s17970_s5 + $0x1680] sm:$0xff]  ;;  %v8073_v59 = vld [vmem:[%s17970_s5 + $0x1630] sm:$0xff] }
 0x692   : > { %v10693_v7 = vpack.c.bf16 %v8084_v14, %v8083_v11  ;;  %v8093_v11 = vld [vmem:[%s17970_s5 + $0x16d0] sm:$0xff]  ;;  %v8094_v14 = vld [vmem:[%s17970_s5 + $0x16d8] sm:$0xff] }
 0x693   : > { %10653 = vmatpush3.bf16.msra.mxu0 %v10652_v60  ;;  %5420 = vmatmul.mubr.f32.vlgmr.msra.gmra.mrb[30].mxu1 %v5341_v5  ;;  %v5928_v60 = vrot.slane %v16200_v21, 3 }
 0x694   : > { %10660 = vmatpush3.bf16.msra.mxu1 %v10659_v2  ;;  %5712 = vmatprep.mubr.f32.mxu1 %v5635_v43  ;;  %v8122_v2 = vld [vmem:[%s17970_s5 + $0x17a8] sm:$0xff]  ;;  %v8045_v43 = vld [vmem:[%s17970_s5 + $0x1550] sm:$0xff] }
 0x695   : > { %10654 = vmatprep.subr.bf16.mxu0 %v18096_v56  ;;  %10662 = vmatprep.subr.bf16.mxu1 %v10661_v30  ;;  %v10730_v30 = vpack.c.bf16 %v8105_v29, %v8104_v42  ;;  %v10683_v61 = vpack.c.bf16 %v8046_v40, %v8045_v43  ;;  %v5634_v42 = vrot.slane %v16416_v26, 2  ;;  %v5637_v29 = vrot.slane %v16180_v54, 2  ;;  %v8069_v43 = vld [vmem:[%s17970_s5 + $0x1610] sm:$0xff]  ;;  %v8070_v40 = vld [vmem:[%s17970_s5 + $0x1618] sm:$0xff] }
 0x696   : > { %5490 = vmatmul.mubr.f32.vlgmr.msra.gmra.mrb[30].mxu0 %v5343_v6  ;;  %v8107_v6 = vld [vmem:[%s17970_s5 + $0x1730] sm:$0xff] }
 0x697   : > { %10656 = vmatpush3.bf16.msra.mxu0 %v10655_v52  ;;  %9756 = vmatprep.mubr.msk.f32.mxu0 %vm11989_vm10, %v18097_v58  ;;  %v10732_v52 = vpack.c.bf16 %v8123_v62, %v8122_v2  ;;  %v8086_v2 = vld [vmem:[%s17970_s5 + $0x1698] sm:$0xff]  ;;  %v8130_v62 = vld [vmem:[%s17970_s5 + $0x17e8] sm:$0xff] }
 0x698   : > { %10664 = vmatpush3.bf16.msra.mxu1 %v10663_v41  ;;  %9754 = vmatprep.subr.mxu0 %v18097_v58  ;;  %v8063_v41 = vld [vmem:[%s17970_s5 + $0x15e0] sm:$0xff] }
 0x699   : > { %10666 = vmatprep.subr.bf16.mxu1 %v10665_v39  ;;  %v8064_v39 = vld [vmem:[%s17970_s5 + $0x15e8] sm:$0xff] }
 0x69b   : > { %9755 = vmatpush3.msk.msra.mxu0 %vm812_vm4, %v8030_v12  ;;  %v10734_v12 = vpack.c.bf16 %v8107_v6, %v8106_v37  ;;  %v8114_v37 = vld [vmem:[%s17970_s5 + $0x1768] sm:$0xff]  ;;  %v8087_v6 = vld [vmem:[%s17970_s5 + $0x16a0] sm:$0xff] }
 0x69c   : > { %9757 = vmatmul.mubr.msk.f32.vlgmr.msra.gmra.mrb[14].mxu0 %vm2711_vm9, %v5345_v35  ;;  %10668 = vmatpush3.bf16.msra.mxu1 %v10667_v16  ;;  %v10685_v16 = vpack.c.bf16 %v8064_v39, %v8063_v41  ;;  %v8088_v41 = vld [vmem:[%s17970_s5 + $0x16a8] sm:$0xff]  ;;  %v8132_v39 = vld [vmem:[%s17970_s5 + $0x17f8] sm:$0xff] }
 0x69d   : > { %10721 = vmatprep.subr.bf16.mxu0 %v18096_v56  ;;  %10670 = vmatprep.subr.bf16.mxu1 %v10669_v34  ;;  %v8108_v34 = vld [vmem:[%s17970_s5 + $0x1738] sm:$0xff] }
 0x69e   : > { %10723 = vmatpush3.bf16.msra.mxu0 %v10722_v20  ;;  %9765 = vmatprep.mubr.msk.f32.mxu0 %vm11989_vm10, %v18097_v58  ;;  %v8109_v20 = vld [vmem:[%s17970_s5 + $0x1740] sm:$0xff] }
 0x69f   : > { %9763 = vmatprep.subr.mxu0 %v18097_v58  ;;  %v10738_v51 = vpack.c.bf16 %v8109_v20, %v8108_v34  ;;  %v8117_v34 = vld [vmem:[%s17970_s5 + $0x1780] sm:$0xff] }
 0x6a0   : > { %10672 = vmatpush3.bf16.msra.mxu1 %v10671_v0 }
 0x6a1   : > { %10674 = vmatprep.subr.bf16.mxu1 %v10673_v57  ;;  %v10687_v57 = vpack.c.bf16 %v8048_v19, %v8047_v28  ;;  %v8089_v28 = vld [vmem:[%s17970_s5 + $0x16b0] sm:$0xff]  ;;  %v8090_v19 = vld [vmem:[%s17970_s5 + $0x16b8] sm:$0xff] }
 0x6a2   : > { %9764 = vmatpush3.msk.msra.mxu0 %vm812_vm4, %v8099_v46  ;;  %v8127_v46 = vld [vmem:[%s17970_s5 + $0x17d0] sm:$0xff]  ;;  %v10705_v20 = vpack.c.bf16 %v8090_v19, %v8089_v28  ;;  %v8176_v28 = vld [vmem:[%s17970_s5 + $0x1948] sm:$0xff] }
 0x6a3   : > { %10725 = vmatprep.subr.bf16.mxu0 %v10724_v44  ;;  %v10740_v27 = vpack.c.bf16 %v8127_v46, %v8126_v25  ;;  %v8111_v44 = vld [vmem:[%s17970_s5 + $0x1750] sm:$0xff]  ;;  %v8074_v25 = vld [vmem:[%s17970_s5 + $0x1638] sm:$0xff] }
 0x6a4   : > { %9766 = vmatmul.mubr.msk.f32.vlgmr.msra.gmra.mrb[14].mxu0 %vm2711_vm9, %v5638_v22  ;;  %10676 = vmatpush3.bf16.msra.mxu1 %v10675_v24  ;;  %v8129_v24 = vld [vmem:[%s17970_s5 + $0x17e0] sm:$0xff]  ;;  %v8112_v22 = vld [vmem:[%s17970_s5 + $0x1758] sm:$0xff]  ;;  %v8167_v46 = vld [vmem:[%s17970_s5 + $0x1910] sm:$0xff] }
 0x6a5   : > { %10727 = vmatpush3.bf16.msra.mxu0 %v10726_v17  ;;  %6005 = vmatprep.mubr.f32.mxu0 %v5928_v60  ;;  %v8751_v5 = vpop.f32.mrb[18].mxu1  ;;  %v10691_v17 = vpack.c.bf16 %v8066_v53, %v8065_v63  ;;  %v10744_v15 = vpack.c.bf16 %v8129_v24, %v8128_v10  ;;  %v8085_v60 = vld [vmem:[%s17970_s5 + $0x1690] sm:$0xff]  ;;  %v8075_v53 = vld [vmem:[%s17970_s5 + $0x1640] sm:$0xff]  ;;  %v8188_v24 = vld [vmem:[%s17970_s5 + $0x19a8] sm:$0xff] }
 0x6a6   : > { %10729 = vmatprep.subr.bf16.mxu0 %v10728_v55  ;;  %v8752_v50 = vpop.f32.mrb[19].mxu1  ;;  %10678 = vmatprep.subr.bf16.mxu1 %v10677_v49  ;;  %v8067_v55 = vld [vmem:[%s17970_s5 + $0x1600] sm:$0xff]  ;;  %v8068_v49 = vld [vmem:[%s17970_s5 + $0x1608] sm:$0xff] }
 0x6a7   : > { %v8753_v47 = vadd.f32 %v8752_v50, %v8751_v5  ;;  %v10695_v5 = vpack.c.bf16 %v8068_v49, %v8067_v55  ;;  %v8187_v10 = vld [vmem:[%s17970_s5 + $0x19a0] sm:$0xff]  ;;  %v10713_v55 = vpack.c.bf16 %v8094_v14, %v8093_v11  ;;  %v8078_v49 = vld [vmem:[%s17970_s5 + $0x1658] sm:$0xff] }
 0x6a8   : > { %10680 = vmatpush3.bf16.msra.mxu1 %v10679_v33  ;;  %v8131_v33 = vld [vmem:[%s17970_s5 + $0x17f0] sm:$0xff]  ;;  %v8137_v14 = vld [vmem:[%s17970_s5 + $0x1820] sm:$0xff] }
 0x6a9   : > { %v3738_v1 = vadd.f32 %v8753_v47, %v16554_v23  ;;  %10731 = vmatpush3.bf16.msra.mxu0 %v10730_v30  ;;  %v8790_v48 = vpop.f32.mrb[20].mxu0  ;;  %10682 = vmatprep.subr.bf16.mxu1 %v10681_v9  ;;  %v10736_v23 = vpack.c.bf16 %v8125_v32, %v8124_v8  ;;  %v10746_v30 = vpack.c.bf16 %v8113_v31, %v8112_v22  ;;  %v8133_v47 = vld [vmem:[%s17970_s5 + $0x1800] sm:$0xff] }
 0x6aa   : > { %10733 = vmatprep.subr.bf16.mxu0 %v10732_v52  ;;  %v8791_v35 = vpop.f32.mrb[21].mxu0  ;;  %v10697_v9 = vpack.c.bf16 %v8086_v2, %v8085_v60  ;;  %v10748_v50 = vpack.c.bf16 %v8131_v33, %v8130_v62  ;;  %v8115_v52 = vld [vmem:[%s17970_s5 + $0x1770] sm:$0xff]  ;;  %v10699_v8 = vpack.c.bf16 %v8070_v40, %v8069_v43  ;;  %v8168_v60 = vld [vmem:[%s17970_s5 + $0x1918] sm:$0x1]  ;;  %v10791_v2 = vpack.c.bf16 %v8188_v24, %v8187_v10  ;;  %v8095_v62 = vld [vmem:[%s17970_s5 + $0x16e0] sm:$0xff] }
 0x6ab   : > { %v16787_v0 = vadd.f32 %v16597_v36, %v3738_v1  ;;  %v16789_v45 = vadd.f32 %v8791_v35, %v8790_v48  ;;  %v8110_v36 = vld [vmem:[%s17970_s5 + $0x1748] sm:$0xff]  ;;  %v10750_v32 = vpack.c.bf16 %v8115_v52, %v8114_v37  ;;  %v8116_v1 = vld [vmem:[%s17970_s5 + $0x1778] sm:$0xff]  ;;  %v8071_v48 = vld [vmem:[%s17970_s5 + $0x1620] sm:$0xff] }
 0x6ac   : > { %10684 = vmatpush3.bf16.msra.mxu1 %v10683_v61  ;;  %v10742_v38 = vpack.c.bf16 %v8111_v44, %v8110_v36  ;;  %v10701_v61 = vpack.c.bf16 %v8088_v41, %v8087_v6  ;;  %v10789_v36 = vpack.c.bf16 %v8167_v46, %v8166_v13  ;;  %v5927_v44 = vrot.slane %v16416_v26, 3  ;;  %v8096_v33 = vld [vmem:[%s17970_s5 + $0x16e8] sm:$0xff]  ;;  %v8173_v40 = vld [vmem:[%s17970_s5 + $0x1930] sm:$0xff]  ;;  %v8079_v52 = vld [vmem:[%s17970_s5 + $0x1660] sm:$0xff] }
 0x6ad   : > { %10735 = vmatpush3.bf16.msra.mxu0 %v10734_v12  ;;  %10686 = vmatprep.subr.bf16.mxu1 %v10685_v16  ;;  %v8072_v12 = vld [vmem:[%s17970_s5 + $0x1628] sm:$0xff]  ;;  %v10752_v16 = vpack.c.bf16 %v8133_v47, %v8132_v39  ;;  %v6221_v41 = vrot.slane %v16200_v21, 4  ;;  %v10717_v39 = vpack.c.bf16 %v8096_v33, %v8095_v62  ;;  %v8152_v13 = vld [vmem:[%s17970_s5 + $0x1898] sm:$0xff]  ;;  %v8195_v10 = vld [vmem:[%s17970_s5 + $0x19e0] sm:$0xff] }
 0x6ae   : > { %10737 = vmatprep.subr.bf16.mxu0 %v10736_v23  ;;  %v10703_v35 = vpack.c.bf16 %v8072_v12, %v8071_v48  ;;  %v10754_v23 = vpack.c.bf16 %v8117_v34, %v8116_v1  ;;  %v8080_v47 = vld [vmem:[%s17970_s5 + $0x1668] sm:$0xff]  ;;  %v8175_v34 = vld [vmem:[%s17970_s5 + $0x1940] sm:$0xff]  ;;  %v8198_v62 = vld [vmem:[%s17970_s5 + $0x19f8] sm:$0xff] }
 0x6af   : > { %v10719_v12 = vpack.c.bf16 %v8080_v47, %v8079_v52  ;;  %v10801_v46 = vpack.c.bf16 %v8176_v28, %v8175_v34  ;;  %v8196_v24 = vld [vmem:[%s17970_s5 + $0x19e8] sm:$0xff]  ;;  %v8156_v33 = vld [vmem:[%s17970_s5 + $0x18b8] sm:$0xff]  ;;  %v8143_v28 = vld [vmem:[%s17970_s5 + $0x1850] sm:$0xff] }
 0x6b0   : > { %10688 = vmatpush3.bf16.msra.mxu1 %v10687_v57  ;;  %v8091_v57 = vld [vmem:[%s17970_s5 + $0x16c0] sm:$0xff]  ;;  %v8158_v47 = vld [vmem:[%s17970_s5 + $0x18c8] sm:$0xff] }
 0x6b1   : > { %10739 = vmatpush3.bf16.msra.mxu0 %v10738_v51  ;;  %10690 = vmatprep.subr.bf16.mxu1 %v10689_v4  ;;  %v8092_v51 = vld [vmem:[%s17970_s5 + $0x16c8] sm:$0xff]  ;;  %v10707_v4 = vpack.c.bf16 %v8074_v25, %v8073_v59  ;;  %v8153_v59 = vld [vmem:[%s17970_s5 + $0x18a0] sm:$0xff] }
 0x6b2   : > { %10741 = vmatprep.subr.bf16.mxu0 %v10740_v27  ;;  %v10709_v63 = vpack.c.bf16 %v8092_v51, %v8091_v57  ;;  %v8076_v27 = vld [vmem:[%s17970_s5 + $0x1648] sm:$0xff]  ;;  %v10760_v11 = vpack.c.bf16 %v8153_v59, %v8152_v13 }
 0x6b3   : > { %5713 = vmatmul.mubr.f32.vlgmr.msra.gmra.mrb[32].mxu1 %v5634_v42  ;;  %v8171_v42 = vld [vmem:[%s17970_s5 + $0x1920] sm:$0xff] }
 0x6b4   : > { %10692 = vmatpush3.bf16.msra.mxu1 %v10691_v17  ;;  %5782 = vmatprep.mubr.f32.mxu1 %v5637_v29  ;;  %v10711_v17 = vpack.c.bf16 %v8076_v27, %v8075_v53  ;;  %v8189_v29 = vld [vmem:[%s17970_s5 + $0x19b0] sm:$0xff]  ;;  %v5636_v27 = vrot.slane %v16389_v18, 2 }
 0x6b5   : > { %10743 = vmatpush3.bf16.msra.mxu0 %v10742_v38  ;;  %10694 = vmatprep.subr.bf16.mxu1 %v10693_v7  ;;  %v8172_v38 = vld [vmem:[%s17970_s5 + $0x1928] sm:$0xff]  ;;  %v8077_v7 = vld [vmem:[%s17970_s5 + $0x1650] sm:$0xff] }
 0x6b6   : > { %10745 = vmatprep.subr.bf16.mxu0 %v10744_v15  ;;  %v8190_v15 = vld [vmem:[%s17970_s5 + $0x19b8] sm:$0xff]  ;;  %v10715_v37 = vpack.c.bf16 %v8078_v49, %v8077_v7  ;;  %v8179_v49 = vld [vmem:[%s17970_s5 + $0x1960] sm:$0xff] }
 0x6b7   : > { %v10795_v43 = vpack.c.bf16 %v8190_v15, %v8189_v29  ;;  %v8180_v29 = vld [vmem:[%s17970_s5 + $0x1968] sm:$0xff] }
 0x6b8   : > { %10696 = vmatpush3.bf16.msra.mxu1 %v10695_v5  ;;  %v8138_v15 = vld [vmem:[%s17970_s5 + $0x1828] sm:$0xff] }
 0x6b9   : > { %10747 = vmatpush3.bf16.msra.mxu0 %v10746_v30  ;;  %10698 = vmatprep.subr.bf16.mxu1 %v10697_v9  ;;  %v10793_v30 = vpack.c.bf16 %v8172_v38, %v8171_v42  ;;  %v5931_v9 = vrot.slane %v16443_v3, 3  ;;  %v8154_v42 = vld [vmem:[%s17970_s5 + $0x18a8] sm:$0xff]  ;;  %v8155_v38 = vld [vmem:[%s17970_s5 + $0x18b0] sm:$0xff] }
 0x6ba   : > { %10749 = vmatprep.subr.bf16.mxu0 %v10748_v50  ;;  %v8174_v50 = vld [vmem:[%s17970_s5 + $0x1938] sm:$0xff] }
 0x6bb   : > { %v10797_v48 = vpack.c.bf16 %v8174_v50, %v8173_v40  ;;  %v8182_v40 = vld [vmem:[%s17970_s5 + $0x1978] sm:$0xff] }
 0x6bc   : > { %10700 = vmatpush3.bf16.msra.mxu1 %v10699_v8  ;;  %v8191_v8 = vld [vmem:[%s17970_s5 + $0x19c0] sm:$0xff]  ;;  %v8140_v50 = vld [vmem:[%s17970_s5 + $0x1838] sm:$0xff] }
 0x6bd   : > { %10751 = vmatpush3.bf16.msra.mxu0 %v10750_v32  ;;  %10702 = vmatprep.subr.bf16.mxu1 %v10701_v61  ;;  %v8192_v32 = vld [vmem:[%s17970_s5 + $0x19c8] sm:$0xff]  ;;  %v8151_v61 = vld [vmem:[%s17970_s5 + $0x1890] sm:$0xff] }
 0x6be   : > { %10753 = vmatprep.subr.bf16.mxu0 %v10752_v16  ;;  %v10799_v16 = vpack.c.bf16 %v8192_v32, %v8191_v8  ;;  %v8159_v8 = vld [vmem:[%s17970_s5 + $0x18d0] sm:$0xff] }
 0x6bf   : > { %v10772_v34 = vpack.c.bf16 %v8159_v8, %v8158_v47  ;;  %v8242_v8 = vld [vmem:[%s17970_s5 + $0x1b48] sm:$0xff] }
 0x6c0   : > { %10704 = vmatpush3.bf16.msra.mxu1 %v10703_v35  ;;  %v8135_v35 = vld [vmem:[%s17970_s5 + $0x1810] sm:$0xff] }
 0x6c1   : > { %10755 = vmatpush3.bf16.msra.mxu0 %v10754_v23  ;;  %10706 = vmatprep.subr.bf16.mxu1 %v10705_v20  ;;  %v8193_v23 = vld [vmem:[%s17970_s5 + $0x19d0] sm:$0xff]  ;;  %v8194_v20 = vld [vmem:[%s17970_s5 + $0x19d8] sm:$0xff] }
 0x6c2   : > { %10788 = vmatprep.subr.bf16.mxu0 %v18096_v56 }
 0x6c4   : > { %6006 = vmatmul.mubr.f32.vlgmr.msra.gmra.mrb[32].mxu0 %v5927_v44  ;;  %10708 = vmatpush3.bf16.msra.mxu1 %v10707_v4  ;;  %v8177_v4 = vld [vmem:[%s17970_s5 + $0x1950] sm:$0xff]  ;;  %v10803_v44 = vpack.c.bf16 %v8194_v20, %v8193_v23  ;;  %v8161_v23 = vld [vmem:[%s17970_s5 + $0x18e0] sm:$0xff] }
 0x6c5   : > { %10790 = vmatpush3.bf16.msra.mxu0 %v10789_v36  ;;  %v8825_v22 = vpop.f32.mrb[20].mxu1  ;;  %10710 = vmatprep.subr.bf16.mxu1 %v10709_v63  ;;  %v8178_v36 = vld [vmem:[%s17970_s5 + $0x1958] sm:$0xff] }
 0x6c6   : > { %9772 = vmatprep.subr.mxu0 %v18097_v58  ;;  %v8826_v31 = vpop.f32.mrb[21].mxu1  ;;  %9774 = vmatprep.mubr.msk.f32.mxu0 %vm11989_vm10, %v18097_v58  ;;  %v8136_v63 = vld [vmem:[%s17970_s5 + $0x1818] sm:$0xff]  ;;  %v10805_v7 = vpack.c.bf16 %v8178_v36, %v8177_v4  ;;  %v8145_v4 = vld [vmem:[%s17970_s5 + $0x1860] sm:$0xff]  ;;  %v8162_v36 = vld [vmem:[%s17970_s5 + $0x18e8] sm:$0xff] }
 0x6c7   : > { %v8827_v5 = vadd.f32 %v8826_v31, %v8825_v22  ;;  %v10762_v22 = vpack.c.bf16 %v8137_v14, %v8136_v63  ;;  %v10764_v31 = vpack.c.bf16 %v8155_v38, %v8154_v42  ;;  %v8163_v63 = vld [vmem:[%s17970_s5 + $0x18f0] sm:$0xff]  ;;  %v8236_v14 = vld [vmem:[%s17970_s5 + $0x1b28] sm:$0xff] }
 0x6c8   : > { %10712 = vmatpush3.bf16.msra.mxu1 %v10711_v17  ;;  %v5930_v17 = vrot.slane %v16180_v54, 3  ;;  %v8147_v42 = vld [vmem:[%s17970_s5 + $0x1870] sm:$0xff] }
 0x6c9   : > { %v4031_v6 = vadd.f32 %v8827_v5, %v16789_v45  ;;  %9773 = vmatpush3.msk.msra.mxu0 %vm812_vm4, %v8168_v60  ;;  %10714 = vmatprep.subr.bf16.mxu1 %v10713_v55  ;;  %v8150_v45 = vld [vmem:[%s17970_s5 + $0x1888] sm:$0xff]  ;;  %v10807_v55 = vpack.c.bf16 %v8196_v24, %v8195_v10  ;;  %v8139_v60 = vld [vmem:[%s17970_s5 + $0x1830] sm:$0xff]  ;;  %v8157_v5 = vld [vmem:[%s17970_s5 + $0x18c0] sm:$0xff]  ;;  %v10780_v24 = vpack.c.bf16 %v8163_v63, %v8162_v36  ;;  %v6223_v36 = vrot.slane %v16180_v54, 4 }
 0x6ca   : > { %9775 = vmatmul.mubr.msk.f32.vlgmr.msra.gmra.mrb[14].mxu0 %vm2711_vm9, %v5931_v9  ;;  %10792 = vmatprep.subr.bf16.mxu0 %v10791_v2  ;;  %v10756_v19 = vpack.c.bf16 %v8151_v61, %v8150_v45  ;;  %v8197_v2 = vld [vmem:[%s17970_s5 + $0x19f0] sm:$0xff]  ;;  %v10766_v9 = vpack.c.bf16 %v8139_v60, %v8138_v15  ;;  %v10768_v52 = vpack.c.bf16 %v8157_v5, %v8156_v33  ;;  %v8256_v60 = vld [vmem:[%s17970_s5 + $0x1bb8] sm:$0xff]  ;;  %v8241_v5 = vld [vmem:[%s17970_s5 + $0x1b40] sm:$0xff] }
 0x6cb   : > { %v16987_v1 = vadd.f32 %v16787_v0, %v4031_v6  ;;  %10794 = vmatpush3.bf16.msra.mxu0 %v10793_v30  ;;  %6298 = vmatprep.mubr.f32.mxu0 %v6221_v41  ;;  %v8134_v0 = vld [vmem:[%s17970_s5 + $0x1808] sm:$0xff]  ;;  %v10809_v30 = vpack.c.bf16 %v8180_v29, %v8179_v49  ;;  %v8141_v6 = vld [vmem:[%s17970_s5 + $0x1840] sm:$0xff]  ;;  %v6220_v29 = vrot.slane %v16416_v26, 4  ;;  %v8240_v33 = vld [vmem:[%s17970_s5 + $0x1b38] sm:$0xff] }
 0x6cc   : > { %10716 = vmatpush3.bf16.msra.mxu1 %v10715_v37  ;;  %10796 = vmatprep.subr.bf16.mxu0 %v10795_v43  ;;  %v10758_v51 = vpack.c.bf16 %v8135_v35, %v8134_v0  ;;  %v10811_v37 = vpack.c.bf16 %v8198_v62, %v8197_v2  ;;  %v8181_v43 = vld [vmem:[%s17970_s5 + $0x1970] sm:$0xff]  ;;  %v8199_v41 = vld [vmem:[%s17970_s5 + $0x1a00] sm:$0xff]  ;;  %v10770_v45 = vpack.c.bf16 %v8141_v6, %v8140_v50  ;;  %v8202_v0 = vld [vmem:[%s17970_s5 + $0x1a18] sm:$0xff] }
 0x6cd   : > { %10718 = vmatprep.subr.bf16.mxu1 %v10717_v39  ;;  %v8200_v39 = vld [vmem:[%s17970_s5 + $0x1a08] sm:$0xff]  ;;  %v10813_v32 = vpack.c.bf16 %v8182_v40, %v8181_v43  ;;  %v8160_v35 = vld [vmem:[%s17970_s5 + $0x18d8] sm:$0xff]  ;;  %v8257_v2 = vld [vmem:[%s17970_s5 + $0x1bc0] sm:$0xff]  ;;  %v10860_v6 = vpack.c.bf16 %v8241_v5, %v8240_v33 }
 0x6ce   : > { %v10815_v61 = vpack.c.bf16 %v8200_v39, %v8199_v41  ;;  %v8259_v43 = vld [vmem:[%s17970_s5 + $0x1bd0] sm:$0xff]  ;;  %v10858_v40 = vpack.c.bf16 %v8257_v2, %v8256_v60  ;;  %v8219_v50 = vld [vmem:[%s17970_s5 + $0x1aa0] sm:$0xff]  ;;  %v6224_v41 = vrot.slane %v16443_v3, 4  ;;  %v8248_v33 = vld [vmem:[%s17970_s5 + $0x1b78] sm:$0xff] }
 0x6cf   : > { %10798 = vmatpush3.bf16.msra.mxu0 %v10797_v48  ;;  %v8899_v25 = vpop.f32.mrb[22].mxu0  ;;  %v8183_v48 = vld [vmem:[%s17970_s5 + $0x1980] sm:$0xff] }
 0x6d0   : > { %10720 = vmatpush3.bf16.msra.mxu1 %v10719_v12  ;;  %10800 = vmatprep.subr.bf16.mxu0 %v10799_v16  ;;  %v8900_v57 = vpop.f32.mrb[23].mxu0  ;;  %v8184_v12 = vld [vmem:[%s17970_s5 + $0x1988] sm:$0xff]  ;;  %v8223_v63 = vld [vmem:[%s17970_s5 + $0x1ac0] sm:$0xff] }
 0x6d1   : > { %v17022_v53 = vadd.f32 %v8900_v57, %v8899_v25  ;;  %10757 = vmatprep.subr.bf16.mxu1 %v10756_v19  ;;  %v8142_v16 = vld [vmem:[%s17970_s5 + $0x1848] sm:$0xff]  ;;  %v8201_v19 = vld [vmem:[%s17970_s5 + $0x1a10] sm:$0xff]  ;;  %v10817_v20 = vpack.c.bf16 %v8184_v12, %v8183_v48  ;;  %v10776_v57 = vpack.c.bf16 %v8161_v23, %v8160_v35  ;;  %v8203_v48 = vld [vmem:[%s17970_s5 + $0x1a20] sm:$0xff] }
 0x6d2   : > { %v10774_v13 = vpack.c.bf16 %v8143_v28, %v8142_v16  ;;  %v10819_v59 = vpack.c.bf16 %v8202_v0, %v8201_v19  ;;  %v8185_v25 = vld [vmem:[%s17970_s5 + $0x1990] sm:$0xff]  ;;  %v8204_v12 = vld [vmem:[%s17970_s5 + $0x1a28] sm:$0xff]  ;;  %v8260_v16 = vld [vmem:[%s17970_s5 + $0x1bd8] sm:$0xff] }
 0x6d3   : > { %10802 = vmatpush3.bf16.msra.mxu0 %v10801_v46  ;;  %5783 = vmatmul.mubr.f32.vlgmr.msra.gmra.mrb[34].mxu1 %v5636_v27  ;;  %v8186_v46 = vld [vmem:[%s17970_s5 + $0x1998] sm:$0xff]  ;;  %v8221_v28 = vld [vmem:[%s17970_s5 + $0x1ab0] sm:$0xff]  ;;  %v10825_v35 = vpack.c.bf16 %v8204_v12, %v8203_v48  ;;  %v8249_v5 = vld [vmem:[%s17970_s5 + $0x1b80] sm:$0xff] }
 0x6d4   : > { %10759 = vmatpush3.bf16.msra.mxu1 %v10758_v51  ;;  %6075 = vmatprep.mubr.f32.mxu1 %v5930_v17  ;;  %v8144_v51 = vld [vmem:[%s17970_s5 + $0x1858] sm:$0xff]  ;;  %v10821_v27 = vpack.c.bf16 %v8186_v46, %v8185_v25  ;;  %v8146_v17 = vld [vmem:[%s17970_s5 + $0x1868] sm:$0xff]  ;;  %v8269_v48 = vld [vmem:[%s17970_s5 + $0x1c20] sm:$0xff] }
 0x6d5   : > { %10804 = vmatprep.subr.bf16.mxu0 %v10803_v44  ;;  %10761 = vmatprep.subr.bf16.mxu1 %v10760_v11  ;;  %v10778_v44 = vpack.c.bf16 %v8145_v4, %v8144_v51  ;;  %v8235_v11 = vld [vmem:[%s17970_s5 + $0x1b20] sm:$0xff]  ;;  %v10782_v15 = vpack.c.bf16 %v8147_v42, %v8146_v17  ;;  %v8222_v19 = vld [vmem:[%s17970_s5 + $0x1ab8] sm:$0xff]  ;;  %v8262_v51 = vld [vmem:[%s17970_s5 + $0x1be8] sm:$0xff] }
 0x6d6   : > { %v10856_v49 = vpack.c.bf16 %v8236_v14, %v8235_v11  ;;  %v8244_v23 = vld [vmem:[%s17970_s5 + $0x1b58] sm:$0xff]  ;;  %v10827_v46 = vpack.c.bf16 %v8222_v19, %v8221_v28  ;;  %v8263_v4 = vld [vmem:[%s17970_s5 + $0x1bf0] sm:$0xff]  ;;  %v8207_v42 = vld [vmem:[%s17970_s5 + $0x1a40] sm:$0xff] }
 0x6d7   : > { %10806 = vmatpush3.bf16.msra.mxu0 %v10805_v7  ;;  %v8164_v7 = vld [vmem:[%s17970_s5 + $0x18f8] sm:$0xff]  ;;  %v8247_v17 = vld [vmem:[%s17970_s5 + $0x1b70] sm:$0xff] }
 0x6d8   : > { %10763 = vmatpush3.bf16.msra.mxu1 %v10762_v22  ;;  %10808 = vmatprep.subr.bf16.mxu0 %v10807_v55  ;;  %v8165_v22 = vld [vmem:[%s17970_s5 + $0x1900] sm:$0xff]  ;;  %v8229_v12 = vld [vmem:[%s17970_s5 + $0x1af0] sm:$0xff] }
 0x6d9   : > { %10765 = vmatprep.subr.bf16.mxu1 %v10764_v31  ;;  %v10784_v62 = vpack.c.bf16 %v8165_v22, %v8164_v7  ;;  %v8208_v22 = vld [vmem:[%s17970_s5 + $0x1a48] sm:$0xff] }
 0x6da   : > { %v10833_v2 = vpack.c.bf16 %v8208_v22, %v8207_v42  ;;  %v8233_v42 = vld [vmem:[%s17970_s5 + $0x1b10] sm:$0xff] }
 0x6db   : > { %10810 = vmatpush3.bf16.msra.mxu0 %v10809_v30 }
 0x6dc   : > { %10767 = vmatpush3.bf16.msra.mxu1 %v10766_v9  ;;  %10812 = vmatprep.subr.bf16.mxu0 %v10811_v37  ;;  %v8149_v9 = vld [vmem:[%s17970_s5 + $0x1880] sm:$0xff]  ;;  %v8258_v37 = vld [vmem:[%s17970_s5 + $0x1bc8] sm:$0xff] }
 0x6dd   : > { %10769 = vmatprep.subr.bf16.mxu1 %v10768_v52  ;;  %v8220_v52 = vld [vmem:[%s17970_s5 + $0x1aa8] sm:$0xff]  ;;  %v10862_v47 = vpack.c.bf16 %v8259_v43, %v8258_v37  ;;  %v8210_v37 = vld [vmem:[%s17970_s5 + $0x1a58] sm:$0xff] }
 0x6de   : > { %v8266_v43 = vld [vmem:[%s17970_s5 + $0x1c08] sm:$0xff] }
 0x6df   : > { %10814 = vmatpush3.bf16.msra.mxu0 %v10813_v32  ;;  %v8243_v32 = vld [vmem:[%s17970_s5 + $0x1b50] sm:$0xff] }
 0x6e0   : > { %10771 = vmatpush3.bf16.msra.mxu1 %v10770_v45  ;;  %10816 = vmatprep.subr.bf16.mxu0 %v10815_v61  ;;  %v6514_v45 = vrot.slane %v16200_v21, 5  ;;  %v10823_v61 = vpack.c.bf16 %v8220_v52, %v8219_v50  ;;  %v10864_v0 = vpack.c.bf16 %v8243_v32, %v8242_v8  ;;  %v8228_v50 = vld [vmem:[%s17970_s5 + $0x1ae8] sm:$0xff]  ;;  %v10876_v52 = vpack.c.bf16 %v8249_v5, %v8248_v33  ;;  %v8211_v8 = vld [vmem:[%s17970_s5 + $0x1a60] sm:$0xff] }
 0x6e1   : > { %10773 = vmatprep.subr.bf16.mxu1 %v10772_v34  ;;  %v8261_v34 = vld [vmem:[%s17970_s5 + $0x1be0] sm:$0xff]  ;;  %v6513_v5 = vrot.slane %v16416_v26, 5 }
 0x6e2   : > { %v10866_v25 = vpack.c.bf16 %v8261_v34, %v8260_v16  ;;  %v8230_v16 = vld [vmem:[%s17970_s5 + $0x1af8] sm:$0xff]  ;;  %v8289_v33 = vld [vmem:[%s17970_s5 + $0x1cc0] sm:$0xff] }
 0x6e3   : > { %10818 = vmatpush3.bf16.msra.mxu0 %v10817_v20  ;;  %v8245_v20 = vld [vmem:[%s17970_s5 + $0x1b60] sm:$0xff] }
 0x6e4   : > { %10775 = vmatpush3.bf16.msra.mxu1 %v10774_v13  ;;  %10820 = vmatprep.subr.bf16.mxu0 %v10819_v59  ;;  %v8205_v13 = vld [vmem:[%s17970_s5 + $0x1a30] sm:$0xff]  ;;  %v5929_v59 = vrot.slane %v16389_v18, 3 }
 0x6e5   : > { %v8864_v10 = vpop.f32.mrb[22].mxu1  ;;  %10777 = vmatprep.subr.bf16.mxu1 %v10776_v57  ;;  %v8206_v57 = vld [vmem:[%s17970_s5 + $0x1a38] sm:$0xff] }
 0x6e6   : > { %v8865_v38 = vpop.f32.mrb[23].mxu1  ;;  %v10829_v14 = vpack.c.bf16 %v8206_v57, %v8205_v13  ;;  %v8214_v13 = vld [vmem:[%s17970_s5 + $0x1a78] sm:$0xff]  ;;  %v8232_v57 = vld [vmem:[%s17970_s5 + $0x1b08] sm:$0xff] }
 0x6e7   : > { %10822 = vmatpush3.bf16.msra.mxu0 %v10821_v27  ;;  %v8866_v55 = vadd.f32 %v8865_v38, %v8864_v10  ;;  %v8224_v27 = vld [vmem:[%s17970_s5 + $0x1ac8] sm:$0xff]  ;;  %v10870_v10 = vpack.c.bf16 %v8263_v4, %v8262_v51 }
 0x6e8   : > { %10779 = vmatpush3.bf16.msra.mxu1 %v10778_v44  ;;  %10855 = vmatprep.subr.bf16.mxu0 %v18096_v56  ;;  %v10868_v44 = vpack.c.bf16 %v8245_v20, %v8244_v23  ;;  %v10831_v7 = vpack.c.bf16 %v8224_v27, %v8223_v63  ;;  %v8213_v23 = vld [vmem:[%s17970_s5 + $0x1a70] sm:$0xff]  ;;  %v10843_v20 = vpack.c.bf16 %v8230_v16, %v8229_v12  ;;  %v6516_v16 = vrot.slane %v16180_v54, 5 }
 0x6e9   : > { %v4324_v31 = vadd.f32 %v17022_v53, %v8866_v55  ;;  %10781 = vmatprep.subr.bf16.mxu1 %v10780_v24  ;;  %v8148_v53 = vld [vmem:[%s17970_s5 + $0x1878] sm:$0xff]  ;;  %v8246_v24 = vld [vmem:[%s17970_s5 + $0x1b68] sm:$0xff]  ;;  %v10845_v63 = vpack.c.bf16 %v8214_v13, %v8213_v23  ;;  %v8275_v12 = vld [vmem:[%s17970_s5 + $0x1c50] sm:$0xff] }
 0x6ea   : > { %6299 = vmatmul.mubr.f32.vlgmr.msra.gmra.mrb[34].mxu0 %v6220_v29  ;;  %v10786_v39 = vpack.c.bf16 %v8149_v9, %v8148_v53  ;;  %v8264_v55 = vld [vmem:[%s17970_s5 + $0x1bf8] sm:$0xff]  ;;  %v10872_v60 = vpack.c.bf16 %v8247_v17, %v8246_v24  ;;  %v8209_v53 = vld [vmem:[%s17970_s5 + $0x1a50] sm:$0xff]  ;;  %v8215_v24 = vld [vmem:[%s17970_s5 + $0x1a80] sm:$0xff] }
 0x6eb   : > { %v17168_v30 = vadd.f32 %v16987_v1, %v4324_v31  ;;  %10857 = vmatpush3.bf16.msra.mxu0 %v10856_v49  ;;  %9783 = vmatprep.mubr.msk.f32.mxu0 %vm11989_vm10, %v18097_v58  ;;  %v8237_v1 = vld [vmem:[%s17970_s5 + $0x1b30] sm:$0x1]  ;;  %v8265_v49 = vld [vmem:[%s17970_s5 + $0x1c00] sm:$0xff]  ;;  %v8226_v31 = vld [vmem:[%s17970_s5 + $0x1ad8] sm:$0xff] }
 0x6ec   : > { %10783 = vmatpush3.bf16.msra.mxu1 %v10782_v15  ;;  %9781 = vmatprep.subr.mxu0 %v18097_v58  ;;  %v8225_v15 = vld [vmem:[%s17970_s5 + $0x1ad0] sm:$0xff]  ;;  %v8216_v17 = vld [vmem:[%s17970_s5 + $0x1a88] sm:$0xff] }
 0x6ed   : > { %10785 = vmatprep.subr.bf16.mxu1 %v10784_v62  ;;  %v10874_v62 = vpack.c.bf16 %v8265_v49, %v8264_v55  ;;  %v10835_v9 = vpack.c.bf16 %v8226_v31, %v8225_v15  ;;  %v10849_v55 = vpack.c.bf16 %v8216_v17, %v8215_v24  ;;  %v8304_v49 = vld [vmem:[%s17970_s5 + $0x1d38] sm:$0xff]  ;;  %v8305_v15 = vld [vmem:[%s17970_s5 + $0x1d40] sm:$0xff]  ;;  %v8312_v13 = vld [vmem:[%s17970_s5 + $0x1d68] sm:$0xff] }
 0x6ee   : > { %v8331_v17 = vld [vmem:[%s17970_s5 + $0x1e00] sm:$0xff] }
 0x6ef   : > { %9782 = vmatpush3.msk.msra.mxu0 %vm812_vm4, %v8237_v1  ;;  %v8267_v1 = vld [vmem:[%s17970_s5 + $0x1c10] sm:$0xff] }
 0x6f0   : > { %9784 = vmatmul.mubr.msk.f32.vlgmr.msra.gmra.mrb[14].mxu0 %vm2711_vm9, %v6224_v41  ;;  %10859 = vmatprep.subr.bf16.mxu0 %v10858_v40  ;;  %v8227_v40 = vld [vmem:[%s17970_s5 + $0x1ae0] sm:$0xff]  ;;  %v10878_v41 = vpack.c.bf16 %v8267_v1, %v8266_v43  ;;  %v8306_v1 = vld [vmem:[%s17970_s5 + $0x1d48] sm:$0x1] }
 0x6f1   : > { %10861 = vmatpush3.bf16.msra.mxu0 %v10860_v6  ;;  %6591 = vmatprep.mubr.f32.mxu0 %v6514_v45  ;;  %v10837_v6 = vpack.c.bf16 %v8210_v37, %v8209_v53  ;;  %v10839_v32 = vpack.c.bf16 %v8228_v50, %v8227_v40  ;;  %v8212_v45 = vld [vmem:[%s17970_s5 + $0x1a68] sm:$0xff]  ;;  %v8272_v37 = vld [vmem:[%s17970_s5 + $0x1c38] sm:$0xff]  ;;  %v8273_v43 = vld [vmem:[%s17970_s5 + $0x1c40] sm:$0xff] }
 0x6f2   : > { %10787 = vmatpush3.bf16.msra.mxu1 %v10786_v39  ;;  %10863 = vmatprep.subr.bf16.mxu0 %v10862_v47  ;;  %v8250_v39 = vld [vmem:[%s17970_s5 + $0x1b88] sm:$0xff]  ;;  %v8251_v47 = vld [vmem:[%s17970_s5 + $0x1b90] sm:$0xff]  ;;  %v10841_v28 = vpack.c.bf16 %v8212_v45, %v8211_v8  ;;  %v8326_v50 = vld [vmem:[%s17970_s5 + $0x1dd8] sm:$0xff]  ;;  %v6222_v45 = vrot.slane %v16389_v18, 4 }
 0x6f3   : > { %10824 = vmatprep.subr.bf16.mxu1 %v10823_v61  ;;  %v8268_v61 = vld [vmem:[%s17970_s5 + $0x1c18] sm:$0xff]  ;;  %v10880_v34 = vpack.c.bf16 %v8251_v47, %v8250_v39  ;;  %v8325_v40 = vld [vmem:[%s17970_s5 + $0x1dd0] sm:$0xff]  ;;  %v10892_v39 = vpack.c.bf16 %v8273_v43, %v8272_v37  ;;  %v8327_v8 = vld [vmem:[%s17970_s5 + $0x1de0] sm:$0xff] }
 0x6f4   : > { %v10882_v19 = vpack.c.bf16 %v8269_v48, %v8268_v61  ;;  %v8291_v47 = vld [vmem:[%s17970_s5 + $0x1cd0] sm:$0xff]  ;;  %v10925_v61 = vpack.c.bf16 %v8326_v50, %v8325_v40  ;;  %v8274_v48 = vld [vmem:[%s17970_s5 + $0x1c48] sm:$0xff]  ;;  %v8280_v43 = vld [vmem:[%s17970_s5 + $0x1c78] sm:$0xff] }
 0x6f5   : > { %6076 = vmatmul.mubr.f32.vlgmr.msra.gmra.mrb[36].mxu1 %v5929_v59  ;;  %10865 = vmatpush3.bf16.msra.mxu0 %v10864_v0  ;;  %v8252_v0 = vld [vmem:[%s17970_s5 + $0x1b98] sm:$0xff]  ;;  %v8270_v59 = vld [vmem:[%s17970_s5 + $0x1c28] sm:$0xff] }
 0x6f6   : > { %10826 = vmatpush3.bf16.msra.mxu1 %v10825_v35  ;;  %6368 = vmatprep.mubr.f32.mxu1 %v6223_v36  ;;  %v8973_v11 = vpop.f32.mrb[24].mxu0  ;;  %v8253_v35 = vld [vmem:[%s17970_s5 + $0x1ba0] sm:$0xff]  ;;  %v8298_v50 = vld [vmem:[%s17970_s5 + $0x1d08] sm:$0xff] }
 0x6f7   : > { %10867 = vmatprep.subr.bf16.mxu0 %v10866_v25  ;;  %v8974_v38 = vpop.f32.mrb[25].mxu0  ;;  %10828 = vmatprep.subr.bf16.mxu1 %v10827_v46  ;;  %v8271_v25 = vld [vmem:[%s17970_s5 + $0x1c30] sm:$0xff]  ;;  %v8231_v46 = vld [vmem:[%s17970_s5 + $0x1b00] sm:$0xff]  ;;  %v10884_v4 = vpack.c.bf16 %v8253_v35, %v8252_v0  ;;  %v6517_v0 = vrot.slane %v16443_v3, 5 }
 0x6f8   : > { %v17263_v29 = vadd.f32 %v8974_v38, %v8973_v11  ;;  %v10886_v27 = vpack.c.bf16 %v8271_v25, %v8270_v59  ;;  %v8255_v11 = vld [vmem:[%s17970_s5 + $0x1bb0] sm:$0xff]  ;;  %v8234_v38 = vld [vmem:[%s17970_s5 + $0x1b18] sm:$0xff]  ;;  %v6807_v59 = vrot.slane %v16200_v21, 6  ;;  %v10896_v25 = vpack.c.bf16 %v8275_v12, %v8274_v48 }
 0x6f9   : > { %10869 = vmatpush3.bf16.msra.mxu0 %v10868_v44  ;;  %v8254_v44 = vld [vmem:[%s17970_s5 + $0x1ba8] sm:$0xff]  ;;  %v8283_v48 = vld [vmem:[%s17970_s5 + $0x1c90] sm:$0xff] }
 0x6fa   : > { %10830 = vmatpush3.bf16.msra.mxu1 %v10829_v14  ;;  %10871 = vmatprep.subr.bf16.mxu0 %v10870_v10  ;;  %v10847_v10 = vpack.c.bf16 %v8232_v57, %v8231_v46  ;;  %v10888_v22 = vpack.c.bf16 %v8255_v11, %v8254_v44  ;;  %v8329_v46 = vld [vmem:[%s17970_s5 + $0x1df0] sm:$0xff]  ;;  %v8330_v57 = vld [vmem:[%s17970_s5 + $0x1df8] sm:$0xff] }
 0x6fb   : > { %10832 = vmatprep.subr.bf16.mxu1 %v10831_v7  ;;  %v8295_v44 = vld [vmem:[%s17970_s5 + $0x1cf0] sm:$0xff]  ;;  %v10933_v11 = vpack.c.bf16 %v8330_v57, %v8329_v46  ;;  %v8284_v46 = vld [vmem:[%s17970_s5 + $0x1c98] sm:$0xff]  ;;  %v8285_v57 = vld [vmem:[%s17970_s5 + $0x1ca0] sm:$0xff] }
 0x6fd   : > { %10873 = vmatpush3.bf16.msra.mxu0 %v10872_v60  ;;  %v10851_v60 = vpack.c.bf16 %v8234_v38, %v8233_v42  ;;  %v8332_v42 = vld [vmem:[%s17970_s5 + $0x1e08] sm:$0xff] }
 0x6fe   : > { %10834 = vmatpush3.bf16.msra.mxu1 %v10833_v2  ;;  %10875 = vmatprep.subr.bf16.mxu0 %v10874_v62  ;;  %v8218_v2 = vld [vmem:[%s17970_s5 + $0x1a98] sm:$0xff] }
 0x6ff   : > { %10836 = vmatprep.subr.bf16.mxu1 %v10835_v9  ;;  %v8288_v62 = vld [vmem:[%s17970_s5 + $0x1cb8] sm:$0xff] }
 0x700   : > { %v10890_v9 = vpack.c.bf16 %v8289_v33, %v8288_v62  ;;  %v8315_v62 = vld [vmem:[%s17970_s5 + $0x1d80] sm:$0xff]  ;;  %v8316_v33 = vld [vmem:[%s17970_s5 + $0x1d88] sm:$0xff] }
 0x701   : > { %10877 = vmatpush3.bf16.msra.mxu0 %v10876_v52  ;;  %v8309_v52 = vld [vmem:[%s17970_s5 + $0x1d50] sm:$0xff]  ;;  %v10939_v40 = vpack.c.bf16 %v8316_v33, %v8315_v62 }
 0x702   : > { %10838 = vmatpush3.bf16.msra.mxu1 %v10837_v6  ;;  %10879 = vmatprep.subr.bf16.mxu0 %v10878_v41  ;;  %v8310_v6 = vld [vmem:[%s17970_s5 + $0x1d58] sm:$0xff]  ;;  %v8290_v41 = vld [vmem:[%s17970_s5 + $0x1cc8] sm:$0xff]  ;;  %v8341_v33 = vld [vmem:[%s17970_s5 + $0x1e50] sm:$0xff] }
 0x703   : > { %10840 = vmatprep.subr.bf16.mxu1 %v10839_v32  ;;  %v8328_v32 = vld [vmem:[%s17970_s5 + $0x1de8] sm:$0xff]  ;;  %v10894_v35 = vpack.c.bf16 %v8291_v47, %v8290_v41  ;;  %v8317_v41 = vld [vmem:[%s17970_s5 + $0x1d90] sm:$0xff] }
 0x704   : > { %v10929_v23 = vpack.c.bf16 %v8328_v32, %v8327_v8  ;;  %v8335_v8 = vld [vmem:[%s17970_s5 + $0x1e20] sm:$0xff]  ;;  %v8336_v32 = vld [vmem:[%s17970_s5 + $0x1e28] sm:$0xff] }
 0x705   : > { %10881 = vmatpush3.bf16.msra.mxu0 %v10880_v34  ;;  %v8938_v51 = vpop.f32.mrb[24].mxu1  ;;  %v10927_v34 = vpack.c.bf16 %v8310_v6, %v8309_v52  ;;  %v8299_v52 = vld [vmem:[%s17970_s5 + $0x1d10] sm:$0xff] }
 0x706   : > { %10842 = vmatpush3.bf16.msra.mxu1 %v10841_v28  ;;  %10883 = vmatprep.subr.bf16.mxu0 %v10882_v19  ;;  %v8939_v36 = vpop.f32.mrb[25].mxu1  ;;  %v8292_v28 = vld [vmem:[%s17970_s5 + $0x1cd8] sm:$0xff]  ;;  %v8293_v19 = vld [vmem:[%s17970_s5 + $0x1ce0] sm:$0xff] }
 0x707   : > { %v8940_v14 = vadd.f32 %v8939_v36, %v8938_v51  ;;  %10844 = vmatprep.subr.bf16.mxu1 %v10843_v20  ;;  %v8311_v20 = vld [vmem:[%s17970_s5 + $0x1d60] sm:$0xff]  ;;  %v10898_v51 = vpack.c.bf16 %v8293_v19, %v8292_v28  ;;  %v10945_v28 = vpack.c.bf16 %v8336_v32, %v8335_v8  ;;  %v8362_v8 = vld [vmem:[%s17970_s5 + $0x1ef8] sm:$0xff]  ;;  %v6806_v32 = vrot.slane %v16416_v26, 6 }
 0x708   : > { %v8277_v36 = vld [vmem:[%s17970_s5 + $0x1c60] sm:$0xff] }
 0x709   : > { %v4617_v7 = vadd.f32 %v17263_v29, %v8940_v14  ;;  %10885 = vmatpush3.bf16.msra.mxu0 %v10884_v4  ;;  %v8217_v29 = vld [vmem:[%s17970_s5 + $0x1a90] sm:$0xff]  ;;  %v8276_v4 = vld [vmem:[%s17970_s5 + $0x1c58] sm:$0xff]  ;;  %v8319_v19 = vld [vmem:[%s17970_s5 + $0x1da0] sm:$0xff] }
 0x70a   : > { %10846 = vmatpush3.bf16.msra.mxu1 %v10845_v63  ;;  %10887 = vmatprep.subr.bf16.mxu0 %v10886_v27  ;;  %v10853_v53 = vpack.c.bf16 %v8218_v2, %v8217_v29  ;;  %v10931_v63 = vpack.c.bf16 %v8312_v13, %v8311_v20  ;;  %v8294_v27 = vld [vmem:[%s17970_s5 + $0x1ce8] sm:$0xff]  ;;  %v8313_v14 = vld [vmem:[%s17970_s5 + $0x1d70] sm:$0xff]  ;;  %v10900_v24 = vpack.c.bf16 %v8277_v36, %v8276_v4  ;;  %v8338_v13 = vld [vmem:[%s17970_s5 + $0x1e38] sm:$0xff] }
 0x70b   : > { %v17369_v31 = vadd.f32 %v17168_v30, %v4617_v7  ;;  %10848 = vmatprep.subr.bf16.mxu1 %v10847_v10  ;;  %v10923_v30 = vpack.c.bf16 %v8305_v15, %v8304_v49  ;;  %v8314_v10 = vld [vmem:[%s17970_s5 + $0x1d78] sm:$0xff]  ;;  %v10902_v38 = vpack.c.bf16 %v8295_v44, %v8294_v27  ;;  %v8278_v7 = vld [vmem:[%s17970_s5 + $0x1c68] sm:$0xff]  ;;  %v10937_v2 = vpack.c.bf16 %v8332_v42, %v8331_v17  ;;  %v8337_v20 = vld [vmem:[%s17970_s5 + $0x1e30] sm:$0xff] }
 0x70c   : > { %v10935_v49 = vpack.c.bf16 %v8314_v10, %v8313_v14  ;;  %v8296_v15 = vld [vmem:[%s17970_s5 + $0x1cf8] sm:$0xff]  ;;  %v8302_v36 = vld [vmem:[%s17970_s5 + $0x1d28] sm:$0xff]  ;;  %v10949_v27 = vpack.c.bf16 %v8338_v13, %v8337_v20  ;;  %v8321_v44 = vld [vmem:[%s17970_s5 + $0x1db0] sm:$0xff]  ;;  %v10916_v10 = vpack.c.bf16 %v8285_v57, %v8284_v46  ;;  %v6810_v46 = vrot.slane %v16443_v3, 6 }
 0x70d   : > { %10889 = vmatpush3.bf16.msra.mxu0 %v10888_v22  ;;  %v8279_v22 = vld [vmem:[%s17970_s5 + $0x1c70] sm:$0xff]  ;;  %v8340_v17 = vld [vmem:[%s17970_s5 + $0x1e48] sm:$0xff]  ;;  %v8363_v13 = vld [vmem:[%s17970_s5 + $0x1f00] sm:$0xff] }
 0x70e   : > { %10850 = vmatpush3.bf16.msra.mxu1 %v10849_v55  ;;  %10922 = vmatprep.subr.bf16.mxu0 %v18096_v56 }
 0x70f   : > { %10852 = vmatprep.subr.bf16.mxu1 %v10851_v60  ;;  %v8297_v60 = vld [vmem:[%s17970_s5 + $0x1d00] sm:$0xff] }
 0x710   : > { %6592 = vmatmul.mubr.f32.vlgmr.msra.gmra.mrb[36].mxu0 %v6513_v5  ;;  %v10904_v5 = vpack.c.bf16 %v8279_v22, %v8278_v7  ;;  %v10906_v37 = vpack.c.bf16 %v8297_v60, %v8296_v15  ;;  %v8287_v7 = vld [vmem:[%s17970_s5 + $0x1cb0] sm:$0xff]  ;;  %v8358_v15 = vld [vmem:[%s17970_s5 + $0x1ed8] sm:$0xff] }
 0x711   : > { %10924 = vmatpush3.bf16.msra.mxu0 %v10923_v30  ;;  %9792 = vmatprep.mubr.msk.f32.mxu0 %vm11989_vm10, %v18097_v58 }
 0x712   : > { %10854 = vmatpush3.bf16.msra.mxu1 %v10853_v53  ;;  %9790 = vmatprep.subr.mxu0 %v18097_v58  ;;  %v8333_v53 = vld [vmem:[%s17970_s5 + $0x1e10] sm:$0xff] }
 0x713   : > { %10891 = vmatprep.subr.bf16.mxu1 %v10890_v9  ;;  %v8334_v9 = vld [vmem:[%s17970_s5 + $0x1e18] sm:$0xff] }
 0x714   : > { %v10941_v6 = vpack.c.bf16 %v8334_v9, %v8333_v53  ;;  %v8359_v53 = vld [vmem:[%s17970_s5 + $0x1ee0] sm:$0xff]  ;;  %v8360_v9 = vld [vmem:[%s17970_s5 + $0x1ee8] sm:$0xff] }
 0x715   : > { %6369 = vmatmul.mubr.f32.vlgmr.msra.gmra.mrb[38].mxu1 %v6222_v45  ;;  %9791 = vmatpush3.msk.msra.mxu0 %vm812_vm4, %v8306_v1  ;;  %v8281_v1 = vld [vmem:[%s17970_s5 + $0x1c80] sm:$0xff]  ;;  %v10910_v45 = vpack.c.bf16 %v8299_v52, %v8298_v50  ;;  %v10961_v50 = vpack.c.bf16 %v8360_v9, %v8359_v53  ;;  %v8416_v9 = vld [vmem:[%s17970_s5 + $0x2098] sm:$0xff] }
 0x716   : > { %10893 = vmatpush3.bf16.msra.mxu1 %v10892_v39  ;;  %6661 = vmatprep.mubr.f32.mxu1 %v6516_v16  ;;  %v8318_v39 = vld [vmem:[%s17970_s5 + $0x1d98] sm:$0xff]  ;;  %v10908_v47 = vpack.c.bf16 %v8281_v1, %v8280_v43  ;;  %v8343_v52 = vld [vmem:[%s17970_s5 + $0x1e60] sm:$0xff] }
 0x717   : > { %9793 = vmatmul.mubr.msk.f32.vlgmr.msra.gmra.mrb[14].mxu0 %vm2711_vm9, %v6517_v0  ;;  %10926 = vmatprep.subr.bf16.mxu0 %v10925_v61  ;;  %v8282_v61 = vld [vmem:[%s17970_s5 + $0x1c88] sm:$0xff]  ;;  %v10943_v12 = vpack.c.bf16 %v8318_v39, %v8317_v41  ;;  %v8300_v16 = vld [vmem:[%s17970_s5 + $0x1d18] sm:$0xff]  ;;  %v6809_v41 = vrot.slane %v16180_v54, 6 }
 0x718   : > { %10928 = vmatpush3.bf16.msra.mxu0 %v10927_v34  ;;  %6884 = vmatprep.mubr.f32.mxu0 %v6807_v59  ;;  %v8301_v34 = vld [vmem:[%s17970_s5 + $0x1d20] sm:$0xff]  ;;  %v8320_v0 = vld [vmem:[%s17970_s5 + $0x1da8] sm:$0xff]  ;;  %v8374_v43 = vld [vmem:[%s17970_s5 + $0x1f58] sm:$0xff] }
 0x719   : > { %10895 = vmatprep.subr.bf16.mxu1 %v10894_v35  ;;  %10930 = vmatprep.subr.bf16.mxu0 %v10929_v23  ;;  %v10912_v23 = vpack.c.bf16 %v8283_v48, %v8282_v61  ;;  %v10947_v4 = vpack.c.bf16 %v8320_v0, %v8319_v19  ;;  %v8426_v61 = vld [vmem:[%s17970_s5 + $0x20e8] sm:$0xff]  ;;  %v8427_v48 = vld [vmem:[%s17970_s5 + $0x20f0] sm:$0xff]  ;;  %v8346_v19 = vld [vmem:[%s17970_s5 + $0x1e78] sm:$0xff] }
 0x71a   : > { %10897 = vmatpush3.bf16.msra.mxu1 %v10896_v25  ;;  %v10914_v25 = vpack.c.bf16 %v8301_v34, %v8300_v16  ;;  %v8410_v16 = vld [vmem:[%s17970_s5 + $0x2068] sm:$0xff]  ;;  %v8411_v34 = vld [vmem:[%s17970_s5 + $0x2070] sm:$0xff]  ;;  %v8428_v0 = vld [vmem:[%s17970_s5 + $0x20f8] sm:$0xff]  ;;  %v11024_v20 = vpack.c.bf16 %v8427_v48, %v8426_v61 }
 0x71b   : > { %10899 = vmatprep.subr.bf16.mxu1 %v10898_v51 }
 0x71c   : > { %10932 = vmatpush3.bf16.msra.mxu0 %v10931_v63  ;;  %v9047_v55 = vpop.f32.mrb[26].mxu0  ;;  %v8303_v63 = vld [vmem:[%s17970_s5 + $0x1d30] sm:$0xff] }
 0x71d   : > { %10934 = vmatprep.subr.bf16.mxu0 %v10933_v11  ;;  %v9048_v29 = vpop.f32.mrb[27].mxu0  ;;  %v8322_v11 = vld [vmem:[%s17970_s5 + $0x1db8] sm:$0xff]  ;;  %v10918_v42 = vpack.c.bf16 %v8303_v63, %v8302_v36  ;;  %v8413_v36 = vld [vmem:[%s17970_s5 + $0x2080] sm:$0xff] }
 0x71e   : > { %10901 = vmatpush3.bf16.msra.mxu1 %v10900_v24  ;;  %v9049_v30 = vadd.f32 %v9048_v29, %v9047_v55  ;;  %v8339_v24 = vld [vmem:[%s17970_s5 + $0x1e40] sm:$0xff]  ;;  %v10951_v55 = vpack.c.bf16 %v8322_v11, %v8321_v44  ;;  %v8348_v11 = vld [vmem:[%s17970_s5 + $0x1e88] sm:$0xff] }
 0x71f   : > { %10903 = vmatprep.subr.bf16.mxu1 %v10902_v38  ;;  %v8286_v38 = vld [vmem:[%s17970_s5 + $0x1ca8] sm:$0xff]  ;;  %v10953_v60 = vpack.c.bf16 %v8340_v17, %v8339_v24  ;;  %v8323_v29 = vld [vmem:[%s17970_s5 + $0x1dc0] sm:$0xff]  ;;  %v8366_v24 = vld [vmem:[%s17970_s5 + $0x1f18] sm:$0xff] }
 0x720   : > { %10936 = vmatpush3.bf16.msra.mxu0 %v10935_v49  ;;  %v8357_v49 = vld [vmem:[%s17970_s5 + $0x1ed0] sm:$0xff]  ;;  %v8347_v63 = vld [vmem:[%s17970_s5 + $0x1e80] sm:$0xff] }
 0x721   : > { %10938 = vmatprep.subr.bf16.mxu0 %v10937_v2  ;;  %v10920_v2 = vpack.c.bf16 %v8287_v7, %v8286_v38  ;;  %v10957_v62 = vpack.c.bf16 %v8358_v15, %v8357_v49  ;;  %v8414_v7 = vld [vmem:[%s17970_s5 + $0x2088] sm:$0xff]  ;;  %v8349_v49 = vld [vmem:[%s17970_s5 + $0x1e90] sm:$0xff] }
 0x722   : > { %10905 = vmatpush3.bf16.msra.mxu1 %v10904_v5 }
 0x723   : > { %10907 = vmatprep.subr.bf16.mxu1 %v10906_v37  ;;  %v8373_v37 = vld [vmem:[%s17970_s5 + $0x1f50] sm:$0xff] }
 0x724   : > { %10940 = vmatpush3.bf16.msra.mxu0 %v10939_v40  ;;  %v6515_v40 = vrot.slane %v16389_v18, 5  ;;  %v10990_v39 = vpack.c.bf16 %v8374_v43, %v8373_v37  ;;  %v8417_v37 = vld [vmem:[%s17970_s5 + $0x20a0] sm:$0xff] }
 0x725   : > { %10942 = vmatprep.subr.bf16.mxu0 %v10941_v6  ;;  %v8344_v6 = vld [vmem:[%s17970_s5 + $0x1e68] sm:$0xff]  ;;  %v8351_v43 = vld [vmem:[%s17970_s5 + $0x1ea0] sm:$0xff] }
 0x726   : > { %10909 = vmatpush3.bf16.msra.mxu1 %v10908_v47  ;;  %v9012_v35 = vpop.f32.mrb[26].mxu1  ;;  %v8361_v47 = vld [vmem:[%s17970_s5 + $0x1ef0] sm:$0xff] }
 0x727   : > { %v9013_v59 = vpop.f32.mrb[27].mxu1  ;;  %10911 = vmatprep.subr.bf16.mxu1 %v10910_v45  ;;  %v10963_v45 = vpack.c.bf16 %v8344_v6, %v8343_v52  ;;  %v8434_v52 = vld [vmem:[%s17970_s5 + $0x2128] sm:$0xff]  ;;  %v8435_v6 = vld [vmem:[%s17970_s5 + $0x2130] sm:$0xff] }
 0x728   : > { %10944 = vmatpush3.bf16.msra.mxu0 %v10943_v12  ;;  %v9014_v51 = vadd.f32 %v9013_v59, %v9012_v35  ;;  %v10965_v12 = vpack.c.bf16 %v8362_v8, %v8361_v47  ;;  %v8429_v35 = vld [vmem:[%s17970_s5 + $0x2100] sm:$0xff]  ;;  %v8364_v59 = vld [vmem:[%s17970_s5 + $0x1f08] sm:$0xff]  ;;  %v8370_v47 = vld [vmem:[%s17970_s5 + $0x1f38] sm:$0xff]  ;;  %v11040_v48 = vpack.c.bf16 %v8435_v6, %v8434_v52 }
 0x729   : > { %10946 = vmatprep.subr.bf16.mxu0 %v10945_v28  ;;  %v8345_v28 = vld [vmem:[%s17970_s5 + $0x1e70] sm:$0xff]  ;;  %v10969_v44 = vpack.c.bf16 %v8364_v59, %v8363_v13  ;;  %v8372_v13 = vld [vmem:[%s17970_s5 + $0x1f48] sm:$0xff] }
 0x72a   : > { %v4910_v14 = vadd.f32 %v9049_v30, %v9014_v51  ;;  %10913 = vmatpush3.bf16.msra.mxu1 %v10912_v23  ;;  %v8342_v30 = vld [vmem:[%s17970_s5 + $0x1e58] sm:$0xff]  ;;  %v8375_v23 = vld [vmem:[%s17970_s5 + $0x1f60] sm:$0x1]  ;;  %v10967_v57 = vpack.c.bf16 %v8346_v19, %v8345_v28  ;;  %v11028_v51 = vpack.c.bf16 %v8429_v35, %v8428_v0 }
 0x72b   : > { %10915 = vmatprep.subr.bf16.mxu1 %v10914_v25  ;;  %v10959_v1 = vpack.c.bf16 %v8342_v30, %v8341_v33  ;;  %v11026_v25 = vpack.c.bf16 %v8411_v34, %v8410_v16  ;;  %v8419_v16 = vld [vmem:[%s17970_s5 + $0x20b0] sm:$0xff]  ;;  %v8354_v0 = vld [vmem:[%s17970_s5 + $0x1eb8] sm:$0xff] }
 0x72c   : > { %v17578_v22 = vadd.f32 %v17369_v31, %v4910_v14  ;;  %10948 = vmatpush3.bf16.msra.mxu0 %v10947_v4  ;;  %v8324_v31 = vld [vmem:[%s17970_s5 + $0x1dc8] sm:$0xff]  ;;  %v8412_v4 = vld [vmem:[%s17970_s5 + $0x2078] sm:$0xff]  ;;  %v8353_v34 = vld [vmem:[%s17970_s5 + $0x1eb0] sm:$0xff] }
 0x72d   : > { %10950 = vmatprep.subr.bf16.mxu0 %v10949_v27  ;;  %v10955_v5 = vpack.c.bf16 %v8324_v31, %v8323_v29  ;;  %v7102_v27 = vrot.slane %v16180_v54, 7  ;;  %v8430_v14 = vld [vmem:[%s17970_s5 + $0x2108] sm:$0xff]  ;;  %v8365_v54 = vld [vmem:[%s17970_s5 + $0x1f10] sm:$0xff]  ;;  %v11030_v17 = vpack.c.bf16 %v8413_v36, %v8412_v4  ;;  %v8432_v29 = vld [vmem:[%s17970_s5 + $0x2118] sm:$0xff] }
 0x72e   : > { %10917 = vmatpush3.bf16.msra.mxu1 %v10916_v10  ;;  %v8431_v10 = vld [vmem:[%s17970_s5 + $0x2110] sm:$0xff]  ;;  %v10973_v15 = vpack.c.bf16 %v8366_v24, %v8365_v54  ;;  %v8433_v31 = vld [vmem:[%s17970_s5 + $0x2120] sm:$0xff]  ;;  %v8436_v35 = vld [vmem:[%s17970_s5 + $0x2138] sm:$0xff] }
 0x72f   : > { %10919 = vmatprep.subr.bf16.mxu1 %v10918_v42  ;;  %v10971_v42 = vpack.c.bf16 %v8348_v11, %v8347_v63  ;;  %v11032_v38 = vpack.c.bf16 %v8431_v10, %v8430_v14  ;;  %v11036_v53 = vpack.c.bf16 %v8433_v31, %v8432_v29  ;;  %v8421_v4 = vld [vmem:[%s17970_s5 + $0x20c0] sm:$0xff]  ;;  %v8438_v11 = vld [vmem:[%s17970_s5 + $0x2148] sm:$0xff]  ;;  %v8439_v14 = vld [vmem:[%s17970_s5 + $0x2150] sm:$0xff] }
 0x730   : > { %10952 = vmatpush3.bf16.msra.mxu0 %v10951_v55  ;;  %v8415_v55 = vld [vmem:[%s17970_s5 + $0x2090] sm:$0xff]  ;;  %v8355_v36 = vld [vmem:[%s17970_s5 + $0x1ec0] sm:$0xff]  ;;  %v8394_v10 = vld [vmem:[%s17970_s5 + $0x1fe8] sm:$0xff] }
 0x731   : > { %10954 = vmatprep.subr.bf16.mxu0 %v10953_v60  ;;  %v8350_v60 = vld [vmem:[%s17970_s5 + $0x1e98] sm:$0xff]  ;;  %v11034_v33 = vpack.c.bf16 %v8415_v55, %v8414_v7  ;;  %v8378_v55 = vld [vmem:[%s17970_s5 + $0x1f68] sm:$0xff]  ;;  %v8397_v31 = vld [vmem:[%s17970_s5 + $0x2000] sm:$0xff] }
 0x732   : > { %10921 = vmatpush3.bf16.msra.mxu1 %v10920_v2  ;;  %v8367_v2 = vld [vmem:[%s17970_s5 + $0x1f20] sm:$0xff]  ;;  %v8396_v29 = vld [vmem:[%s17970_s5 + $0x1ff8] sm:$0xff] }
 0x733   : > { %10958 = vmatprep.subr.bf16.mxu1 %v10957_v62  ;;  %v8368_v62 = vld [vmem:[%s17970_s5 + $0x1f28] sm:$0xff] }
 0x734   : > { %10956 = vmatpush3.bf16.msra.mxu0 %v10955_v5  ;;  %v10975_v5 = vpack.c.bf16 %v8350_v60, %v8349_v49  ;;  %v8379_v49 = vld [vmem:[%s17970_s5 + $0x1f70] sm:$0xff]  ;;  %v8441_v60 = vld [vmem:[%s17970_s5 + $0x2160] sm:$0xff] }
 0x735   : > { %6662 = vmatmul.mubr.f32.vlgmr.msra.gmra.mrb[40].mxu1 %v6515_v40  ;;  %10989 = vmatprep.subr.bf16.mxu0 %v18096_v56  ;;  %v10977_v40 = vpack.c.bf16 %v8368_v62, %v8367_v2  ;;  %v10994_v62 = vpack.c.bf16 %v8379_v49, %v8378_v55  ;;  %v8392_v49 = vld [vmem:[%s17970_s5 + $0x1fd8] sm:$0xff] }
 0x736   : > { %10960 = vmatpush3.bf16.msra.mxu1 %v10959_v1  ;;  %6954 = vmatprep.mubr.f32.mxu1 %v6809_v41 }
 0x737   : > { %6885 = vmatmul.mubr.f32.vlgmr.msra.gmra.mrb[38].mxu0 %v6806_v32  ;;  %10962 = vmatprep.subr.bf16.mxu1 %v10961_v50  ;;  %v8352_v50 = vld [vmem:[%s17970_s5 + $0x1ea8] sm:$0xff]  ;;  %v11038_v32 = vpack.c.bf16 %v8417_v37, %v8416_v9  ;;  %v10996_v9 = vpack.c.bf16 %v8397_v31, %v8396_v29  ;;  %v8380_v37 = vld [vmem:[%s17970_s5 + $0x1f78] sm:$0xff] }
 0x738   : > { %10991 = vmatpush3.bf16.msra.mxu0 %v10990_v39  ;;  %9801 = vmatprep.mubr.msk.f32.mxu0 %vm11989_vm10, %v18097_v58  ;;  %v8369_v39 = vld [vmem:[%s17970_s5 + $0x1f30] sm:$0xff]  ;;  %v10979_v61 = vpack.c.bf16 %v8352_v50, %v8351_v43  ;;  %v8381_v43 = vld [vmem:[%s17970_s5 + $0x1f80] sm:$0xff] }
 0x739   : > { %9799 = vmatprep.subr.mxu0 %v18097_v58  ;;  %v10981_v19 = vpack.c.bf16 %v8370_v47, %v8369_v39  ;;  %v8399_v50 = vld [vmem:[%s17970_s5 + $0x2010] sm:$0xff]  ;;  %v10998_v6 = vpack.c.bf16 %v8381_v43, %v8380_v37  ;;  %v8382_v47 = vld [vmem:[%s17970_s5 + $0x1f88] sm:$0xff] }
 0x73a   : > { %10964 = vmatpush3.bf16.msra.mxu1 %v10963_v45 }
 0x73b   : > { %10966 = vmatprep.subr.bf16.mxu1 %v10965_v12  ;;  %v8418_v12 = vld [vmem:[%s17970_s5 + $0x20a8] sm:$0xff] }
 0x73c   : > { %9800 = vmatpush3.msk.msra.mxu0 %vm812_vm4, %v8375_v23  ;;  %v8437_v23 = vld [vmem:[%s17970_s5 + $0x2140] sm:$0xff] }
 0x73d   : > { %9802 = vmatmul.mubr.msk.f32.vlgmr.msra.gmra.mrb[14].mxu0 %vm2711_vm9, %v6810_v46  ;;  %11025 = vmatprep.subr.bf16.mxu0 %v11024_v20  ;;  %v8371_v20 = vld [vmem:[%s17970_s5 + $0x1f40] sm:$0xff]  ;;  %v10983_v46 = vpack.c.bf16 %v8354_v0, %v8353_v34  ;;  %v8384_v34 = vld [vmem:[%s17970_s5 + $0x1f98] sm:$0xff] }
 0x73e   : > { %11027 = vmatpush3.bf16.msra.mxu0 %v11026_v25  ;;  %7247 = vmatprep.mubr.f32.mxu0 %v7102_v27  ;;  %v11042_v25 = vpack.c.bf16 %v8419_v16, %v8418_v12  ;;  %v10985_v27 = vpack.c.bf16 %v8372_v13, %v8371_v20  ;;  %v8387_v20 = vld [vmem:[%s17970_s5 + $0x1fb0] sm:$0xff]  ;;  %v7103_v13 = vrot.slane %v16443_v3, 7  ;;  %v8388_v3 = vld [vmem:[%s17970_s5 + $0x1fb8] sm:$0xff] }
 0x73f   : > { %10968 = vmatpush3.bf16.msra.mxu1 %v10967_v57  ;;  %11029 = vmatprep.subr.bf16.mxu0 %v11028_v51  ;;  %v11044_v57 = vpack.c.bf16 %v8437_v23, %v8436_v35  ;;  %v8420_v51 = vld [vmem:[%s17970_s5 + $0x20b8] sm:$0xff]  ;;  %v8386_v23 = vld [vmem:[%s17970_s5 + $0x1fa8] sm:$0xff] }
 0x740   : > { %10970 = vmatprep.subr.bf16.mxu1 %v10969_v44  ;;  %v8356_v44 = vld [vmem:[%s17970_s5 + $0x1ec8] sm:$0xff]  ;;  %v11046_v54 = vpack.c.bf16 %v8421_v4, %v8420_v51  ;;  %v8407_v4 = vld [vmem:[%s17970_s5 + $0x2050] sm:$0xff] }
 0x741   : > { %v10987_v24 = vpack.c.bf16 %v8356_v44, %v8355_v36  ;;  %v8406_v51 = vld [vmem:[%s17970_s5 + $0x2048] sm:$0xff] }
 0x742   : > { %11031 = vmatpush3.bf16.msra.mxu0 %v11030_v17  ;;  %v11048_v17 = vpack.c.bf16 %v8439_v14, %v8438_v11  ;;  %v11016_v14 = vpack.c.bf16 %v8407_v4, %v8406_v51 }
 0x743   : > { %10972 = vmatpush3.bf16.msra.mxu1 %v10971_v42  ;;  %v9121_v30 = vpop.f32.mrb[28].mxu0  ;;  %11033 = vmatprep.subr.bf16.mxu0 %v11032_v38  ;;  %v8422_v42 = vld [vmem:[%s17970_s5 + $0x20c8] sm:$0xff]  ;;  %v8423_v38 = vld [vmem:[%s17970_s5 + $0x20d0] sm:$0xff] }
 0x744   : > { %v9122_v1 = vpop.f32.mrb[29].mxu0  ;;  %10974 = vmatprep.subr.bf16.mxu1 %v10973_v15  ;;  %v8440_v15 = vld [vmem:[%s17970_s5 + $0x2158] sm:$0xff]  ;;  %v11050_v2 = vpack.c.bf16 %v8423_v38, %v8422_v42 }
 0x745   : > { %v9123_v41 = vadd.f32 %v9122_v1, %v9121_v30  ;;  %v8425_v30 = vld [vmem:[%s17970_s5 + $0x20e0] sm:$0xff]  ;;  %v7100_v1 = vrot.slane %v16200_v21, 7  ;;  %v8443_v21 = vld [vmem:[%s17970_s5 + $0x2170] sm:$0xff] }
 0x746   : > { %11035 = vmatpush3.bf16.msra.mxu0 %v11034_v33  ;;  %v9086_v8 = vpop.f32.mrb[28].mxu1  ;;  %v8424_v33 = vld [vmem:[%s17970_s5 + $0x20d8] sm:$0xff] }
 0x747   : > { %10976 = vmatpush3.bf16.msra.mxu1 %v10975_v5  ;;  %11037 = vmatprep.subr.bf16.mxu0 %v11036_v53  ;;  %v9087_v45 = vpop.f32.mrb[29].mxu1  ;;  %v6808_v5 = vrot.slane %v16389_v18, 6  ;;  %v11052_v53 = vpack.c.bf16 %v8441_v60, %v8440_v15  ;;  %v11054_v52 = vpack.c.bf16 %v8425_v30, %v8424_v33  ;;  %v8393_v15 = vld [vmem:[%s17970_s5 + $0x1fe0] sm:$0xff] }
 0x748   : > { %v9088_v28 = vadd.f32 %v9087_v45, %v9086_v8  ;;  %10978 = vmatprep.subr.bf16.mxu1 %v10977_v40  ;;  %v8398_v40 = vld [vmem:[%s17970_s5 + $0x2008] sm:$0xff]  ;;  %v8383_v8 = vld [vmem:[%s17970_s5 + $0x1f90] sm:$0xff]  ;;  %v8401_v45 = vld [vmem:[%s17970_s5 + $0x2020] sm:$0xff]  ;;  %v11022_v31 = vpack.c.bf16 %v8393_v15, %v8392_v49 }
 0x749   : > { %v11000_v39 = vpack.c.bf16 %v8399_v50, %v8398_v40  ;;  %v11002_v12 = vpack.c.bf16 %v8383_v8, %v8382_v47 }
 0x74a   : > { %v5195_v59 = vadd.f32 %v9123_v41, %v9088_v28  ;;  %11039 = vmatpush3.bf16.msra.mxu0 %v11038_v32  ;;  %v8442_v41 = vld [vmem:[%s17970_s5 + $0x2168] sm:$0xff]  ;;  %v8400_v32 = vld [vmem:[%s17970_s5 + $0x2018] sm:$0xff]  ;;  %v8385_v28 = vld [vmem:[%s17970_s5 + $0x1fa0] sm:$0xff] }
 0x74b   : > { %10980 = vmatpush3.bf16.msra.mxu1 %v10979_v61  ;;  %11041 = vmatprep.subr.bf16.mxu0 %v11040_v48  ;;  %v11057_v61 = vpack.c.bf16 %v8443_v21, %v8442_v41  ;;  %v7101_v48 = vrot.slane %v16389_v18, 7  ;;  %v11004_v16 = vpack.c.bf16 %v8401_v45, %v8400_v32  ;;  %v8444_v18 = vld [vmem:[%s17970_s5 + $0x2178] sm:$0x1]  ;;  %v11006_v0 = vpack.c.bf16 %v8385_v28, %v8384_v34 }
 0x74c   : > { %v17772_v63 = vadd.f32 %v17578_v22, %v5195_v59  ;;  %10982 = vmatprep.subr.bf16.mxu1 %v10981_v19  ;;  %v8395_v22 = vld [vmem:[%s17970_s5 + $0x1ff0] sm:$0xff]  ;;  %v8402_v19 = vld [vmem:[%s17970_s5 + $0x2028] sm:$0xff]  ;;  %v8405_v59 = vld [vmem:[%s17970_s5 + $0x2040] sm:$0xff] }
 0x74d   : > { %v10992_v7 = vpack.c.bf16 %v8395_v22, %v8394_v10  ;;  %v8390_v10 = vld [vmem:[%s17970_s5 + $0x1fc8] sm:$0xff]  ;;  %v8391_v22 = vld [vmem:[%s17970_s5 + $0x1fd0] sm:$0xff] }
 0x74e   : > { %11043 = vmatpush3.bf16.msra.mxu0 %v11042_v25  ;;  %v11010_v25 = vpack.c.bf16 %v8387_v20, %v8386_v23 }
 0x74f   : > { %10984 = vmatpush3.bf16.msra.mxu1 %v10983_v46  ;;  %11045 = vmatprep.subr.bf16.mxu0 %v11044_v57  ;;  %v8389_v57 = vld [vmem:[%s17970_s5 + $0x1fc0] sm:$0xff] }
 0x750   : > { %10986 = vmatprep.subr.bf16.mxu1 %v10985_v27  ;;  %v11014_v44 = vpack.c.bf16 %v8389_v57, %v8388_v3 }
 0x752   : > { %11047 = vmatpush3.bf16.msra.mxu0 %v11046_v54 }
 0x753   : > { %10988 = vmatpush3.bf16.msra.mxu1 %v10987_v24  ;;  %11049 = vmatprep.subr.bf16.mxu0 %v11048_v17  ;;  %v8408_v24 = vld [vmem:[%s17970_s5 + $0x2058] sm:$0xff]  ;;  %v8409_v17 = vld [vmem:[%s17970_s5 + $0x2060] sm:$0xff] }
 0x754   : > { %10993 = vmatprep.subr.bf16.mxu1 %v10992_v7  ;;  %v11018_v7 = vpack.c.bf16 %v8391_v22, %v8390_v10  ;;  %v11020_v55 = vpack.c.bf16 %v8409_v17, %v8408_v24 }
 0x756   : > { %6955 = vmatmul.mubr.f32.vlgmr.msra.gmra.mrb[42].mxu1 %v6808_v5  ;;  %11051 = vmatpush3.bf16.msra.mxu0 %v11050_v2  ;;  %v7099_v2 = vrot.slane %v16416_v26, 7 }
 0x757   : > { %10995 = vmatpush3.bf16.msra.mxu1 %v10994_v62  ;;  %7177 = vmatprep.mubr.f32.mxu1 %v7100_v1 }
 0x758   : > { %11053 = vmatprep.subr.bf16.mxu0 %v11052_v53  ;;  %10997 = vmatprep.subr.bf16.mxu1 %v10996_v9 }
 0x75a   : > { %11055 = vmatpush3.bf16.msra.mxu0 %v11054_v52 }
 0x75b   : > { %10999 = vmatpush3.bf16.msra.mxu1 %v10998_v6  ;;  %11056 = vmatprep.subr.bf16.mxu0 %v18096_v56  ;;  %v8403_v56 = vld [vmem:[%s17970_s5 + $0x2030] sm:$0xff] }
 0x75c   : > { %11001 = vmatprep.subr.bf16.mxu1 %v11000_v39  ;;  %v11008_v35 = vpack.c.bf16 %v8403_v56, %v8402_v19 }
 0x75d   : > { %7248 = vmatmul.mubr.f32.vlgmr.msra.gmra.mrb[40].mxu0 %v7101_v48 }
 0x75e   : > { %11058 = vmatpush3.bf16.msra.mxu0 %v11057_v61  ;;  %9810 = vmatprep.mubr.msk.f32.mxu0 %vm11989_vm10, %v18097_v58 }
 0x75f   : > { %11003 = vmatpush3.bf16.msra.mxu1 %v11002_v12  ;;  %9808 = vmatprep.subr.mxu0 %v18097_v58  ;;  %v8404_v58 = vld [vmem:[%s17970_s5 + $0x2038] sm:$0xff] }
 0x760   : > { %11005 = vmatprep.subr.bf16.mxu1 %v11004_v16  ;;  %v11012_v46 = vpack.c.bf16 %v8405_v59, %v8404_v58 }
 0x762   : > { %9809 = vmatpush3.msk.msra.mxu0 %vm812_vm4, %v8444_v18  ;;  %vm7324_vm4 = vcmask 73728  }
 0x763   : > { %11007 = vmatpush3.bf16.msra.mxu1 %v11006_v0  ;;  %9811 = vmatmul.mubr.msk.f32.vlgmr.msra.gmra.mrb[14].mxu0 %vm2711_vm9, %v7103_v13 }
 0x764   : > { %11009 = vmatprep.subr.bf16.mxu1 %v11008_v35 }
 0x766   : > { %v9160_v36 = vpop.f32.mrb[30].mxu1 }
 0x767   : > { %11011 = vmatpush3.bf16.msra.mxu1 %v11010_v25  ;;  %v9161_v27 = vpop.f32.mrb[31].mxu1 }
 0x768   : > { %v9162_v11 = vadd.f32 %v9161_v27, %v9160_v36  ;;  %11013 = vmatprep.subr.bf16.mxu1 %v11012_v46 }
 0x769   : > { %v9195_v54 = vpop.f32.mrb[30].mxu0 }
 0x76a   : > { %v9196_v42 = vpop.f32.mrb[31].mxu0 }
 0x76b   : > { %11015 = vmatpush3.bf16.msra.mxu1 %v11014_v44  ;;  %v9197_v38 = vadd.f32 %v9196_v42, %v9195_v54 }
 0x76c   : > { %11017 = vmatprep.subr.bf16.mxu1 %v11016_v14 }
 0x76d   : > { %v5492_v60 = vadd.f32 %v9197_v38, %v9162_v11 }
 0x76f   : > { %v11069_v29 = vadd.f32 %v17772_v63, %v5492_v60  ;;  %11019 = vmatpush3.bf16.msra.mxu1 %v11018_v7 }
 0x770   : > { %11021 = vmatprep.subr.bf16.mxu1 %v11020_v55 }
 0x773   : > { %11023 = vmatpush3.bf16.msra.mxu1 %v11022_v31 }
 0x776   : > { %7178 = vmatmul.mubr.f32.vlgmr.msra.gmra.mrb[44].mxu1 %v7099_v2 }
 0x786   : > { %v9234_v62 = vpop.f32.mrb[32].mxu1 }
 0x787   : > { %v9235_v33 = vpop.f32.mrb[33].mxu1 }
 0x788   : > { %v9236_v30 = vadd.f32 %v9235_v33, %v9234_v62 }
 0x797   : > { %v9308_v5 = vpop.f32.mrb[32].mxu0 }
 0x798   : > { %v9309_v53 = vpop.f32.mrb[33].mxu0 }
 0x799   : > { %v9310_v9 = vadd.f32 %v9309_v53, %v9308_v5 }
 0x7a6   : > { %v9269_v37 = vpop.f32.mrb[34].mxu1 }
 0x7a7   : > { %v9270_v43 = vpop.f32.mrb[35].mxu1 }
 0x7a8   : > { %v9271_v1 = vadd.f32 %v9270_v43, %v9269_v37 }
 0x7aa   : > { %v5785_v40 = vadd.f32 %v9271_v1, %v9236_v30 }
 0x7ac   : > { %v11070_v50 = vadd.f32 %v11069_v29, %v5785_v40 }
 0x7bd   : > { %v9382_v52 = vpop.f32.mrb[34].mxu0 }
 0x7be   : > { %v9383_v63 = vpop.f32.mrb[35].mxu0 }
 0x7bf   : > { %v9384_v6 = vadd.f32 %v9383_v63, %v9382_v52 }
 0x7c8   : > { %v9343_v41 = vpop.f32.mrb[36].mxu1 }
 0x7c9   : > { %v9344_v21 = vpop.f32.mrb[37].mxu1 }
 0x7ca   : > { %v9345_v39 = vadd.f32 %v9344_v21, %v9343_v41 }
 0x7cc   : > { %v6078_v47 = vadd.f32 %v9345_v39, %v9310_v9 }
 0x7ce   : > { %v11071_v26 = vadd.f32 %v11070_v50, %v6078_v47 }
 0x7e3   : > { %v9456_v8 = vpop.f32.mrb[36].mxu0 }
 0x7e4   : > { %v9457_v32 = vpop.f32.mrb[37].mxu0 }
 0x7e5   : > { %v9458_v45 = vadd.f32 %v9457_v32, %v9456_v8 }
 0x7e8   : > { %v9417_v61 = vpop.f32.mrb[38].mxu1 }
 0x7e9   : > { %v9418_v48 = vpop.f32.mrb[39].mxu1 }
 0x7ea   : > { %v9419_v12 = vadd.f32 %v9418_v48, %v9417_v61 }
 0x7ec   : > { %v6371_v16 = vadd.f32 %v9419_v12, %v9384_v6 }
 0x7ee   : > { %v11072_v34 = vadd.f32 %v11071_v26, %v6371_v16 }
 0x808   : > { %v9491_v28 = vpop.f32.mrb[40].mxu1 }
 0x809   : > { %v9492_v19 = vpop.f32.mrb[41].mxu1 }
 0x80a   : > { %v9493_v56 = vadd.f32 %v9492_v19, %v9491_v28  ;;  %v9530_v18 = vpop.f32.mrb[38].mxu0 }
 0x80b   : > { %v9531_v0 = vpop.f32.mrb[39].mxu0 }
 0x80c   : > { %v6664_v35 = vadd.f32 %v9493_v56, %v9458_v45  ;;  %v9532_v23 = vadd.f32 %v9531_v0, %v9530_v18 }
 0x80e   : > { %v11073_v20 = vadd.f32 %v11072_v34, %v6664_v35 }
 0x829   : > { %v9565_v13 = vpop.f32.mrb[42].mxu1 }
 0x82a   : > { %v9566_v58 = vpop.f32.mrb[43].mxu1 }
 0x82b   : > { %v9567_v59 = vadd.f32 %v9566_v58, %v9565_v13 }
 0x82d   : > { %v6957_v25 = vadd.f32 %v9567_v59, %v9532_v23 }
 0x82f   : > { %v11074_v46 = vadd.f32 %v11073_v20, %v6957_v25 }
 0x830   : > { %v9639_v3 = vpop.f32.mrb[40].mxu0 }
 0x831   : > { %v9640_v57 = vpop.f32.mrb[41].mxu0 }
 0x832   : > { %v9641_v51 = vadd.f32 %v9640_v57, %v9639_v3 }
 0x836   : > { %v7319_v4 = vpop.f32.mrb[14].mxu0 }
 0x837   : > { %v9812_v36 = vpop.f32.mrb[15].mxu0 }
 0x849   : > { %v9604_v27 = vpop.f32.mrb[44].mxu1 }
 0x84a   : > { %v9605_v44 = vpop.f32.mrb[45].mxu1 }
 0x84b   : > { %v9606_v11 = vadd.f32 %v9605_v44, %v9604_v27 }
 0x84d   : > { %v7250_v14 = vadd.f32 %v9641_v51, %v9606_v11 }
 0x84f   : > { %v11075_v10 = vadd.f32 %v11074_v46, %v7250_v14 }
 0x851   : > { %v11076_v22 = vadd.f32 %v11075_v10, %v7319_v4 }
 0x853   : > { %7325 = vst.msk [vmem:[%s270_s17] sm:$0x1] %vm7324_vm4, %v11076_v22 }
 0x854   : > { %11918 = shalt.err (!%p11915_p3)
}
 0x855   : > { %s11919_s23 = scalar_lea.hbm %s17923_s15, 16  ;;  %s11923_s29 = scalar_lea.hbm %s17972_s7, 32 }
 0x856   : > { %p11920_p4 = scmp.ne.s32.totalorder %s17923_s15, %s11919_s23  ;;  %p11924_p9 = scmp.lt.u32.totalorder %s17923_s15, %s17972_s7 }
 0x857   : > { %p11925_p10 = scmp.lt.u32.totalorder %s11923_s29, %s11919_s23  ;;  %p11927_p12 = scmp.lt.u32.totalorder %s11919_s23, %s17923_s15 }
 0x858   : > { %p11921_p7 = pnand %p11920_p4, %p12074_p5 }
 0x859   : > { %p11926_p11 = por %p11925_p10, %p11924_p9 }
 0x85a   : > { %p11922_p8 = pneg %p11921_p7 }
 0x85b   : > { %p11928_p13 = por %p11927_p12, %p11926_p11 }
 0x85d   : > { %p11929_p0 = pnand %p11928_p13, %p11922_p8 }
 0x85f   : > { %11932 = shalt.err (!%p11929_p0)
}
 0x860   : > { %11105 = dma.vmem_to_hbm [thread:$0]  (%p12074_p5), %s17925_s19, 16, %s17923_s15, %s7327_s18  }
 0x861 PF: > { %p11111_p1 = scmp.ge.s32.totalorder %s11967_s27, 2  ;;  %s7351_s8 = sand.u32 1, %s11955_s24  }
 0x862   : > { %s7352_s13 = scalar_lea.sflag [#allocation3], %s7351_s8 }
 0x863   : > { %p11108_p2 = pnand %p11111_p1, %p12078_p6 }
 0x865   : > { %11950 = dma.done.wait (!%p11108_p2), %s7352_s13, 16  }
 0x866   : > { %11952 = vsyncadd (!%p11108_p2), %s7352_s13, 4294967280  ;;  %p17_p3 = scmp.ge.s32.totalorder %s12061_s30, 4   ;;  %s18105_s24 = smov %s11959_s25 }
 0x867   : > { %s18106_s25 = smov %s11963_s26  ;;  %s18107_s26 = smov %s12072_s10 }
 0x868   : > { %s18108_s27 = smov %s12061_s30  ;;  %19 = sbr.rel (!%p17_p3) target bundleno = 3 (0x3), region = 98 }
 0x86f   :  { %7356 = vsyncpa [#allocation3], 1 }
 0x870   :  { %7358 = vsyncpa [#allocation3 + $0x1], 1 }

</bundles_post_ra>
